<compile_context>
chip_gen: v7x
topology: tpu7x:2x2x1
jax: 0.10.0
libtpu: 0.0.40
codegen_flags: <defaults>
</compile_context>

<pallas_src>
import functools

import jax
import jax.numpy as jnp
from jax.experimental import pallas as pl
from jax.experimental.pallas import tpu as pltpu


# ----------------------------- small in-kernel helpers -------------------------------

def _round_up(v, m):
    return ((v + m - 1) // m) * m


def _pad_rows(x, pad_rows):
    """Zero-pad a flat (L, C) tensor with pad_rows rows at top and bottom (sublane-aligned)."""
    z = jnp.zeros((pad_rows, x.shape[1]), x.dtype)
    return jnp.concatenate([z, x, z], axis=0)


def _shifted_tap(xpad, pad_rows, L, W, di, dj, jj):
    """Return x shifted by (di, dj) in the original (H, W) image, flat (L, C) layout.

    Out-of-bounds rows read the zero padding; out-of-bounds columns are masked via jj.
    """
    s = di * W + dj
    t = jax.lax.slice(xpad, (pad_rows + s, 0), (pad_rows + s + L, xpad.shape[1]))
    if dj != 0:
        valid = jnp.logical_and(jj + dj >= 0, jj + dj < W)
        t = jnp.where(valid, t, 0.0)
    return t


def _dwconv_flat(x, w_taps, H, W, K):
    """Depthwise KxK 'same' conv on a flat row-major image. x: (H*W, Cd), w_taps: (K*K, Cd)."""
    L, _ = x.shape
    p = K // 2
    pad_rows = _round_up(p * W + p, 8)
    xp = _pad_rows(x, pad_rows)
    jj = jax.lax.broadcasted_iota(jnp.int32, (L, 1), 0) % W
    acc = jnp.zeros_like(x)
    for ki in range(K):
        for kj in range(K):
            tap = _shifted_tap(xp, pad_rows, L, W, ki - p, kj - p, jj)
            acc = acc + tap * w_taps[ki * K + kj:ki * K + kj + 1, :]
    return acc


def _mhsa_proj(qkv, wproj, num_heads, scale, extra=None):
    """Multi-head attention over a packed (L, 3C) qkv tile, fused with the output
    projection: returns (concat_h attn_h [+ extra]) @ Wproj as an (L, C) tile."""
    C = wproj.shape[0]
    L = qkv.shape[0]
    dh = C // num_heads
    if extra is not None:
        acc = jnp.dot(extra, wproj, preferred_element_type=jnp.float32)
    else:
        acc = jnp.zeros((L, C), jnp.float32)
    for h in range(num_heads):
        lo, hi = h * dh, (h + 1) * dh
        q = qkv[:, lo:hi]
        k = qkv[:, C + lo:C + hi]
        v = qkv[:, 2 * C + lo:2 * C + hi]
        s = jax.lax.dot_general(q, k, (((1,), (1,)), ((), ())),
                                preferred_element_type=jnp.float32) * scale
        s = s - jnp.max(s, axis=-1, keepdims=True)
        e = jnp.exp(s)
        p = e * pl.reciprocal(jnp.sum(e, axis=-1, keepdims=True), approx=True)
        o_h = jnp.dot(p, v, preferred_element_type=jnp.float32)           # (L, dh)
        acc = acc + jnp.dot(o_h, wproj[lo:hi, :], preferred_element_type=jnp.float32)
    return acc


# ----------------------------- Pallas kernels ---------------------------------------

def _ln_matmul_kernel(x_ref, g_ref, b_ref, w_ref, o_ref, *, eps):
    x = x_ref[...].astype(jnp.float32)
    mean = jnp.mean(x, axis=-1, keepdims=True)
    var = jnp.mean(jnp.square(x - mean), axis=-1, keepdims=True)
    xn = (x - mean) * jax.lax.rsqrt(var + eps) * g_ref[...].astype(jnp.float32) \
        + b_ref[...].astype(jnp.float32)
    o_ref[...] = jnp.dot(xn, w_ref[...].astype(jnp.float32),
                         preferred_element_type=jnp.float32).astype(o_ref.dtype)


def _row_tile(R, cap=256):
    for t in (cap, cap // 2, 64, 32, 16, 8):
        if t <= R and R % t == 0 and R // t >= 2:
            return t
    for t in (cap, cap // 2, 64, 32, 16, 8):
        if t <= R and R % t == 0:
            return t
    return R


def ln_matmul(x2d, gamma, beta, w, eps=1e-5):
    """Fused LayerNorm + matmul: LN(x) @ w.  x: (R, C), w: (C, N) -> (R, N)."""
    R, C = x2d.shape
    N = w.shape[1]
    bm = _row_tile(R)
    return pl.pallas_call(
        functools.partial(_ln_matmul_kernel, eps=eps),
        out_shape=jax.ShapeDtypeStruct((R, N), x2d.dtype),
        grid=(R // bm,),
        in_specs=[pl.BlockSpec((bm, C), lambda i: (i, 0)),
                  pl.BlockSpec((1, C), lambda i: (0, 0)),
                  pl.BlockSpec((1, C), lambda i: (0, 0)),
                  pl.BlockSpec((C, N), lambda i: (0, 0))],
        out_specs=pl.BlockSpec((bm, N), lambda i: (i, 0)),
        compiler_params=pltpu.CompilerParams(dimension_semantics=("parallel",)),
    )(x2d, gamma.reshape(1, C), beta.reshape(1, C), w)


def _swin_attn_kernel(qkv_ref, xres_ref, wproj_ref, wlepe_ref, o_ref,
                      *, num_heads, win, K, scale):
    qkv = qkv_ref[0].astype(jnp.float32)                 # (Lw, 3C)
    wproj = wproj_ref[...].astype(jnp.float32)           # (C, C)
    C = wproj.shape[0]
    v = qkv[:, 2 * C:]                                   # (Lw, C)
    lepe = _dwconv_flat(v, wlepe_ref[...].astype(jnp.float32), win, win, K)
    out = _mhsa_proj(qkv, wproj, num_heads, scale, extra=lepe)
    o_ref[0] = (xres_ref[0].astype(jnp.float32) + out).astype(o_ref.dtype)


def swin_attention(qkv_w, xres_w, wproj, wlepe, num_heads, win):
    """Per-window fused: MHSA (all heads) + LePE dwconv on V + projection + residual."""
    nWB, Lw, C3 = qkv_w.shape
    C = xres_w.shape[-1]
    K = int(round(wlepe.shape[0] ** 0.5))
    scale = (C // num_heads) ** -0.5
    wspec = lambda w: (w, 0, 0)
    return pl.pallas_call(
        functools.partial(_swin_attn_kernel, num_heads=num_heads, win=win, K=K, scale=scale),
        out_shape=jax.ShapeDtypeStruct((nWB, Lw, C), xres_w.dtype),
        grid=(nWB,),
        in_specs=[pl.BlockSpec((1, Lw, C3), wspec),
                  pl.BlockSpec((1, Lw, C), wspec),
                  pl.BlockSpec((C, C), lambda w: (0, 0)),
                  pl.BlockSpec((K * K, C), lambda w: (0, 0))],
        out_specs=pl.BlockSpec((1, Lw, C), wspec),
        compiler_params=pltpu.CompilerParams(dimension_semantics=("parallel",)),
    )(qkv_w, xres_w, wproj, wlepe)


def _global_attn_kernel(qkv_ref, xres_ref, wproj_ref, o_ref, *, num_heads, scale):
    qkv = qkv_ref[0].astype(jnp.float32)
    out = _mhsa_proj(qkv, wproj_ref[...].astype(jnp.float32), num_heads, scale)
    o_ref[0] = (xres_ref[0].astype(jnp.float32) + out).astype(o_ref.dtype)


def global_attention(qkv_b, xres_b, wproj, num_heads):
    """Per-image fused: global MHSA (all heads) + projection + residual (ConvNat approx)."""
    B, L, C3 = qkv_b.shape
    C = xres_b.shape[-1]
    scale = (C // num_heads) ** -0.5
    bspec = lambda b: (b, 0, 0)
    return pl.pallas_call(
        functools.partial(_global_attn_kernel, num_heads=num_heads, scale=scale),
        out_shape=jax.ShapeDtypeStruct((B, L, C), xres_b.dtype),
        grid=(B,),
        in_specs=[pl.BlockSpec((1, L, C3), bspec),
                  pl.BlockSpec((1, L, C), bspec),
                  pl.BlockSpec((C, C), lambda b: (0, 0))],
        out_specs=pl.BlockSpec((1, L, C), bspec),
        compiler_params=pltpu.CompilerParams(dimension_semantics=("parallel",)),
    )(qkv_b, xres_b, wproj)


def _mlp_kernel(x1_ref, g_ref, b_ref, win_ref, wdw_ref, wout_ref, o_ref, *, eps, H, W):
    x1 = x1_ref[0].astype(jnp.float32)                                  # (L, C)
    mean = jnp.mean(x1, axis=-1, keepdims=True)
    var = jnp.mean(jnp.square(x1 - mean), axis=-1, keepdims=True)
    xn = (x1 - mean) * jax.lax.rsqrt(var + eps) * g_ref[...].astype(jnp.float32) \
        + b_ref[...].astype(jnp.float32)
    h = jnp.dot(xn, win_ref[...].astype(jnp.float32),
                preferred_element_type=jnp.float32)                     # (L, hidden)
    hidden = h.shape[-1]
    dw = _dwconv_flat(h, wdw_ref[...].astype(jnp.float32), H, W, 3)     # depthwise 3x3
    a = dw[:, :hidden // 2]
    g2 = dw[:, hidden // 2:]
    gelu = 0.5 * a * (1.0 + jax.lax.erf(a * 0.7071067811865476))        # exact (erf) GELU
    out = jnp.dot(gelu * g2, wout_ref[...].astype(jnp.float32),
                  preferred_element_type=jnp.float32)                   # project_out
    o_ref[0] = (x1 + out).astype(o_ref.dtype)


def mlp_fused(x1_blc, gamma, beta, w_in, w_dw, w_out, H, W):
    """Fused: LayerNorm -> 1x1 conv -> 3x3 depthwise -> gated GELU -> 1x1 conv -> +residual."""
    B, L, C = x1_blc.shape
    hidden = w_in.shape[1]
    bspec = lambda b: (b, 0, 0)
    return pl.pallas_call(
        functools.partial(_mlp_kernel, eps=1e-5, H=H, W=W),
        out_shape=jax.ShapeDtypeStruct((B, L, C), x1_blc.dtype),
        grid=(B,),
        in_specs=[pl.BlockSpec((1, L, C), bspec),
                  pl.BlockSpec((1, C), lambda b: (0, 0)),
                  pl.BlockSpec((1, C), lambda b: (0, 0)),
                  pl.BlockSpec((C, hidden), lambda b: (0, 0)),
                  pl.BlockSpec((9, hidden), lambda b: (0, 0)),
                  pl.BlockSpec((hidden // 2, C), lambda b: (0, 0))],
        out_specs=pl.BlockSpec((1, L, C), bspec),
        compiler_params=pltpu.CompilerParams(dimension_semantics=("parallel",)),
    )(x1_blc, gamma.reshape(1, C), beta.reshape(1, C), w_in, w_dw, w_out)


def _conv3x3_kernel(x_ref, res_ref, w_ref, b_ref, o_ref, *, H, W):
    x = x_ref[0].astype(jnp.float32)                                   # (L, Cin)
    L, Cin = x.shape
    Cout = o_ref.shape[-1]
    w = w_ref[...].astype(jnp.float32)                                 # (9, Cin, Cout)
    pad_rows = _round_up(W + 1, 8)
    xp = _pad_rows(x, pad_rows)
    jj = jax.lax.broadcasted_iota(jnp.int32, (L, 1), 0) % W
    acc = jnp.zeros((L, Cout), jnp.float32)
    for ki in range(3):
        for kj in range(3):
            tap = _shifted_tap(xp, pad_rows, L, W, ki - 1, kj - 1, jj)
            acc = acc + jnp.dot(tap, w[ki * 3 + kj], preferred_element_type=jnp.float32)
    acc = acc + b_ref[...].astype(jnp.float32)
    o_ref[0] = (res_ref[0].astype(jnp.float32) + acc).astype(o_ref.dtype)


def conv3x3_residual(x_blc, res_blc, w_taps, bias, H, W):
    """Final 3x3 conv (padding 1) as 9 accumulated tap matmuls + bias + outer residual."""
    B, L, Cin = x_blc.shape
    Cout = w_taps.shape[-1]
    bspec = lambda b: (b, 0, 0)
    return pl.pallas_call(
        functools.partial(_conv3x3_kernel, H=H, W=W),
        out_shape=jax.ShapeDtypeStruct((B, L, Cout), x_blc.dtype),
        grid=(B,),
        in_specs=[pl.BlockSpec((1, L, Cin), bspec),
                  pl.BlockSpec((1, L, Cout), bspec),
                  pl.BlockSpec((9, Cin, Cout), lambda b: (0, 0, 0)),
                  pl.BlockSpec((1, Cout), lambda b: (0, 0))],
        out_specs=pl.BlockSpec((1, L, Cout), bspec),
        compiler_params=pltpu.CompilerParams(dimension_semantics=("parallel",)),
    )(x_blc, res_blc, w_taps, bias.reshape(1, Cout))


# ----------------------------- glue (windowing, XLA-side reshapes only) ---------------

def window_partition(x, ws):
    B, H, W, C = x.shape
    x = x.reshape(B, H // ws, ws, W // ws, ws, C)
    return x.transpose(0, 1, 3, 2, 4, 5).reshape(-1, ws, ws, C)


def window_reverse(wins, ws, H, W):
    C = wins.shape[-1]
    B = wins.shape[0] // ((H // ws) * (W // ws))
    x = wins.reshape(B, H // ws, W // ws, ws, ws, C)
    return x.transpose(0, 1, 3, 2, 4, 5).reshape(B, H, W, C)


# ----------------------------- blocks / layer ----------------------------------------

def swin_biformer_block(x_nlc, p, H, W, num_heads, win_size):
    B, L, C = x_nlc.shape
    win = min(win_size, H, W)     # Swin_BiFormer_Attention clamps win_size; shift_size -> 0
    xw = window_partition(x_nlc.reshape(B, H, W, C), win).reshape(-1, win * win, C)
    nWB, Lw, _ = xw.shape
    qkv = ln_matmul(xw.reshape(nWB * Lw, C), p['norm1_g'], p['norm1_b'], p['wqkv'])
    x1_w = swin_attention(qkv.reshape(nWB, Lw, 3 * C), xw,
                          p['wproj'], p['w_lepe'], num_heads, win)   # x + attn (window order)
    x1 = window_reverse(x1_w.reshape(nWB, win, win, C), win, H, W).reshape(B, L, C)
    return mlp_fused(x1, p['norm2_g'], p['norm2_b'], p['w_in'], p['w_dw'], p['w_out'], H, W)


def convnat_block(x_nlc, p, H, W, num_heads):
    B, L, C = x_nlc.shape
    qkv = ln_matmul(x_nlc.reshape(B * L, C), p['norm1_g'], p['norm1_b'], p['wqkv'])
    x1 = global_attention(qkv.reshape(B, L, 3 * C), x_nlc, p['wproj'], num_heads)
    return mlp_fused(x1, p['norm2_g'], p['norm2_b'], p['w_in'], p['w_dw'], p['w_out'], H, W)


def swin_biformer_layer(x_nchw, params, *, num_heads, win_size):
    B, C, H, W = x_nchw.shape
    x_nlc = jnp.transpose(x_nchw, (0, 2, 3, 1)).reshape(B, H * W, C)   # NCHW -> NLC
    res = x_nlc
    x = x_nlc
    for i, blk in enumerate(params['blocks']):
        if i % 2 == 0:
            x = swin_biformer_block(x, blk, H, W, num_heads, win_size)
        else:
            x = convnat_block(x, blk, H, W, num_heads)
    y = conv3x3_residual(x, res, params['conv_w'], params['conv_b'], H, W)  # res + conv(x)
    return jnp.transpose(y.reshape(B, H, W, C), (0, 3, 1, 2))               # back to NCHW


# ----------------------------- deterministic parameter init --------------------------

def _init_block(key, dim, hidden, side_dwconv, with_lepe):
    ks = jax.random.split(key, 6)

    def nrm(k, shape, scale=0.05):
        return jax.random.normal(k, shape, jnp.float32) * scale

    p = dict(
        norm1_g=jnp.ones((dim,), jnp.float32),
        norm1_b=jnp.zeros((dim,), jnp.float32),
        wqkv=nrm(ks[0], (dim, 3 * dim)),
        wproj=nrm(ks[1], (dim, dim)),
        norm2_g=jnp.ones((dim,), jnp.float32),
        norm2_b=jnp.zeros((dim,), jnp.float32),
        w_in=nrm(ks[2], (dim, hidden)),
        w_dw=nrm(ks[3], (9, hidden)),                 # 3x3 depthwise taps, row-major (ki,kj)
        w_out=nrm(ks[4], (hidden // 2, dim)),
    )
    if with_lepe:
        p['w_lepe'] = nrm(ks[5], (side_dwconv * side_dwconv, dim))   # KxK depthwise taps
    return p


def init_params(key, dim, depth, mlp_ratio, side_dwconv):
    hidden = int(dim * mlp_ratio)
    keys = jax.random.split(key, depth + 2)
    blocks = [_init_block(keys[i], dim, hidden, side_dwconv, with_lepe=(i % 2 == 0))
              for i in range(depth)]
    return dict(
        blocks=blocks,
        conv_w=jax.random.normal(keys[depth], (9, dim, dim), jnp.float32) * 0.05,  # taps,Cin,Cout
        conv_b=jax.random.normal(keys[depth + 1], (dim,), jnp.float32) * 0.05,
    )


# ----------------------------- demo --------------------------------------------------

if __name__ == "__main__":
    key = jax.random.PRNGKey(0)
    kx, kp = jax.random.split(key)

    B, C, H, W = 2, 32, 8, 8
    depth, num_heads, win_size, mlp_ratio, side_dwconv = 2, 4, 8, 2, 5

    x = jax.random.normal(kx, (B, C, H, W), jnp.float32)            # NCHW, like PyTorch
    params = init_params(kp, C, depth, mlp_ratio, side_dwconv)

    @jax.jit
    def run(x, params):
        return swin_biformer_layer(x, params, num_heads=num_heads, win_size=win_size)

    out = jax.block_until_ready(run(x, params))
    assert out.shape == (B, C, H, W) and out.dtype == jnp.float32
    print("KERNEL_OK")
</pallas_src>

<mosaic_0001>
module attributes {stable_mosaic.version = 11 : i64} {
  func.func @_ln_matmul_kernel(%arg0: i32, %arg1: memref<64x32xf32, #tpu.memory_space<vmem>>, %arg2: memref<1x32xf32, #tpu.memory_space<vmem>>, %arg3: memref<1x32xf32, #tpu.memory_space<vmem>>, %arg4: memref<32x96xf32, #tpu.memory_space<vmem>>, %arg5: memref<64x96xf32, #tpu.memory_space<vmem>>) attributes {dimension_semantics = [#tpu.dimension_semantics<parallel>], iteration_bounds = array<i64: 2>, scalar_prefetch = 0 : i64, scratch_operands = 0 : i64, tpu.core_type = #tpu.core_type<tc>, window_params = [{transform_indices = @transform_0, window_bounds = array<i64: 64, 32>}, {pipeline_mode = #tpu.pipeline_mode<synchronous>, transform_indices = @transform_1, window_bounds = array<i64: 1, 32>}, {pipeline_mode = #tpu.pipeline_mode<synchronous>, transform_indices = @transform_2, window_bounds = array<i64: 1, 32>}, {pipeline_mode = #tpu.pipeline_mode<synchronous>, transform_indices = @transform_3, window_bounds = array<i64: 32, 96>}, {transform_indices = @transform_4, window_bounds = array<i64: 64, 96>}]} {
    %c0 = arith.constant 0 : index
    %c0_0 = arith.constant 0 : index
    %0 = vector.load %arg1[%c0, %c0_0] : memref<64x32xf32, #tpu.memory_space<vmem>>, vector<64x32xf32>
    %cst = arith.constant dense<0.000000e+00> : vector<64xf32>
    %1 = vector.multi_reduction <add>, %0, %cst [1] : vector<64x32xf32> to vector<64xf32>
    %2 = vector.shape_cast %1 : vector<64xf32> to vector<64x1xf32>
    %cst_1 = arith.constant 3.200000e+01 : f32
    %3 = vector.broadcast %cst_1 : f32 to vector<64x1xf32>
    %4 = arith.divf %2, %3 : vector<64x1xf32>
    %5 = vector.broadcast %4 : vector<64x1xf32> to vector<64x32xf32>
    %6 = arith.subf %0, %5 : vector<64x32xf32>
    %7 = arith.mulf %6, %6 : vector<64x32xf32>
    %cst_2 = arith.constant dense<0.000000e+00> : vector<64xf32>
    %8 = vector.multi_reduction <add>, %7, %cst_2 [1] : vector<64x32xf32> to vector<64xf32>
    %9 = vector.shape_cast %8 : vector<64xf32> to vector<64x1xf32>
    %cst_3 = arith.constant 3.200000e+01 : f32
    %10 = vector.broadcast %cst_3 : f32 to vector<64x1xf32>
    %11 = arith.divf %9, %10 : vector<64x1xf32>
    %12 = vector.broadcast %4 : vector<64x1xf32> to vector<64x32xf32>
    %13 = arith.subf %0, %12 : vector<64x32xf32>
    %cst_4 = arith.constant 9.99999974E-6 : f32
    %14 = vector.broadcast %cst_4 : f32 to vector<64x1xf32>
    %15 = arith.addf %11, %14 : vector<64x1xf32>
    %16 = math.rsqrt %15 : vector<64x1xf32>
    %17 = vector.broadcast %16 : vector<64x1xf32> to vector<64x32xf32>
    %18 = arith.mulf %13, %17 : vector<64x32xf32>
    %c0_5 = arith.constant 0 : index
    %c0_6 = arith.constant 0 : index
    %19 = vector.load %arg2[%c0_5, %c0_6] : memref<1x32xf32, #tpu.memory_space<vmem>>, vector<1x32xf32>
    %20 = vector.broadcast %19 : vector<1x32xf32> to vector<64x32xf32>
    %21 = arith.mulf %18, %20 : vector<64x32xf32>
    %c0_7 = arith.constant 0 : index
    %c0_8 = arith.constant 0 : index
    %22 = vector.load %arg3[%c0_7, %c0_8] : memref<1x32xf32, #tpu.memory_space<vmem>>, vector<1x32xf32>
    %23 = vector.broadcast %22 : vector<1x32xf32> to vector<64x32xf32>
    %24 = arith.addf %21, %23 : vector<64x32xf32>
    %c0_9 = arith.constant 0 : index
    %c0_10 = arith.constant 0 : index
    %25 = vector.load %arg4[%c0_9, %c0_10] : memref<32x96xf32, #tpu.memory_space<vmem>>, vector<32x96xf32>
    %cst_11 = arith.constant dense<0.000000e+00> : vector<64x96xf32>
    %26 = tpu.matmul %24, %25, %cst_11 {dimension_numbers = #tpu.dot_dimension_numbers<[1], [0], [0], [1], [0, 0, 1, 1], [], []>} : vector<64x32xf32>, vector<32x96xf32>, vector<64x96xf32> -> vector<64x96xf32>
    %c0_12 = arith.constant 0 : index
    %c0_13 = arith.constant 0 : index
    %27 = vector.load %arg5[%c0_12, %c0_13] : memref<64x96xf32, #tpu.memory_space<vmem>>, vector<64x96xf32>
    tpu.vector_store %arg5[%c0_12, %c0_13], %26 {strides = array<i32>} : memref<64x96xf32, #tpu.memory_space<vmem>>, vector<64x96xf32>,
    return
  }
  func.func @transform_0(%arg0: i32) -> (i32, i32) {
    %c0_i32 = arith.constant 0 : i32
    %c0_i32_0 = arith.constant 0 : i32
    return %arg0, %c0_i32 : i32, i32
  }
  func.func @transform_1(%arg0: i32) -> (i32, i32) {
    %c0_i32 = arith.constant 0 : i32
    %c0_i32_0 = arith.constant 0 : i32
    %c0_i32_1 = arith.constant 0 : i32
    return %c0_i32, %c0_i32_0 : i32, i32
  }
  func.func @transform_2(%arg0: i32) -> (i32, i32) {
    %c0_i32 = arith.constant 0 : i32
    %c0_i32_0 = arith.constant 0 : i32
    %c0_i32_1 = arith.constant 0 : i32
    return %c0_i32, %c0_i32_0 : i32, i32
  }
  func.func @transform_3(%arg0: i32) -> (i32, i32) {
    %c0_i32 = arith.constant 0 : i32
    %c0_i32_0 = arith.constant 0 : i32
    %c0_i32_1 = arith.constant 0 : i32
    return %c0_i32, %c0_i32_0 : i32, i32
  }
  func.func @transform_4(%arg0: i32) -> (i32, i32) {
    %c0_i32 = arith.constant 0 : i32
    %c0_i32_0 = arith.constant 0 : i32
    return %arg0, %c0_i32 : i32, i32
  }
}

module attributes {stable_mosaic.version = 11 : i64} {
  func.func @_ln_matmul_kernel(%arg0: i32, %arg1: memref<64x32xf32, #tpu.memory_space<vmem>>, %arg2: memref<1x32xf32, #tpu.memory_space<vmem>>, %arg3: memref<1x32xf32, #tpu.memory_space<vmem>>, %arg4: memref<32x96xf32, #tpu.memory_space<vmem>>, %arg5: memref<64x96xf32, #tpu.memory_space<vmem>>) attributes {dimension_semantics = [#tpu.dimension_semantics<parallel>], iteration_bounds = array<i64: 2>, scalar_prefetch = 0 : i64, scratch_operands = 0 : i64, tpu.core_type = #tpu.core_type<tc>, window_params = [{transform_indices = @transform_0, window_bounds = array<i64: 64, 32>}, {pipeline_mode = #tpu.pipeline_mode<synchronous>, transform_indices = @transform_1, window_bounds = array<i64: 1, 32>}, {pipeline_mode = #tpu.pipeline_mode<synchronous>, transform_indices = @transform_2, window_bounds = array<i64: 1, 32>}, {pipeline_mode = #tpu.pipeline_mode<synchronous>, transform_indices = @transform_3, window_bounds = array<i64: 32, 96>}, {transform_indices = @transform_4, window_bounds = array<i64: 64, 96>}]} {
    %c0 = arith.constant 0 : index
    %c0_0 = arith.constant 0 : index
    %0 = vector.load %arg1[%c0, %c0_0] : memref<64x32xf32, #tpu.memory_space<vmem>>, vector<64x32xf32>
    %cst = arith.constant dense<0.000000e+00> : vector<64xf32>
    %1 = vector.multi_reduction <add>, %0, %cst [1] : vector<64x32xf32> to vector<64xf32>
    %2 = vector.shape_cast %1 : vector<64xf32> to vector<64x1xf32>
    %cst_1 = arith.constant 3.200000e+01 : f32
    %3 = vector.broadcast %cst_1 : f32 to vector<64x1xf32>
    %4 = arith.divf %2, %3 : vector<64x1xf32>
    %5 = vector.broadcast %4 : vector<64x1xf32> to vector<64x32xf32>
    %6 = arith.subf %0, %5 : vector<64x32xf32>
    %7 = arith.mulf %6, %6 : vector<64x32xf32>
    %cst_2 = arith.constant dense<0.000000e+00> : vector<64xf32>
    %8 = vector.multi_reduction <add>, %7, %cst_2 [1] : vector<64x32xf32> to vector<64xf32>
    %9 = vector.shape_cast %8 : vector<64xf32> to vector<64x1xf32>
    %cst_3 = arith.constant 3.200000e+01 : f32
    %10 = vector.broadcast %cst_3 : f32 to vector<64x1xf32>
    %11 = arith.divf %9, %10 : vector<64x1xf32>
    %12 = vector.broadcast %4 : vector<64x1xf32> to vector<64x32xf32>
    %13 = arith.subf %0, %12 : vector<64x32xf32>
    %cst_4 = arith.constant 9.99999974E-6 : f32
    %14 = vector.broadcast %cst_4 : f32 to vector<64x1xf32>
    %15 = arith.addf %11, %14 : vector<64x1xf32>
    %16 = math.rsqrt %15 : vector<64x1xf32>
    %17 = vector.broadcast %16 : vector<64x1xf32> to vector<64x32xf32>
    %18 = arith.mulf %13, %17 : vector<64x32xf32>
    %c0_5 = arith.constant 0 : index
    %c0_6 = arith.constant 0 : index
    %19 = vector.load %arg2[%c0_5, %c0_6] : memref<1x32xf32, #tpu.memory_space<vmem>>, vector<1x32xf32>
    %20 = vector.broadcast %19 : vector<1x32xf32> to vector<64x32xf32>
    %21 = arith.mulf %18, %20 : vector<64x32xf32>
    %c0_7 = arith.constant 0 : index
    %c0_8 = arith.constant 0 : index
    %22 = vector.load %arg3[%c0_7, %c0_8] : memref<1x32xf32, #tpu.memory_space<vmem>>, vector<1x32xf32>
    %23 = vector.broadcast %22 : vector<1x32xf32> to vector<64x32xf32>
    %24 = arith.addf %21, %23 : vector<64x32xf32>
    %c0_9 = arith.constant 0 : index
    %c0_10 = arith.constant 0 : index
    %25 = vector.load %arg4[%c0_9, %c0_10] : memref<32x96xf32, #tpu.memory_space<vmem>>, vector<32x96xf32>
    %cst_11 = arith.constant dense<0.000000e+00> : vector<64x96xf32>
    %26 = tpu.matmul %24, %25, %cst_11 {dimension_numbers = #tpu.dot_dimension_numbers<[1], [0], [0], [1], [0, 0, 1, 1], [], []>} : vector<64x32xf32>, vector<32x96xf32>, vector<64x96xf32> -> vector<64x96xf32>
    %c0_12 = arith.constant 0 : index
    %c0_13 = arith.constant 0 : index
    %27 = vector.load %arg5[%c0_12, %c0_13] : memref<64x96xf32, #tpu.memory_space<vmem>>, vector<64x96xf32>
    tpu.vector_store %arg5[%c0_12, %c0_13], %26 {strides = array<i32>} : memref<64x96xf32, #tpu.memory_space<vmem>>, vector<64x96xf32>,
    return
  }
  func.func @transform_0(%arg0: i32) -> (i32, i32) {
    %c0_i32 = arith.constant 0 : i32
    %c0_i32_0 = arith.constant 0 : i32
    return %arg0, %c0_i32 : i32, i32
  }
  func.func @transform_1(%arg0: i32) -> (i32, i32) {
    %c0_i32 = arith.constant 0 : i32
    %c0_i32_0 = arith.constant 0 : i32
    %c0_i32_1 = arith.constant 0 : i32
    return %c0_i32, %c0_i32_0 : i32, i32
  }
  func.func @transform_2(%arg0: i32) -> (i32, i32) {
    %c0_i32 = arith.constant 0 : i32
    %c0_i32_0 = arith.constant 0 : i32
    %c0_i32_1 = arith.constant 0 : i32
    return %c0_i32, %c0_i32_0 : i32, i32
  }
  func.func @transform_3(%arg0: i32) -> (i32, i32) {
    %c0_i32 = arith.constant 0 : i32
    %c0_i32_0 = arith.constant 0 : i32
    %c0_i32_1 = arith.constant 0 : i32
    return %c0_i32, %c0_i32_0 : i32, i32
  }
  func.func @transform_4(%arg0: i32) -> (i32, i32) {
    %c0_i32 = arith.constant 0 : i32
    %c0_i32_0 = arith.constant 0 : i32
    return %arg0, %c0_i32 : i32, i32
  }
}

module attributes {stable_mosaic.version = 11 : i64} {
  func.func @_mlp_kernel(%arg0: i32, %arg1: memref<1x64x32xf32, #tpu.memory_space<vmem>>, %arg2: memref<1x32xf32, #tpu.memory_space<vmem>>, %arg3: memref<1x32xf32, #tpu.memory_space<vmem>>, %arg4: memref<32x64xf32, #tpu.memory_space<vmem>>, %arg5: memref<9x64xf32, #tpu.memory_space<vmem>>, %arg6: memref<32x32xf32, #tpu.memory_space<vmem>>, %arg7: memref<1x64x32xf32, #tpu.memory_space<vmem>>) attributes {dimension_semantics = [#tpu.dimension_semantics<parallel>], iteration_bounds = array<i64: 2>, scalar_prefetch = 0 : i64, scratch_operands = 0 : i64, tpu.core_type = #tpu.core_type<tc>, window_params = [{transform_indices = @transform_0, window_bounds = array<i64: 1, 64, 32>}, {pipeline_mode = #tpu.pipeline_mode<synchronous>, transform_indices = @transform_1, window_bounds = array<i64: 1, 32>}, {pipeline_mode = #tpu.pipeline_mode<synchronous>, transform_indices = @transform_2, window_bounds = array<i64: 1, 32>}, {pipeline_mode = #tpu.pipeline_mode<synchronous>, transform_indices = @transform_3, window_bounds = array<i64: 32, 64>}, {pipeline_mode = #tpu.pipeline_mode<synchronous>, transform_indices = @transform_4, window_bounds = array<i64: 9, 64>}, {pipeline_mode = #tpu.pipeline_mode<synchronous>, transform_indices = @transform_5, window_bounds = array<i64: 32, 32>}, {transform_indices = @transform_6, window_bounds = array<i64: 1, 64, 32>}]} {
    %c0 = arith.constant 0 : index
    %c0_0 = arith.constant 0 : index
    %c0_1 = arith.constant 0 : index
    %0 = vector.load %arg1[%c0, %c0_0, %c0_1] : memref<1x64x32xf32, #tpu.memory_space<vmem>>, vector<1x64x32xf32>
    %1 = vector.shape_cast %0 : vector<1x64x32xf32> to vector<64x32xf32>
    %cst = arith.constant dense<0.000000e+00> : vector<64xf32>
    %2 = vector.multi_reduction <add>, %1, %cst [1] : vector<64x32xf32> to vector<64xf32>
    %3 = vector.shape_cast %2 : vector<64xf32> to vector<64x1xf32>
    %cst_2 = arith.constant 3.200000e+01 : f32
    %4 = vector.broadcast %cst_2 : f32 to vector<64x1xf32>
    %5 = arith.divf %3, %4 : vector<64x1xf32>
    %6 = vector.broadcast %5 : vector<64x1xf32> to vector<64x32xf32>
    %7 = arith.subf %1, %6 : vector<64x32xf32>
    %8 = arith.mulf %7, %7 : vector<64x32xf32>
    %cst_3 = arith.constant dense<0.000000e+00> : vector<64xf32>
    %9 = vector.multi_reduction <add>, %8, %cst_3 [1] : vector<64x32xf32> to vector<64xf32>
    %10 = vector.shape_cast %9 : vector<64xf32> to vector<64x1xf32>
    %cst_4 = arith.constant 3.200000e+01 : f32
    %11 = vector.broadcast %cst_4 : f32 to vector<64x1xf32>
    %12 = arith.divf %10, %11 : vector<64x1xf32>
    %13 = vector.broadcast %5 : vector<64x1xf32> to vector<64x32xf32>
    %14 = arith.subf %1, %13 : vector<64x32xf32>
    %cst_5 = arith.constant 9.99999974E-6 : f32
    %15 = vector.broadcast %cst_5 : f32 to vector<64x1xf32>
    %16 = arith.addf %12, %15 : vector<64x1xf32>
    %17 = math.rsqrt %16 : vector<64x1xf32>
    %18 = vector.broadcast %17 : vector<64x1xf32> to vector<64x32xf32>
    %19 = arith.mulf %14, %18 : vector<64x32xf32>
    %c0_6 = arith.constant 0 : index
    %c0_7 = arith.constant 0 : index
    %20 = vector.load %arg2[%c0_6, %c0_7] : memref<1x32xf32, #tpu.memory_space<vmem>>, vector<1x32xf32>
    %21 = vector.broadcast %20 : vector<1x32xf32> to vector<64x32xf32>
    %22 = arith.mulf %19, %21 : vector<64x32xf32>
    %c0_8 = arith.constant 0 : index
    %c0_9 = arith.constant 0 : index
    %23 = vector.load %arg3[%c0_8, %c0_9] : memref<1x32xf32, #tpu.memory_space<vmem>>, vector<1x32xf32>
    %24 = vector.broadcast %23 : vector<1x32xf32> to vector<64x32xf32>
    %25 = arith.addf %22, %24 : vector<64x32xf32>
    %c0_10 = arith.constant 0 : index
    %c0_11 = arith.constant 0 : index
    %26 = vector.load %arg4[%c0_10, %c0_11] : memref<32x64xf32, #tpu.memory_space<vmem>>, vector<32x64xf32>
    %cst_12 = arith.constant dense<0.000000e+00> : vector<64x64xf32>
    %27 = tpu.matmul %25, %26, %cst_12 {dimension_numbers = #tpu.dot_dimension_numbers<[1], [0], [0], [1], [0, 0, 1, 1], [], []>} : vector<64x32xf32>, vector<32x64xf32>, vector<64x64xf32> -> vector<64x64xf32>
    %c0_13 = arith.constant 0 : index
    %c0_14 = arith.constant 0 : index
    %28 = vector.load %arg5[%c0_13, %c0_14] : memref<9x64xf32, #tpu.memory_space<vmem>>, vector<9x64xf32>
    %cst_15 = arith.constant 0.000000e+00 : f32
    %29 = vector.broadcast %cst_15 : f32 to vector<16x64xf32>
    %30 = tpu.concatenate %29, %27, %29 in 0 : vector<16x64xf32>, vector<64x64xf32>, vector<16x64xf32> -> vector<96x64xf32>
    %31 = tpu.iota {dimensions = array<i32: 0>} : vector<64x1xi32>
    %c8_i32 = arith.constant 8 : i32
    %c0_i32 = arith.constant 0 : i32
    %32 = arith.cmpi eq, %c8_i32, %c0_i32 : i32
    %c1_i32 = arith.constant 1 : i32
    %33 = arith.select %32, %c1_i32, %c8_i32 : i32
    %34 = vector.broadcast %33 : i32 to vector<64x1xi32>
    %35 = arith.remsi %31, %34 : vector<64x1xi32>
    %c0_i32_16 = arith.constant 0 : i32
    %36 = vector.broadcast %c0_i32_16 : i32 to vector<64x1xi32>
    %37 = arith.cmpi ne, %35, %36 : vector<64x1xi32>
    %c0_i32_17 = arith.constant 0 : i32
    %38 = vector.broadcast %c0_i32_17 : i32 to vector<64x1xi32>
    %39 = arith.cmpi slt, %35, %38 : vector<64x1xi32>
    %c0_i32_18 = arith.constant 0 : i32
    %40 = arith.cmpi slt, %33, %c0_i32_18 : i32
    %41 = vector.broadcast %40 : i1 to vector<64x1xi1>
    %42 = vector.broadcast %41 : vector<64x1xi1> to vector<64x1xi1>
    %43 = arith.xori %39, %42 : vector<64x1xi1>
    %44 = arith.andi %43, %37 : vector<64x1xi1>
    %45 = vector.broadcast %33 : i32 to vector<64x1xi32>
    %46 = arith.addi %35, %45 : vector<64x1xi32>
    %47 = arith.select %44, %46, %35 : vector<64x1xi1>, vector<64x1xi32>
    %cst_19 = arith.constant 0.000000e+00 : f32
    %48 = vector.broadcast %cst_19 : f32 to vector<64x64xf32>
    %49 = vector.extract_strided_slice %30 {offsets = [7, 0], sizes = [64, 64], strides = [1, 1]} : vector<96x64xf32> to vector<64x64xf32>
    %c-1_i32 = arith.constant -1 : i32
    %50 = vector.broadcast %c-1_i32 : i32 to vector<64x1xi32>
    %51 = arith.addi %47, %50 : vector<64x1xi32>
    %c0_i32_20 = arith.constant 0 : i32
    %52 = vector.broadcast %c0_i32_20 : i32 to vector<64x1xi32>
    %53 = arith.cmpi sge, %51, %52 : vector<64x1xi32>
    %c-1_i32_21 = arith.constant -1 : i32
    %54 = vector.broadcast %c-1_i32_21 : i32 to vector<64x1xi32>
    %55 = arith.addi %47, %54 : vector<64x1xi32>
    %c8_i32_22 = arith.constant 8 : i32
    %56 = vector.broadcast %c8_i32_22 : i32 to vector<64x1xi32>
    %57 = arith.cmpi slt, %55, %56 : vector<64x1xi32>
    %58 = arith.andi %53, %57 : vector<64x1xi1>
    %cst_23 = arith.constant 0.000000e+00 : f32
    %59 = vector.shape_cast %58 : vector<64x1xi1> to vector<64x1xi1>
    %60 = vector.broadcast %59 : vector<64x1xi1> to vector<64x64xi1>
    %61 = vector.broadcast %cst_23 : f32 to vector<64x64xf32>
    %62 = arith.select %60, %49, %61 : vector<64x64xi1>, vector<64x64xf32>
    %63 = vector.extract_strided_slice %28 {offsets = [0, 0], sizes = [1, 64], strides = [1, 1]} : vector<9x64xf32> to vector<1x64xf32>
    %64 = vector.broadcast %63 : vector<1x64xf32> to vector<64x64xf32>
    %65 = arith.mulf %62, %64 : vector<64x64xf32>
    %66 = arith.addf %48, %65 : vector<64x64xf32>
    %67 = vector.extract_strided_slice %30 {offsets = [8, 0], sizes = [64, 64], strides = [1, 1]} : vector<96x64xf32> to vector<64x64xf32>
    %68 = vector.extract_strided_slice %28 {offsets = [1, 0], sizes = [1, 64], strides = [1, 1]} : vector<9x64xf32> to vector<1x64xf32>
    %69 = vector.broadcast %68 : vector<1x64xf32> to vector<64x64xf32>
    %70 = arith.mulf %67, %69 : vector<64x64xf32>
    %71 = arith.addf %66, %70 : vector<64x64xf32>
    %72 = vector.extract_strided_slice %30 {offsets = [9, 0], sizes = [64, 64], strides = [1, 1]} : vector<96x64xf32> to vector<64x64xf32>
    %c1_i32_24 = arith.constant 1 : i32
    %73 = vector.broadcast %c1_i32_24 : i32 to vector<64x1xi32>
    %74 = arith.addi %47, %73 : vector<64x1xi32>
    %c0_i32_25 = arith.constant 0 : i32
    %75 = vector.broadcast %c0_i32_25 : i32 to vector<64x1xi32>
    %76 = arith.cmpi sge, %74, %75 : vector<64x1xi32>
    %c1_i32_26 = arith.constant 1 : i32
    %77 = vector.broadcast %c1_i32_26 : i32 to vector<64x1xi32>
    %78 = arith.addi %47, %77 : vector<64x1xi32>
    %c8_i32_27 = arith.constant 8 : i32
    %79 = vector.broadcast %c8_i32_27 : i32 to vector<64x1xi32>
    %80 = arith.cmpi slt, %78, %79 : vector<64x1xi32>
    %81 = arith.andi %76, %80 : vector<64x1xi1>
    %cst_28 = arith.constant 0.000000e+00 : f32
    %82 = vector.shape_cast %81 : vector<64x1xi1> to vector<64x1xi1>
    %83 = vector.broadcast %82 : vector<64x1xi1> to vector<64x64xi1>
    %84 = vector.broadcast %cst_28 : f32 to vector<64x64xf32>
    %85 = arith.select %83, %72, %84 : vector<64x64xi1>, vector<64x64xf32>
    %86 = vector.extract_strided_slice %28 {offsets = [2, 0], sizes = [1, 64], strides = [1, 1]} : vector<9x64xf32> to vector<1x64xf32>
    %87 = vector.broadcast %86 : vector<1x64xf32> to vector<64x64xf32>
    %88 = arith.mulf %85, %87 : vector<64x64xf32>
    %89 = arith.addf %71, %88 : vector<64x64xf32>
    %90 = vector.extract_strided_slice %30 {offsets = [15, 0], sizes = [64, 64], strides = [1, 1]} : vector<96x64xf32> to vector<64x64xf32>
    %c-1_i32_29 = arith.constant -1 : i32
    %91 = vector.broadcast %c-1_i32_29 : i32 to vector<64x1xi32>
    %92 = arith.addi %47, %91 : vector<64x1xi32>
    %c0_i32_30 = arith.constant 0 : i32
    %93 = vector.broadcast %c0_i32_30 : i32 to vector<64x1xi32>
    %94 = arith.cmpi sge, %92, %93 : vector<64x1xi32>
    %c-1_i32_31 = arith.constant -1 : i32
    %95 = vector.broadcast %c-1_i32_31 : i32 to vector<64x1xi32>
    %96 = arith.addi %47, %95 : vector<64x1xi32>
    %c8_i32_32 = arith.constant 8 : i32
    %97 = vector.broadcast %c8_i32_32 : i32 to vector<64x1xi32>
    %98 = arith.cmpi slt, %96, %97 : vector<64x1xi32>
    %99 = arith.andi %94, %98 : vector<64x1xi1>
    %cst_33 = arith.constant 0.000000e+00 : f32
    %100 = vector.shape_cast %99 : vector<64x1xi1> to vector<64x1xi1>
    %101 = vector.broadcast %100 : vector<64x1xi1> to vector<64x64xi1>
    %102 = vector.broadcast %cst_33 : f32 to vector<64x64xf32>
    %103 = arith.select %101, %90, %102 : vector<64x64xi1>, vector<64x64xf32>
    %104 = vector.extract_strided_slice %28 {offsets = [3, 0], sizes = [1, 64], strides = [1, 1]} : vector<9x64xf32> to vector<1x64xf32>
    %105 = vector.broadcast %104 : vector<1x64xf32> to vector<64x64xf32>
    %106 = arith.mulf %103, %105 : vector<64x64xf32>
    %107 = arith.addf %89, %106 : vector<64x64xf32>
    %108 = vector.extract_strided_slice %30 {offsets = [16, 0], sizes = [64, 64], strides = [1, 1]} : vector<96x64xf32> to vector<64x64xf32>
    %109 = vector.extract_strided_slice %28 {offsets = [4, 0], sizes = [1, 64], strides = [1, 1]} : vector<9x64xf32> to vector<1x64xf32>
    %110 = vector.broadcast %109 : vector<1x64xf32> to vector<64x64xf32>
    %111 = arith.mulf %108, %110 : vector<64x64xf32>
    %112 = arith.addf %107, %111 : vector<64x64xf32>
    %113 = vector.extract_strided_slice %30 {offsets = [17, 0], sizes = [64, 64], strides = [1, 1]} : vector<96x64xf32> to vector<64x64xf32>
    %c1_i32_34 = arith.constant 1 : i32
    %114 = vector.broadcast %c1_i32_34 : i32 to vector<64x1xi32>
    %115 = arith.addi %47, %114 : vector<64x1xi32>
    %c0_i32_35 = arith.constant 0 : i32
    %116 = vector.broadcast %c0_i32_35 : i32 to vector<64x1xi32>
    %117 = arith.cmpi sge, %115, %116 : vector<64x1xi32>
    %c1_i32_36 = arith.constant 1 : i32
    %118 = vector.broadcast %c1_i32_36 : i32 to vector<64x1xi32>
    %119 = arith.addi %47, %118 : vector<64x1xi32>
    %c8_i32_37 = arith.constant 8 : i32
    %120 = vector.broadcast %c8_i32_37 : i32 to vector<64x1xi32>
    %121 = arith.cmpi slt, %119, %120 : vector<64x1xi32>
    %122 = arith.andi %117, %121 : vector<64x1xi1>
    %cst_38 = arith.constant 0.000000e+00 : f32
    %123 = vector.shape_cast %122 : vector<64x1xi1> to vector<64x1xi1>
    %124 = vector.broadcast %123 : vector<64x1xi1> to vector<64x64xi1>
    %125 = vector.broadcast %cst_38 : f32 to vector<64x64xf32>
    %126 = arith.select %124, %113, %125 : vector<64x64xi1>, vector<64x64xf32>
    %127 = vector.extract_strided_slice %28 {offsets = [5, 0], sizes = [1, 64], strides = [1, 1]} : vector<9x64xf32> to vector<1x64xf32>
    %128 = vector.broadcast %127 : vector<1x64xf32> to vector<64x64xf32>
    %129 = arith.mulf %126, %128 : vector<64x64xf32>
    %130 = arith.addf %112, %129 : vector<64x64xf32>
    %131 = vector.extract_strided_slice %30 {offsets = [23, 0], sizes = [64, 64], strides = [1, 1]} : vector<96x64xf32> to vector<64x64xf32>
    %c-1_i32_39 = arith.constant -1 : i32
    %132 = vector.broadcast %c-1_i32_39 : i32 to vector<64x1xi32>
    %133 = arith.addi %47, %132 : vector<64x1xi32>
    %c0_i32_40 = arith.constant 0 : i32
    %134 = vector.broadcast %c0_i32_40 : i32 to vector<64x1xi32>
    %135 = arith.cmpi sge, %133, %134 : vector<64x1xi32>
    %c-1_i32_41 = arith.constant -1 : i32
    %136 = vector.broadcast %c-1_i32_41 : i32 to vector<64x1xi32>
    %137 = arith.addi %47, %136 : vector<64x1xi32>
    %c8_i32_42 = arith.constant 8 : i32
    %138 = vector.broadcast %c8_i32_42 : i32 to vector<64x1xi32>
    %139 = arith.cmpi slt, %137, %138 : vector<64x1xi32>
    %140 = arith.andi %135, %139 : vector<64x1xi1>
    %cst_43 = arith.constant 0.000000e+00 : f32
    %141 = vector.shape_cast %140 : vector<64x1xi1> to vector<64x1xi1>
    %142 = vector.broadcast %141 : vector<64x1xi1> to vector<64x64xi1>
    %143 = vector.broadcast %cst_43 : f32 to vector<64x64xf32>
    %144 = arith.select %142, %131, %143 : vector<64x64xi1>, vector<64x64xf32>
    %145 = vector.extract_strided_slice %28 {offsets = [6, 0], sizes = [1, 64], strides = [1, 1]} : vector<9x64xf32> to vector<1x64xf32>
    %146 = vector.broadcast %145 : vector<1x64xf32> to vector<64x64xf32>
    %147 = arith.mulf %144, %146 : vector<64x64xf32>
    %148 = arith.addf %130, %147 : vector<64x64xf32>
    %149 = vector.extract_strided_slice %30 {offsets = [24, 0], sizes = [64, 64], strides = [1, 1]} : vector<96x64xf32> to vector<64x64xf32>
    %150 = vector.extract_strided_slice %28 {offsets = [7, 0], sizes = [1, 64], strides = [1, 1]} : vector<9x64xf32> to vector<1x64xf32>
    %151 = vector.broadcast %150 : vector<1x64xf32> to vector<64x64xf32>
    %152 = arith.mulf %149, %151 : vector<64x64xf32>
    %153 = arith.addf %148, %152 : vector<64x64xf32>
    %154 = vector.extract_strided_slice %30 {offsets = [25, 0], sizes = [64, 64], strides = [1, 1]} : vector<96x64xf32> to vector<64x64xf32>
    %c1_i32_44 = arith.constant 1 : i32
    %155 = vector.broadcast %c1_i32_44 : i32 to vector<64x1xi32>
    %156 = arith.addi %47, %155 : vector<64x1xi32>
    %c0_i32_45 = arith.constant 0 : i32
    %157 = vector.broadcast %c0_i32_45 : i32 to vector<64x1xi32>
    %158 = arith.cmpi sge, %156, %157 : vector<64x1xi32>
    %c1_i32_46 = arith.constant 1 : i32
    %159 = vector.broadcast %c1_i32_46 : i32 to vector<64x1xi32>
    %160 = arith.addi %47, %159 : vector<64x1xi32>
    %c8_i32_47 = arith.constant 8 : i32
    %161 = vector.broadcast %c8_i32_47 : i32 to vector<64x1xi32>
    %162 = arith.cmpi slt, %160, %161 : vector<64x1xi32>
    %163 = arith.andi %158, %162 : vector<64x1xi1>
    %cst_48 = arith.constant 0.000000e+00 : f32
    %164 = vector.shape_cast %163 : vector<64x1xi1> to vector<64x1xi1>
    %165 = vector.broadcast %164 : vector<64x1xi1> to vector<64x64xi1>
    %166 = vector.broadcast %cst_48 : f32 to vector<64x64xf32>
    %167 = arith.select %165, %154, %166 : vector<64x64xi1>, vector<64x64xf32>
    %168 = vector.extract_strided_slice %28 {offsets = [8, 0], sizes = [1, 64], strides = [1, 1]} : vector<9x64xf32> to vector<1x64xf32>
    %169 = vector.broadcast %168 : vector<1x64xf32> to vector<64x64xf32>
    %170 = arith.mulf %167, %169 : vector<64x64xf32>
    %171 = arith.addf %153, %170 : vector<64x64xf32>
    %172 = vector.extract_strided_slice %171 {offsets = [0, 0], sizes = [64, 32], strides = [1, 1]} : vector<64x64xf32> to vector<64x32xf32>
    %173 = vector.extract_strided_slice %171 {offsets = [0, 32], sizes = [64, 32], strides = [1, 1]} : vector<64x64xf32> to vector<64x32xf32>
    %cst_49 = arith.constant 5.000000e-01 : f32
    %174 = vector.broadcast %cst_49 : f32 to vector<64x32xf32>
    %175 = arith.mulf %174, %172 : vector<64x32xf32>
    %cst_50 = arith.constant 0.707106769 : f32
    %176 = vector.broadcast %cst_50 : f32 to vector<64x32xf32>
    %177 = arith.mulf %172, %176 : vector<64x32xf32>
    %178 = math.erf %177 : vector<64x32xf32>
    %cst_51 = arith.constant 1.000000e+00 : f32
    %179 = vector.broadcast %cst_51 : f32 to vector<64x32xf32>
    %180 = arith.addf %179, %178 : vector<64x32xf32>
    %181 = arith.mulf %175, %180 : vector<64x32xf32>
    %182 = arith.mulf %181, %173 : vector<64x32xf32>
    %c0_52 = arith.constant 0 : index
    %c0_53 = arith.constant 0 : index
    %183 = vector.load %arg6[%c0_52, %c0_53] : memref<32x32xf32, #tpu.memory_space<vmem>>, vector<32x32xf32>
    %cst_54 = arith.constant dense<0.000000e+00> : vector<64x32xf32>
    %184 = tpu.matmul %182, %183, %cst_54 {dimension_numbers = #tpu.dot_dimension_numbers<[1], [0], [0], [1], [0, 0, 1, 1], [], []>} : vector<64x32xf32>, vector<32x32xf32>, vector<64x32xf32> -> vector<64x32xf32>
    %185 = arith.addf %1, %184 : vector<64x32xf32>
    %c0_55 = arith.constant 0 : index
    %c0_56 = arith.constant 0 : index
    %c0_57 = arith.constant 0 : index
    %186 = vector.load %arg7[%c0_55, %c0_56, %c0_57] : memref<1x64x32xf32, #tpu.memory_space<vmem>>, vector<1x64x32xf32>
    %187 = vector.shape_cast %186 : vector<1x64x32xf32> to vector<64x32xf32>
    %188 = vector.shape_cast %185 : vector<64x32xf32> to vector<1x64x32xf32>
    tpu.vector_store %arg7[%c0_55, %c0_56, %c0_57], %188 {strides = array<i32>} : memref<1x64x32xf32, #tpu.memory_space<vmem>>, vector<1x64x32xf32>,
    return
  }
  func.func @transform_0(%arg0: i32) -> (i32, i32, i32) {
    %c0_i32 = arith.constant 0 : i32
    %c0_i32_0 = arith.constant 0 : i32
    %c0_i32_1 = arith.constant 0 : i32
    return %arg0, %c0_i32, %c0_i32_0 : i32, i32, i32
  }
  func.func @transform_1(%arg0: i32) -> (i32, i32) {
    %c0_i32 = arith.constant 0 : i32
    %c0_i32_0 = arith.constant 0 : i32
    %c0_i32_1 = arith.constant 0 : i32
    return %c0_i32, %c0_i32_0 : i32, i32
  }
  func.func @transform_2(%arg0: i32) -> (i32, i32) {
    %c0_i32 = arith.constant 0 : i32
    %c0_i32_0 = arith.constant 0 : i32
    %c0_i32_1 = arith.constant 0 : i32
    return %c0_i32, %c0_i32_0 : i32, i32
  }
  func.func @transform_3(%arg0: i32) -> (i32, i32) {
    %c0_i32 = arith.constant 0 : i32
    %c0_i32_0 = arith.constant 0 : i32
    %c0_i32_1 = arith.constant 0 : i32
    return %c0_i32, %c0_i32_0 : i32, i32
  }
  func.func @transform_4(%arg0: i32) -> (i32, i32) {
    %c0_i32 = arith.constant 0 : i32
    %c0_i32_0 = arith.constant 0 : i32
    %c0_i32_1 = arith.constant 0 : i32
    return %c0_i32, %c0_i32_0 : i32, i32
  }
  func.func @transform_5(%arg0: i32) -> (i32, i32) {
    %c0_i32 = arith.constant 0 : i32
    %c0_i32_0 = arith.constant 0 : i32
    %c0_i32_1 = arith.constant 0 : i32
    return %c0_i32, %c0_i32_0 : i32, i32
  }
  func.func @transform_6(%arg0: i32) -> (i32, i32, i32) {
    %c0_i32 = arith.constant 0 : i32
    %c0_i32_0 = arith.constant 0 : i32
    %c0_i32_1 = arith.constant 0 : i32
    return %arg0, %c0_i32, %c0_i32_0 : i32, i32, i32
  }
}

module attributes {stable_mosaic.version = 11 : i64} {
  func.func @_swin_attn_kernel(%arg0: i32, %arg1: memref<1x64x96xf32, #tpu.memory_space<vmem>>, %arg2: memref<1x64x32xf32, #tpu.memory_space<vmem>>, %arg3: memref<32x32xf32, #tpu.memory_space<vmem>>, %arg4: memref<25x32xf32, #tpu.memory_space<vmem>>, %arg5: memref<1x64x32xf32, #tpu.memory_space<vmem>>) attributes {dimension_semantics = [#tpu.dimension_semantics<parallel>], iteration_bounds = array<i64: 2>, scalar_prefetch = 0 : i64, scratch_operands = 0 : i64, tpu.core_type = #tpu.core_type<tc>, window_params = [{transform_indices = @transform_0, window_bounds = array<i64: 1, 64, 96>}, {transform_indices = @transform_1, window_bounds = array<i64: 1, 64, 32>}, {pipeline_mode = #tpu.pipeline_mode<synchronous>, transform_indices = @transform_2, window_bounds = array<i64: 32, 32>}, {pipeline_mode = #tpu.pipeline_mode<synchronous>, transform_indices = @transform_3, window_bounds = array<i64: 25, 32>}, {transform_indices = @transform_4, window_bounds = array<i64: 1, 64, 32>}]} {
    %c0 = arith.constant 0 : index
    %c0_0 = arith.constant 0 : index
    %c0_1 = arith.constant 0 : index
    %0 = vector.load %arg1[%c0, %c0_0, %c0_1] : memref<1x64x96xf32, #tpu.memory_space<vmem>>, vector<1x64x96xf32>
    %1 = vector.shape_cast %0 : vector<1x64x96xf32> to vector<64x96xf32>
    %c0_2 = arith.constant 0 : index
    %c0_3 = arith.constant 0 : index
    %2 = vector.load %arg3[%c0_2, %c0_3] : memref<32x32xf32, #tpu.memory_space<vmem>>, vector<32x32xf32>
    %3 = vector.extract_strided_slice %1 {offsets = [0, 64], sizes = [64, 32], strides = [1, 1]} : vector<64x96xf32> to vector<64x32xf32>
    %c0_4 = arith.constant 0 : index
    %c0_5 = arith.constant 0 : index
    %4 = vector.load %arg4[%c0_4, %c0_5] : memref<25x32xf32, #tpu.memory_space<vmem>>, vector<25x32xf32>
    %cst = arith.constant 0.000000e+00 : f32
    %5 = vector.broadcast %cst : f32 to vector<24x32xf32>
    %6 = tpu.concatenate %5, %3, %5 in 0 : vector<24x32xf32>, vector<64x32xf32>, vector<24x32xf32> -> vector<112x32xf32>
    %7 = tpu.iota {dimensions = array<i32: 0>} : vector<64x1xi32>
    %c8_i32 = arith.constant 8 : i32
    %c0_i32 = arith.constant 0 : i32
    %8 = arith.cmpi eq, %c8_i32, %c0_i32 : i32
    %c1_i32 = arith.constant 1 : i32
    %9 = arith.select %8, %c1_i32, %c8_i32 : i32
    %10 = vector.broadcast %9 : i32 to vector<64x1xi32>
    %11 = arith.remsi %7, %10 : vector<64x1xi32>
    %c0_i32_6 = arith.constant 0 : i32
    %12 = vector.broadcast %c0_i32_6 : i32 to vector<64x1xi32>
    %13 = arith.cmpi ne, %11, %12 : vector<64x1xi32>
    %c0_i32_7 = arith.constant 0 : i32
    %14 = vector.broadcast %c0_i32_7 : i32 to vector<64x1xi32>
    %15 = arith.cmpi slt, %11, %14 : vector<64x1xi32>
    %c0_i32_8 = arith.constant 0 : i32
    %16 = arith.cmpi slt, %9, %c0_i32_8 : i32
    %17 = vector.broadcast %16 : i1 to vector<64x1xi1>
    %18 = vector.broadcast %17 : vector<64x1xi1> to vector<64x1xi1>
    %19 = arith.xori %15, %18 : vector<64x1xi1>
    %20 = arith.andi %19, %13 : vector<64x1xi1>
    %21 = vector.broadcast %9 : i32 to vector<64x1xi32>
    %22 = arith.addi %11, %21 : vector<64x1xi32>
    %23 = arith.select %20, %22, %11 : vector<64x1xi1>, vector<64x1xi32>
    %cst_9 = arith.constant 0.000000e+00 : f32
    %24 = vector.broadcast %cst_9 : f32 to vector<64x32xf32>
    %25 = vector.extract_strided_slice %6 {offsets = [6, 0], sizes = [64, 32], strides = [1, 1]} : vector<112x32xf32> to vector<64x32xf32>
    %c-2_i32 = arith.constant -2 : i32
    %26 = vector.broadcast %c-2_i32 : i32 to vector<64x1xi32>
    %27 = arith.addi %23, %26 : vector<64x1xi32>
    %c0_i32_10 = arith.constant 0 : i32
    %28 = vector.broadcast %c0_i32_10 : i32 to vector<64x1xi32>
    %29 = arith.cmpi sge, %27, %28 : vector<64x1xi32>
    %c-2_i32_11 = arith.constant -2 : i32
    %30 = vector.broadcast %c-2_i32_11 : i32 to vector<64x1xi32>
    %31 = arith.addi %23, %30 : vector<64x1xi32>
    %c8_i32_12 = arith.constant 8 : i32
    %32 = vector.broadcast %c8_i32_12 : i32 to vector<64x1xi32>
    %33 = arith.cmpi slt, %31, %32 : vector<64x1xi32>
    %34 = arith.andi %29, %33 : vector<64x1xi1>
    %cst_13 = arith.constant 0.000000e+00 : f32
    %35 = vector.shape_cast %34 : vector<64x1xi1> to vector<64x1xi1>
    %36 = vector.broadcast %35 : vector<64x1xi1> to vector<64x32xi1>
    %37 = vector.broadcast %cst_13 : f32 to vector<64x32xf32>
    %38 = arith.select %36, %25, %37 : vector<64x32xi1>, vector<64x32xf32>
    %39 = vector.extract_strided_slice %4 {offsets = [0, 0], sizes = [1, 32], strides = [1, 1]} : vector<25x32xf32> to vector<1x32xf32>
    %40 = vector.broadcast %39 : vector<1x32xf32> to vector<64x32xf32>
    %41 = arith.mulf %38, %40 : vector<64x32xf32>
    %42 = arith.addf %24, %41 : vector<64x32xf32>
    %43 = vector.extract_strided_slice %6 {offsets = [7, 0], sizes = [64, 32], strides = [1, 1]} : vector<112x32xf32> to vector<64x32xf32>
    %c-1_i32 = arith.constant -1 : i32
    %44 = vector.broadcast %c-1_i32 : i32 to vector<64x1xi32>
    %45 = arith.addi %23, %44 : vector<64x1xi32>
    %c0_i32_14 = arith.constant 0 : i32
    %46 = vector.broadcast %c0_i32_14 : i32 to vector<64x1xi32>
    %47 = arith.cmpi sge, %45, %46 : vector<64x1xi32>
    %c-1_i32_15 = arith.constant -1 : i32
    %48 = vector.broadcast %c-1_i32_15 : i32 to vector<64x1xi32>
    %49 = arith.addi %23, %48 : vector<64x1xi32>
    %c8_i32_16 = arith.constant 8 : i32
    %50 = vector.broadcast %c8_i32_16 : i32 to vector<64x1xi32>
    %51 = arith.cmpi slt, %49, %50 : vector<64x1xi32>
    %52 = arith.andi %47, %51 : vector<64x1xi1>
    %cst_17 = arith.constant 0.000000e+00 : f32
    %53 = vector.shape_cast %52 : vector<64x1xi1> to vector<64x1xi1>
    %54 = vector.broadcast %53 : vector<64x1xi1> to vector<64x32xi1>
    %55 = vector.broadcast %cst_17 : f32 to vector<64x32xf32>
    %56 = arith.select %54, %43, %55 : vector<64x32xi1>, vector<64x32xf32>
    %57 = vector.extract_strided_slice %4 {offsets = [1, 0], sizes = [1, 32], strides = [1, 1]} : vector<25x32xf32> to vector<1x32xf32>
    %58 = vector.broadcast %57 : vector<1x32xf32> to vector<64x32xf32>
    %59 = arith.mulf %56, %58 : vector<64x32xf32>
    %60 = arith.addf %42, %59 : vector<64x32xf32>
    %61 = vector.extract_strided_slice %6 {offsets = [8, 0], sizes = [64, 32], strides = [1, 1]} : vector<112x32xf32> to vector<64x32xf32>
    %62 = vector.extract_strided_slice %4 {offsets = [2, 0], sizes = [1, 32], strides = [1, 1]} : vector<25x32xf32> to vector<1x32xf32>
    %63 = vector.broadcast %62 : vector<1x32xf32> to vector<64x32xf32>
    %64 = arith.mulf %61, %63 : vector<64x32xf32>
    %65 = arith.addf %60, %64 : vector<64x32xf32>
    %66 = vector.extract_strided_slice %6 {offsets = [9, 0], sizes = [64, 32], strides = [1, 1]} : vector<112x32xf32> to vector<64x32xf32>
    %c1_i32_18 = arith.constant 1 : i32
    %67 = vector.broadcast %c1_i32_18 : i32 to vector<64x1xi32>
    %68 = arith.addi %23, %67 : vector<64x1xi32>
    %c0_i32_19 = arith.constant 0 : i32
    %69 = vector.broadcast %c0_i32_19 : i32 to vector<64x1xi32>
    %70 = arith.cmpi sge, %68, %69 : vector<64x1xi32>
    %c1_i32_20 = arith.constant 1 : i32
    %71 = vector.broadcast %c1_i32_20 : i32 to vector<64x1xi32>
    %72 = arith.addi %23, %71 : vector<64x1xi32>
    %c8_i32_21 = arith.constant 8 : i32
    %73 = vector.broadcast %c8_i32_21 : i32 to vector<64x1xi32>
    %74 = arith.cmpi slt, %72, %73 : vector<64x1xi32>
    %75 = arith.andi %70, %74 : vector<64x1xi1>
    %cst_22 = arith.constant 0.000000e+00 : f32
    %76 = vector.shape_cast %75 : vector<64x1xi1> to vector<64x1xi1>
    %77 = vector.broadcast %76 : vector<64x1xi1> to vector<64x32xi1>
    %78 = vector.broadcast %cst_22 : f32 to vector<64x32xf32>
    %79 = arith.select %77, %66, %78 : vector<64x32xi1>, vector<64x32xf32>
    %80 = vector.extract_strided_slice %4 {offsets = [3, 0], sizes = [1, 32], strides = [1, 1]} : vector<25x32xf32> to vector<1x32xf32>
    %81 = vector.broadcast %80 : vector<1x32xf32> to vector<64x32xf32>
    %82 = arith.mulf %79, %81 : vector<64x32xf32>
    %83 = arith.addf %65, %82 : vector<64x32xf32>
    %84 = vector.extract_strided_slice %6 {offsets = [10, 0], sizes = [64, 32], strides = [1, 1]} : vector<112x32xf32> to vector<64x32xf32>
    %c2_i32 = arith.constant 2 : i32
    %85 = vector.broadcast %c2_i32 : i32 to vector<64x1xi32>
    %86 = arith.addi %23, %85 : vector<64x1xi32>
    %c0_i32_23 = arith.constant 0 : i32
    %87 = vector.broadcast %c0_i32_23 : i32 to vector<64x1xi32>
    %88 = arith.cmpi sge, %86, %87 : vector<64x1xi32>
    %c2_i32_24 = arith.constant 2 : i32
    %89 = vector.broadcast %c2_i32_24 : i32 to vector<64x1xi32>
    %90 = arith.addi %23, %89 : vector<64x1xi32>
    %c8_i32_25 = arith.constant 8 : i32
    %91 = vector.broadcast %c8_i32_25 : i32 to vector<64x1xi32>
    %92 = arith.cmpi slt, %90, %91 : vector<64x1xi32>
    %93 = arith.andi %88, %92 : vector<64x1xi1>
    %cst_26 = arith.constant 0.000000e+00 : f32
    %94 = vector.shape_cast %93 : vector<64x1xi1> to vector<64x1xi1>
    %95 = vector.broadcast %94 : vector<64x1xi1> to vector<64x32xi1>
    %96 = vector.broadcast %cst_26 : f32 to vector<64x32xf32>
    %97 = arith.select %95, %84, %96 : vector<64x32xi1>, vector<64x32xf32>
    %98 = vector.extract_strided_slice %4 {offsets = [4, 0], sizes = [1, 32], strides = [1, 1]} : vector<25x32xf32> to vector<1x32xf32>
    %99 = vector.broadcast %98 : vector<1x32xf32> to vector<64x32xf32>
    %100 = arith.mulf %97, %99 : vector<64x32xf32>
    %101 = arith.addf %83, %100 : vector<64x32xf32>
    %102 = vector.extract_strided_slice %6 {offsets = [14, 0], sizes = [64, 32], strides = [1, 1]} : vector<112x32xf32> to vector<64x32xf32>
    %c-2_i32_27 = arith.constant -2 : i32
    %103 = vector.broadcast %c-2_i32_27 : i32 to vector<64x1xi32>
    %104 = arith.addi %23, %103 : vector<64x1xi32>
    %c0_i32_28 = arith.constant 0 : i32
    %105 = vector.broadcast %c0_i32_28 : i32 to vector<64x1xi32>
    %106 = arith.cmpi sge, %104, %105 : vector<64x1xi32>
    %c-2_i32_29 = arith.constant -2 : i32
    %107 = vector.broadcast %c-2_i32_29 : i32 to vector<64x1xi32>
    %108 = arith.addi %23, %107 : vector<64x1xi32>
    %c8_i32_30 = arith.constant 8 : i32
    %109 = vector.broadcast %c8_i32_30 : i32 to vector<64x1xi32>
    %110 = arith.cmpi slt, %108, %109 : vector<64x1xi32>
    %111 = arith.andi %106, %110 : vector<64x1xi1>
    %cst_31 = arith.constant 0.000000e+00 : f32
    %112 = vector.shape_cast %111 : vector<64x1xi1> to vector<64x1xi1>
    %113 = vector.broadcast %112 : vector<64x1xi1> to vector<64x32xi1>
    %114 = vector.broadcast %cst_31 : f32 to vector<64x32xf32>
    %115 = arith.select %113, %102, %114 : vector<64x32xi1>, vector<64x32xf32>
    %116 = vector.extract_strided_slice %4 {offsets = [5, 0], sizes = [1, 32], strides = [1, 1]} : vector<25x32xf32> to vector<1x32xf32>
    %117 = vector.broadcast %116 : vector<1x32xf32> to vector<64x32xf32>
    %118 = arith.mulf %115, %117 : vector<64x32xf32>
    %119 = arith.addf %101, %118 : vector<64x32xf32>
    %120 = vector.extract_strided_slice %6 {offsets = [15, 0], sizes = [64, 32], strides = [1, 1]} : vector<112x32xf32> to vector<64x32xf32>
    %c-1_i32_32 = arith.constant -1 : i32
    %121 = vector.broadcast %c-1_i32_32 : i32 to vector<64x1xi32>
    %122 = arith.addi %23, %121 : vector<64x1xi32>
    %c0_i32_33 = arith.constant 0 : i32
    %123 = vector.broadcast %c0_i32_33 : i32 to vector<64x1xi32>
    %124 = arith.cmpi sge, %122, %123 : vector<64x1xi32>
    %c-1_i32_34 = arith.constant -1 : i32
    %125 = vector.broadcast %c-1_i32_34 : i32 to vector<64x1xi32>
    %126 = arith.addi %23, %125 : vector<64x1xi32>
    %c8_i32_35 = arith.constant 8 : i32
    %127 = vector.broadcast %c8_i32_35 : i32 to vector<64x1xi32>
    %128 = arith.cmpi slt, %126, %127 : vector<64x1xi32>
    %129 = arith.andi %124, %128 : vector<64x1xi1>
    %cst_36 = arith.constant 0.000000e+00 : f32
    %130 = vector.shape_cast %129 : vector<64x1xi1> to vector<64x1xi1>
    %131 = vector.broadcast %130 : vector<64x1xi1> to vector<64x32xi1>
    %132 = vector.broadcast %cst_36 : f32 to vector<64x32xf32>
    %133 = arith.select %131, %120, %132 : vector<64x32xi1>, vector<64x32xf32>
    %134 = vector.extract_strided_slice %4 {offsets = [6, 0], sizes = [1, 32], strides = [1, 1]} : vector<25x32xf32> to vector<1x32xf32>
    %135 = vector.broadcast %134 : vector<1x32xf32> to vector<64x32xf32>
    %136 = arith.mulf %133, %135 : vector<64x32xf32>
    %137 = arith.addf %119, %136 : vector<64x32xf32>
    %138 = vector.extract_strided_slice %6 {offsets = [16, 0], sizes = [64, 32], strides = [1, 1]} : vector<112x32xf32> to vector<64x32xf32>
    %139 = vector.extract_strided_slice %4 {offsets = [7, 0], sizes = [1, 32], strides = [1, 1]} : vector<25x32xf32> to vector<1x32xf32>
    %140 = vector.broadcast %139 : vector<1x32xf32> to vector<64x32xf32>
    %141 = arith.mulf %138, %140 : vector<64x32xf32>
    %142 = arith.addf %137, %141 : vector<64x32xf32>
    %143 = vector.extract_strided_slice %6 {offsets = [17, 0], sizes = [64, 32], strides = [1, 1]} : vector<112x32xf32> to vector<64x32xf32>
    %c1_i32_37 = arith.constant 1 : i32
    %144 = vector.broadcast %c1_i32_37 : i32 to vector<64x1xi32>
    %145 = arith.addi %23, %144 : vector<64x1xi32>
    %c0_i32_38 = arith.constant 0 : i32
    %146 = vector.broadcast %c0_i32_38 : i32 to vector<64x1xi32>
    %147 = arith.cmpi sge, %145, %146 : vector<64x1xi32>
    %c1_i32_39 = arith.constant 1 : i32
    %148 = vector.broadcast %c1_i32_39 : i32 to vector<64x1xi32>
    %149 = arith.addi %23, %148 : vector<64x1xi32>
    %c8_i32_40 = arith.constant 8 : i32
    %150 = vector.broadcast %c8_i32_40 : i32 to vector<64x1xi32>
    %151 = arith.cmpi slt, %149, %150 : vector<64x1xi32>
    %152 = arith.andi %147, %151 : vector<64x1xi1>
    %cst_41 = arith.constant 0.000000e+00 : f32
    %153 = vector.shape_cast %152 : vector<64x1xi1> to vector<64x1xi1>
    %154 = vector.broadcast %153 : vector<64x1xi1> to vector<64x32xi1>
    %155 = vector.broadcast %cst_41 : f32 to vector<64x32xf32>
    %156 = arith.select %154, %143, %155 : vector<64x32xi1>, vector<64x32xf32>
    %157 = vector.extract_strided_slice %4 {offsets = [8, 0], sizes = [1, 32], strides = [1, 1]} : vector<25x32xf32> to vector<1x32xf32>
    %158 = vector.broadcast %157 : vector<1x32xf32> to vector<64x32xf32>
    %159 = arith.mulf %156, %158 : vector<64x32xf32>
    %160 = arith.addf %142, %159 : vector<64x32xf32>
    %161 = vector.extract_strided_slice %6 {offsets = [18, 0], sizes = [64, 32], strides = [1, 1]} : vector<112x32xf32> to vector<64x32xf32>
    %c2_i32_42 = arith.constant 2 : i32
    %162 = vector.broadcast %c2_i32_42 : i32 to vector<64x1xi32>
    %163 = arith.addi %23, %162 : vector<64x1xi32>
    %c0_i32_43 = arith.constant 0 : i32
    %164 = vector.broadcast %c0_i32_43 : i32 to vector<64x1xi32>
    %165 = arith.cmpi sge, %163, %164 : vector<64x1xi32>
    %c2_i32_44 = arith.constant 2 : i32
    %166 = vector.broadcast %c2_i32_44 : i32 to vector<64x1xi32>
    %167 = arith.addi %23, %166 : vector<64x1xi32>
    %c8_i32_45 = arith.constant 8 : i32
    %168 = vector.broadcast %c8_i32_45 : i32 to vector<64x1xi32>
    %169 = arith.cmpi slt, %167, %168 : vector<64x1xi32>
    %170 = arith.andi %165, %169 : vector<64x1xi1>
    %cst_46 = arith.constant 0.000000e+00 : f32
    %171 = vector.shape_cast %170 : vector<64x1xi1> to vector<64x1xi1>
    %172 = vector.broadcast %171 : vector<64x1xi1> to vector<64x32xi1>
    %173 = vector.broadcast %cst_46 : f32 to vector<64x32xf32>
    %174 = arith.select %172, %161, %173 : vector<64x32xi1>, vector<64x32xf32>
    %175 = vector.extract_strided_slice %4 {offsets = [9, 0], sizes = [1, 32], strides = [1, 1]} : vector<25x32xf32> to vector<1x32xf32>
    %176 = vector.broadcast %175 : vector<1x32xf32> to vector<64x32xf32>
    %177 = arith.mulf %174, %176 : vector<64x32xf32>
    %178 = arith.addf %160, %177 : vector<64x32xf32>
    %179 = vector.extract_strided_slice %6 {offsets = [22, 0], sizes = [64, 32], strides = [1, 1]} : vector<112x32xf32> to vector<64x32xf32>
    %c-2_i32_47 = arith.constant -2 : i32
    %180 = vector.broadcast %c-2_i32_47 : i32 to vector<64x1xi32>
    %181 = arith.addi %23, %180 : vector<64x1xi32>
    %c0_i32_48 = arith.constant 0 : i32
    %182 = vector.broadcast %c0_i32_48 : i32 to vector<64x1xi32>
    %183 = arith.cmpi sge, %181, %182 : vector<64x1xi32>
    %c-2_i32_49 = arith.constant -2 : i32
    %184 = vector.broadcast %c-2_i32_49 : i32 to vector<64x1xi32>
    %185 = arith.addi %23, %184 : vector<64x1xi32>
    %c8_i32_50 = arith.constant 8 : i32
    %186 = vector.broadcast %c8_i32_50 : i32 to vector<64x1xi32>
    %187 = arith.cmpi slt, %185, %186 : vector<64x1xi32>
    %188 = arith.andi %183, %187 : vector<64x1xi1>
    %cst_51 = arith.constant 0.000000e+00 : f32
    %189 = vector.shape_cast %188 : vector<64x1xi1> to vector<64x1xi1>
    %190 = vector.broadcast %189 : vector<64x1xi1> to vector<64x32xi1>
    %191 = vector.broadcast %cst_51 : f32 to vector<64x32xf32>
    %192 = arith.select %190, %179, %191 : vector<64x32xi1>, vector<64x32xf32>
    %193 = vector.extract_strided_slice %4 {offsets = [10, 0], sizes = [1, 32], strides = [1, 1]} : vector<25x32xf32> to vector<1x32xf32>
    %194 = vector.broadcast %193 : vector<1x32xf32> to vector<64x32xf32>
    %195 = arith.mulf %192, %194 : vector<64x32xf32>
    %196 = arith.addf %178, %195 : vector<64x32xf32>
    %197 = vector.extract_strided_slice %6 {offsets = [23, 0], sizes = [64, 32], strides = [1, 1]} : vector<112x32xf32> to vector<64x32xf32>
    %c-1_i32_52 = arith.constant -1 : i32
    %198 = vector.broadcast %c-1_i32_52 : i32 to vector<64x1xi32>
    %199 = arith.addi %23, %198 : vector<64x1xi32>
    %c0_i32_53 = arith.constant 0 : i32
    %200 = vector.broadcast %c0_i32_53 : i32 to vector<64x1xi32>
    %201 = arith.cmpi sge, %199, %200 : vector<64x1xi32>
    %c-1_i32_54 = arith.constant -1 : i32
    %202 = vector.broadcast %c-1_i32_54 : i32 to vector<64x1xi32>
    %203 = arith.addi %23, %202 : vector<64x1xi32>
    %c8_i32_55 = arith.constant 8 : i32
    %204 = vector.broadcast %c8_i32_55 : i32 to vector<64x1xi32>
    %205 = arith.cmpi slt, %203, %204 : vector<64x1xi32>
    %206 = arith.andi %201, %205 : vector<64x1xi1>
    %cst_56 = arith.constant 0.000000e+00 : f32
    %207 = vector.shape_cast %206 : vector<64x1xi1> to vector<64x1xi1>
    %208 = vector.broadcast %207 : vector<64x1xi1> to vector<64x32xi1>
    %209 = vector.broadcast %cst_56 : f32 to vector<64x32xf32>
    %210 = arith.select %208, %197, %209 : vector<64x32xi1>, vector<64x32xf32>
    %211 = vector.extract_strided_slice %4 {offsets = [11, 0], sizes = [1, 32], strides = [1, 1]} : vector<25x32xf32> to vector<1x32xf32>
    %212 = vector.broadcast %211 : vector<1x32xf32> to vector<64x32xf32>
    %213 = arith.mulf %210, %212 : vector<64x32xf32>
    %214 = arith.addf %196, %213 : vector<64x32xf32>
    %215 = vector.extract_strided_slice %6 {offsets = [24, 0], sizes = [64, 32], strides = [1, 1]} : vector<112x32xf32> to vector<64x32xf32>
    %216 = vector.extract_strided_slice %4 {offsets = [12, 0], sizes = [1, 32], strides = [1, 1]} : vector<25x32xf32> to vector<1x32xf32>
    %217 = vector.broadcast %216 : vector<1x32xf32> to vector<64x32xf32>
    %218 = arith.mulf %215, %217 : vector<64x32xf32>
    %219 = arith.addf %214, %218 : vector<64x32xf32>
    %220 = vector.extract_strided_slice %6 {offsets = [25, 0], sizes = [64, 32], strides = [1, 1]} : vector<112x32xf32> to vector<64x32xf32>
    %c1_i32_57 = arith.constant 1 : i32
    %221 = vector.broadcast %c1_i32_57 : i32 to vector<64x1xi32>
    %222 = arith.addi %23, %221 : vector<64x1xi32>
    %c0_i32_58 = arith.constant 0 : i32
    %223 = vector.broadcast %c0_i32_58 : i32 to vector<64x1xi32>
    %224 = arith.cmpi sge, %222, %223 : vector<64x1xi32>
    %c1_i32_59 = arith.constant 1 : i32
    %225 = vector.broadcast %c1_i32_59 : i32 to vector<64x1xi32>
    %226 = arith.addi %23, %225 : vector<64x1xi32>
    %c8_i32_60 = arith.constant 8 : i32
    %227 = vector.broadcast %c8_i32_60 : i32 to vector<64x1xi32>
    %228 = arith.cmpi slt, %226, %227 : vector<64x1xi32>
    %229 = arith.andi %224, %228 : vector<64x1xi1>
    %cst_61 = arith.constant 0.000000e+00 : f32
    %230 = vector.shape_cast %229 : vector<64x1xi1> to vector<64x1xi1>
    %231 = vector.broadcast %230 : vector<64x1xi1> to vector<64x32xi1>
    %232 = vector.broadcast %cst_61 : f32 to vector<64x32xf32>
    %233 = arith.select %231, %220, %232 : vector<64x32xi1>, vector<64x32xf32>
    %234 = vector.extract_strided_slice %4 {offsets = [13, 0], sizes = [1, 32], strides = [1, 1]} : vector<25x32xf32> to vector<1x32xf32>
    %235 = vector.broadcast %234 : vector<1x32xf32> to vector<64x32xf32>
    %236 = arith.mulf %233, %235 : vector<64x32xf32>
    %237 = arith.addf %219, %236 : vector<64x32xf32>
    %238 = vector.extract_strided_slice %6 {offsets = [26, 0], sizes = [64, 32], strides = [1, 1]} : vector<112x32xf32> to vector<64x32xf32>
    %c2_i32_62 = arith.constant 2 : i32
    %239 = vector.broadcast %c2_i32_62 : i32 to vector<64x1xi32>
    %240 = arith.addi %23, %239 : vector<64x1xi32>
    %c0_i32_63 = arith.constant 0 : i32
    %241 = vector.broadcast %c0_i32_63 : i32 to vector<64x1xi32>
    %242 = arith.cmpi sge, %240, %241 : vector<64x1xi32>
    %c2_i32_64 = arith.constant 2 : i32
    %243 = vector.broadcast %c2_i32_64 : i32 to vector<64x1xi32>
    %244 = arith.addi %23, %243 : vector<64x1xi32>
    %c8_i32_65 = arith.constant 8 : i32
    %245 = vector.broadcast %c8_i32_65 : i32 to vector<64x1xi32>
    %246 = arith.cmpi slt, %244, %245 : vector<64x1xi32>
    %247 = arith.andi %242, %246 : vector<64x1xi1>
    %cst_66 = arith.constant 0.000000e+00 : f32
    %248 = vector.shape_cast %247 : vector<64x1xi1> to vector<64x1xi1>
    %249 = vector.broadcast %248 : vector<64x1xi1> to vector<64x32xi1>
    %250 = vector.broadcast %cst_66 : f32 to vector<64x32xf32>
    %251 = arith.select %249, %238, %250 : vector<64x32xi1>, vector<64x32xf32>
    %252 = vector.extract_strided_slice %4 {offsets = [14, 0], sizes = [1, 32], strides = [1, 1]} : vector<25x32xf32> to vector<1x32xf32>
    %253 = vector.broadcast %252 : vector<1x32xf32> to vector<64x32xf32>
    %254 = arith.mulf %251, %253 : vector<64x32xf32>
    %255 = arith.addf %237, %254 : vector<64x32xf32>
    %256 = vector.extract_strided_slice %6 {offsets = [30, 0], sizes = [64, 32], strides = [1, 1]} : vector<112x32xf32> to vector<64x32xf32>
    %c-2_i32_67 = arith.constant -2 : i32
    %257 = vector.broadcast %c-2_i32_67 : i32 to vector<64x1xi32>
    %258 = arith.addi %23, %257 : vector<64x1xi32>
    %c0_i32_68 = arith.constant 0 : i32
    %259 = vector.broadcast %c0_i32_68 : i32 to vector<64x1xi32>
    %260 = arith.cmpi sge, %258, %259 : vector<64x1xi32>
    %c-2_i32_69 = arith.constant -2 : i32
    %261 = vector.broadcast %c-2_i32_69 : i32 to vector<64x1xi32>
    %262 = arith.addi %23, %261 : vector<64x1xi32>
    %c8_i32_70 = arith.constant 8 : i32
    %263 = vector.broadcast %c8_i32_70 : i32 to vector<64x1xi32>
    %264 = arith.cmpi slt, %262, %263 : vector<64x1xi32>
    %265 = arith.andi %260, %264 : vector<64x1xi1>
    %cst_71 = arith.constant 0.000000e+00 : f32
    %266 = vector.shape_cast %265 : vector<64x1xi1> to vector<64x1xi1>
    %267 = vector.broadcast %266 : vector<64x1xi1> to vector<64x32xi1>
    %268 = vector.broadcast %cst_71 : f32 to vector<64x32xf32>
    %269 = arith.select %267, %256, %268 : vector<64x32xi1>, vector<64x32xf32>
    %270 = vector.extract_strided_slice %4 {offsets = [15, 0], sizes = [1, 32], strides = [1, 1]} : vector<25x32xf32> to vector<1x32xf32>
    %271 = vector.broadcast %270 : vector<1x32xf32> to vector<64x32xf32>
    %272 = arith.mulf %269, %271 : vector<64x32xf32>
    %273 = arith.addf %255, %272 : vector<64x32xf32>
    %274 = vector.extract_strided_slice %6 {offsets = [31, 0], sizes = [64, 32], strides = [1, 1]} : vector<112x32xf32> to vector<64x32xf32>
    %c-1_i32_72 = arith.constant -1 : i32
    %275 = vector.broadcast %c-1_i32_72 : i32 to vector<64x1xi32>
    %276 = arith.addi %23, %275 : vector<64x1xi32>
    %c0_i32_73 = arith.constant 0 : i32
    %277 = vector.broadcast %c0_i32_73 : i32 to vector<64x1xi32>
    %278 = arith.cmpi sge, %276, %277 : vector<64x1xi32>
    %c-1_i32_74 = arith.constant -1 : i32
    %279 = vector.broadcast %c-1_i32_74 : i32 to vector<64x1xi32>
    %280 = arith.addi %23, %279 : vector<64x1xi32>
    %c8_i32_75 = arith.constant 8 : i32
    %281 = vector.broadcast %c8_i32_75 : i32 to vector<64x1xi32>
    %282 = arith.cmpi slt, %280, %281 : vector<64x1xi32>
    %283 = arith.andi %278, %282 : vector<64x1xi1>
    %cst_76 = arith.constant 0.000000e+00 : f32
    %284 = vector.shape_cast %283 : vector<64x1xi1> to vector<64x1xi1>
    %285 = vector.broadcast %284 : vector<64x1xi1> to vector<64x32xi1>
    %286 = vector.broadcast %cst_76 : f32 to vector<64x32xf32>
    %287 = arith.select %285, %274, %286 : vector<64x32xi1>, vector<64x32xf32>
    %288 = vector.extract_strided_slice %4 {offsets = [16, 0], sizes = [1, 32], strides = [1, 1]} : vector<25x32xf32> to vector<1x32xf32>
    %289 = vector.broadcast %288 : vector<1x32xf32> to vector<64x32xf32>
    %290 = arith.mulf %287, %289 : vector<64x32xf32>
    %291 = arith.addf %273, %290 : vector<64x32xf32>
    %292 = vector.extract_strided_slice %6 {offsets = [32, 0], sizes = [64, 32], strides = [1, 1]} : vector<112x32xf32> to vector<64x32xf32>
    %293 = vector.extract_strided_slice %4 {offsets = [17, 0], sizes = [1, 32], strides = [1, 1]} : vector<25x32xf32> to vector<1x32xf32>
    %294 = vector.broadcast %293 : vector<1x32xf32> to vector<64x32xf32>
    %295 = arith.mulf %292, %294 : vector<64x32xf32>
    %296 = arith.addf %291, %295 : vector<64x32xf32>
    %297 = vector.extract_strided_slice %6 {offsets = [33, 0], sizes = [64, 32], strides = [1, 1]} : vector<112x32xf32> to vector<64x32xf32>
    %c1_i32_77 = arith.constant 1 : i32
    %298 = vector.broadcast %c1_i32_77 : i32 to vector<64x1xi32>
    %299 = arith.addi %23, %298 : vector<64x1xi32>
    %c0_i32_78 = arith.constant 0 : i32
    %300 = vector.broadcast %c0_i32_78 : i32 to vector<64x1xi32>
    %301 = arith.cmpi sge, %299, %300 : vector<64x1xi32>
    %c1_i32_79 = arith.constant 1 : i32
    %302 = vector.broadcast %c1_i32_79 : i32 to vector<64x1xi32>
    %303 = arith.addi %23, %302 : vector<64x1xi32>
    %c8_i32_80 = arith.constant 8 : i32
    %304 = vector.broadcast %c8_i32_80 : i32 to vector<64x1xi32>
    %305 = arith.cmpi slt, %303, %304 : vector<64x1xi32>
    %306 = arith.andi %301, %305 : vector<64x1xi1>
    %cst_81 = arith.constant 0.000000e+00 : f32
    %307 = vector.shape_cast %306 : vector<64x1xi1> to vector<64x1xi1>
    %308 = vector.broadcast %307 : vector<64x1xi1> to vector<64x32xi1>
    %309 = vector.broadcast %cst_81 : f32 to vector<64x32xf32>
    %310 = arith.select %308, %297, %309 : vector<64x32xi1>, vector<64x32xf32>
    %311 = vector.extract_strided_slice %4 {offsets = [18, 0], sizes = [1, 32], strides = [1, 1]} : vector<25x32xf32> to vector<1x32xf32>
    %312 = vector.broadcast %311 : vector<1x32xf32> to vector<64x32xf32>
    %313 = arith.mulf %310, %312 : vector<64x32xf32>
    %314 = arith.addf %296, %313 : vector<64x32xf32>
    %315 = vector.extract_strided_slice %6 {offsets = [34, 0], sizes = [64, 32], strides = [1, 1]} : vector<112x32xf32> to vector<64x32xf32>
    %c2_i32_82 = arith.constant 2 : i32
    %316 = vector.broadcast %c2_i32_82 : i32 to vector<64x1xi32>
    %317 = arith.addi %23, %316 : vector<64x1xi32>
    %c0_i32_83 = arith.constant 0 : i32
    %318 = vector.broadcast %c0_i32_83 : i32 to vector<64x1xi32>
    %319 = arith.cmpi sge, %317, %318 : vector<64x1xi32>
    %c2_i32_84 = arith.constant 2 : i32
    %320 = vector.broadcast %c2_i32_84 : i32 to vector<64x1xi32>
    %321 = arith.addi %23, %320 : vector<64x1xi32>
    %c8_i32_85 = arith.constant 8 : i32
    %322 = vector.broadcast %c8_i32_85 : i32 to vector<64x1xi32>
    %323 = arith.cmpi slt, %321, %322 : vector<64x1xi32>
    %324 = arith.andi %319, %323 : vector<64x1xi1>
    %cst_86 = arith.constant 0.000000e+00 : f32
    %325 = vector.shape_cast %324 : vector<64x1xi1> to vector<64x1xi1>
    %326 = vector.broadcast %325 : vector<64x1xi1> to vector<64x32xi1>
    %327 = vector.broadcast %cst_86 : f32 to vector<64x32xf32>
    %328 = arith.select %326, %315, %327 : vector<64x32xi1>, vector<64x32xf32>
    %329 = vector.extract_strided_slice %4 {offsets = [19, 0], sizes = [1, 32], strides = [1, 1]} : vector<25x32xf32> to vector<1x32xf32>
    %330 = vector.broadcast %329 : vector<1x32xf32> to vector<64x32xf32>
    %331 = arith.mulf %328, %330 : vector<64x32xf32>
    %332 = arith.addf %314, %331 : vector<64x32xf32>
    %333 = vector.extract_strided_slice %6 {offsets = [38, 0], sizes = [64, 32], strides = [1, 1]} : vector<112x32xf32> to vector<64x32xf32>
    %c-2_i32_87 = arith.constant -2 : i32
    %334 = vector.broadcast %c-2_i32_87 : i32 to vector<64x1xi32>
    %335 = arith.addi %23, %334 : vector<64x1xi32>
    %c0_i32_88 = arith.constant 0 : i32
    %336 = vector.broadcast %c0_i32_88 : i32 to vector<64x1xi32>
    %337 = arith.cmpi sge, %335, %336 : vector<64x1xi32>
    %c-2_i32_89 = arith.constant -2 : i32
    %338 = vector.broadcast %c-2_i32_89 : i32 to vector<64x1xi32>
    %339 = arith.addi %23, %338 : vector<64x1xi32>
    %c8_i32_90 = arith.constant 8 : i32
    %340 = vector.broadcast %c8_i32_90 : i32 to vector<64x1xi32>
    %341 = arith.cmpi slt, %339, %340 : vector<64x1xi32>
    %342 = arith.andi %337, %341 : vector<64x1xi1>
    %cst_91 = arith.constant 0.000000e+00 : f32
    %343 = vector.shape_cast %342 : vector<64x1xi1> to vector<64x1xi1>
    %344 = vector.broadcast %343 : vector<64x1xi1> to vector<64x32xi1>
    %345 = vector.broadcast %cst_91 : f32 to vector<64x32xf32>
    %346 = arith.select %344, %333, %345 : vector<64x32xi1>, vector<64x32xf32>
    %347 = vector.extract_strided_slice %4 {offsets = [20, 0], sizes = [1, 32], strides = [1, 1]} : vector<25x32xf32> to vector<1x32xf32>
    %348 = vector.broadcast %347 : vector<1x32xf32> to vector<64x32xf32>
    %349 = arith.mulf %346, %348 : vector<64x32xf32>
    %350 = arith.addf %332, %349 : vector<64x32xf32>
    %351 = vector.extract_strided_slice %6 {offsets = [39, 0], sizes = [64, 32], strides = [1, 1]} : vector<112x32xf32> to vector<64x32xf32>
    %c-1_i32_92 = arith.constant -1 : i32
    %352 = vector.broadcast %c-1_i32_92 : i32 to vector<64x1xi32>
    %353 = arith.addi %23, %352 : vector<64x1xi32>
    %c0_i32_93 = arith.constant 0 : i32
    %354 = vector.broadcast %c0_i32_93 : i32 to vector<64x1xi32>
    %355 = arith.cmpi sge, %353, %354 : vector<64x1xi32>
    %c-1_i32_94 = arith.constant -1 : i32
    %356 = vector.broadcast %c-1_i32_94 : i32 to vector<64x1xi32>
    %357 = arith.addi %23, %356 : vector<64x1xi32>
    %c8_i32_95 = arith.constant 8 : i32
    %358 = vector.broadcast %c8_i32_95 : i32 to vector<64x1xi32>
    %359 = arith.cmpi slt, %357, %358 : vector<64x1xi32>
    %360 = arith.andi %355, %359 : vector<64x1xi1>
    %cst_96 = arith.constant 0.000000e+00 : f32
    %361 = vector.shape_cast %360 : vector<64x1xi1> to vector<64x1xi1>
    %362 = vector.broadcast %361 : vector<64x1xi1> to vector<64x32xi1>
    %363 = vector.broadcast %cst_96 : f32 to vector<64x32xf32>
    %364 = arith.select %362, %351, %363 : vector<64x32xi1>, vector<64x32xf32>
    %365 = vector.extract_strided_slice %4 {offsets = [21, 0], sizes = [1, 32], strides = [1, 1]} : vector<25x32xf32> to vector<1x32xf32>
    %366 = vector.broadcast %365 : vector<1x32xf32> to vector<64x32xf32>
    %367 = arith.mulf %364, %366 : vector<64x32xf32>
    %368 = arith.addf %350, %367 : vector<64x32xf32>
    %369 = vector.extract_strided_slice %6 {offsets = [40, 0], sizes = [64, 32], strides = [1, 1]} : vector<112x32xf32> to vector<64x32xf32>
    %370 = vector.extract_strided_slice %4 {offsets = [22, 0], sizes = [1, 32], strides = [1, 1]} : vector<25x32xf32> to vector<1x32xf32>
    %371 = vector.broadcast %370 : vector<1x32xf32> to vector<64x32xf32>
    %372 = arith.mulf %369, %371 : vector<64x32xf32>
    %373 = arith.addf %368, %372 : vector<64x32xf32>
    %374 = vector.extract_strided_slice %6 {offsets = [41, 0], sizes = [64, 32], strides = [1, 1]} : vector<112x32xf32> to vector<64x32xf32>
    %c1_i32_97 = arith.constant 1 : i32
    %375 = vector.broadcast %c1_i32_97 : i32 to vector<64x1xi32>
    %376 = arith.addi %23, %375 : vector<64x1xi32>
    %c0_i32_98 = arith.constant 0 : i32
    %377 = vector.broadcast %c0_i32_98 : i32 to vector<64x1xi32>
    %378 = arith.cmpi sge, %376, %377 : vector<64x1xi32>
    %c1_i32_99 = arith.constant 1 : i32
    %379 = vector.broadcast %c1_i32_99 : i32 to vector<64x1xi32>
    %380 = arith.addi %23, %379 : vector<64x1xi32>
    %c8_i32_100 = arith.constant 8 : i32
    %381 = vector.broadcast %c8_i32_100 : i32 to vector<64x1xi32>
    %382 = arith.cmpi slt, %380, %381 : vector<64x1xi32>
    %383 = arith.andi %378, %382 : vector<64x1xi1>
    %cst_101 = arith.constant 0.000000e+00 : f32
    %384 = vector.shape_cast %383 : vector<64x1xi1> to vector<64x1xi1>
    %385 = vector.broadcast %384 : vector<64x1xi1> to vector<64x32xi1>
    %386 = vector.broadcast %cst_101 : f32 to vector<64x32xf32>
    %387 = arith.select %385, %374, %386 : vector<64x32xi1>, vector<64x32xf32>
    %388 = vector.extract_strided_slice %4 {offsets = [23, 0], sizes = [1, 32], strides = [1, 1]} : vector<25x32xf32> to vector<1x32xf32>
    %389 = vector.broadcast %388 : vector<1x32xf32> to vector<64x32xf32>
    %390 = arith.mulf %387, %389 : vector<64x32xf32>
    %391 = arith.addf %373, %390 : vector<64x32xf32>
    %392 = vector.extract_strided_slice %6 {offsets = [42, 0], sizes = [64, 32], strides = [1, 1]} : vector<112x32xf32> to vector<64x32xf32>
    %c2_i32_102 = arith.constant 2 : i32
    %393 = vector.broadcast %c2_i32_102 : i32 to vector<64x1xi32>
    %394 = arith.addi %23, %393 : vector<64x1xi32>
    %c0_i32_103 = arith.constant 0 : i32
    %395 = vector.broadcast %c0_i32_103 : i32 to vector<64x1xi32>
    %396 = arith.cmpi sge, %394, %395 : vector<64x1xi32>
    %c2_i32_104 = arith.constant 2 : i32
    %397 = vector.broadcast %c2_i32_104 : i32 to vector<64x1xi32>
    %398 = arith.addi %23, %397 : vector<64x1xi32>
    %c8_i32_105 = arith.constant 8 : i32
    %399 = vector.broadcast %c8_i32_105 : i32 to vector<64x1xi32>
    %400 = arith.cmpi slt, %398, %399 : vector<64x1xi32>
    %401 = arith.andi %396, %400 : vector<64x1xi1>
    %cst_106 = arith.constant 0.000000e+00 : f32
    %402 = vector.shape_cast %401 : vector<64x1xi1> to vector<64x1xi1>
    %403 = vector.broadcast %402 : vector<64x1xi1> to vector<64x32xi1>
    %404 = vector.broadcast %cst_106 : f32 to vector<64x32xf32>
    %405 = arith.select %403, %392, %404 : vector<64x32xi1>, vector<64x32xf32>
    %406 = vector.extract_strided_slice %4 {offsets = [24, 0], sizes = [1, 32], strides = [1, 1]} : vector<25x32xf32> to vector<1x32xf32>
    %407 = vector.broadcast %406 : vector<1x32xf32> to vector<64x32xf32>
    %408 = arith.mulf %405, %407 : vector<64x32xf32>
    %409 = arith.addf %391, %408 : vector<64x32xf32>
    %cst_107 = arith.constant dense<0.000000e+00> : vector<64x32xf32>
    %410 = tpu.matmul %409, %2, %cst_107 {dimension_numbers = #tpu.dot_dimension_numbers<[1], [0], [0], [1], [0, 0, 1, 1], [], []>} : vector<64x32xf32>, vector<32x32xf32>, vector<64x32xf32> -> vector<64x32xf32>
    %411 = vector.extract_strided_slice %1 {offsets = [0, 0], sizes = [64, 8], strides = [1, 1]} : vector<64x96xf32> to vector<64x8xf32>
    %412 = vector.extract_strided_slice %1 {offsets = [0, 32], sizes = [64, 8], strides = [1, 1]} : vector<64x96xf32> to vector<64x8xf32>
    %413 = vector.extract_strided_slice %1 {offsets = [0, 64], sizes = [64, 8], strides = [1, 1]} : vector<64x96xf32> to vector<64x8xf32>
    %cst_108 = arith.constant dense<0.000000e+00> : vector<64x64xf32>
    %414 = tpu.matmul %411, %412, %cst_108 {dimension_numbers = #tpu.dot_dimension_numbers<[1], [1], [0], [0], [0, 0, 1, 0], [], []>} : vector<64x8xf32>, vector<64x8xf32>, vector<64x64xf32> -> vector<64x64xf32>
    %cst_109 = arith.constant 0.353553385 : f32
    %415 = vector.broadcast %cst_109 : f32 to vector<64x64xf32>
    %416 = arith.mulf %414, %415 : vector<64x64xf32>
    %cst_110 = arith.constant dense<0xFF800000> : vector<64xf32>
    %417 = vector.multi_reduction <maximumf>, %416, %cst_110 [1] : vector<64x64xf32> to vector<64xf32>
    %418 = vector.shape_cast %417 : vector<64xf32> to vector<64x1xf32>
    %419 = vector.broadcast %418 : vector<64x1xf32> to vector<64x64xf32>
    %420 = arith.subf %416, %419 : vector<64x64xf32>
    %421 = math.exp %420 : vector<64x64xf32>
    %cst_111 = arith.constant dense<0.000000e+00> : vector<64xf32>
    %422 = vector.multi_reduction <add>, %421, %cst_111 [1] : vector<64x64xf32> to vector<64xf32>
    %423 = vector.shape_cast %422 : vector<64xf32> to vector<64x1xf32>
    %424 = tpu.reciprocal %423 {approx = true} : vector<64x1xf32> -> vector<64x1xf32>
    %425 = vector.broadcast %424 : vector<64x1xf32> to vector<64x64xf32>
    %426 = arith.mulf %421, %425 : vector<64x64xf32>
    %cst_112 = arith.constant dense<0.000000e+00> : vector<64x8xf32>
    %427 = tpu.matmul %426, %413, %cst_112 {dimension_numbers = #tpu.dot_dimension_numbers<[1], [0], [0], [1], [0, 0, 1, 1], [], []>} : vector<64x64xf32>, vector<64x8xf32>, vector<64x8xf32> -> vector<64x8xf32>
    %428 = vector.extract_strided_slice %2 {offsets = [0, 0], sizes = [8, 32], strides = [1, 1]} : vector<32x32xf32> to vector<8x32xf32>
    %cst_113 = arith.constant dense<0.000000e+00> : vector<64x32xf32>
    %429 = tpu.matmul %427, %428, %cst_113 {dimension_numbers = #tpu.dot_dimension_numbers<[1], [0], [0], [1], [0, 0, 1, 1], [], []>} : vector<64x8xf32>, vector<8x32xf32>, vector<64x32xf32> -> vector<64x32xf32>
    %430 = arith.addf %410, %429 : vector<64x32xf32>
    %431 = vector.extract_strided_slice %1 {offsets = [0, 8], sizes = [64, 8], strides = [1, 1]} : vector<64x96xf32> to vector<64x8xf32>
    %432 = vector.extract_strided_slice %1 {offsets = [0, 40], sizes = [64, 8], strides = [1, 1]} : vector<64x96xf32> to vector<64x8xf32>
    %433 = vector.extract_strided_slice %1 {offsets = [0, 72], sizes = [64, 8], strides = [1, 1]} : vector<64x96xf32> to vector<64x8xf32>
    %cst_114 = arith.constant dense<0.000000e+00> : vector<64x64xf32>
    %434 = tpu.matmul %431, %432, %cst_114 {dimension_numbers = #tpu.dot_dimension_numbers<[1], [1], [0], [0], [0, 0, 1, 0], [], []>} : vector<64x8xf32>, vector<64x8xf32>, vector<64x64xf32> -> vector<64x64xf32>
    %cst_115 = arith.constant 0.353553385 : f32
    %435 = vector.broadcast %cst_115 : f32 to vector<64x64xf32>
    %436 = arith.mulf %434, %435 : vector<64x64xf32>
    %cst_116 = arith.constant dense<0xFF800000> : vector<64xf32>
    %437 = vector.multi_reduction <maximumf>, %436, %cst_116 [1] : vector<64x64xf32> to vector<64xf32>
    %438 = vector.shape_cast %437 : vector<64xf32> to vector<64x1xf32>
    %439 = vector.broadcast %438 : vector<64x1xf32> to vector<64x64xf32>
    %440 = arith.subf %436, %439 : vector<64x64xf32>
    %441 = math.exp %440 : vector<64x64xf32>
    %cst_117 = arith.constant dense<0.000000e+00> : vector<64xf32>
    %442 = vector.multi_reduction <add>, %441, %cst_117 [1] : vector<64x64xf32> to vector<64xf32>
    %443 = vector.shape_cast %442 : vector<64xf32> to vector<64x1xf32>
    %444 = tpu.reciprocal %443 {approx = true} : vector<64x1xf32> -> vector<64x1xf32>
    %445 = vector.broadcast %444 : vector<64x1xf32> to vector<64x64xf32>
    %446 = arith.mulf %441, %445 : vector<64x64xf32>
    %cst_118 = arith.constant dense<0.000000e+00> : vector<64x8xf32>
    %447 = tpu.matmul %446, %433, %cst_118 {dimension_numbers = #tpu.dot_dimension_numbers<[1], [0], [0], [1], [0, 0, 1, 1], [], []>} : vector<64x64xf32>, vector<64x8xf32>, vector<64x8xf32> -> vector<64x8xf32>
    %448 = vector.extract_strided_slice %2 {offsets = [8, 0], sizes = [8, 32], strides = [1, 1]} : vector<32x32xf32> to vector<8x32xf32>
    %cst_119 = arith.constant dense<0.000000e+00> : vector<64x32xf32>
    %449 = tpu.matmul %447, %448, %cst_119 {dimension_numbers = #tpu.dot_dimension_numbers<[1], [0], [0], [1], [0, 0, 1, 1], [], []>} : vector<64x8xf32>, vector<8x32xf32>, vector<64x32xf32> -> vector<64x32xf32>
    %450 = arith.addf %430, %449 : vector<64x32xf32>
    %451 = vector.extract_strided_slice %1 {offsets = [0, 16], sizes = [64, 8], strides = [1, 1]} : vector<64x96xf32> to vector<64x8xf32>
    %452 = vector.extract_strided_slice %1 {offsets = [0, 48], sizes = [64, 8], strides = [1, 1]} : vector<64x96xf32> to vector<64x8xf32>
    %453 = vector.extract_strided_slice %1 {offsets = [0, 80], sizes = [64, 8], strides = [1, 1]} : vector<64x96xf32> to vector<64x8xf32>
    %cst_120 = arith.constant dense<0.000000e+00> : vector<64x64xf32>
    %454 = tpu.matmul %451, %452, %cst_120 {dimension_numbers = #tpu.dot_dimension_numbers<[1], [1], [0], [0], [0, 0, 1, 0], [], []>} : vector<64x8xf32>, vector<64x8xf32>, vector<64x64xf32> -> vector<64x64xf32>
    %cst_121 = arith.constant 0.353553385 : f32
    %455 = vector.broadcast %cst_121 : f32 to vector<64x64xf32>
    %456 = arith.mulf %454, %455 : vector<64x64xf32>
    %cst_122 = arith.constant dense<0xFF800000> : vector<64xf32>
    %457 = vector.multi_reduction <maximumf>, %456, %cst_122 [1] : vector<64x64xf32> to vector<64xf32>
    %458 = vector.shape_cast %457 : vector<64xf32> to vector<64x1xf32>
    %459 = vector.broadcast %458 : vector<64x1xf32> to vector<64x64xf32>
    %460 = arith.subf %456, %459 : vector<64x64xf32>
    %461 = math.exp %460 : vector<64x64xf32>
    %cst_123 = arith.constant dense<0.000000e+00> : vector<64xf32>
    %462 = vector.multi_reduction <add>, %461, %cst_123 [1] : vector<64x64xf32> to vector<64xf32>
    %463 = vector.shape_cast %462 : vector<64xf32> to vector<64x1xf32>
    %464 = tpu.reciprocal %463 {approx = true} : vector<64x1xf32> -> vector<64x1xf32>
    %465 = vector.broadcast %464 : vector<64x1xf32> to vector<64x64xf32>
    %466 = arith.mulf %461, %465 : vector<64x64xf32>
    %cst_124 = arith.constant dense<0.000000e+00> : vector<64x8xf32>
    %467 = tpu.matmul %466, %453, %cst_124 {dimension_numbers = #tpu.dot_dimension_numbers<[1], [0], [0], [1], [0, 0, 1, 1], [], []>} : vector<64x64xf32>, vector<64x8xf32>, vector<64x8xf32> -> vector<64x8xf32>
    %468 = vector.extract_strided_slice %2 {offsets = [16, 0], sizes = [8, 32], strides = [1, 1]} : vector<32x32xf32> to vector<8x32xf32>
    %cst_125 = arith.constant dense<0.000000e+00> : vector<64x32xf32>
    %469 = tpu.matmul %467, %468, %cst_125 {dimension_numbers = #tpu.dot_dimension_numbers<[1], [0], [0], [1], [0, 0, 1, 1], [], []>} : vector<64x8xf32>, vector<8x32xf32>, vector<64x32xf32> -> vector<64x32xf32>
    %470 = arith.addf %450, %469 : vector<64x32xf32>
    %471 = vector.extract_strided_slice %1 {offsets = [0, 24], sizes = [64, 8], strides = [1, 1]} : vector<64x96xf32> to vector<64x8xf32>
    %472 = vector.extract_strided_slice %1 {offsets = [0, 56], sizes = [64, 8], strides = [1, 1]} : vector<64x96xf32> to vector<64x8xf32>
    %473 = vector.extract_strided_slice %1 {offsets = [0, 88], sizes = [64, 8], strides = [1, 1]} : vector<64x96xf32> to vector<64x8xf32>
    %cst_126 = arith.constant dense<0.000000e+00> : vector<64x64xf32>
    %474 = tpu.matmul %471, %472, %cst_126 {dimension_numbers = #tpu.dot_dimension_numbers<[1], [1], [0], [0], [0, 0, 1, 0], [], []>} : vector<64x8xf32>, vector<64x8xf32>, vector<64x64xf32> -> vector<64x64xf32>
    %cst_127 = arith.constant 0.353553385 : f32
    %475 = vector.broadcast %cst_127 : f32 to vector<64x64xf32>
    %476 = arith.mulf %474, %475 : vector<64x64xf32>
    %cst_128 = arith.constant dense<0xFF800000> : vector<64xf32>
    %477 = vector.multi_reduction <maximumf>, %476, %cst_128 [1] : vector<64x64xf32> to vector<64xf32>
    %478 = vector.shape_cast %477 : vector<64xf32> to vector<64x1xf32>
    %479 = vector.broadcast %478 : vector<64x1xf32> to vector<64x64xf32>
    %480 = arith.subf %476, %479 : vector<64x64xf32>
    %481 = math.exp %480 : vector<64x64xf32>
    %cst_129 = arith.constant dense<0.000000e+00> : vector<64xf32>
    %482 = vector.multi_reduction <add>, %481, %cst_129 [1] : vector<64x64xf32> to vector<64xf32>
    %483 = vector.shape_cast %482 : vector<64xf32> to vector<64x1xf32>
    %484 = tpu.reciprocal %483 {approx = true} : vector<64x1xf32> -> vector<64x1xf32>
    %485 = vector.broadcast %484 : vector<64x1xf32> to vector<64x64xf32>
    %486 = arith.mulf %481, %485 : vector<64x64xf32>
    %cst_130 = arith.constant dense<0.000000e+00> : vector<64x8xf32>
    %487 = tpu.matmul %486, %473, %cst_130 {dimension_numbers = #tpu.dot_dimension_numbers<[1], [0], [0], [1], [0, 0, 1, 1], [], []>} : vector<64x64xf32>, vector<64x8xf32>, vector<64x8xf32> -> vector<64x8xf32>
    %488 = vector.extract_strided_slice %2 {offsets = [24, 0], sizes = [8, 32], strides = [1, 1]} : vector<32x32xf32> to vector<8x32xf32>
    %cst_131 = arith.constant dense<0.000000e+00> : vector<64x32xf32>
    %489 = tpu.matmul %487, %488, %cst_131 {dimension_numbers = #tpu.dot_dimension_numbers<[1], [0], [0], [1], [0, 0, 1, 1], [], []>} : vector<64x8xf32>, vector<8x32xf32>, vector<64x32xf32> -> vector<64x32xf32>
    %490 = arith.addf %470, %489 : vector<64x32xf32>
    %c0_132 = arith.constant 0 : index
    %c0_133 = arith.constant 0 : index
    %c0_134 = arith.constant 0 : index
    %491 = vector.load %arg2[%c0_132, %c0_133, %c0_134] : memref<1x64x32xf32, #tpu.memory_space<vmem>>, vector<1x64x32xf32>
    %492 = vector.shape_cast %491 : vector<1x64x32xf32> to vector<64x32xf32>
    %493 = arith.addf %492, %490 : vector<64x32xf32>
    %c0_135 = arith.constant 0 : index
    %c0_136 = arith.constant 0 : index
    %c0_137 = arith.constant 0 : index
    %494 = vector.load %arg5[%c0_135, %c0_136, %c0_137] : memref<1x64x32xf32, #tpu.memory_space<vmem>>, vector<1x64x32xf32>
    %495 = vector.shape_cast %494 : vector<1x64x32xf32> to vector<64x32xf32>
    %496 = vector.shape_cast %493 : vector<64x32xf32> to vector<1x64x32xf32>
    tpu.vector_store %arg5[%c0_135, %c0_136, %c0_137], %496 {strides = array<i32>} : memref<1x64x32xf32, #tpu.memory_space<vmem>>, vector<1x64x32xf32>,
    return
  }
  func.func @transform_0(%arg0: i32) -> (i32, i32, i32) {
    %c0_i32 = arith.constant 0 : i32
    %c0_i32_0 = arith.constant 0 : i32
    %c0_i32_1 = arith.constant 0 : i32
    return %arg0, %c0_i32, %c0_i32_0 : i32, i32, i32
  }
  func.func @transform_1(%arg0: i32) -> (i32, i32, i32) {
    %c0_i32 = arith.constant 0 : i32
    %c0_i32_0 = arith.constant 0 : i32
    %c0_i32_1 = arith.constant 0 : i32
    return %arg0, %c0_i32, %c0_i32_0 : i32, i32, i32
  }
  func.func @transform_2(%arg0: i32) -> (i32, i32) {
    %c0_i32 = arith.constant 0 : i32
    %c0_i32_0 = arith.constant 0 : i32
    %c0_i32_1 = arith.constant 0 : i32
    return %c0_i32, %c0_i32_0 : i32, i32
  }
  func.func @transform_3(%arg0: i32) -> (i32, i32) {
    %c0_i32 = arith.constant 0 : i32
    %c0_i32_0 = arith.constant 0 : i32
    %c0_i32_1 = arith.constant 0 : i32
    return %c0_i32, %c0_i32_0 : i32, i32
  }
  func.func @transform_4(%arg0: i32) -> (i32, i32, i32) {
    %c0_i32 = arith.constant 0 : i32
    %c0_i32_0 = arith.constant 0 : i32
    %c0_i32_1 = arith.constant 0 : i32
    return %arg0, %c0_i32, %c0_i32_0 : i32, i32, i32
  }
}

module attributes {stable_mosaic.version = 11 : i64} {
  func.func @_global_attn_kernel(%arg0: i32, %arg1: memref<1x64x96xf32, #tpu.memory_space<vmem>>, %arg2: memref<1x64x32xf32, #tpu.memory_space<vmem>>, %arg3: memref<32x32xf32, #tpu.memory_space<vmem>>, %arg4: memref<1x64x32xf32, #tpu.memory_space<vmem>>) attributes {dimension_semantics = [#tpu.dimension_semantics<parallel>], iteration_bounds = array<i64: 2>, scalar_prefetch = 0 : i64, scratch_operands = 0 : i64, tpu.core_type = #tpu.core_type<tc>, window_params = [{transform_indices = @transform_0, window_bounds = array<i64: 1, 64, 96>}, {transform_indices = @transform_1, window_bounds = array<i64: 1, 64, 32>}, {pipeline_mode = #tpu.pipeline_mode<synchronous>, transform_indices = @transform_2, window_bounds = array<i64: 32, 32>}, {transform_indices = @transform_3, window_bounds = array<i64: 1, 64, 32>}]} {
    %c0 = arith.constant 0 : index
    %c0_0 = arith.constant 0 : index
    %c0_1 = arith.constant 0 : index
    %0 = vector.load %arg1[%c0, %c0_0, %c0_1] : memref<1x64x96xf32, #tpu.memory_space<vmem>>, vector<1x64x96xf32>
    %1 = vector.shape_cast %0 : vector<1x64x96xf32> to vector<64x96xf32>
    %c0_2 = arith.constant 0 : index
    %c0_3 = arith.constant 0 : index
    %2 = vector.load %arg3[%c0_2, %c0_3] : memref<32x32xf32, #tpu.memory_space<vmem>>, vector<32x32xf32>
    %cst = arith.constant 0.000000e+00 : f32
    %3 = vector.broadcast %cst : f32 to vector<64x32xf32>
    %4 = vector.extract_strided_slice %1 {offsets = [0, 0], sizes = [64, 8], strides = [1, 1]} : vector<64x96xf32> to vector<64x8xf32>
    %5 = vector.extract_strided_slice %1 {offsets = [0, 32], sizes = [64, 8], strides = [1, 1]} : vector<64x96xf32> to vector<64x8xf32>
    %6 = vector.extract_strided_slice %1 {offsets = [0, 64], sizes = [64, 8], strides = [1, 1]} : vector<64x96xf32> to vector<64x8xf32>
    %cst_4 = arith.constant dense<0.000000e+00> : vector<64x64xf32>
    %7 = tpu.matmul %4, %5, %cst_4 {dimension_numbers = #tpu.dot_dimension_numbers<[1], [1], [0], [0], [0, 0, 1, 0], [], []>} : vector<64x8xf32>, vector<64x8xf32>, vector<64x64xf32> -> vector<64x64xf32>
    %cst_5 = arith.constant 0.353553385 : f32
    %8 = vector.broadcast %cst_5 : f32 to vector<64x64xf32>
    %9 = arith.mulf %7, %8 : vector<64x64xf32>
    %cst_6 = arith.constant dense<0xFF800000> : vector<64xf32>
    %10 = vector.multi_reduction <maximumf>, %9, %cst_6 [1] : vector<64x64xf32> to vector<64xf32>
    %11 = vector.shape_cast %10 : vector<64xf32> to vector<64x1xf32>
    %12 = vector.broadcast %11 : vector<64x1xf32> to vector<64x64xf32>
    %13 = arith.subf %9, %12 : vector<64x64xf32>
    %14 = math.exp %13 : vector<64x64xf32>
    %cst_7 = arith.constant dense<0.000000e+00> : vector<64xf32>
    %15 = vector.multi_reduction <add>, %14, %cst_7 [1] : vector<64x64xf32> to vector<64xf32>
    %16 = vector.shape_cast %15 : vector<64xf32> to vector<64x1xf32>
    %17 = tpu.reciprocal %16 {approx = true} : vector<64x1xf32> -> vector<64x1xf32>
    %18 = vector.broadcast %17 : vector<64x1xf32> to vector<64x64xf32>
    %19 = arith.mulf %14, %18 : vector<64x64xf32>
    %cst_8 = arith.constant dense<0.000000e+00> : vector<64x8xf32>
    %20 = tpu.matmul %19, %6, %cst_8 {dimension_numbers = #tpu.dot_dimension_numbers<[1], [0], [0], [1], [0, 0, 1, 1], [], []>} : vector<64x64xf32>, vector<64x8xf32>, vector<64x8xf32> -> vector<64x8xf32>
    %21 = vector.extract_strided_slice %2 {offsets = [0, 0], sizes = [8, 32], strides = [1, 1]} : vector<32x32xf32> to vector<8x32xf32>
    %cst_9 = arith.constant dense<0.000000e+00> : vector<64x32xf32>
    %22 = tpu.matmul %20, %21, %cst_9 {dimension_numbers = #tpu.dot_dimension_numbers<[1], [0], [0], [1], [0, 0, 1, 1], [], []>} : vector<64x8xf32>, vector<8x32xf32>, vector<64x32xf32> -> vector<64x32xf32>
    %23 = arith.addf %3, %22 : vector<64x32xf32>
    %24 = vector.extract_strided_slice %1 {offsets = [0, 8], sizes = [64, 8], strides = [1, 1]} : vector<64x96xf32> to vector<64x8xf32>
    %25 = vector.extract_strided_slice %1 {offsets = [0, 40], sizes = [64, 8], strides = [1, 1]} : vector<64x96xf32> to vector<64x8xf32>
    %26 = vector.extract_strided_slice %1 {offsets = [0, 72], sizes = [64, 8], strides = [1, 1]} : vector<64x96xf32> to vector<64x8xf32>
    %cst_10 = arith.constant dense<0.000000e+00> : vector<64x64xf32>
    %27 = tpu.matmul %24, %25, %cst_10 {dimension_numbers = #tpu.dot_dimension_numbers<[1], [1], [0], [0], [0, 0, 1, 0], [], []>} : vector<64x8xf32>, vector<64x8xf32>, vector<64x64xf32> -> vector<64x64xf32>
    %cst_11 = arith.constant 0.353553385 : f32
    %28 = vector.broadcast %cst_11 : f32 to vector<64x64xf32>
    %29 = arith.mulf %27, %28 : vector<64x64xf32>
    %cst_12 = arith.constant dense<0xFF800000> : vector<64xf32>
    %30 = vector.multi_reduction <maximumf>, %29, %cst_12 [1] : vector<64x64xf32> to vector<64xf32>
    %31 = vector.shape_cast %30 : vector<64xf32> to vector<64x1xf32>
    %32 = vector.broadcast %31 : vector<64x1xf32> to vector<64x64xf32>
    %33 = arith.subf %29, %32 : vector<64x64xf32>
    %34 = math.exp %33 : vector<64x64xf32>
    %cst_13 = arith.constant dense<0.000000e+00> : vector<64xf32>
    %35 = vector.multi_reduction <add>, %34, %cst_13 [1] : vector<64x64xf32> to vector<64xf32>
    %36 = vector.shape_cast %35 : vector<64xf32> to vector<64x1xf32>
    %37 = tpu.reciprocal %36 {approx = true} : vector<64x1xf32> -> vector<64x1xf32>
    %38 = vector.broadcast %37 : vector<64x1xf32> to vector<64x64xf32>
    %39 = arith.mulf %34, %38 : vector<64x64xf32>
    %cst_14 = arith.constant dense<0.000000e+00> : vector<64x8xf32>
    %40 = tpu.matmul %39, %26, %cst_14 {dimension_numbers = #tpu.dot_dimension_numbers<[1], [0], [0], [1], [0, 0, 1, 1], [], []>} : vector<64x64xf32>, vector<64x8xf32>, vector<64x8xf32> -> vector<64x8xf32>
    %41 = vector.extract_strided_slice %2 {offsets = [8, 0], sizes = [8, 32], strides = [1, 1]} : vector<32x32xf32> to vector<8x32xf32>
    %cst_15 = arith.constant dense<0.000000e+00> : vector<64x32xf32>
    %42 = tpu.matmul %40, %41, %cst_15 {dimension_numbers = #tpu.dot_dimension_numbers<[1], [0], [0], [1], [0, 0, 1, 1], [], []>} : vector<64x8xf32>, vector<8x32xf32>, vector<64x32xf32> -> vector<64x32xf32>
    %43 = arith.addf %23, %42 : vector<64x32xf32>
    %44 = vector.extract_strided_slice %1 {offsets = [0, 16], sizes = [64, 8], strides = [1, 1]} : vector<64x96xf32> to vector<64x8xf32>
    %45 = vector.extract_strided_slice %1 {offsets = [0, 48], sizes = [64, 8], strides = [1, 1]} : vector<64x96xf32> to vector<64x8xf32>
    %46 = vector.extract_strided_slice %1 {offsets = [0, 80], sizes = [64, 8], strides = [1, 1]} : vector<64x96xf32> to vector<64x8xf32>
    %cst_16 = arith.constant dense<0.000000e+00> : vector<64x64xf32>
    %47 = tpu.matmul %44, %45, %cst_16 {dimension_numbers = #tpu.dot_dimension_numbers<[1], [1], [0], [0], [0, 0, 1, 0], [], []>} : vector<64x8xf32>, vector<64x8xf32>, vector<64x64xf32> -> vector<64x64xf32>
    %cst_17 = arith.constant 0.353553385 : f32
    %48 = vector.broadcast %cst_17 : f32 to vector<64x64xf32>
    %49 = arith.mulf %47, %48 : vector<64x64xf32>
    %cst_18 = arith.constant dense<0xFF800000> : vector<64xf32>
    %50 = vector.multi_reduction <maximumf>, %49, %cst_18 [1] : vector<64x64xf32> to vector<64xf32>
    %51 = vector.shape_cast %50 : vector<64xf32> to vector<64x1xf32>
    %52 = vector.broadcast %51 : vector<64x1xf32> to vector<64x64xf32>
    %53 = arith.subf %49, %52 : vector<64x64xf32>
    %54 = math.exp %53 : vector<64x64xf32>
    %cst_19 = arith.constant dense<0.000000e+00> : vector<64xf32>
    %55 = vector.multi_reduction <add>, %54, %cst_19 [1] : vector<64x64xf32> to vector<64xf32>
    %56 = vector.shape_cast %55 : vector<64xf32> to vector<64x1xf32>
    %57 = tpu.reciprocal %56 {approx = true} : vector<64x1xf32> -> vector<64x1xf32>
    %58 = vector.broadcast %57 : vector<64x1xf32> to vector<64x64xf32>
    %59 = arith.mulf %54, %58 : vector<64x64xf32>
    %cst_20 = arith.constant dense<0.000000e+00> : vector<64x8xf32>
    %60 = tpu.matmul %59, %46, %cst_20 {dimension_numbers = #tpu.dot_dimension_numbers<[1], [0], [0], [1], [0, 0, 1, 1], [], []>} : vector<64x64xf32>, vector<64x8xf32>, vector<64x8xf32> -> vector<64x8xf32>
    %61 = vector.extract_strided_slice %2 {offsets = [16, 0], sizes = [8, 32], strides = [1, 1]} : vector<32x32xf32> to vector<8x32xf32>
    %cst_21 = arith.constant dense<0.000000e+00> : vector<64x32xf32>
    %62 = tpu.matmul %60, %61, %cst_21 {dimension_numbers = #tpu.dot_dimension_numbers<[1], [0], [0], [1], [0, 0, 1, 1], [], []>} : vector<64x8xf32>, vector<8x32xf32>, vector<64x32xf32> -> vector<64x32xf32>
    %63 = arith.addf %43, %62 : vector<64x32xf32>
    %64 = vector.extract_strided_slice %1 {offsets = [0, 24], sizes = [64, 8], strides = [1, 1]} : vector<64x96xf32> to vector<64x8xf32>
    %65 = vector.extract_strided_slice %1 {offsets = [0, 56], sizes = [64, 8], strides = [1, 1]} : vector<64x96xf32> to vector<64x8xf32>
    %66 = vector.extract_strided_slice %1 {offsets = [0, 88], sizes = [64, 8], strides = [1, 1]} : vector<64x96xf32> to vector<64x8xf32>
    %cst_22 = arith.constant dense<0.000000e+00> : vector<64x64xf32>
    %67 = tpu.matmul %64, %65, %cst_22 {dimension_numbers = #tpu.dot_dimension_numbers<[1], [1], [0], [0], [0, 0, 1, 0], [], []>} : vector<64x8xf32>, vector<64x8xf32>, vector<64x64xf32> -> vector<64x64xf32>
    %cst_23 = arith.constant 0.353553385 : f32
    %68 = vector.broadcast %cst_23 : f32 to vector<64x64xf32>
    %69 = arith.mulf %67, %68 : vector<64x64xf32>
    %cst_24 = arith.constant dense<0xFF800000> : vector<64xf32>
    %70 = vector.multi_reduction <maximumf>, %69, %cst_24 [1] : vector<64x64xf32> to vector<64xf32>
    %71 = vector.shape_cast %70 : vector<64xf32> to vector<64x1xf32>
    %72 = vector.broadcast %71 : vector<64x1xf32> to vector<64x64xf32>
    %73 = arith.subf %69, %72 : vector<64x64xf32>
    %74 = math.exp %73 : vector<64x64xf32>
    %cst_25 = arith.constant dense<0.000000e+00> : vector<64xf32>
    %75 = vector.multi_reduction <add>, %74, %cst_25 [1] : vector<64x64xf32> to vector<64xf32>
    %76 = vector.shape_cast %75 : vector<64xf32> to vector<64x1xf32>
    %77 = tpu.reciprocal %76 {approx = true} : vector<64x1xf32> -> vector<64x1xf32>
    %78 = vector.broadcast %77 : vector<64x1xf32> to vector<64x64xf32>
    %79 = arith.mulf %74, %78 : vector<64x64xf32>
    %cst_26 = arith.constant dense<0.000000e+00> : vector<64x8xf32>
    %80 = tpu.matmul %79, %66, %cst_26 {dimension_numbers = #tpu.dot_dimension_numbers<[1], [0], [0], [1], [0, 0, 1, 1], [], []>} : vector<64x64xf32>, vector<64x8xf32>, vector<64x8xf32> -> vector<64x8xf32>
    %81 = vector.extract_strided_slice %2 {offsets = [24, 0], sizes = [8, 32], strides = [1, 1]} : vector<32x32xf32> to vector<8x32xf32>
    %cst_27 = arith.constant dense<0.000000e+00> : vector<64x32xf32>
    %82 = tpu.matmul %80, %81, %cst_27 {dimension_numbers = #tpu.dot_dimension_numbers<[1], [0], [0], [1], [0, 0, 1, 1], [], []>} : vector<64x8xf32>, vector<8x32xf32>, vector<64x32xf32> -> vector<64x32xf32>
    %83 = arith.addf %63, %82 : vector<64x32xf32>
    %c0_28 = arith.constant 0 : index
    %c0_29 = arith.constant 0 : index
    %c0_30 = arith.constant 0 : index
    %84 = vector.load %arg2[%c0_28, %c0_29, %c0_30] : memref<1x64x32xf32, #tpu.memory_space<vmem>>, vector<1x64x32xf32>
    %85 = vector.shape_cast %84 : vector<1x64x32xf32> to vector<64x32xf32>
    %86 = arith.addf %85, %83 : vector<64x32xf32>
    %c0_31 = arith.constant 0 : index
    %c0_32 = arith.constant 0 : index
    %c0_33 = arith.constant 0 : index
    %87 = vector.load %arg4[%c0_31, %c0_32, %c0_33] : memref<1x64x32xf32, #tpu.memory_space<vmem>>, vector<1x64x32xf32>
    %88 = vector.shape_cast %87 : vector<1x64x32xf32> to vector<64x32xf32>
    %89 = vector.shape_cast %86 : vector<64x32xf32> to vector<1x64x32xf32>
    tpu.vector_store %arg4[%c0_31, %c0_32, %c0_33], %89 {strides = array<i32>} : memref<1x64x32xf32, #tpu.memory_space<vmem>>, vector<1x64x32xf32>,
    return
  }
  func.func @transform_0(%arg0: i32) -> (i32, i32, i32) {
    %c0_i32 = arith.constant 0 : i32
    %c0_i32_0 = arith.constant 0 : i32
    %c0_i32_1 = arith.constant 0 : i32
    return %arg0, %c0_i32, %c0_i32_0 : i32, i32, i32
  }
  func.func @transform_1(%arg0: i32) -> (i32, i32, i32) {
    %c0_i32 = arith.constant 0 : i32
    %c0_i32_0 = arith.constant 0 : i32
    %c0_i32_1 = arith.constant 0 : i32
    return %arg0, %c0_i32, %c0_i32_0 : i32, i32, i32
  }
  func.func @transform_2(%arg0: i32) -> (i32, i32) {
    %c0_i32 = arith.constant 0 : i32
    %c0_i32_0 = arith.constant 0 : i32
    %c0_i32_1 = arith.constant 0 : i32
    return %c0_i32, %c0_i32_0 : i32, i32
  }
  func.func @transform_3(%arg0: i32) -> (i32, i32, i32) {
    %c0_i32 = arith.constant 0 : i32
    %c0_i32_0 = arith.constant 0 : i32
    %c0_i32_1 = arith.constant 0 : i32
    return %arg0, %c0_i32, %c0_i32_0 : i32, i32, i32
  }
}

module attributes {stable_mosaic.version = 11 : i64} {
  func.func @_conv3x3_kernel(%arg0: i32, %arg1: memref<1x64x32xf32, #tpu.memory_space<vmem>>, %arg2: memref<1x64x32xf32, #tpu.memory_space<vmem>>, %arg3: memref<9x32x32xf32, #tpu.memory_space<vmem>>, %arg4: memref<1x32xf32, #tpu.memory_space<vmem>>, %arg5: memref<1x64x32xf32, #tpu.memory_space<vmem>>) attributes {dimension_semantics = [#tpu.dimension_semantics<parallel>], iteration_bounds = array<i64: 2>, scalar_prefetch = 0 : i64, scratch_operands = 0 : i64, tpu.core_type = #tpu.core_type<tc>, window_params = [{transform_indices = @transform_0, window_bounds = array<i64: 1, 64, 32>}, {transform_indices = @transform_1, window_bounds = array<i64: 1, 64, 32>}, {pipeline_mode = #tpu.pipeline_mode<synchronous>, transform_indices = @transform_2, window_bounds = array<i64: 9, 32, 32>}, {pipeline_mode = #tpu.pipeline_mode<synchronous>, transform_indices = @transform_3, window_bounds = array<i64: 1, 32>}, {transform_indices = @transform_4, window_bounds = array<i64: 1, 64, 32>}]} {
    %c0 = arith.constant 0 : index
    %c0_0 = arith.constant 0 : index
    %c0_1 = arith.constant 0 : index
    %0 = vector.load %arg1[%c0, %c0_0, %c0_1] : memref<1x64x32xf32, #tpu.memory_space<vmem>>, vector<1x64x32xf32>
    %1 = vector.shape_cast %0 : vector<1x64x32xf32> to vector<64x32xf32>
    %c0_2 = arith.constant 0 : index
    %c0_3 = arith.constant 0 : index
    %c0_4 = arith.constant 0 : index
    %2 = vector.load %arg3[%c0_2, %c0_3, %c0_4] : memref<9x32x32xf32, #tpu.memory_space<vmem>>, vector<9x32x32xf32>
    %cst = arith.constant 0.000000e+00 : f32
    %3 = vector.broadcast %cst : f32 to vector<16x32xf32>
    %4 = tpu.concatenate %3, %1, %3 in 0 : vector<16x32xf32>, vector<64x32xf32>, vector<16x32xf32> -> vector<96x32xf32>
    %5 = tpu.iota {dimensions = array<i32: 0>} : vector<64x1xi32>
    %c8_i32 = arith.constant 8 : i32
    %c0_i32 = arith.constant 0 : i32
    %6 = arith.cmpi eq, %c8_i32, %c0_i32 : i32
    %c1_i32 = arith.constant 1 : i32
    %7 = arith.select %6, %c1_i32, %c8_i32 : i32
    %8 = vector.broadcast %7 : i32 to vector<64x1xi32>
    %9 = arith.remsi %5, %8 : vector<64x1xi32>
    %c0_i32_5 = arith.constant 0 : i32
    %10 = vector.broadcast %c0_i32_5 : i32 to vector<64x1xi32>
    %11 = arith.cmpi ne, %9, %10 : vector<64x1xi32>
    %c0_i32_6 = arith.constant 0 : i32
    %12 = vector.broadcast %c0_i32_6 : i32 to vector<64x1xi32>
    %13 = arith.cmpi slt, %9, %12 : vector<64x1xi32>
    %c0_i32_7 = arith.constant 0 : i32
    %14 = arith.cmpi slt, %7, %c0_i32_7 : i32
    %15 = vector.broadcast %14 : i1 to vector<64x1xi1>
    %16 = vector.broadcast %15 : vector<64x1xi1> to vector<64x1xi1>
    %17 = arith.xori %13, %16 : vector<64x1xi1>
    %18 = arith.andi %17, %11 : vector<64x1xi1>
    %19 = vector.broadcast %7 : i32 to vector<64x1xi32>
    %20 = arith.addi %9, %19 : vector<64x1xi32>
    %21 = arith.select %18, %20, %9 : vector<64x1xi1>, vector<64x1xi32>
    %cst_8 = arith.constant 0.000000e+00 : f32
    %22 = vector.broadcast %cst_8 : f32 to vector<64x32xf32>
    %23 = vector.extract_strided_slice %4 {offsets = [7, 0], sizes = [64, 32], strides = [1, 1]} : vector<96x32xf32> to vector<64x32xf32>
    %c-1_i32 = arith.constant -1 : i32
    %24 = vector.broadcast %c-1_i32 : i32 to vector<64x1xi32>
    %25 = arith.addi %21, %24 : vector<64x1xi32>
    %c0_i32_9 = arith.constant 0 : i32
    %26 = vector.broadcast %c0_i32_9 : i32 to vector<64x1xi32>
    %27 = arith.cmpi sge, %25, %26 : vector<64x1xi32>
    %c-1_i32_10 = arith.constant -1 : i32
    %28 = vector.broadcast %c-1_i32_10 : i32 to vector<64x1xi32>
    %29 = arith.addi %21, %28 : vector<64x1xi32>
    %c8_i32_11 = arith.constant 8 : i32
    %30 = vector.broadcast %c8_i32_11 : i32 to vector<64x1xi32>
    %31 = arith.cmpi slt, %29, %30 : vector<64x1xi32>
    %32 = arith.andi %27, %31 : vector<64x1xi1>
    %cst_12 = arith.constant 0.000000e+00 : f32
    %33 = vector.shape_cast %32 : vector<64x1xi1> to vector<64x1xi1>
    %34 = vector.broadcast %33 : vector<64x1xi1> to vector<64x32xi1>
    %35 = vector.broadcast %cst_12 : f32 to vector<64x32xf32>
    %36 = arith.select %34, %23, %35 : vector<64x32xi1>, vector<64x32xf32>
    %37 = vector.extract_strided_slice %2 {offsets = [0, 0, 0], sizes = [1, 32, 32], strides = [1, 1, 1]} : vector<9x32x32xf32> to vector<1x32x32xf32>
    %38 = vector.shape_cast %37 : vector<1x32x32xf32> to vector<32x32xf32>
    %cst_13 = arith.constant dense<0.000000e+00> : vector<64x32xf32>
    %39 = tpu.matmul %36, %38, %cst_13 {dimension_numbers = #tpu.dot_dimension_numbers<[1], [0], [0], [1], [0, 0, 1, 1], [], []>} : vector<64x32xf32>, vector<32x32xf32>, vector<64x32xf32> -> vector<64x32xf32>
    %40 = arith.addf %22, %39 : vector<64x32xf32>
    %41 = vector.extract_strided_slice %4 {offsets = [8, 0], sizes = [64, 32], strides = [1, 1]} : vector<96x32xf32> to vector<64x32xf32>
    %42 = vector.extract_strided_slice %2 {offsets = [1, 0, 0], sizes = [1, 32, 32], strides = [1, 1, 1]} : vector<9x32x32xf32> to vector<1x32x32xf32>
    %43 = vector.shape_cast %42 : vector<1x32x32xf32> to vector<32x32xf32>
    %cst_14 = arith.constant dense<0.000000e+00> : vector<64x32xf32>
    %44 = tpu.matmul %41, %43, %cst_14 {dimension_numbers = #tpu.dot_dimension_numbers<[1], [0], [0], [1], [0, 0, 1, 1], [], []>} : vector<64x32xf32>, vector<32x32xf32>, vector<64x32xf32> -> vector<64x32xf32>
    %45 = arith.addf %40, %44 : vector<64x32xf32>
    %46 = vector.extract_strided_slice %4 {offsets = [9, 0], sizes = [64, 32], strides = [1, 1]} : vector<96x32xf32> to vector<64x32xf32>
    %c1_i32_15 = arith.constant 1 : i32
    %47 = vector.broadcast %c1_i32_15 : i32 to vector<64x1xi32>
    %48 = arith.addi %21, %47 : vector<64x1xi32>
    %c0_i32_16 = arith.constant 0 : i32
    %49 = vector.broadcast %c0_i32_16 : i32 to vector<64x1xi32>
    %50 = arith.cmpi sge, %48, %49 : vector<64x1xi32>
    %c1_i32_17 = arith.constant 1 : i32
    %51 = vector.broadcast %c1_i32_17 : i32 to vector<64x1xi32>
    %52 = arith.addi %21, %51 : vector<64x1xi32>
    %c8_i32_18 = arith.constant 8 : i32
    %53 = vector.broadcast %c8_i32_18 : i32 to vector<64x1xi32>
    %54 = arith.cmpi slt, %52, %53 : vector<64x1xi32>
    %55 = arith.andi %50, %54 : vector<64x1xi1>
    %cst_19 = arith.constant 0.000000e+00 : f32
    %56 = vector.shape_cast %55 : vector<64x1xi1> to vector<64x1xi1>
    %57 = vector.broadcast %56 : vector<64x1xi1> to vector<64x32xi1>
    %58 = vector.broadcast %cst_19 : f32 to vector<64x32xf32>
    %59 = arith.select %57, %46, %58 : vector<64x32xi1>, vector<64x32xf32>
    %60 = vector.extract_strided_slice %2 {offsets = [2, 0, 0], sizes = [1, 32, 32], strides = [1, 1, 1]} : vector<9x32x32xf32> to vector<1x32x32xf32>
    %61 = vector.shape_cast %60 : vector<1x32x32xf32> to vector<32x32xf32>
    %cst_20 = arith.constant dense<0.000000e+00> : vector<64x32xf32>
    %62 = tpu.matmul %59, %61, %cst_20 {dimension_numbers = #tpu.dot_dimension_numbers<[1], [0], [0], [1], [0, 0, 1, 1], [], []>} : vector<64x32xf32>, vector<32x32xf32>, vector<64x32xf32> -> vector<64x32xf32>
    %63 = arith.addf %45, %62 : vector<64x32xf32>
    %64 = vector.extract_strided_slice %4 {offsets = [15, 0], sizes = [64, 32], strides = [1, 1]} : vector<96x32xf32> to vector<64x32xf32>
    %c-1_i32_21 = arith.constant -1 : i32
    %65 = vector.broadcast %c-1_i32_21 : i32 to vector<64x1xi32>
    %66 = arith.addi %21, %65 : vector<64x1xi32>
    %c0_i32_22 = arith.constant 0 : i32
    %67 = vector.broadcast %c0_i32_22 : i32 to vector<64x1xi32>
    %68 = arith.cmpi sge, %66, %67 : vector<64x1xi32>
    %c-1_i32_23 = arith.constant -1 : i32
    %69 = vector.broadcast %c-1_i32_23 : i32 to vector<64x1xi32>
    %70 = arith.addi %21, %69 : vector<64x1xi32>
    %c8_i32_24 = arith.constant 8 : i32
    %71 = vector.broadcast %c8_i32_24 : i32 to vector<64x1xi32>
    %72 = arith.cmpi slt, %70, %71 : vector<64x1xi32>
    %73 = arith.andi %68, %72 : vector<64x1xi1>
    %cst_25 = arith.constant 0.000000e+00 : f32
    %74 = vector.shape_cast %73 : vector<64x1xi1> to vector<64x1xi1>
    %75 = vector.broadcast %74 : vector<64x1xi1> to vector<64x32xi1>
    %76 = vector.broadcast %cst_25 : f32 to vector<64x32xf32>
    %77 = arith.select %75, %64, %76 : vector<64x32xi1>, vector<64x32xf32>
    %78 = vector.extract_strided_slice %2 {offsets = [3, 0, 0], sizes = [1, 32, 32], strides = [1, 1, 1]} : vector<9x32x32xf32> to vector<1x32x32xf32>
    %79 = vector.shape_cast %78 : vector<1x32x32xf32> to vector<32x32xf32>
    %cst_26 = arith.constant dense<0.000000e+00> : vector<64x32xf32>
    %80 = tpu.matmul %77, %79, %cst_26 {dimension_numbers = #tpu.dot_dimension_numbers<[1], [0], [0], [1], [0, 0, 1, 1], [], []>} : vector<64x32xf32>, vector<32x32xf32>, vector<64x32xf32> -> vector<64x32xf32>
    %81 = arith.addf %63, %80 : vector<64x32xf32>
    %82 = vector.extract_strided_slice %4 {offsets = [16, 0], sizes = [64, 32], strides = [1, 1]} : vector<96x32xf32> to vector<64x32xf32>
    %83 = vector.extract_strided_slice %2 {offsets = [4, 0, 0], sizes = [1, 32, 32], strides = [1, 1, 1]} : vector<9x32x32xf32> to vector<1x32x32xf32>
    %84 = vector.shape_cast %83 : vector<1x32x32xf32> to vector<32x32xf32>
    %cst_27 = arith.constant dense<0.000000e+00> : vector<64x32xf32>
    %85 = tpu.matmul %82, %84, %cst_27 {dimension_numbers = #tpu.dot_dimension_numbers<[1], [0], [0], [1], [0, 0, 1, 1], [], []>} : vector<64x32xf32>, vector<32x32xf32>, vector<64x32xf32> -> vector<64x32xf32>
    %86 = arith.addf %81, %85 : vector<64x32xf32>
    %87 = vector.extract_strided_slice %4 {offsets = [17, 0], sizes = [64, 32], strides = [1, 1]} : vector<96x32xf32> to vector<64x32xf32>
    %c1_i32_28 = arith.constant 1 : i32
    %88 = vector.broadcast %c1_i32_28 : i32 to vector<64x1xi32>
    %89 = arith.addi %21, %88 : vector<64x1xi32>
    %c0_i32_29 = arith.constant 0 : i32
    %90 = vector.broadcast %c0_i32_29 : i32 to vector<64x1xi32>
    %91 = arith.cmpi sge, %89, %90 : vector<64x1xi32>
    %c1_i32_30 = arith.constant 1 : i32
    %92 = vector.broadcast %c1_i32_30 : i32 to vector<64x1xi32>
    %93 = arith.addi %21, %92 : vector<64x1xi32>
    %c8_i32_31 = arith.constant 8 : i32
    %94 = vector.broadcast %c8_i32_31 : i32 to vector<64x1xi32>
    %95 = arith.cmpi slt, %93, %94 : vector<64x1xi32>
    %96 = arith.andi %91, %95 : vector<64x1xi1>
    %cst_32 = arith.constant 0.000000e+00 : f32
    %97 = vector.shape_cast %96 : vector<64x1xi1> to vector<64x1xi1>
    %98 = vector.broadcast %97 : vector<64x1xi1> to vector<64x32xi1>
    %99 = vector.broadcast %cst_32 : f32 to vector<64x32xf32>
    %100 = arith.select %98, %87, %99 : vector<64x32xi1>, vector<64x32xf32>
    %101 = vector.extract_strided_slice %2 {offsets = [5, 0, 0], sizes = [1, 32, 32], strides = [1, 1, 1]} : vector<9x32x32xf32> to vector<1x32x32xf32>
    %102 = vector.shape_cast %101 : vector<1x32x32xf32> to vector<32x32xf32>
    %cst_33 = arith.constant dense<0.000000e+00> : vector<64x32xf32>
    %103 = tpu.matmul %100, %102, %cst_33 {dimension_numbers = #tpu.dot_dimension_numbers<[1], [0], [0], [1], [0, 0, 1, 1], [], []>} : vector<64x32xf32>, vector<32x32xf32>, vector<64x32xf32> -> vector<64x32xf32>
    %104 = arith.addf %86, %103 : vector<64x32xf32>
    %105 = vector.extract_strided_slice %4 {offsets = [23, 0], sizes = [64, 32], strides = [1, 1]} : vector<96x32xf32> to vector<64x32xf32>
    %c-1_i32_34 = arith.constant -1 : i32
    %106 = vector.broadcast %c-1_i32_34 : i32 to vector<64x1xi32>
    %107 = arith.addi %21, %106 : vector<64x1xi32>
    %c0_i32_35 = arith.constant 0 : i32
    %108 = vector.broadcast %c0_i32_35 : i32 to vector<64x1xi32>
    %109 = arith.cmpi sge, %107, %108 : vector<64x1xi32>
    %c-1_i32_36 = arith.constant -1 : i32
    %110 = vector.broadcast %c-1_i32_36 : i32 to vector<64x1xi32>
    %111 = arith.addi %21, %110 : vector<64x1xi32>
    %c8_i32_37 = arith.constant 8 : i32
    %112 = vector.broadcast %c8_i32_37 : i32 to vector<64x1xi32>
    %113 = arith.cmpi slt, %111, %112 : vector<64x1xi32>
    %114 = arith.andi %109, %113 : vector<64x1xi1>
    %cst_38 = arith.constant 0.000000e+00 : f32
    %115 = vector.shape_cast %114 : vector<64x1xi1> to vector<64x1xi1>
    %116 = vector.broadcast %115 : vector<64x1xi1> to vector<64x32xi1>
    %117 = vector.broadcast %cst_38 : f32 to vector<64x32xf32>
    %118 = arith.select %116, %105, %117 : vector<64x32xi1>, vector<64x32xf32>
    %119 = vector.extract_strided_slice %2 {offsets = [6, 0, 0], sizes = [1, 32, 32], strides = [1, 1, 1]} : vector<9x32x32xf32> to vector<1x32x32xf32>
    %120 = vector.shape_cast %119 : vector<1x32x32xf32> to vector<32x32xf32>
    %cst_39 = arith.constant dense<0.000000e+00> : vector<64x32xf32>
    %121 = tpu.matmul %118, %120, %cst_39 {dimension_numbers = #tpu.dot_dimension_numbers<[1], [0], [0], [1], [0, 0, 1, 1], [], []>} : vector<64x32xf32>, vector<32x32xf32>, vector<64x32xf32> -> vector<64x32xf32>
    %122 = arith.addf %104, %121 : vector<64x32xf32>
    %123 = vector.extract_strided_slice %4 {offsets = [24, 0], sizes = [64, 32], strides = [1, 1]} : vector<96x32xf32> to vector<64x32xf32>
    %124 = vector.extract_strided_slice %2 {offsets = [7, 0, 0], sizes = [1, 32, 32], strides = [1, 1, 1]} : vector<9x32x32xf32> to vector<1x32x32xf32>
    %125 = vector.shape_cast %124 : vector<1x32x32xf32> to vector<32x32xf32>
    %cst_40 = arith.constant dense<0.000000e+00> : vector<64x32xf32>
    %126 = tpu.matmul %123, %125, %cst_40 {dimension_numbers = #tpu.dot_dimension_numbers<[1], [0], [0], [1], [0, 0, 1, 1], [], []>} : vector<64x32xf32>, vector<32x32xf32>, vector<64x32xf32> -> vector<64x32xf32>
    %127 = arith.addf %122, %126 : vector<64x32xf32>
    %128 = vector.extract_strided_slice %4 {offsets = [25, 0], sizes = [64, 32], strides = [1, 1]} : vector<96x32xf32> to vector<64x32xf32>
    %c1_i32_41 = arith.constant 1 : i32
    %129 = vector.broadcast %c1_i32_41 : i32 to vector<64x1xi32>
    %130 = arith.addi %21, %129 : vector<64x1xi32>
    %c0_i32_42 = arith.constant 0 : i32
    %131 = vector.broadcast %c0_i32_42 : i32 to vector<64x1xi32>
    %132 = arith.cmpi sge, %130, %131 : vector<64x1xi32>
    %c1_i32_43 = arith.constant 1 : i32
    %133 = vector.broadcast %c1_i32_43 : i32 to vector<64x1xi32>
    %134 = arith.addi %21, %133 : vector<64x1xi32>
    %c8_i32_44 = arith.constant 8 : i32
    %135 = vector.broadcast %c8_i32_44 : i32 to vector<64x1xi32>
    %136 = arith.cmpi slt, %134, %135 : vector<64x1xi32>
    %137 = arith.andi %132, %136 : vector<64x1xi1>
    %cst_45 = arith.constant 0.000000e+00 : f32
    %138 = vector.shape_cast %137 : vector<64x1xi1> to vector<64x1xi1>
    %139 = vector.broadcast %138 : vector<64x1xi1> to vector<64x32xi1>
    %140 = vector.broadcast %cst_45 : f32 to vector<64x32xf32>
    %141 = arith.select %139, %128, %140 : vector<64x32xi1>, vector<64x32xf32>
    %142 = vector.extract_strided_slice %2 {offsets = [8, 0, 0], sizes = [1, 32, 32], strides = [1, 1, 1]} : vector<9x32x32xf32> to vector<1x32x32xf32>
    %143 = vector.shape_cast %142 : vector<1x32x32xf32> to vector<32x32xf32>
    %cst_46 = arith.constant dense<0.000000e+00> : vector<64x32xf32>
    %144 = tpu.matmul %141, %143, %cst_46 {dimension_numbers = #tpu.dot_dimension_numbers<[1], [0], [0], [1], [0, 0, 1, 1], [], []>} : vector<64x32xf32>, vector<32x32xf32>, vector<64x32xf32> -> vector<64x32xf32>
    %145 = arith.addf %127, %144 : vector<64x32xf32>
    %c0_47 = arith.constant 0 : index
    %c0_48 = arith.constant 0 : index
    %146 = vector.load %arg4[%c0_47, %c0_48] : memref<1x32xf32, #tpu.memory_space<vmem>>, vector<1x32xf32>
    %147 = vector.broadcast %146 : vector<1x32xf32> to vector<64x32xf32>
    %148 = arith.addf %145, %147 : vector<64x32xf32>
    %c0_49 = arith.constant 0 : index
    %c0_50 = arith.constant 0 : index
    %c0_51 = arith.constant 0 : index
    %149 = vector.load %arg2[%c0_49, %c0_50, %c0_51] : memref<1x64x32xf32, #tpu.memory_space<vmem>>, vector<1x64x32xf32>
    %150 = vector.shape_cast %149 : vector<1x64x32xf32> to vector<64x32xf32>
    %151 = arith.addf %150, %148 : vector<64x32xf32>
    %c0_52 = arith.constant 0 : index
    %c0_53 = arith.constant 0 : index
    %c0_54 = arith.constant 0 : index
    %152 = vector.load %arg5[%c0_52, %c0_53, %c0_54] : memref<1x64x32xf32, #tpu.memory_space<vmem>>, vector<1x64x32xf32>
    %153 = vector.shape_cast %152 : vector<1x64x32xf32> to vector<64x32xf32>
    %154 = vector.shape_cast %151 : vector<64x32xf32> to vector<1x64x32xf32>
    tpu.vector_store %arg5[%c0_52, %c0_53, %c0_54], %154 {strides = array<i32>} : memref<1x64x32xf32, #tpu.memory_space<vmem>>, vector<1x64x32xf32>,
    return
  }
  func.func @transform_0(%arg0: i32) -> (i32, i32, i32) {
    %c0_i32 = arith.constant 0 : i32
    %c0_i32_0 = arith.constant 0 : i32
    %c0_i32_1 = arith.constant 0 : i32
    return %arg0, %c0_i32, %c0_i32_0 : i32, i32, i32
  }
  func.func @transform_1(%arg0: i32) -> (i32, i32, i32) {
    %c0_i32 = arith.constant 0 : i32
    %c0_i32_0 = arith.constant 0 : i32
    %c0_i32_1 = arith.constant 0 : i32
    return %arg0, %c0_i32, %c0_i32_0 : i32, i32, i32
  }
  func.func @transform_2(%arg0: i32) -> (i32, i32, i32) {
    %c0_i32 = arith.constant 0 : i32
    %c0_i32_0 = arith.constant 0 : i32
    %c0_i32_1 = arith.constant 0 : i32
    %c0_i32_2 = arith.constant 0 : i32
    return %c0_i32, %c0_i32_0, %c0_i32_1 : i32, i32, i32
  }
  func.func @transform_3(%arg0: i32) -> (i32, i32) {
    %c0_i32 = arith.constant 0 : i32
    %c0_i32_0 = arith.constant 0 : i32
    %c0_i32_1 = arith.constant 0 : i32
    return %c0_i32, %c0_i32_0 : i32, i32
  }
  func.func @transform_4(%arg0: i32) -> (i32, i32, i32) {
    %c0_i32 = arith.constant 0 : i32
    %c0_i32_0 = arith.constant 0 : i32
    %c0_i32_1 = arith.constant 0 : i32
    return %arg0, %c0_i32, %c0_i32_0 : i32, i32, i32
  }
}

</mosaic_0001>

<bundles_post_ra>
// kernel: run.7
= control target key start
LH: loop header
LB: loop body
LE: loop exit
PB: predicated region body
PF: predicated region fallthrough
CT: control target
= control target key end

     0   :  { %9 = vsyncpa [#allocation3], 0  ;;  %s989_s0 = inlined_call_operand.hbm [shape: f32[128,32], index: 0, kind: input, shape index: {}]   ;;  %s990_s1 = inlined_call_operand.vmem [shape: f32[1,32], index: 1, kind: input, shape index: {}]   ;;  %s991_s2 = inlined_call_operand.vmem [shape: f32[1,32], index: 2, kind: input, shape index: {}]   ;;  %s992_s3 = inlined_call_operand.vmem [shape: f32[32,96], index: 3, kind: input, shape index: {}]   ;;  %s993_s4 = inlined_call_operand.vmem [shape: f32[128,96], index: 4, kind: output, shape index: {}]  }
   0x1   :  { %11 = vsyncpa [#allocation3 + $0x1], 0  ;;  %s792_s15 = smov 0   ;;  %s794_s16 = smov 0  }
   0x2   :  { %s796_s17 = smov 0   ;;  %s798_s18 = smov 0  }
   0x3 LB: > { %s573_s19 = sadd.s32 4294967295, %s762_s18   ;;  %s812_s20 = sadd.s32 1, %s762_s18   ;;  %s762_s18 = sphi %s798_s18, %s1000_s18   ;;  %s758_s17 = sphi %s796_s17, %s999_s17   ;;  %s754_s16 = sphi %s794_s16, %s998_s16   ;;  %s750_s15 = sphi %s792_s15, %s997_s15  }
   0x4   : > { %s21_s21 = ssub.s32 %s762_s18, %s812_s20  ;;  %s24_s22 = sadd.s32 1, %s758_s17 }
   0x5   : > { %p22_p0 = scmp.eq.s32.totalorder %s21_s21, 0  ;;  %p31_p1 = scmp.ne.s32.totalorder %s758_s17, %s754_s16 }
   0x6   : > { %p32_p2 = scmp.eq.s32.totalorder %s762_s18, 0  ;;  %p37_p3 = scmp.ne.s32.totalorder %s754_s16, %s750_s15 }
   0x7   : > { %s822_s23 = scalar_select %p22_p0, %s758_s17, %s24_s22  }
   0x8   : > { %p33_p4 = por %p32_p2, %p31_p1  ;;  %p38_p5 = scmp.eq.s32.totalorder %s573_s19, 0 }
   0x9   : > { %p647_p6 = scmp.lt.s32.totalorder %s762_s18, 2  ;;  %s159_s25 = sand.u32 1, %s758_s17  }
   0xa   : > { %p827_p7 = por %p38_p5, %p37_p3  ;;  %s577_s26 = sshll.u32 %s159_s25, 6 }
   0xb   : > { %s596_s27 = sshll.u32 %s762_s18, 10  ;;  %s163_s5 = scalar_lea.vmem [#allocation2], %s577_s26 }
   0xc   : > { %s836_s30 = scalar_lea.hbm %s989_s0, %s596_s27  ;;  %s170_s6 = sshll.u32 %s163_s5, 4  ;;  %s838_s6 = int_to_ptr.vmem [resolvable:$true] %s170_s6 }
   0xd   : > { %p840_p8 = pnand %p647_p6, %p33_p4  ;;  %s845_s8 = scalar_lea.sflag [#allocation3], %s159_s25 }
   0xe   : > { %s698_s9 = scalar_lea.hbm %s836_s30, 1024  ;;  %s703_s12 = scalar_lea.hbm %s989_s0, 2048 }
   0xf   : > { %p699_p10 = scmp.ne.s32.totalorder %s836_s30, %s698_s9  ;;  %p700_p11 = pneg %p840_p8 }
  0x10   : > { %p704_p0 = scmp.lt.u32.totalorder %s836_s30, %s989_s0  ;;  %p705_p1 = scmp.lt.u32.totalorder %s703_s12, %s698_s9 }
  0x11   : > { %p701_p12 = pnand %p700_p11, %p699_p10  ;;  %p707_p3 = scmp.lt.u32.totalorder %s698_s9, %s836_s30 }
  0x12   : > { %p706_p2 = por %p705_p1, %p704_p0 }
  0x13   : > { %p702_p13 = pneg %p701_p12 }
  0x14   : > { %p708_p4 = por %p707_p3, %p706_p2 }
  0x16   : > { %p709_p5 = pnand %p708_p4, %p702_p13 }
  0x18   : > { %712 = shalt.err (!%p709_p5)
}
  0x19   : > { %s713_s15 = scalar_lea.vmem %s838_s6, 1024  ;;  %s764_s21 = smov [#allocation2]  }
  0x1a   : > { %p714_p6 = scmp.ne.s32.totalorder %s838_s6, %s713_s15  ;;  %s718_s22 = sshll.u32 %s764_s21, 4  ;;  %s719_s22 = int_to_ptr.vmem [resolvable:$false] %s718_s22 }
  0x1b   : > { %s720_s25 = scalar_lea.vmem %s719_s22, 2048  ;;  %p721_p9 = scmp.lt.s32.totalorder %s838_s6, %s719_s22 }
  0x1c   : > { %p716_p10 = pnand %p714_p6, %p700_p11  ;;  %p722_p0 = scmp.lt.s32.totalorder %s720_s25, %s713_s15 }
  0x1e   : > { %p717_p12 = pneg %p716_p10  ;;  %p723_p1 = por %p722_p0, %p721_p9 }
  0x20   : > { %p724_p2 = pnand %p723_p1, %p717_p12 }
  0x22   : > { %727 = shalt.err (!%p724_p2)
}
  0x23   : > { %s765_s26 = smov 128   ;;  %s766_s27 = smov 8  }
  0x24   : > { %646 = dma.hbm_to_vmem [thread:$0]  (!%p840_p8), %s836_s30, 1024, %s838_s6, %s845_s8, %s765_s26, %s765_s26, %s766_s27  }
  0x25   : > { %p178_p11 = scmp.lt.s32.totalorder %s762_s18, 3  ;;  %p996_p13 = scmp.ge.s32.totalorder %s762_s18, 1 }
  0x27   : > { %p179_p3 = pnand %p996_p13, %p178_p11 }
  0x28   : > { %s184_s28 = sand.u32 (!%p179_p3), 1, %s754_s16  }
  0x29   : > { %182 = sbr.rel (%p179_p3) target bundleno = 593 (0x251), region = 36  ;;  %s581_s29 = sshll.u32 (!%p179_p3), %s184_s28, 6 }
  0x2a   : > { %s185_s5 = scalar_lea.sflag (!%p179_p3), [#allocation3], %s184_s28  ;;  %s188_s9 = scalar_lea.vmem (!%p179_p3), [#allocation2], %s581_s29 }
  0x30   : > { %745 = dma.done.wait (%p827_p7), %s185_s5, 1024  }
  0x31   : > { %747 = vsyncadd (%p827_p7), %s185_s5, 4294966272  ;;  %vm228_vm0 = vcmask 261120   ;;  %v220_v0 = vld [vmem:[%s188_s9] sm:$0xff]  ;;  %v221_v1 = vld [vmem:[%s188_s9 + $0x8] sm:$0xff]  ;;  %s582_s22 = sshll.u32 %s573_s19, 3  ;;  %vm497_vm1 = vcmask 785408  }
  0x32   : > { %v224_v2 = vld [vmem:[%s188_s9 + $0x20] sm:$0xff]  ;;  %v229_v3 = vsel %vm228_vm0, %v220_v0, 0.0  ;;  %v232_v4 = vsel %vm228_vm0, %v221_v1, 0.0  ;;  %v225_v5 = vld [vmem:[%s188_s9 + $0x28] sm:$0xff]  ;;  %v222_v8 = vld [vmem:[%s188_s9 + $0x10] sm:$0xff]  ;;  %p215_p7 = scmp.lt.s32.totalorder %s582_s22, 15 }
  0x33   : > { %230 = vadd.xlane.f32.xlu0 %v229_v3  ;;  %233 = vadd.xlane.f32.xlu1 %v232_v4  ;;  %v241_v6 = vsel %vm228_vm0, %v224_v2, 0.0  ;;  %v244_v7 = vsel %vm228_vm0, %v225_v5, 0.0  ;;  %v226_v9 = vld [vmem:[%s188_s9 + $0x30] sm:$0xff]  ;;  %v235_v10 = vsel %vm228_vm0, %v222_v8, 0.0  ;;  %v223_v12 = vld [vmem:[%s188_s9 + $0x18] sm:$0xff]  ;;  %v364_v56 = vld [vmem:[%s992_s3] sm:$0xff] }
  0x34   : > { %v247_v11 = vsel %vm228_vm0, %v226_v9, 0.0  ;;  %v227_v13 = vld [vmem:[%s188_s9 + $0x38] sm:$0xff]  ;;  %v238_v14 = vsel %vm228_vm0, %v223_v12, 0.0  ;;  %v365_v57 = vld [vmem:[%s992_s3 + $0x8] sm:$0xff]  ;;  %v366_v59 = vld [vmem:[%s992_s3 + $0x10] sm:$0xff]  ;;  %s1002_s22 = smov (!%p215_p7, %s582_s22), 15 }
  0x35   : > { %v250_v15 = vsel %vm228_vm0, %v227_v13, 0.0  ;;  %v629_v58 = vpack.c.bf16 %v365_v57, %v364_v56  ;;  %v367_v60 = vld [vmem:[%s992_s3 + $0x18] sm:$0xff]  ;;  %s583_s25 = sshll.u32 %s1002_s22, 3 }
  0x36   : > { %v633_v61 = vpack.c.bf16 %v367_v60, %v366_v59  ;;  %s218_s28 = scalar_lea.vmem %s993_s4, %s583_s25 }
  0x37   : > { %242 = vadd.xlane.f32.xlu0 %v241_v6  ;;  %245 = vadd.xlane.f32.xlu1 %v244_v7 }
  0x38   : > { %630 = vmatprep.subr.bf16.mxu0 %v629_v58  ;;  %637 = vmatprep.subr.bf16.mxu1 %v629_v58 }
  0x39   : > { %632 = vmatpush3.bf16.msra.mxu0 %v629_v58  ;;  %639 = vmatpush3.bf16.msra.mxu1 %v629_v58 }
  0x3a   : > { %634 = vmatprep.subr.bf16.mxu0 %v633_v61  ;;  %638 = vmatprep.subr.bf16.mxu1 %v633_v61 }
  0x3b   : > { %236 = vadd.xlane.f32.xlu0 %v235_v10  ;;  %248 = vadd.xlane.f32.xlu1 %v247_v11 }
  0x3d   : > { %636 = vmatpush3.bf16.msra.mxu0 %v633_v61  ;;  %640 = vmatpush3.bf16.msra.mxu1 %v633_v61 }
  0x3f   : > { %239 = vadd.xlane.f32.xlu0 %v238_v14  ;;  %251 = vadd.xlane.f32.xlu1 %v250_v15 }
  0xc0   : > { %v231_v16 = vpop.xlane.xlu0 %230  ;;  %v234_v17 = vpop.xlane.xlu1 %233 }
  0xc1   : > { %v254_v18 = vmul.f32 0.03125, %v231_v16  ;;  %v255_v19 = vmul.f32 0.03125, %v234_v17 }
  0xc3   : > { %v889_v20 = vsub.f32 %v220_v0, %v254_v18  ;;  %v891_v21 = vsub.f32 %v221_v1, %v255_v19 }
  0xc4   : > { %v243_v22 = vpop.xlane.xlu0 %242  ;;  %v246_v23 = vpop.xlane.xlu1 %245 }
  0xc5   : > { %v258_v24 = vmul.f32 0.03125, %v243_v22  ;;  %v259_v25 = vmul.f32 0.03125, %v246_v23  ;;  %v270_v26 = vmul.f32 %v889_v20, %v889_v20  ;;  %v271_v27 = vmul.f32 %v891_v21, %v891_v21  ;;  %v584_v22 = vld [vmem:[%s990_s1] ss:$0 sm:$0xff] }
  0xc7   : > { %v897_v28 = vsub.f32 %v224_v2, %v258_v24  ;;  %v899_v29 = vsub.f32 %v225_v5, %v259_v25  ;;  %v278_v30 = vsel %vm228_vm0, %v270_v26, 0.0  ;;  %v281_v33 = vsel %vm228_vm0, %v271_v27, 0.0  ;;  %v585_v26 = vld [vmem:[%s991_s2] ss:$0 sm:$0xff] }
  0xc8   : > { %279 = vadd.xlane.f32.xlu0 %v278_v30  ;;  %v237_v31 = vpop.xlane.xlu0 %236  ;;  %v249_v32 = vpop.xlane.xlu1 %248 }
  0xc9   : > { %v256_v34 = vmul.f32 0.03125, %v237_v31  ;;  %v260_v35 = vmul.f32 0.03125, %v249_v32  ;;  %v274_v36 = vmul.f32 %v897_v28, %v897_v28  ;;  %v275_v37 = vmul.f32 %v899_v29, %v899_v29 }
  0xcb   : > { %v907_v38 = vsub.f32 %v222_v8, %v256_v34  ;;  %v909_v39 = vsub.f32 %v226_v9, %v260_v35  ;;  %v290_v40 = vsel %vm228_vm0, %v274_v36, 0.0  ;;  %v293_v43 = vsel %vm228_vm0, %v275_v37, 0.0 }
  0xcc   : > { %282 = vadd.xlane.f32.xlu0 %v281_v33  ;;  %291 = vadd.xlane.f32.xlu1 %v290_v40  ;;  %v240_v41 = vpop.xlane.xlu0 %239  ;;  %v252_v42 = vpop.xlane.xlu1 %251 }
  0xcd   : > { %v257_v44 = vmul.f32 0.03125, %v240_v41  ;;  %v261_v45 = vmul.f32 0.03125, %v252_v42  ;;  %v272_v46 = vmul.f32 %v907_v38, %v907_v38  ;;  %v276_v47 = vmul.f32 %v909_v39, %v909_v39 }
  0xcf   : > { %v917_v48 = vsub.f32 %v223_v12, %v257_v44  ;;  %v919_v49 = vsub.f32 %v227_v13, %v261_v45  ;;  %v284_v50 = vsel %vm228_vm0, %v272_v46, 0.0  ;;  %v296_v51 = vsel %vm228_vm0, %v276_v47, 0.0 }
  0xd0   : > { %294 = vadd.xlane.f32.xlu1 %v293_v43  ;;  %285 = vadd.xlane.f32.xlu0 %v284_v50 }
  0xd1   : > { %v273_v52 = vmul.f32 %v917_v48, %v917_v48  ;;  %v277_v53 = vmul.f32 %v919_v49, %v919_v49 }
  0xd3   : > { %v287_v54 = vsel %vm228_vm0, %v273_v52, 0.0  ;;  %v299_v55 = vsel %vm228_vm0, %v277_v53, 0.0 }
  0xd4   : > { %297 = vadd.xlane.f32.xlu1 %v296_v51  ;;  %288 = vadd.xlane.f32.xlu0 %v287_v54 }
  0xd8   : > { %300 = vadd.xlane.f32.xlu1 %v299_v55 }
 0x155   : > { %v280_v62 = vpop.xlane.xlu0 %279 }
 0x156   : > { %v302_v63 = vmul.f32 0.03125, %v280_v62 }
 0x158   : > { %v310_v0 = vadd.f32 1e-05, %v302_v63 }
 0x159   : > { %v292_v1 = vpop.xlane.xlu1 %291  ;;  %v283_v2 = vpop.xlane.xlu0 %282 }
 0x15a   : > { %682 = vrsqrt.f32 %v310_v0  ;;  %v306_v3 = vmul.f32 0.03125, %v292_v1  ;;  %v303_v4 = vmul.f32 0.03125, %v283_v2 }
 0x15c   : > { %v314_v5 = vadd.f32 1e-05, %v306_v3  ;;  %v311_v6 = vadd.f32 1e-05, %v303_v4 }
 0x15d   : > { %v295_v7 = vpop.xlane.xlu1 %294  ;;  %v286_v8 = vpop.xlane.xlu0 %285 }
 0x15e   : > { %684 = vrsqrt.f32 %v314_v5  ;;  %v307_v9 = vmul.f32 0.03125, %v295_v7  ;;  %v304_v10 = vmul.f32 0.03125, %v286_v8 }
 0x15f   : > { %686 = vrsqrt.f32 %v311_v6 }
 0x160   : > { %v315_v11 = vadd.f32 1e-05, %v307_v9  ;;  %v312_v12 = vadd.f32 1e-05, %v304_v10 }
 0x161   : > { %v298_v13 = vpop.xlane.xlu1 %297  ;;  %v289_v14 = vpop.xlane.xlu0 %288 }
 0x162   : > { %688 = vrsqrt.f32 %v315_v11  ;;  %v308_v15 = vmul.f32 0.03125, %v298_v13  ;;  %v305_v16 = vmul.f32 0.03125, %v289_v14 }
 0x163   : > { %690 = vrsqrt.f32 %v312_v12 }
 0x164   : > { %v683_v17 = vpop.eup %682  ;;  %v316_v18 = vadd.f32 1e-05, %v308_v15  ;;  %v313_v19 = vadd.f32 1e-05, %v305_v16 }
 0x165   : > { %v301_v23 = vpop.xlane.xlu1 %300  ;;  %v326_v24 = vmul.f32 %v683_v17, %v889_v20 }
 0x166   : > { %692 = vrsqrt.f32 %v316_v18  ;;  %v309_v25 = vmul.f32 0.03125, %v301_v23 }
 0x167   : > { %694 = vrsqrt.f32 %v313_v19  ;;  %v341_v27 = vmul.f32 %v584_v22, %v326_v24 }
 0x168   : > { %v685_v30 = vpop.eup %684  ;;  %v317_v31 = vadd.f32 1e-05, %v309_v25 }
 0x169   : > { %v687_v32 = vpop.eup %686  ;;  %v356_v33 = vadd.f32 %v585_v26, %v341_v27  ;;  %v330_v34 = vmul.f32 %v685_v30, %v897_v28 }
 0x16a   : > { %696 = vrsqrt.f32 %v317_v31  ;;  %v327_v35 = vmul.f32 %v687_v32, %v891_v21 }
 0x16b   : > { %617 = vmatprep.mubr.msk.f32.mxu0 %vm228_vm0, %v356_v33  ;;  %v345_v20 = vmul.f32 %v584_v22, %v330_v34 }
 0x16c   : > { %v689_v36 = vpop.eup %688  ;;  %v342_v37 = vmul.f32 %v584_v22, %v327_v35 }
 0x16d   : > { %v691_v40 = vpop.eup %690  ;;  %v360_v41 = vadd.f32 %v585_v26, %v345_v20  ;;  %v331_v42 = vmul.f32 %v689_v36, %v899_v29 }
 0x16e   : > { %v357_v43 = vadd.f32 %v585_v26, %v342_v37  ;;  %v328_v44 = vmul.f32 %v691_v40, %v907_v38 }
 0x16f   : > { %623 = vmatprep.mubr.msk.f32.mxu1 %vm228_vm0, %v360_v41  ;;  %v346_v45 = vmul.f32 %v584_v22, %v331_v42 }
 0x170   : > { %v693_v46 = vpop.eup %692  ;;  %618 = vmatmul.mubr.msk.f32.vlgmr.msra.gmra.mrb[0].mxu0 %vm228_vm0, %v357_v43  ;;  %v343_v28 = vmul.f32 %v584_v22, %v328_v44 }
 0x171   : > { %v695_v21 = vpop.eup %694  ;;  %v361_v47 = vadd.f32 %v585_v26, %v346_v45  ;;  %v332_v50 = vmul.f32 %v693_v46, %v909_v39 }
 0x172   : > { %v358_v51 = vadd.f32 %v585_v26, %v343_v28  ;;  %v329_v52 = vmul.f32 %v695_v21, %v917_v48 }
 0x173   : > { %624 = vmatmul.mubr.msk.f32.vlgmr.msra.gmra.mrb[0].mxu1 %vm228_vm0, %v361_v47  ;;  %v347_v29 = vmul.f32 %v584_v22, %v332_v50 }
 0x174   : > { %v697_v53 = vpop.eup %696  ;;  %620 = vmatprep.mubr.msk.f32.mxu0 %vm228_vm0, %v358_v51  ;;  %v344_v38 = vmul.f32 %v584_v22, %v329_v52 }
 0x175   : > { %v362_v54 = vadd.f32 %v585_v26, %v347_v29  ;;  %v333_v55 = vmul.f32 %v697_v53, %v919_v49 }
 0x176   : > { %v359_v56 = vadd.f32 %v585_v26, %v344_v38 }
 0x177   : > { %626 = vmatprep.mubr.msk.f32.mxu1 %vm228_vm0, %v362_v54  ;;  %v348_v57 = vmul.f32 %v584_v22, %v333_v55 }
 0x178   : > { %621 = vmatmul.mubr.msk.f32.gmra.mrb[2].mxu0 %vm228_vm0, %v359_v56 }
 0x179   : > { %v363_v39 = vadd.f32 %v585_v26, %v348_v57 }
 0x17b   : > { %627 = vmatmul.mubr.msk.f32.gmra.mrb[2].mxu1 %vm228_vm0, %v363_v39 }
 0x243   : > { %v619_v48 = vpop.f32.mrb[0].mxu0 }
 0x244   : > { %499 = vst.msk [vmem:[%s218_s28 + $0x8] sm:$0xff] %vm497_vm1, %v619_v48  ;;  %v458_v49 = vpop.f32.mrb[1].mxu0 }
 0x245   : > { %498 = vst.msk [vmem:[%s218_s28] sm:$0xff] %vm497_vm1, %v458_v49 }
 0x246   : > { %v625_v58 = vpop.f32.mrb[0].mxu1 }
 0x247   : > { %503 = vst.msk [vmem:[%s218_s28 + $0x28] sm:$0xff] %vm497_vm1, %v625_v58  ;;  %v478_v59 = vpop.f32.mrb[1].mxu1 }
 0x248   : > { %502 = vst.msk [vmem:[%s218_s28 + $0x20] sm:$0xff] %vm497_vm1, %v478_v59 }
 0x24b   : > { %v622_v60 = vpop.f32.mrb[2].mxu0 }
 0x24c   : > { %501 = vst.msk [vmem:[%s218_s28 + $0x18] sm:$0xff] %vm497_vm1, %v622_v60  ;;  %v468_v61 = vpop.f32.mrb[3].mxu0 }
 0x24d   : > { %500 = vst.msk [vmem:[%s218_s28 + $0x10] sm:$0xff] %vm497_vm1, %v468_v61 }
 0x24e   : > { %v628_v62 = vpop.f32.mrb[2].mxu1 }
 0x24f   : > { %505 = vst.msk [vmem:[%s218_s28 + $0x38] sm:$0xff] %vm497_vm1, %v628_v62  ;;  %v488_v63 = vpop.f32.mrb[3].mxu1 }
 0x250   : > { %504 = vst.msk [vmem:[%s218_s28 + $0x30] sm:$0xff] %vm497_vm1, %v488_v63 }
 0x251 PF: > { %p14_p8 = scmp.ge.s32.totalorder %s812_s20, 4   ;;  %s997_s15 = smov %s754_s16 }
 0x252   : > { %s998_s16 = smov %s758_s17  ;;  %s999_s17 = smov %s822_s23 }
 0x253   : > { %s1000_s18 = smov %s812_s20  ;;  %16 = sbr.rel (!%p14_p8) target bundleno = 3 (0x3), region = 76 }
 0x25a   :  { %528 = vsyncpa [#allocation3], 1 }
 0x25b   :  { %530 = vsyncpa [#allocation3 + $0x1], 1 }

// kernel: run.10
= control target key start
LH: loop header
LB: loop body
LE: loop exit
PB: predicated region body
PF: predicated region fallthrough
CT: control target
= control target key end

     0   :  { %s665_s15 = smov 0   ;;  %s779_s0 = inlined_call_operand.vmem [shape: f32[128,32], index: 0, kind: input, shape index: {}]   ;;  %s780_s1 = inlined_call_operand.vmem [shape: f32[1,32], index: 1, kind: input, shape index: {}]   ;;  %s781_s2 = inlined_call_operand.vmem [shape: f32[1,32], index: 2, kind: input, shape index: {}]   ;;  %s782_s3 = inlined_call_operand.vmem [shape: f32[32,96], index: 3, kind: input, shape index: {}]   ;;  %s783_s4 = inlined_call_operand.vmem [shape: f32[128,96], index: 4, kind: output, shape index: {}]  }
   0x1 LB: > { %s543_s16 = sadd.s32 4294967295, %s638_s15   ;;  %p547_p0 = scmp.ge.s32.totalorder %s638_s15, 1  ;;  %s638_s15 = sphi %s665_s15, %s14_s15  }
   0x2   : > { %p163_p1 = scmp.lt.s32.totalorder %s638_s15, 3 }
   0x4   : > { %p164_p2 = pnand %p547_p0, %p163_p1 }
   0x5   : > { %s548_s17 = sshll.u32 (!%p164_p2), %s543_s16, 3  ;;  %vm209_vm0 = vcmask (!%p164_p2), 261120   ;;  %v345_v56 = vld [vmem:[%s782_s3] sm:$0xff] (!%p164_p2)  ;;  %v346_v57 = vld [vmem:[%s782_s3 + $0x8] sm:$0xff] (!%p164_p2)  ;;  %v347_v59 = vld [vmem:[%s782_s3 + $0x10] sm:$0xff] (!%p164_p2)  ;;  %vm478_vm1 = vcmask (!%p164_p2), 785408  }
   0x6   : > { %167 = sbr.rel (%p164_p2) target bundleno = 560 (0x230), region = 36  ;;  %p190_p3 = scmp.lt.s32.totalorder (!%p164_p2), %s548_s17, 15  ;;  %v596_v58 = vpack.c.bf16 (!%p164_p2), %v346_v57, %v345_v56  ;;  %v348_v60 = vld [vmem:[%s782_s3 + $0x18] sm:$0xff] (!%p164_p2) }
   0x7   : > { %v600_v61 = vpack.c.bf16 (!%p164_p2), %v348_v60, %v347_v59 }
   0x8   : > { %597 = vmatprep.subr.bf16.mxu0 (!%p164_p2), %v596_v58  ;;  %604 = vmatprep.subr.bf16.mxu1 (!%p164_p2), %v596_v58 }
   0x9   : > { %599 = vmatpush3.bf16.msra.mxu0 (!%p164_p2), %v596_v58  ;;  %606 = vmatpush3.bf16.msra.mxu1 (!%p164_p2), %v596_v58 }
   0xa   : > { %601 = vmatprep.subr.bf16.mxu0 (!%p164_p2), %v600_v61  ;;  %605 = vmatprep.subr.bf16.mxu1 (!%p164_p2), %v600_v61 }
   0xd   : > { %s785_s17 = smov (!%p190_p3, %s548_s17), 15  ;;  %603 = vmatpush3.bf16.msra.mxu0 %v600_v61  ;;  %607 = vmatpush3.bf16.msra.mxu1 %v600_v61 }
   0xe   : > { %s549_s18 = sshll.u32 %s785_s17, 3 }
   0xf   : > { %s193_s21 = scalar_lea.vmem %s779_s0, %s549_s18  ;;  %s199_s10 = scalar_lea.vmem %s783_s4, %s549_s18 }
  0x10   : > { %v201_v0 = vld [vmem:[%s193_s21] sm:$0xff]  ;;  %v202_v1 = vld [vmem:[%s193_s21 + $0x8] sm:$0xff]  ;;  %v203_v8 = vld [vmem:[%s193_s21 + $0x10] sm:$0xff] }
  0x11   : > { %v205_v2 = vld [vmem:[%s193_s21 + $0x20] sm:$0xff]  ;;  %v210_v3 = vsel %vm209_vm0, %v201_v0, 0.0  ;;  %v213_v4 = vsel %vm209_vm0, %v202_v1, 0.0  ;;  %v206_v5 = vld [vmem:[%s193_s21 + $0x28] sm:$0xff]  ;;  %v207_v9 = vld [vmem:[%s193_s21 + $0x30] sm:$0xff]  ;;  %v216_v10 = vsel %vm209_vm0, %v203_v8, 0.0 }
  0x12   : > { %211 = vadd.xlane.f32.xlu0 %v210_v3  ;;  %214 = vadd.xlane.f32.xlu1 %v213_v4  ;;  %v222_v6 = vsel %vm209_vm0, %v205_v2, 0.0  ;;  %v225_v7 = vsel %vm209_vm0, %v206_v5, 0.0  ;;  %v228_v11 = vsel %vm209_vm0, %v207_v9, 0.0  ;;  %v204_v12 = vld [vmem:[%s193_s21 + $0x18] sm:$0xff] }
  0x13   : > { %v208_v13 = vld [vmem:[%s193_s21 + $0x38] sm:$0xff]  ;;  %v219_v14 = vsel %vm209_vm0, %v204_v12, 0.0 }
  0x14   : > { %v231_v15 = vsel %vm209_vm0, %v208_v13, 0.0 }
  0x16   : > { %223 = vadd.xlane.f32.xlu0 %v222_v6  ;;  %226 = vadd.xlane.f32.xlu1 %v225_v7 }
  0x1a   : > { %217 = vadd.xlane.f32.xlu0 %v216_v10  ;;  %229 = vadd.xlane.f32.xlu1 %v228_v11 }
  0x1e   : > { %220 = vadd.xlane.f32.xlu0 %v219_v14  ;;  %232 = vadd.xlane.f32.xlu1 %v231_v15 }
  0x9f   : > { %v212_v16 = vpop.xlane.xlu0 %211  ;;  %v215_v17 = vpop.xlane.xlu1 %214 }
  0xa0   : > { %v235_v18 = vmul.f32 0.03125, %v212_v16  ;;  %v236_v19 = vmul.f32 0.03125, %v215_v17 }
  0xa2   : > { %v689_v20 = vsub.f32 %v201_v0, %v235_v18  ;;  %v691_v21 = vsub.f32 %v202_v1, %v236_v19 }
  0xa3   : > { %v224_v22 = vpop.xlane.xlu0 %223  ;;  %v227_v23 = vpop.xlane.xlu1 %226 }
  0xa4   : > { %v239_v24 = vmul.f32 0.03125, %v224_v22  ;;  %v240_v25 = vmul.f32 0.03125, %v227_v23  ;;  %v251_v26 = vmul.f32 %v689_v20, %v689_v20  ;;  %v252_v27 = vmul.f32 %v691_v21, %v691_v21  ;;  %v552_v22 = vld [vmem:[%s780_s1] ss:$0 sm:$0xff] }
  0xa6   : > { %v697_v28 = vsub.f32 %v205_v2, %v239_v24  ;;  %v699_v29 = vsub.f32 %v206_v5, %v240_v25  ;;  %v259_v30 = vsel %vm209_vm0, %v251_v26, 0.0  ;;  %v262_v33 = vsel %vm209_vm0, %v252_v27, 0.0  ;;  %v553_v26 = vld [vmem:[%s781_s2] ss:$0 sm:$0xff] }
  0xa7   : > { %260 = vadd.xlane.f32.xlu0 %v259_v30  ;;  %v218_v31 = vpop.xlane.xlu0 %217  ;;  %v230_v32 = vpop.xlane.xlu1 %229 }
  0xa8   : > { %v237_v34 = vmul.f32 0.03125, %v218_v31  ;;  %v241_v35 = vmul.f32 0.03125, %v230_v32  ;;  %v255_v36 = vmul.f32 %v697_v28, %v697_v28  ;;  %v256_v37 = vmul.f32 %v699_v29, %v699_v29 }
  0xaa   : > { %v707_v38 = vsub.f32 %v203_v8, %v237_v34  ;;  %v709_v39 = vsub.f32 %v207_v9, %v241_v35  ;;  %v271_v40 = vsel %vm209_vm0, %v255_v36, 0.0  ;;  %v274_v43 = vsel %vm209_vm0, %v256_v37, 0.0 }
  0xab   : > { %263 = vadd.xlane.f32.xlu0 %v262_v33  ;;  %272 = vadd.xlane.f32.xlu1 %v271_v40  ;;  %v221_v41 = vpop.xlane.xlu0 %220  ;;  %v233_v42 = vpop.xlane.xlu1 %232 }
  0xac   : > { %v238_v44 = vmul.f32 0.03125, %v221_v41  ;;  %v242_v45 = vmul.f32 0.03125, %v233_v42  ;;  %v253_v46 = vmul.f32 %v707_v38, %v707_v38  ;;  %v257_v47 = vmul.f32 %v709_v39, %v709_v39 }
  0xae   : > { %v717_v48 = vsub.f32 %v204_v12, %v238_v44  ;;  %v719_v49 = vsub.f32 %v208_v13, %v242_v45  ;;  %v265_v50 = vsel %vm209_vm0, %v253_v46, 0.0  ;;  %v277_v51 = vsel %vm209_vm0, %v257_v47, 0.0 }
  0xaf   : > { %275 = vadd.xlane.f32.xlu1 %v274_v43  ;;  %266 = vadd.xlane.f32.xlu0 %v265_v50 }
  0xb0   : > { %v254_v52 = vmul.f32 %v717_v48, %v717_v48  ;;  %v258_v53 = vmul.f32 %v719_v49, %v719_v49 }
  0xb2   : > { %v268_v54 = vsel %vm209_vm0, %v254_v52, 0.0  ;;  %v280_v55 = vsel %vm209_vm0, %v258_v53, 0.0 }
  0xb3   : > { %278 = vadd.xlane.f32.xlu1 %v277_v51  ;;  %269 = vadd.xlane.f32.xlu0 %v268_v54 }
  0xb7   : > { %281 = vadd.xlane.f32.xlu1 %v280_v55 }
 0x134   : > { %v261_v62 = vpop.xlane.xlu0 %260 }
 0x135   : > { %v283_v63 = vmul.f32 0.03125, %v261_v62 }
 0x137   : > { %v291_v0 = vadd.f32 1e-05, %v283_v63 }
 0x138   : > { %v273_v1 = vpop.xlane.xlu1 %272  ;;  %v264_v2 = vpop.xlane.xlu0 %263 }
 0x139   : > { %616 = vrsqrt.f32 %v291_v0  ;;  %v287_v3 = vmul.f32 0.03125, %v273_v1  ;;  %v284_v4 = vmul.f32 0.03125, %v264_v2 }
 0x13b   : > { %v295_v5 = vadd.f32 1e-05, %v287_v3  ;;  %v292_v6 = vadd.f32 1e-05, %v284_v4 }
 0x13c   : > { %v276_v7 = vpop.xlane.xlu1 %275  ;;  %v267_v8 = vpop.xlane.xlu0 %266 }
 0x13d   : > { %618 = vrsqrt.f32 %v295_v5  ;;  %v288_v9 = vmul.f32 0.03125, %v276_v7  ;;  %v285_v10 = vmul.f32 0.03125, %v267_v8 }
 0x13e   : > { %620 = vrsqrt.f32 %v292_v6 }
 0x13f   : > { %v296_v11 = vadd.f32 1e-05, %v288_v9  ;;  %v293_v12 = vadd.f32 1e-05, %v285_v10 }
 0x140   : > { %v279_v13 = vpop.xlane.xlu1 %278  ;;  %v270_v14 = vpop.xlane.xlu0 %269 }
 0x141   : > { %622 = vrsqrt.f32 %v296_v11  ;;  %v289_v15 = vmul.f32 0.03125, %v279_v13  ;;  %v286_v16 = vmul.f32 0.03125, %v270_v14 }
 0x142   : > { %624 = vrsqrt.f32 %v293_v12 }
 0x143   : > { %v617_v17 = vpop.eup %616  ;;  %v297_v18 = vadd.f32 1e-05, %v289_v15  ;;  %v294_v19 = vadd.f32 1e-05, %v286_v16 }
 0x144   : > { %v282_v23 = vpop.xlane.xlu1 %281  ;;  %v307_v24 = vmul.f32 %v617_v17, %v689_v20 }
 0x145   : > { %626 = vrsqrt.f32 %v297_v18  ;;  %v290_v25 = vmul.f32 0.03125, %v282_v23 }
 0x146   : > { %628 = vrsqrt.f32 %v294_v19  ;;  %v322_v27 = vmul.f32 %v552_v22, %v307_v24 }
 0x147   : > { %v619_v30 = vpop.eup %618  ;;  %v298_v31 = vadd.f32 1e-05, %v290_v25 }
 0x148   : > { %v621_v32 = vpop.eup %620  ;;  %v337_v33 = vadd.f32 %v553_v26, %v322_v27  ;;  %v311_v34 = vmul.f32 %v619_v30, %v697_v28 }
 0x149   : > { %630 = vrsqrt.f32 %v298_v31  ;;  %v308_v35 = vmul.f32 %v621_v32, %v691_v21 }
 0x14a   : > { %584 = vmatprep.mubr.msk.f32.mxu0 %vm209_vm0, %v337_v33  ;;  %v326_v20 = vmul.f32 %v552_v22, %v311_v34 }
 0x14b   : > { %v623_v36 = vpop.eup %622  ;;  %v323_v37 = vmul.f32 %v552_v22, %v308_v35 }
 0x14c   : > { %v625_v40 = vpop.eup %624  ;;  %v341_v41 = vadd.f32 %v553_v26, %v326_v20  ;;  %v312_v42 = vmul.f32 %v623_v36, %v699_v29 }
 0x14d   : > { %v338_v43 = vadd.f32 %v553_v26, %v323_v37  ;;  %v309_v44 = vmul.f32 %v625_v40, %v707_v38 }
 0x14e   : > { %590 = vmatprep.mubr.msk.f32.mxu1 %vm209_vm0, %v341_v41  ;;  %v327_v45 = vmul.f32 %v552_v22, %v312_v42 }
 0x14f   : > { %v627_v46 = vpop.eup %626  ;;  %585 = vmatmul.mubr.msk.f32.vlgmr.msra.gmra.mrb[0].mxu0 %vm209_vm0, %v338_v43  ;;  %v324_v28 = vmul.f32 %v552_v22, %v309_v44 }
 0x150   : > { %v629_v21 = vpop.eup %628  ;;  %v342_v47 = vadd.f32 %v553_v26, %v327_v45  ;;  %v313_v50 = vmul.f32 %v627_v46, %v709_v39 }
 0x151   : > { %v339_v51 = vadd.f32 %v553_v26, %v324_v28  ;;  %v310_v52 = vmul.f32 %v629_v21, %v717_v48 }
 0x152   : > { %591 = vmatmul.mubr.msk.f32.vlgmr.msra.gmra.mrb[0].mxu1 %vm209_vm0, %v342_v47  ;;  %v328_v29 = vmul.f32 %v552_v22, %v313_v50 }
 0x153   : > { %v631_v53 = vpop.eup %630  ;;  %587 = vmatprep.mubr.msk.f32.mxu0 %vm209_vm0, %v339_v51  ;;  %v325_v38 = vmul.f32 %v552_v22, %v310_v52 }
 0x154   : > { %v343_v54 = vadd.f32 %v553_v26, %v328_v29  ;;  %v314_v55 = vmul.f32 %v631_v53, %v719_v49 }
 0x155   : > { %v340_v56 = vadd.f32 %v553_v26, %v325_v38 }
 0x156   : > { %593 = vmatprep.mubr.msk.f32.mxu1 %vm209_vm0, %v343_v54  ;;  %v329_v57 = vmul.f32 %v552_v22, %v314_v55 }
 0x157   : > { %588 = vmatmul.mubr.msk.f32.gmra.mrb[2].mxu0 %vm209_vm0, %v340_v56 }
 0x158   : > { %v344_v39 = vadd.f32 %v553_v26, %v329_v57 }
 0x15a   : > { %594 = vmatmul.mubr.msk.f32.gmra.mrb[2].mxu1 %vm209_vm0, %v344_v39 }
 0x222   : > { %v586_v48 = vpop.f32.mrb[0].mxu0 }
 0x223   : > { %480 = vst.msk [vmem:[%s199_s10 + $0x8] sm:$0xff] %vm478_vm1, %v586_v48  ;;  %v439_v58 = vpop.f32.mrb[1].mxu0 }
 0x224   : > { %479 = vst.msk [vmem:[%s199_s10] sm:$0xff] %vm478_vm1, %v439_v58 }
 0x225   : > { %v592_v49 = vpop.f32.mrb[0].mxu1 }
 0x226   : > { %484 = vst.msk [vmem:[%s199_s10 + $0x28] sm:$0xff] %vm478_vm1, %v592_v49  ;;  %v459_v59 = vpop.f32.mrb[1].mxu1 }
 0x227   : > { %483 = vst.msk [vmem:[%s199_s10 + $0x20] sm:$0xff] %vm478_vm1, %v459_v59 }
 0x22a   : > { %v589_v60 = vpop.f32.mrb[2].mxu0 }
 0x22b   : > { %482 = vst.msk [vmem:[%s199_s10 + $0x18] sm:$0xff] %vm478_vm1, %v589_v60  ;;  %v449_v61 = vpop.f32.mrb[3].mxu0 }
 0x22c   : > { %481 = vst.msk [vmem:[%s199_s10 + $0x10] sm:$0xff] %vm478_vm1, %v449_v61 }
 0x22d   : > { %v595_v62 = vpop.f32.mrb[2].mxu1 }
 0x22e   : > { %486 = vst.msk [vmem:[%s199_s10 + $0x38] sm:$0xff] %vm478_vm1, %v595_v62  ;;  %v469_v63 = vpop.f32.mrb[3].mxu1 }
 0x22f   : > { %485 = vst.msk [vmem:[%s199_s10 + $0x30] sm:$0xff] %vm478_vm1, %v469_v63 }
 0x230 PF: > { %s14_s15 = sadd.s32 1, %s638_s15  }
 0x231   : > { %p11_p4 = scmp.ge.s32.totalorder %s14_s15, 4  }
 0x233   :  { %13 = sbr.rel (!%p11_p4) target bundleno = 1 (0x1), region = 66 }

// kernel: run.9
= control target key start
LH: loop header
LB: loop body
LE: loop exit
PB: predicated region body
PF: predicated region fallthrough
CT: control target
= control target key end

     0   :  { %s1520_s21 = smov 0   ;;  %s2173_s0 = inlined_call_operand.vmem [shape: f32[2,64,32], index: 0, kind: input, shape index: {}]   ;;  %s2174_s1 = inlined_call_operand.vmem [shape: f32[1,32], index: 1, kind: input, shape index: {}]   ;;  %s2175_s2 = inlined_call_operand.vmem [shape: f32[1,32], index: 2, kind: input, shape index: {}]   ;;  %s2176_s3 = inlined_call_operand.vmem [shape: f32[32,64], index: 3, kind: input, shape index: {}]   ;;  %s2177_s4 = inlined_call_operand.vmem [shape: f32[9,64], index: 4, kind: input, shape index: {}]   ;;  %s2178_s5 = inlined_call_operand.vmem [shape: f32[32,32], index: 5, kind: input, shape index: {}]   ;;  %s2179_s6 = inlined_call_operand.vmem [shape: f32[2,64,32], index: 6, kind: output, shape index: {}]  }
   0x1 LB: > { %s1313_s22 = sadd.s32 4294967295, %s1481_s21   ;;  %p1317_p0 = scmp.ge.s32.totalorder %s1481_s21, 1  ;;  %s1481_s21 = sphi %s1520_s21, %s16_s21  }
   0x2   : > { %p212_p1 = scmp.lt.s32.totalorder %s1481_s21, 3 }
   0x4   : > { %p213_p2 = pnand %p1317_p0, %p212_p1 }
   0x6   : > { %216 = sbr.rel (%p213_p2) target bundleno = 945 (0x3b1), region = 44 }
   0xd   : > { %p242_p3 = scmp.lt.s32.totalorder %s1313_s22, 1  ;;  %vm260_vm0 = vcmask 261120   ;;  %v396_v56 = vld [vmem:[%s2176_s3] sm:$0xff]  ;;  %v397_v57 = vld [vmem:[%s2176_s3 + $0x8] sm:$0xff]  ;;  %v398_v59 = vld [vmem:[%s2176_s3 + $0x10] sm:$0xff]  ;;  %vm692_vm2 = vcmask 1040384  }
   0xe   : > { %v1409_v58 = vpack.c.bf16 %v397_v57, %v396_v56  ;;  %v399_v60 = vld [vmem:[%s2176_s3 + $0x18] sm:$0xff]  ;;  %vm814_vm4 = vcmask 1046528   ;;  %s1484_s27 = smov 96  }
   0xf   : > { %s2219_s22 = smov (!%p242_p3, %s1313_s22), 1  ;;  %v1413_v61 = vpack.c.bf16 %v399_v60, %v398_v59 }
  0x10   : > { %s1343_s23 = sshll.u32 %s2219_s22, 6  ;;  %1410 = vmatprep.subr.bf16.mxu0 %v1409_v58 }
  0x11   : > { %s1536_s26 = scalar_lea.vmem %s2173_s0, %s1343_s23  ;;  %1412 = vmatpush3.bf16.msra.mxu0 %v1409_v58  ;;  %v1110_v58 = vld [vmem:[%s2178_s5 + $0x8] sm:$0xff]  ;;  %s2144_s10 = scalar_lea.vmem %s2179_s6, %s1343_s23 }
  0x12   : > { %v252_v0 = vld [vmem:[%s1536_s26] sm:$0xff]  ;;  %v254_v1 = vld [vmem:[%s1536_s26 + $0x10] sm:$0xff]  ;;  %v253_v2 = vld [vmem:[%s1536_s26 + $0x8] sm:$0xff]  ;;  %1414 = vmatprep.subr.bf16.mxu0 %v1413_v61 }
  0x13   : > { %v261_v3 = vsel %vm260_vm0, %v252_v0, 0.0  ;;  %v267_v4 = vsel %vm260_vm0, %v254_v1, 0.0  ;;  %v255_v5 = vld [vmem:[%s1536_s26 + $0x18] sm:$0xff]  ;;  %v264_v6 = vsel %vm260_vm0, %v253_v2, 0.0  ;;  %v256_v8 = vld [vmem:[%s1536_s26 + $0x20] sm:$0xff]  ;;  %v257_v9 = vld [vmem:[%s1536_s26 + $0x28] sm:$0xff] }
  0x14   : > { %262 = vadd.xlane.f32.xlu0 %v261_v3  ;;  %268 = vadd.xlane.f32.xlu1 %v267_v4  ;;  %v270_v7 = vsel %vm260_vm0, %v255_v5, 0.0  ;;  %v273_v10 = vsel %vm260_vm0, %v256_v8, 0.0  ;;  %v276_v11 = vsel %vm260_vm0, %v257_v9, 0.0  ;;  %v258_v12 = vld [vmem:[%s1536_s26 + $0x30] sm:$0xff]  ;;  %v259_v13 = vld [vmem:[%s1536_s26 + $0x38] sm:$0xff] }
  0x15   : > { %v279_v14 = vsel %vm260_vm0, %v258_v12, 0.0  ;;  %v282_v15 = vsel %vm260_vm0, %v259_v13, 0.0  ;;  %1416 = vmatpush3.bf16.msra.mxu0 %v1413_v61 }
  0x18   : > { %265 = vadd.xlane.f32.xlu0 %v264_v6  ;;  %271 = vadd.xlane.f32.xlu1 %v270_v7 }
  0x1c   : > { %274 = vadd.xlane.f32.xlu0 %v273_v10  ;;  %277 = vadd.xlane.f32.xlu1 %v276_v11 }
  0x20   : > { %280 = vadd.xlane.f32.xlu0 %v279_v14  ;;  %283 = vadd.xlane.f32.xlu1 %v282_v15 }
  0xa1   : > { %v263_v16 = vpop.xlane.xlu0 %262  ;;  %v269_v17 = vpop.xlane.xlu1 %268 }
  0xa2   : > { %v286_v18 = vmul.f32 0.03125, %v263_v16  ;;  %v288_v19 = vmul.f32 0.03125, %v269_v17 }
  0xa4   : > { %v1554_v20 = vsub.f32 %v252_v0, %v286_v18  ;;  %v1556_v21 = vsub.f32 %v254_v1, %v288_v19 }
  0xa5   : > { %v266_v22 = vpop.xlane.xlu0 %265  ;;  %v272_v23 = vpop.xlane.xlu1 %271 }
  0xa6   : > { %v287_v24 = vmul.f32 0.03125, %v266_v22  ;;  %v289_v25 = vmul.f32 0.03125, %v272_v23  ;;  %v302_v26 = vmul.f32 %v1554_v20, %v1554_v20  ;;  %v304_v27 = vmul.f32 %v1556_v21, %v1556_v21  ;;  %v1322_v22 = vld [vmem:[%s2174_s1] ss:$0 sm:$0xff] }
  0xa8   : > { %v1562_v28 = vsub.f32 %v253_v2, %v287_v24  ;;  %v1564_v29 = vsub.f32 %v255_v5, %v289_v25  ;;  %v310_v30 = vsel %vm260_vm0, %v302_v26, 0.0  ;;  %v316_v33 = vsel %vm260_vm0, %v304_v27, 0.0  ;;  %v1323_v26 = vld [vmem:[%s2175_s2] ss:$0 sm:$0xff] }
  0xa9   : > { %311 = vadd.xlane.f32.xlu0 %v310_v30  ;;  %v275_v31 = vpop.xlane.xlu0 %274  ;;  %v278_v32 = vpop.xlane.xlu1 %277 }
  0xaa   : > { %v290_v34 = vmul.f32 0.03125, %v275_v31  ;;  %v291_v35 = vmul.f32 0.03125, %v278_v32  ;;  %v303_v36 = vmul.f32 %v1562_v28, %v1562_v28  ;;  %v305_v37 = vmul.f32 %v1564_v29, %v1564_v29 }
  0xac   : > { %v1572_v38 = vsub.f32 %v256_v8, %v290_v34  ;;  %v1574_v39 = vsub.f32 %v257_v9, %v291_v35  ;;  %v313_v40 = vsel %vm260_vm0, %v303_v36, 0.0  ;;  %v319_v43 = vsel %vm260_vm0, %v305_v37, 0.0 }
  0xad   : > { %317 = vadd.xlane.f32.xlu0 %v316_v33  ;;  %314 = vadd.xlane.f32.xlu1 %v313_v40  ;;  %v281_v41 = vpop.xlane.xlu0 %280  ;;  %v284_v42 = vpop.xlane.xlu1 %283 }
  0xae   : > { %v292_v44 = vmul.f32 0.03125, %v281_v41  ;;  %v293_v45 = vmul.f32 0.03125, %v284_v42  ;;  %v306_v46 = vmul.f32 %v1572_v38, %v1572_v38  ;;  %v307_v47 = vmul.f32 %v1574_v39, %v1574_v39 }
  0xb0   : > { %v1582_v48 = vsub.f32 %v258_v12, %v292_v44  ;;  %v1584_v49 = vsub.f32 %v259_v13, %v293_v45  ;;  %v322_v50 = vsel %vm260_vm0, %v306_v46, 0.0  ;;  %v325_v51 = vsel %vm260_vm0, %v307_v47, 0.0 }
  0xb1   : > { %320 = vadd.xlane.f32.xlu1 %v319_v43  ;;  %323 = vadd.xlane.f32.xlu0 %v322_v50 }
  0xb2   : > { %v308_v52 = vmul.f32 %v1582_v48, %v1582_v48  ;;  %v309_v53 = vmul.f32 %v1584_v49, %v1584_v49 }
  0xb4   : > { %v328_v54 = vsel %vm260_vm0, %v308_v52, 0.0  ;;  %v331_v55 = vsel %vm260_vm0, %v309_v53, 0.0 }
  0xb5   : > { %326 = vadd.xlane.f32.xlu1 %v325_v51  ;;  %329 = vadd.xlane.f32.xlu0 %v328_v54 }
  0xb9   : > { %332 = vadd.xlane.f32.xlu1 %v331_v55 }
 0x136   : > { %v312_v62 = vpop.xlane.xlu0 %311 }
 0x137   : > { %v334_v63 = vmul.f32 0.03125, %v312_v62 }
 0x139   : > { %v342_v0 = vadd.f32 1e-05, %v334_v63 }
 0x13a   : > { %v315_v1 = vpop.xlane.xlu1 %314  ;;  %v318_v2 = vpop.xlane.xlu0 %317 }
 0x13b   : > { %1435 = vrsqrt.f32 %v342_v0  ;;  %v335_v3 = vmul.f32 0.03125, %v315_v1  ;;  %v336_v4 = vmul.f32 0.03125, %v318_v2  ;;  %v529_v1 = vld [vmem:[%s2177_s4] sm:$0xff] }
 0x13d   : > { %v343_v5 = vadd.f32 1e-05, %v335_v3  ;;  %v344_v6 = vadd.f32 1e-05, %v336_v4 }
 0x13e   : > { %v321_v7 = vpop.xlane.xlu1 %320  ;;  %v324_v8 = vpop.xlane.xlu0 %323 }
 0x13f   : > { %1437 = vrsqrt.f32 %v343_v5  ;;  %v337_v9 = vmul.f32 0.03125, %v321_v7  ;;  %v338_v10 = vmul.f32 0.03125, %v324_v8  ;;  %v1483_v5 = vmov 0.0  }
 0x140   : > { %1439 = vrsqrt.f32 %v344_v6  ;;  %v1639_v6 = vrot.slane %v1483_v5, 7 }
 0x141   : > { %v345_v11 = vadd.f32 1e-05, %v337_v9  ;;  %v346_v12 = vadd.f32 1e-05, %v338_v10 }
 0x142   : > { %v327_v13 = vpop.xlane.xlu1 %326  ;;  %v330_v14 = vpop.xlane.xlu0 %329 }
 0x143   : > { %1441 = vrsqrt.f32 %v345_v11  ;;  %v339_v15 = vmul.f32 0.03125, %v327_v13  ;;  %v340_v16 = vmul.f32 0.03125, %v330_v14 }
 0x144   : > { %1443 = vrsqrt.f32 %v346_v12 }
 0x145   : > { %v1436_v17 = vpop.eup %1435  ;;  %v347_v18 = vadd.f32 1e-05, %v339_v15  ;;  %v348_v19 = vadd.f32 1e-05, %v340_v16 }
 0x146   : > { %v333_v23 = vpop.xlane.xlu1 %332  ;;  %v358_v24 = vmul.f32 %v1436_v17, %v1554_v20 }
 0x147   : > { %1445 = vrsqrt.f32 %v347_v18  ;;  %v341_v25 = vmul.f32 0.03125, %v333_v23 }
 0x148   : > { %1447 = vrsqrt.f32 %v348_v19  ;;  %v373_v27 = vmul.f32 %v1322_v22, %v358_v24 }
 0x149   : > { %v1438_v30 = vpop.eup %1437  ;;  %v349_v31 = vadd.f32 1e-05, %v341_v25 }
 0x14a   : > { %v1440_v32 = vpop.eup %1439  ;;  %v388_v33 = vadd.f32 %v1323_v26, %v373_v27  ;;  %v359_v34 = vmul.f32 %v1438_v30, %v1562_v28 }
 0x14b   : > { %1449 = vrsqrt.f32 %v349_v31  ;;  %v360_v35 = vmul.f32 %v1440_v32, %v1556_v21 }
 0x14c   : > { %1377 = vmatprep.mubr.msk.f32.mxu0 %vm260_vm0, %v388_v33  ;;  %v374_v20 = vmul.f32 %v1322_v22, %v359_v34  ;;  %v1661_v33 = vrot.slane %v1483_v5, 1 }
 0x14d   : > { %v1442_v36 = vpop.eup %1441  ;;  %v375_v37 = vmul.f32 %v1322_v22, %v360_v35 }
 0x14e   : > { %v1444_v40 = vpop.eup %1443  ;;  %v389_v41 = vadd.f32 %v1323_v26, %v374_v20  ;;  %v361_v42 = vmul.f32 %v1442_v36, %v1564_v29  ;;  %2188 = vst [vmem:[#allocation2_spill] sm:$0xff] %v1661_v33 }
 0x14f   : > { %v390_v43 = vadd.f32 %v1323_v26, %v375_v37  ;;  %v362_v44 = vmul.f32 %v1444_v40, %v1572_v38 }
 0x150   : > { %1378 = vmatmul.mubr.msk.f32.vlgmr.msra.gmra.mrb[0].mxu0 %vm260_vm0, %v389_v41  ;;  %v376_v45 = vmul.f32 %v1322_v22, %v361_v42 }
 0x151   : > { %v1446_v46 = vpop.eup %1445  ;;  %1380 = vmatprep.mubr.msk.f32.mxu0 %vm260_vm0, %v390_v43  ;;  %v377_v28 = vmul.f32 %v1322_v22, %v362_v44 }
 0x152   : > { %v1448_v21 = vpop.eup %1447  ;;  %v391_v47 = vadd.f32 %v1323_v26, %v376_v45  ;;  %v363_v50 = vmul.f32 %v1446_v46, %v1574_v39 }
 0x153   : > { %v392_v51 = vadd.f32 %v1323_v26, %v377_v28  ;;  %v364_v52 = vmul.f32 %v1448_v21, %v1582_v48  ;;  %v1109_v48 = vld [vmem:[%s2178_s5] sm:$0xff] }
 0x154   : > { %1381 = vmatmul.mubr.msk.f32.gmra.mrb[2].mxu0 %vm260_vm0, %v391_v47  ;;  %v378_v29 = vmul.f32 %v1322_v22, %v363_v50  ;;  %v1417_v59 = vpack.c.bf16 %v1110_v58, %v1109_v48 }
 0x155   : > { %v1450_v53 = vpop.eup %1449  ;;  %1383 = vmatprep.mubr.msk.f32.mxu0 %vm260_vm0, %v392_v51  ;;  %v379_v38 = vmul.f32 %v1322_v22, %v364_v52 }
 0x156   : > { %v393_v54 = vadd.f32 %v1323_v26, %v378_v29  ;;  %v365_v55 = vmul.f32 %v1450_v53, %v1584_v49  ;;  %1418 = vmatprep.subr.bf16.mxu1 %v1417_v59  ;;  %v531_v49 = vlaneseq }
 0x157   : > { %v394_v56 = vadd.f32 %v1323_v26, %v379_v38  ;;  %1420 = vmatpush3.bf16.msra.mxu1 %v1417_v59 }
 0x158   : > { %1384 = vmatmul.mubr.msk.f32.gmra.mrb[4].mxu0 %vm260_vm0, %v393_v54  ;;  %v380_v57 = vmul.f32 %v1322_v22, %v365_v55  ;;  %v532_v60 = vshrl.u32 %v531_v49, 7 }
 0x159   : > { %1386 = vmatprep.mubr.msk.f32.mxu0 %vm260_vm0, %v394_v56 }
 0x15a   : > { %v395_v39 = vadd.f32 %v1323_v26, %v380_v57  ;;  %v544_v61 = vand.u32 7, %v532_v60  ;;  %v533_v62 = vadd.s32 8, %v532_v60  ;;  %v747_v0 = vsub.s32 1, %v532_v60 }
 0x15b   : > { %v901_v2 = vsub.s32 4, %v532_v60  ;;  %v727_v3 = vsub.s32 0, %v532_v60  ;;  %v535_v7 = vadd.s32 24, %v532_v60  ;;  %v537_v9 = vadd.s32 40, %v532_v60 }
 0x15c   : > { %1387 = vmatmul.mubr.msk.f32.gmra.mrb[6].mxu0 %vm260_vm0, %v395_v39  ;;  %v1634_v63 = vadd.s32 4294967295, %v544_v61  ;;  %v551_v4 = vand.u32 7, %v533_v62  ;;  %v1642_v8 = vrot.slane %v529_v1, %v747_v0  ;;  %v538_v12 = vadd.s32 48, %v532_v60 }
 0x15d   : > { %v1644_v10 = vrot.slane %v529_v1, %v901_v2  ;;  %v1646_v11 = vrot.slane %v529_v1, %v727_v3  ;;  %v1648_v13 = vadd.s32 56, %v532_v60  ;;  %v565_v16 = vand.u32 7, %v535_v7 }
 0x15e   : > { %vm644_vm1 = vcmp.ge.s32.totalorder %v1634_v63, 0  ;;  %v1650_v14 = vadd.s32 4294967295, %v551_v4  ;;  %v1655_v17 = vadd.s32 1, %v544_v61  ;;  %v850_v18 = vsub.s32 2, %v532_v60 }
 0x15f   : > { %v717_v15 = vsel %vm644_vm1, %v1639_v6, 0.0  ;;  %v981_v19 = vsub.s32 7, %v532_v60  ;;  %v534_v22 = vadd.s32 16, %v532_v60  ;;  %v749_v23 = vmul.f32 0.0, %v1642_v8 }
 0x160   : > { %v881_v24 = vsub.s32 3, %v532_v60  ;;  %v579_v25 = vand.u32 7, %v537_v9  ;;  %v536_v26 = vadd.s32 32, %v532_v60  ;;  %v729_v27 = vmul.f32 %v1646_v11, %v717_v15 }
 0x161   : > { %v931_v30 = vsub.s32 5, %v532_v60  ;;  %v586_v31 = vand.u32 7, %v538_v12  ;;  %v593_v32 = vand.u32 7, %v1648_v13  ;;  %vm645_vm3 = vcmp.ge.s32.totalorder %v1650_v14, 0 }
 0x162   : > { %v1663_v34 = vadd.s32 4294967295, %v565_v16  ;;  %vm781_vm5 = vcmp.lt.s32.totalorder %v1655_v17, 8  ;;  %v1666_v35 = vrot.slane %v529_v1, %v850_v18  ;;  %v961_v20 = vsub.s32 6, %v532_v60 }
 0x163   : > { %v558_v36 = vand.u32 7, %v534_v22  ;;  %v1668_v37 = vrot.slane %v529_v1, %v881_v24  ;;  %v1670_v40 = vadd.s32 4294967295, %v579_v25  ;;  %v1672_v41 = vrot.slane %v529_v1, %v981_v19 }
 0x164   : > { %v572_v42 = vand.u32 7, %v536_v26  ;;  %v757_v44 = vadd.f32 %v749_v23, %v729_v27  ;;  %v1676_v45 = vrot.slane %v529_v1, %v931_v30  ;;  %v1678_v46 = vadd.s32 4294967295, %v586_v31 }
 0x165   : > { %2189 = vst [vmem:[#allocation3_spill] sm:$0xff] %v1670_v40  ;;  %v1680_v28 = vadd.s32 4294967295, %v593_v32  ;;  %vm647_vm6 = vcmp.ge.s32.totalorder %v1663_v34, 0  ;;  %v1685_v51 = vadd.s32 1, %v586_v31  ;;  %v1687_v52 = vadd.s32 1, %v551_v4 }
 0x166   : > { %v1689_v38 = vrot.slane %v529_v1, %v961_v20  ;;  %v1691_v54 = vadd.s32 4294967295, %v558_v36  ;;  %vm649_vm7 = vcmp.ge.s32.totalorder %v1670_v40, 0  ;;  %v1694_v55 = vadd.s32 1, %v558_v36 }
 0x167   : > { %2190 = vst [vmem:[#allocation4_spill] sm:$0xff] %v1685_v51  ;;  %v1696_v56 = vadd.s32 4294967295, %v572_v42  ;;  %v1698_v57 = vadd.s32 1, %v572_v42  ;;  %v1700_v39 = vadd.s32 1, %v565_v16  ;;  %v1724_v2 = vadd.s32 1, %v579_v25 }
 0x168   : > { %vm650_vm8 = vcmp.ge.s32.totalorder %v1678_v46, 0  ;;  %v1732_v7 = vadd.s32 1, %v593_v32  ;;  %vm651_vm9 = vcmp.ge.s32.totalorder %v1680_v28, 0  ;;  %vm787_vm10 = vcmp.lt.s32.totalorder %v1685_v51, 8 }
 0x169   : > { %vm782_vm11 = vcmp.lt.s32.totalorder %v1687_v52, 8  ;;  %vm646_vm12 = vcmp.ge.s32.totalorder %v1691_v54, 0  ;;  %vm783_vm13 = vcmp.lt.s32.totalorder %v1694_v55, 8  ;;  %vm648_vm14 = vcmp.ge.s32.totalorder %v1696_v56, 0 }
 0x16a   : > { %vm785_vm15 = vcmp.lt.s32.totalorder %v1698_v57, 8 }
 0x223   : > { %v1674_v43 = vpop.f32.mrb[0].mxu0 }
 0x224   : > { %v697_v21 = vrot.slane %v1674_v43, 7  ;;  %v2181_v47 = vrot.slane %v1674_v43, 1  ;;  %v490_v50 = vpop.f32.mrb[1].mxu0  ;;  %v1736_v9 = vmul.f32 %v1674_v43, %v1642_v8  ;;  %v1740_v12 = vmul.f32 %v1674_v43, %v1644_v10 }
 0x225   : > { %v695_v29 = vrot.slane %v490_v50, 7  ;;  %v816_v53 = vrot.slane %v490_v50, 1  ;;  %v750_v13 = vmul.f32 %v1642_v8, %v490_v50  ;;  %v903_v19 = vmul.f32 %v1644_v10, %v490_v50 }
 0x226   : > { %v1751_v23 = vmul.f32 %v1674_v43, %v1672_v41 }
 0x227   : > { %v696_v48 = vsel %vm692_vm2, %v1639_v6, %v695_v29  ;;  %v1705_v58 = vsel %vm692_vm2, %v695_v29, %v697_v21  ;;  %v817_v59 = vsel %vm814_vm4, %v1661_v33, %v816_v53  ;;  %v1712_v49 = vsel %vm814_vm4, %v816_v53, %v2181_v47  ;;  %v1714_v60 = vpop.f32.mrb[2].mxu0 }
 0x228   : > { %v718_v61 = vsel %vm645_vm3, %v696_v48, 0.0  ;;  %v840_v62 = vsel %vm781_vm5, %v817_v59, 0.0  ;;  %v871_v0 = vsel %vm644_vm1, %v696_v48, 0.0  ;;  %v1722_v1 = vpop.f32.mrb[3].mxu0  ;;  %v872_v5 = vsel %vm645_vm3, %v1705_v58, 0.0 }
 0x229   : > { %v730_v3 = vmul.f32 %v1646_v11, %v718_v61  ;;  %v852_v4 = vmul.f32 %v1666_v35, %v840_v62  ;;  %v701_v15 = vrot.slane %v1714_v60, 7  ;;  %v883_v18 = vmul.f32 %v1668_v37, %v871_v0 }
 0x22a   : > { %v1754_v24 = vmul.f32 %v1668_v37, %v872_v5  ;;  %v921_v25 = vsel %vm781_vm5, %v1712_v49, 0.0  ;;  %v1761_v26 = vmul.f32 %v1714_v60, %v1642_v8  ;;  %v699_v27 = vrot.slane %v1722_v1, 7 }
 0x22b   : > { %v860_v16 = vadd.f32 %v852_v4, %v757_v44  ;;  %v1746_v22 = vpop.f32.mrb[4].mxu0  ;;  %v1767_v31 = vadd.f32 %v750_v13, %v730_v3  ;;  %v933_v48 = vmul.f32 %v1676_v45, %v921_v25  ;;  %v752_v61 = vmul.f32 %v1642_v8, %v1722_v1 }
 0x22c   : > { %2191 = vst [vmem:[#allocation5_spill] sm:$0xff] %v1746_v22  ;;  %v1764_v30 = vpop.f32.mrb[5].mxu0  ;;  %v705_v36 = vrot.slane %v1746_v22, 7  ;;  %v1772_v42 = vsel %vm692_vm2, %v697_v21, %v699_v27  ;;  %v1775_v44 = vsel %vm692_vm2, %v699_v27, %v701_v15  ;;  %v826_v50 = vrot.slane %v1746_v22, 1 }
 0x22d   : > { %v891_v32 = vadd.f32 %v883_v18, %v860_v16  ;;  %v703_v29 = vrot.slane %v1764_v30, 7  ;;  %v720_v59 = vsel %vm647_vm6, %v1772_v42, 0.0  ;;  %v2180_v4 = vrot.slane %v1764_v30, 1 }
 0x22e   : > { %v732_v21 = vmul.f32 %v1646_v11, %v720_v59  ;;  %v1800_v16 = vmul.f32 %v1714_v60, %v1644_v10  ;;  %v1834_v20 = vmul.f32 %v1746_v22, %v1644_v10  ;;  %v873_v14 = vsel %vm646_vm12, %v1772_v42, 0.0 }
 0x22f   : > { %v911_v53 = vadd.f32 %v903_v19, %v891_v32  ;;  %v1785_v62 = vpop.f32.mrb[6].mxu0  ;;  %v1789_v0 = vsel %vm692_vm2, %v701_v15, %v703_v29  ;;  %v1792_v3 = vsel %vm692_vm2, %v703_v29, %v705_v36  ;;  %v754_v15 = vmul.f32 %v1642_v8, %v1764_v30 }
 0x230   : > { %v1795_v5 = vpop.f32.mrb[7].mxu0  ;;  %2192 = vst [vmem:[#allocation6_spill] sm:$0xff] %v1800_v16  ;;  %v722_v18 = vsel %vm649_vm7, %v1789_v0, 0.0  ;;  %v1807_v19 = vadd.f32 %v752_v61, %v732_v21  ;;  %v1813_v27 = vsel %vm814_vm4, %v2180_v4, %v826_v50  ;;  %v820_v29 = vrot.slane %v1722_v1, 1  ;;  %2194 = vst [vmem:[#allocation8_spill] sm:$0xff] %v1834_v20 }
 0x231   : > { %v941_v13 = vadd.f32 %v933_v48, %v911_v53  ;;  %v734_v25 = vmul.f32 %v1646_v11, %v722_v18  ;;  %v1819_v53 = vmul.f32 %v1644_v10, %v1722_v1  ;;  %v868_v48 = vrot.slane %v1785_v62, 7 }
 0x232   : > { %v707_v59 = vrot.slane %v1795_v5, 7  ;;  %v755_v61 = vmul.f32 %v1746_v22, %v1642_v8  ;;  %v723_v18 = vsel %vm650_vm8, %v1792_v3, 0.0  ;;  %v828_v4 = vrot.slane %v1795_v5, 1 }
 0x233   : > { %v1826_v21 = vadd.f32 %v754_v15, %v734_v25  ;;  %v735_v32 = vmul.f32 %v1646_v11, %v723_v18  ;;  %v756_v18 = vmul.f32 %v1642_v8, %v1795_v5  ;;  %v1867_v22 = vsel %vm647_vm6, %v1775_v44, 0.0 }
 0x234   : > { %v1837_v47 = vsel %vm692_vm2, %v705_v36, %v707_v59  ;;  %v1841_v16 = vsel %vm692_vm2, %v707_v59, %v868_v48  ;;  %v1848_v25 = vsel %vm814_vm4, %v826_v50, %v828_v4  ;;  %v1917_v63 = vsel %vm692_vm2, %v868_v48, %v1639_v6 }
 0x235   : > { %2193 = vst [vmem:[#allocation7_spill] sm:$0xff] %v1826_v21  ;;  %2195 = vst [vmem:[#allocation9_spill] sm:$0xff] %v1837_v47  ;;  %v724_v15 = vsel %vm651_vm9, %v1837_v47, 0.0  ;;  %v2196_v21 = vrot.slane %v1785_v62, 1  ;;  %v877_v36 = vsel %vm650_vm8, %v1837_v47, 0.0  ;;  %v763_v33 = vadd.f32 %v755_v61, %v735_v32 }
 0x236   : > { %v736_v59 = vmul.f32 %v1646_v11, %v724_v15  ;;  %v846_v50 = vsel %vm787_vm10, %v1848_v25, 0.0  ;;  %v1881_v32 = vmul.f32 %v1785_v62, %v1644_v10  ;;  %v889_v15 = vmul.f32 %v1668_v37, %v877_v36 }
 0x237   : > { %v1853_v20 = vsel %vm814_vm4, %v828_v4, %v2196_v21  ;;  %v1872_v4 = vsel %vm649_vm7, %v1792_v3, 0.0  ;;  %v1876_v21 = vmul.f32 %v1644_v10, %v1764_v30  ;;  %v858_v8 = vmul.f32 %v1666_v35, %v846_v50  ;;  %v2208_v34 = vld [vmem:[#allocation6_spill] sm:$0xff] }
 0x238   : > { %2197 = vst [vmem:[#allocation10_spill] sm:$0xff] %v1872_v4  ;;  %2198 = vst [vmem:[#allocation11_spill] sm:$0xff] %v1881_v32  ;;  %v1883_v61 = vadd.f32 %v756_v18, %v736_v59  ;;  %v2200_v47 = vrot.slane %v1674_v43, 1  ;;  %v927_v50 = vsel %vm787_vm10, %v1853_v20, 0.0  ;;  %v1897_v59 = vld [vmem:[%s2177_s4 + $0x8] ss:$0 sm:$0xff]  ;;  %v1906_v36 = vmul.f32 %v1785_v62, %v1672_v41 }
 0x239   : > { %v866_v4 = vadd.f32 %v858_v8, %v763_v33  ;;  %v951_v43 = vsel %vm644_vm1, %v1705_v58, 0.0  ;;  %v2202_v18 = vrot.slane %v1714_v60, 1  ;;  %v841_v32 = vsel %vm782_vm11, %v1712_v49, 0.0 }
 0x23a   : > { %2199 = vst [vmem:[#allocation12_spill] sm:$0xff] %v1883_v61  ;;  %v821_v40 = vsel %vm814_vm4, %v2200_v47, %v820_v29  ;;  %2201 = vst [vmem:[#allocation13_spill] sm:$0xff] %v1906_v36  ;;  %v963_v33 = vmul.f32 %v1689_v38, %v951_v43  ;;  %v909_v61 = vmul.f32 %v1644_v10, %v1795_v5  ;;  %v878_v43 = vsel %vm651_vm9, %v1841_v16, 0.0 }
 0x23b   : > { %v1001_v47 = vsel %vm781_vm5, %v821_v40, 0.0  ;;  %v823_v8 = vsel %vm814_vm4, %v820_v29, %v2202_v18  ;;  %v897_v17 = vadd.f32 %v889_v15, %v866_v4  ;;  %v853_v36 = vmul.f32 %v1666_v35, %v841_v32 }
 0x23c   : > { %v939_v29 = vmul.f32 %v1676_v45, %v927_v50  ;;  %v971_v18 = vadd.f32 %v963_v33, %v941_v13  ;;  %v1013_v51 = vmul.f32 %v1897_v59, %v1001_v47  ;;  %vm784_vm1 = vcmp.lt.s32.totalorder %v1700_v39, 8 }
 0x23d   : > { %v917_v49 = vadd.f32 %v909_v61, %v897_v17  ;;  %v861_v6 = vadd.f32 %v853_v36, %v1767_v31  ;;  %v922_v48 = vsel %vm782_vm11, %v821_v40, 0.0  ;;  %v719_v10 = vsel %vm646_vm12, %v1705_v58, 0.0 }
 0x23e   : > { %v991_v4 = vadd.f32 %v1751_v23, %v971_v18  ;;  %v952_v13 = vsel %vm645_vm3, %v1772_v42, 0.0  ;;  %v731_v32 = vmul.f32 %v1646_v11, %v719_v10  ;;  %v2203_v15 = vrot.slane %v1764_v30, 1 }
 0x23f   : > { %v2204_v61 = vrot.slane %v1714_v60, 1  ;;  %v1944_v50 = vadd.f32 %v939_v29, %v917_v49  ;;  %v892_v47 = vadd.f32 %v1754_v24, %v861_v6  ;;  %v842_v58 = vsel %vm783_vm13, %v821_v40, 0.0 }
 0x240   : > { %v1953_v23 = vmul.f32 %v1668_v37, %v878_v43  ;;  %v1955_v36 = vadd.f32 %v1013_v51, %v991_v4  ;;  %v759_v33 = vadd.f32 %v1736_v9, %v731_v32  ;;  %v854_v17 = vmul.f32 %v1666_v35, %v842_v58 }
 0x241   : > { %v825_v31 = vsel %vm814_vm4, %v2204_v61, %v2203_v15  ;;  %v912_v29 = vadd.f32 %v1740_v12, %v892_v47  ;;  %v934_v24 = vmul.f32 %v1676_v45, %v922_v48  ;;  %v964_v18 = vmul.f32 %v1689_v38, %v952_v13 }
 0x242   : > { %v1002_v40 = vsel %vm782_vm11, %v823_v8, 0.0  ;;  %1077 = vrot.lane.b32.xlu0 %v1955_v36, %s1484_s27  ;;  %v862_v42 = vadd.f32 %v854_v17, %v759_v33  ;;  %v885_v51 = vmul.f32 %v1668_v37, %v873_v14  ;;  %v923_v9 = vsel %vm783_vm13, %v823_v8, 0.0 }
 0x243   : > { %v953_v12 = vsel %vm646_vm12, %v1775_v44, 0.0  ;;  %vm786_vm2 = vcmp.lt.s32.totalorder %v1724_v2, 8  ;;  %v942_v43 = vadd.f32 %v934_v24, %v912_v29  ;;  %v984_v52 = vmul.f32 %v1672_v41, %v1722_v1 }
 0x244   : > { %v721_v49 = vsel %vm648_vm14, %v1775_v44, 0.0  ;;  %v844_v6 = vsel %vm785_vm15, %v825_v31, 0.0  ;;  %vm788_vm3 = vcmp.lt.s32.totalorder %v1732_v7, 8  ;;  %v893_v48 = vadd.f32 %v885_v51, %v862_v42 }
 0x245   : > { %v733_v10 = vmul.f32 %v1646_v11, %v721_v49  ;;  %v856_v54 = vmul.f32 %v1666_v35, %v844_v6  ;;  %v875_v4 = vsel %vm648_vm14, %v1789_v0, 0.0  ;;  %v972_v13 = vadd.f32 %v964_v18, %v942_v43  ;;  %v2206_v6 = vld [vmem:[#allocation2_spill] sm:$0xff] }
 0x246   : > { %v1014_v1 = vmul.f32 %v1897_v59, %v1002_v40  ;;  %v935_v32 = vmul.f32 %v1676_v45, %v923_v9  ;;  %v965_v44 = vmul.f32 %v1689_v38, %v953_v12  ;;  %v913_v15 = vadd.f32 %v1819_v53, %v893_v48 }
 0x247   : > { %v1003_v61 = vsel %vm783_vm13, %v825_v31, 0.0  ;;  %v761_v11 = vadd.f32 %v1761_v26, %v733_v10  ;;  %v887_v47 = vmul.f32 %v1668_v37, %v875_v4  ;;  %v992_v58 = vadd.f32 %v984_v52, %v972_v13 }
 0x248   : > { %v925_v14 = vsel %vm785_vm15, %v1813_v27, 0.0  ;;  %v955_v33 = vsel %vm648_vm14, %v1792_v3, 0.0  ;;  %v843_v17 = vsel %vm784_vm1, %v823_v8, 0.0  ;;  %v943_v53 = vadd.f32 %v935_v32, %v913_v15 }
 0x249   : > { %v864_v29 = vadd.f32 %v856_v54, %v761_v11  ;;  %v1005_v55 = vsel %vm785_vm15, %v1848_v25, 0.0  ;;  %v855_v26 = vmul.f32 %v1666_v35, %v843_v17  ;;  %v2006_v24 = vadd.f32 %v1014_v1, %v992_v58 }
 0x24a   : > { %v985_v18 = vmul.f32 %v1714_v60, %v1672_v41  ;;  %v1015_v40 = vmul.f32 %v1897_v59, %v1003_v61  ;;  %v886_v56 = vmul.f32 %v1668_v37, %v1867_v22  ;;  %v973_v3 = vadd.f32 %v965_v44, %v943_v53  ;;  %v2205_v60 = vld [vmem:[#allocation5_spill] sm:$0xff] }
 0x24b   : > { %v895_v8 = vadd.f32 %v887_v47, %v864_v29  ;;  %v863_v42 = vadd.f32 %v855_v26, %v1807_v19  ;;  %v924_v57 = vsel %vm784_vm1, %v825_v31, 0.0  ;;  %1079 = vrot.lane.b32.xlu1 %v2006_v24, %s1484_s27  ;;  %v937_v51 = vmul.f32 %v1676_v45, %v925_v14  ;;  %v2212_v26 = vld [vmem:[#allocation13_spill] sm:$0xff] }
 0x24c   : > { %v967_v9 = vmul.f32 %v1689_v38, %v955_v33  ;;  %v987_v12 = vmul.f32 %v2205_v60, %v1672_v41  ;;  %v1017_v43 = vmul.f32 %v1897_v59, %v1005_v55  ;;  %v993_v22 = vadd.f32 %v985_v18, %v973_v3  ;;  %v2211_v33 = vld [vmem:[#allocation10_spill] sm:$0xff]  ;;  %v1111_v3 = vld [vmem:[%s2178_s5 + $0x10] sm:$0xff] }
 0x24d   : > { %v915_v52 = vadd.f32 %v1876_v21, %v895_v8  ;;  %v894_v49 = vadd.f32 %v886_v56, %v863_v42  ;;  %v954_v19 = vsel %vm647_vm6, %v1789_v0, 0.0  ;;  %v936_v31 = vmul.f32 %v1676_v45, %v924_v57  ;;  %v2213_v56 = vld [vmem:[#allocation12_spill] sm:$0xff]  ;;  %v2214_v57 = vld [vmem:[#allocation9_spill] sm:$0xff] }
 0x24e   : > { %v2207_v48 = vrot.slane %v1785_v62, 1  ;;  %v957_v54 = vsel %vm650_vm8, %v1841_v16, 0.0  ;;  %v845_v21 = vsel %vm786_vm2, %v1813_v27, 0.0  ;;  %v2038_v4 = vadd.f32 %v1015_v40, %v993_v22 }
 0x24f   : > { %v945_v13 = vadd.f32 %v937_v51, %v915_v52  ;;  %v914_v0 = vadd.f32 %v2208_v34, %v894_v49  ;;  %v847_v1 = vsel %vm788_vm3, %v1853_v20, 0.0  ;;  %v966_v62 = vmul.f32 %v1689_v38, %v954_v19 }
 0x250   : > { %v919_v10 = vsel %vm814_vm4, %v2207_v48, %v2206_v6  ;;  %v1004_v46 = vsel %vm784_vm1, %v1813_v27, 0.0  ;;  %v969_v16 = vmul.f32 %v1689_v38, %v957_v54  ;;  %v857_v32 = vmul.f32 %v1666_v35, %v845_v21  ;;  %1081 = vrot.lane.b32.xlu1 %v2038_v4, %s1484_s27  ;;  %v2210_v27 = vld [vmem:[#allocation7_spill] sm:$0xff] }
 0x251   : > { %v975_v44 = vadd.f32 %v967_v9, %v945_v13  ;;  %v944_v15 = vadd.f32 %v936_v31, %v914_v0  ;;  %v986_v61 = vmul.f32 %v1672_v41, %v1764_v30  ;;  %v1007_v47 = vsel %vm787_vm10, %v919_v10, 0.0  ;;  %v2217_v21 = vld [vmem:[#allocation11_spill] sm:$0xff] }
 0x252   : > { %v859_v58 = vmul.f32 %v1666_v35, %v847_v1  ;;  %v977_v39 = vadd.f32 %v969_v16, %v1944_v50  ;;  %v865_v14 = vadd.f32 %v857_v32, %v2210_v27  ;;  %v888_v17 = vmul.f32 %v1668_v37, %v2211_v33  ;;  %v1112_v37 = vld [vmem:[%s2178_s5 + $0x18] sm:$0xff] }
 0x253   : > { %v995_v53 = vadd.f32 %v987_v12, %v975_v44  ;;  %v974_v29 = vadd.f32 %v966_v62, %v944_v15  ;;  %v1016_v55 = vmul.f32 %v1897_v59, %v1004_v46  ;;  %v926_v30 = vsel %vm786_vm2, %v1848_v25, 0.0  ;;  %v2216_v12 = vld [vmem:[#allocation8_spill] sm:$0xff] }
 0x254   : > { %v997_v18 = vadd.f32 %v2212_v26, %v977_v39  ;;  %v1019_v40 = vmul.f32 %v1897_v59, %v1007_v47  ;;  %v896_v35 = vadd.f32 %v888_v17, %v865_v14  ;;  %v867_v50 = vadd.f32 %v859_v58, %v2213_v56 }
 0x255   : > { %v2074_v8 = vadd.f32 %v1017_v43, %v995_v53  ;;  %v994_v42 = vadd.f32 %v986_v61, %v974_v29  ;;  %v928_v25 = vsel %vm788_vm3, %v919_v10, 0.0  ;;  %v956_v9 = vsel %vm649_vm7, %v2214_v57, 0.0 }
 0x256   : > { %v2081_v60 = vadd.f32 %v1019_v40, %v997_v18  ;;  %v916_v22 = vadd.f32 %v2216_v12, %v896_v35  ;;  %v938_v52 = vmul.f32 %v1676_v45, %v926_v30  ;;  %v898_v49 = vadd.f32 %v1953_v23, %v867_v50 }
 0x257   : > { %1085 = vrot.lane.b32.xlu0 %v2074_v8, %s1484_s27  ;;  %v2088_v43 = vadd.f32 %v1016_v55, %v994_v42  ;;  %v958_v19 = vsel %vm651_vm9, %v1917_v63, 0.0  ;;  %v1421_v31 = vpack.c.bf16 %v1112_v37, %v1111_v3  ;;  %v940_v48 = vmul.f32 %v1676_v45, %v928_v25 }
 0x258   : > { %v946_v10 = vadd.f32 %v938_v52, %v916_v22  ;;  %v968_v54 = vmul.f32 %v1689_v38, %v956_v9  ;;  %v918_v13 = vadd.f32 %v2217_v21, %v898_v49  ;;  %v1006_v23 = vsel %vm786_vm2, %v1853_v20, 0.0 }
 0x259   : > { %1083 = vrot.lane.b32.xlu1 %v2088_v43, %s1484_s27  ;;  %v990_v34 = vmul.f32 0.0, %v1672_v41  ;;  %1422 = vmatprep.subr.bf16.mxu1 %v1421_v31  ;;  %v988_v28 = vmul.f32 %v1672_v41, %v1795_v5  ;;  %v970_v0 = vmul.f32 %v1689_v38, %v958_v19  ;;  %v1008_v1 = vsel %vm788_vm3, %v2206_v6, 0.0 }
 0x25a   : > { %v976_v63 = vadd.f32 %v968_v54, %v946_v10  ;;  %v948_v45 = vadd.f32 %v940_v48, %v918_v13  ;;  %1424 = vmatpush3.bf16.msra.mxu1 %v1421_v31  ;;  %v1018_v20 = vmul.f32 %v1897_v59, %v1006_v23  ;;  %v1020_v41 = vmul.f32 %v1897_v59, %v1008_v1 }
 0x25b   : > { %1089 = vrot.lane.b32.xlu0 %v2081_v60, %s1484_s27  ;;  %v1037_v38 = vmul.f32 0.70710677, %v1955_v36  ;;  %v1038_v7 = vmul.f32 0.70710677, %v2006_v24  ;;  %v1039_v32 = vmul.f32 0.70710677, %v2038_v4 }
 0x25c   : > { %v996_v2 = vadd.f32 %v988_v28, %v976_v63  ;;  %v978_v62 = vadd.f32 %v970_v0, %v948_v45  ;;  %v1029_v59 = vmul.f32 0.5, %v1955_v36  ;;  %v1040_v11 = vmul.f32 0.70710677, %v2088_v43 }
 0x25d   : > { %1451 = verf.f32 %v1037_v38  ;;  %v1041_v39 = vmul.f32 0.70710677, %v2074_v8  ;;  %v1030_v33 = vmul.f32 0.5, %v2006_v24  ;;  %v1043_v36 = vmul.f32 0.70710677, %v2081_v60 }
 0x25e   : > { %v1026_v46 = vadd.f32 %v1018_v20, %v996_v2  ;;  %v998_v16 = vadd.f32 %v990_v34, %v978_v62  ;;  %1453 = verf.f32 %v1038_v7  ;;  %v1031_v26 = vmul.f32 0.5, %v2038_v4  ;;  %v1467_v2 = vld [vmem:[%s1536_s26 + $0x8] sm:$0xff] }
 0x25f   : > { %1455 = verf.f32 %v1039_v32  ;;  %v1032_v42 = vmul.f32 0.5, %v2088_v43  ;;  %v1033_v4 = vmul.f32 0.5, %v2074_v8  ;;  %v1035_v43 = vmul.f32 0.5, %v2081_v60 }
 0x260   : > { %1087 = vrot.lane.b32.xlu1 %v1026_v46, %s1484_s27  ;;  %v2113_v5 = vadd.f32 %v1020_v41, %v998_v16  ;;  %1457 = verf.f32 %v1040_v11  ;;  %v1042_v17 = vmul.f32 0.70710677, %v1026_v46  ;;  %v1034_v10 = vmul.f32 0.5, %v1026_v46  ;;  %v1468_v46 = vld [vmem:[%s1536_s26] sm:$0xff] }
 0x261   : > { %1459 = verf.f32 %v1041_v39  ;;  %v1472_v11 = vld [vmem:[%s1536_s26 + $0x20] sm:$0xff]  ;;  %v1473_v39 = vld [vmem:[%s1536_s26 + $0x38] sm:$0xff] }
 0x262   : > { %1461 = verf.f32 %v1042_v17  ;;  %v1044_v18 = vmul.f32 0.70710677, %v2113_v5  ;;  %v1036_v28 = vmul.f32 0.5, %v2113_v5 }
 0x263   : > { %1463 = verf.f32 %v1043_v36 }
 0x264   : > { %1091 = vrot.lane.b32.xlu1 %v2113_v5, %s1484_s27  ;;  %1465 = verf.f32 %v1044_v18  ;;  %v1469_v5 = vld [vmem:[%s1536_s26 + $0x18] sm:$0xff] }
 0x267   : > { %v1452_v6 = vpop.eup %1451 }
 0x268   : > { %v1053_v44 = vadd.f32 1.0, %v1452_v6  ;;  %v1454_v47 = vpop.eup %1453  ;;  %v1470_v6 = vld [vmem:[%s1536_s26 + $0x10] sm:$0xff] }
 0x269   : > { %v1054_v27 = vadd.f32 1.0, %v1454_v47  ;;  %v1456_v14 = vpop.eup %1455 }
 0x26a   : > { %v1061_v15 = vmul.f32 %v1053_v44, %v1029_v59  ;;  %v1055_v55 = vadd.f32 1.0, %v1456_v14  ;;  %v1458_v35 = vpop.eup %1457  ;;  %v1471_v59 = vld [vmem:[%s1536_s26 + $0x28] sm:$0xff] }
 0x26b   : > { %v1062_v53 = vmul.f32 %v1054_v27, %v1030_v33  ;;  %v1460_v50 = vpop.eup %1459  ;;  %v1056_v3 = vadd.f32 1.0, %v1458_v35  ;;  %v1474_v33 = vld [vmem:[%s1536_s26 + $0x30] sm:$0xff] }
 0x26c   : > { %v1063_v40 = vmul.f32 %v1055_v55, %v1031_v26  ;;  %v1057_v37 = vadd.f32 1.0, %v1460_v50  ;;  %v1462_v25 = vpop.eup %1461 }
 0x26d   : > { %v1064_v51 = vmul.f32 %v1056_v3, %v1032_v42  ;;  %v1464_v9 = vpop.eup %1463  ;;  %v1058_v19 = vadd.f32 1.0, %v1462_v25 }
 0x26e   : > { %v1065_v12 = vmul.f32 %v1057_v37, %v1033_v4  ;;  %v1466_v31 = vpop.eup %1465  ;;  %v1059_v48 = vadd.f32 1.0, %v1464_v9 }
 0x26f   : > { %v1066_v54 = vmul.f32 %v1058_v19, %v1034_v10  ;;  %v1060_v21 = vadd.f32 1.0, %v1466_v31 }
 0x270   : > { %v1067_v13 = vmul.f32 %v1059_v48, %v1035_v43 }
 0x271   : > { %v1068_v45 = vmul.f32 %v1060_v21, %v1036_v28 }
 0x2b4   : > { %v1078_v61 = vpop.permute.xlu0 %1077 }
 0x2b5   : > { %v1101_v58 = vmul.f32 %v1078_v61, %v1061_v15 }
 0x2b7   : > { %1397 = vmatprep.mubr.msk.f32.mxu1 %vm260_vm0, %v1101_v58 }
 0x2bd   : > { %v1080_v29 = vpop.permute.xlu1 %1079 }
 0x2be   : > { %v1102_v30 = vmul.f32 %v1080_v29, %v1062_v53 }
 0x2c0   : > { %1398 = vmatmul.mubr.msk.f32.vlgmr.msra.gmra.mrb[0].mxu1 %vm260_vm0, %v1102_v30 }
 0x2c2   : > { %v1082_v56 = vpop.permute.xlu1 %1081 }
 0x2c3   : > { %v1103_v24 = vmul.f32 %v1082_v56, %v1063_v40 }
 0x2c5   : > { %1400 = vmatprep.mubr.msk.f32.mxu1 %vm260_vm0, %v1103_v24 }
 0x2c9   : > { %v1086_v57 = vpop.permute.xlu0 %1085 }
 0x2ca   : > { %v1105_v49 = vmul.f32 %v1086_v57, %v1065_v12 }
 0x2cb   : > { %v1084_v22 = vpop.permute.xlu1 %1083 }
 0x2cc   : > { %v1104_v52 = vmul.f32 %v1084_v22, %v1064_v51 }
 0x2cd   : > { %v1090_v8 = vpop.permute.xlu0 %1089 }
 0x2ce   : > { %1401 = vmatmul.mubr.msk.f32.gmra.mrb[2].mxu1 %vm260_vm0, %v1104_v52  ;;  %v1107_v63 = vmul.f32 %v1090_v8, %v1067_v13 }
 0x2cf   : > { %1403 = vmatprep.mubr.msk.f32.mxu1 %vm260_vm0, %v1105_v49 }
 0x2d2   : > { %v1088_v23 = vpop.permute.xlu1 %1087 }
 0x2d3   : > { %v1106_v34 = vmul.f32 %v1088_v23, %v1066_v54 }
 0x2d5   : > { %1404 = vmatmul.mubr.msk.f32.gmra.mrb[4].mxu1 %vm260_vm0, %v1106_v34 }
 0x2d6   : > { %v1092_v0 = vpop.permute.xlu1 %1091  ;;  %1406 = vmatprep.mubr.msk.f32.mxu1 %vm260_vm0, %v1107_v63 }
 0x2d7   : > { %v1108_v60 = vmul.f32 %v1092_v0, %v1068_v45 }
 0x2d9   : > { %1407 = vmatmul.mubr.msk.f32.gmra.mrb[6].mxu1 %vm260_vm0, %v1108_v60 }
 0x393   : > { %v1399_v1 = vpop.f32.mrb[0].mxu1 }
 0x394   : > { %v1243_v20 = vadd.f32 %v1467_v2, %v1399_v1  ;;  %v1203_v62 = vpop.f32.mrb[1].mxu1 }
 0x395   : > { %v1242_v16 = vadd.f32 %v1468_v46, %v1203_v62 }
 0x396   : > { %1251 = vst.msk [vmem:[%s2144_s10 + $0x8] sm:$0xff] %vm260_vm0, %v1243_v20 }
 0x397   : > { %1250 = vst.msk [vmem:[%s2144_s10] sm:$0xff] %vm260_vm0, %v1242_v16 }
 0x3a1   : > { %v1402_v41 = vpop.f32.mrb[2].mxu1 }
 0x3a2   : > { %v1245_v38 = vadd.f32 %v1469_v5, %v1402_v41  ;;  %v1213_v7 = vpop.f32.mrb[3].mxu1 }
 0x3a3   : > { %v1244_v32 = vadd.f32 %v1470_v6, %v1213_v7 }
 0x3a4   : > { %1253 = vst.msk [vmem:[%s2144_s10 + $0x18] sm:$0xff] %vm260_vm0, %v1245_v38 }
 0x3a5   : > { %1252 = vst.msk [vmem:[%s2144_s10 + $0x10] sm:$0xff] %vm260_vm0, %v1244_v32 }
 0x3a8   : > { %v1405_v44 = vpop.f32.mrb[4].mxu1 }
 0x3a9   : > { %v1247_v15 = vadd.f32 %v1471_v59, %v1405_v44  ;;  %v1223_v61 = vpop.f32.mrb[5].mxu1 }
 0x3aa   : > { %v1246_v47 = vadd.f32 %v1472_v11, %v1223_v61 }
 0x3ab   : > { %1255 = vst.msk [vmem:[%s2144_s10 + $0x28] sm:$0xff] %vm260_vm0, %v1247_v15 }
 0x3ac   : > { %1254 = vst.msk [vmem:[%s2144_s10 + $0x20] sm:$0xff] %vm260_vm0, %v1246_v47  ;;  %v1408_v58 = vpop.f32.mrb[6].mxu1 }
 0x3ad   : > { %v1249_v27 = vadd.f32 %v1473_v39, %v1408_v58  ;;  %v1233_v14 = vpop.f32.mrb[7].mxu1 }
 0x3ae   : > { %v1248_v17 = vadd.f32 %v1474_v33, %v1233_v14 }
 0x3af   : > { %1257 = vst.msk [vmem:[%s2144_s10 + $0x38] sm:$0xff] %vm260_vm0, %v1249_v27 }
 0x3b0   : > { %1256 = vst.msk [vmem:[%s2144_s10 + $0x30] sm:$0xff] %vm260_vm0, %v1248_v17 }
 0x3b1 PF: > { %s16_s21 = sadd.s32 1, %s1481_s21  }
 0x3b2   : > { %p13_p4 = scmp.ge.s32.totalorder %s16_s21, 4  }
 0x3b4   :  { %15 = sbr.rel (!%p13_p4) target bundleno = 1 (0x1), region = 74 }

// kernel: run.8
= control target key start
LH: loop header
LB: loop body
LE: loop exit
PB: predicated region body
PF: predicated region fallthrough
CT: control target
= control target key end

     0   :  { %s4921_s15 = smov 0   ;;  %s6920_s0 = inlined_call_operand.vmem [shape: f32[2,64,96], index: 0, kind: input, shape index: {}]   ;;  %s6921_s1 = inlined_call_operand.vmem [shape: f32[2,64,32], index: 1, kind: input, shape index: {}]   ;;  %s6922_s2 = inlined_call_operand.vmem [shape: f32[32,32], index: 2, kind: input, shape index: {}]   ;;  %s6923_s3 = inlined_call_operand.vmem [shape: f32[25,32], index: 3, kind: input, shape index: {}]   ;;  %s6924_s4 = inlined_call_operand.vmem [shape: f32[2,64,32], index: 4, kind: output, shape index: {}]  }
   0x1 LB: > { %s3733_s16 = sadd.s32 4294967295, %s4882_s15   ;;  %p3737_p0 = scmp.ge.s32.totalorder %s4882_s15, 1  ;;  %s4882_s15 = sphi %s4921_s15, %s14_s15  }
   0x2   : > { %p172_p1 = scmp.lt.s32.totalorder %s4882_s15, 3 }
   0x4   : > { %p173_p2 = pnand %p3737_p0, %p172_p1 }
   0x6   : > { %176 = sbr.rel (%p173_p2) target bundleno = 2034 (0x7f2), region = 36 }
   0xd   : > { %p203_p3 = scmp.lt.s32.totalorder %s3733_s16, 1  ;;  %vm6958_vm0 = vcmask 64512   ;;  %s4884_s21 = smov 96   ;;  %v7071_v15 = vmov 0  ;;  %vm7059_vm2 = vcmask 523264   ;;  %vm420_vm3 = vcmask 1041408  }
   0xe   : > { %s4885_s22 = smov 88   ;;  %s4886_s23 = smov 120   ;;  %vm4999_vm1 = vmpackc.low %vm6958_vm0, %vm6958_vm0  ;;  %vm518_vm4 = vcmask 1040384   ;;  %vm7003_vm7 = vcmask 1046528   ;;  %vm6980_vm9 = vcmask 1045504  }
   0xf   : > { %s7408_s16 = smov (!%p203_p3, %s3733_s16), 1  ;;  %s4887_s24 = smov 64   ;;  %v7072_v15 = vsel %vm4999_vm1, 4294967295, %v7071_v15 }
  0x10   : > { %s4929_s17 = sshll.u32 %s7408_s16, 6  ;;  %7073 = vst [vmem:[#allocation2_spill] sm:$0xff] %v7072_v15  ;;  %s4888_s25 = smov 80  }
  0x11   : > { %s4935_s20 = scalar_lea.vmem %s6920_s0, %s4929_s17  ;;  %s4889_s26 = smov 112  }
  0x12   : > { %v4938_v0 = vld [vmem:[%s4935_s20] sm:$0xff]  ;;  %v4941_v1 = vld [vmem:[%s4935_s20 + $0x8] sm:$0xff]  ;;  %v4944_v2 = vld [vmem:[%s4935_s20 + $0x10] sm:$0xff]  ;;  %s4890_s7 = smov 56   ;;  %s4892_s14 = smov 72  }
  0x13   : > { %v4948_v3 = vpack.i.bf16 %v4941_v1, %v4938_v0  ;;  %v4951_v4 = vld [vmem:[%s4935_s20 + $0x18] sm:$0xff]  ;;  %v4954_v5 = vld [vmem:[%s4935_s20 + $0x20] sm:$0xff]  ;;  %v4957_v6 = vld [vmem:[%s4935_s20 + $0x28] sm:$0xff]  ;;  %4078 = vmatprep.mubr.msk.f32.mxu0 %vm6958_vm0, %v4938_v0  ;;  %s4893_s16 = smov 104   ;;  %s212_s30 = scalar_lea.vmem %s6921_s1, %s4929_s17 }
  0x14   : > { %v4963_v7 = vpack.i.bf16 %v4957_v6, %v4954_v5  ;;  %v4966_v8 = vld [vmem:[%s4935_s20 + $0x30] sm:$0xff]  ;;  %v4969_v9 = vld [vmem:[%s4935_s20 + $0x38] sm:$0xff]  ;;  %v4974_v10 = vpack.i.bf16 %v4951_v4, %v4944_v2 }
  0x15   : > { %4591 = vrot.lane.b32.xlu0 %v4948_v3, %s4884_s21  ;;  %v4979_v11 = vpack.i.bf16 %v4969_v9, %v4966_v8 }
  0x16   : > { %4601 = vrot.lane.b32.xlu1 %v4963_v7, %s4884_s21 }
  0x19   : > { %4596 = vrot.lane.b32.xlu0 %v4974_v10, %s4884_s21 }
  0x1a   : > { %4606 = vrot.lane.b32.xlu1 %v4979_v11, %s4884_s21 }
  0x1d   : > { %4611 = vrot.lane.b32.xlu0 %v4948_v3, %s4885_s22 }
  0x1e   : > { %4616 = vrot.lane.b32.xlu1 %v4974_v10, %s4885_s22 }
  0x21   : > { %4621 = vrot.lane.b32.xlu0 %v4963_v7, %s4885_s22 }
  0x22   : > { %4626 = vrot.lane.b32.xlu1 %v4979_v11, %s4885_s22 }
  0x25   : > { %1977 = vrot.lane.b32.xlu0 %v4938_v0, %s4886_s23 }
  0x26   : > { %1979 = vrot.lane.b32.xlu1 %v4941_v1, %s4886_s23 }
  0x29   : > { %1981 = vrot.lane.b32.xlu0 %v4944_v2, %s4886_s23 }
  0x2a   : > { %1983 = vrot.lane.b32.xlu1 %v4951_v4, %s4886_s23 }
  0x2d   : > { %1985 = vrot.lane.b32.xlu0 %v4954_v5, %s4886_s23 }
  0x2e   : > { %1987 = vrot.lane.b32.xlu1 %v4957_v6, %s4886_s23 }
  0x31   : > { %1989 = vrot.lane.b32.xlu0 %v4966_v8, %s4886_s23 }
  0x32   : > { %1991 = vrot.lane.b32.xlu1 %v4969_v9, %s4886_s23 }
  0x36   : > { %242 = vrot.lane.b32.xlu1 %v4938_v0, %s4887_s24 }
  0x87   : > { %v4592_v12 = vpop.permute.xlu0 %4591 }
  0x88   : > { %v4594_v13 = vunpack.i.h.bf16 %v4592_v12  ;;  %v4593_v14 = vunpack.i.l.bf16 %v4592_v12  ;;  %v4602_v18 = vpop.permute.xlu1 %4601 }
  0x89   : > { %v4604_v22 = vunpack.i.h.bf16 %v4602_v18  ;;  %v4603_v23 = vunpack.i.l.bf16 %v4602_v18 }
  0x8a   : > { %v4362_v16 = vpack.c.bf16 %v4594_v13, %v4593_v14 }
  0x8b   : > { %v4597_v17 = vpop.permute.xlu0 %4596  ;;  %v4374_v24 = vpack.c.bf16 %v4604_v22, %v4603_v23 }
  0x8c   : > { %4364 = vmatprep.subr.msk.bf16.mxu0 %vm4999_vm1, %v4362_v16  ;;  %v4599_v19 = vunpack.i.h.bf16 %v4597_v17  ;;  %v4598_v20 = vunpack.i.l.bf16 %v4597_v17  ;;  %v4607_v25 = vpop.permute.xlu1 %4606 }
  0x8d   : > { %4367 = vmatpush3.bf16.xpose.msk.msra.mxu0 %vm4999_vm1, %v4362_v16  ;;  %v4609_v26 = vunpack.i.h.bf16 %v4607_v25  ;;  %v4608_v27 = vunpack.i.l.bf16 %v4607_v25 }
  0x8e   : > { %v4368_v21 = vpack.c.bf16 %v4599_v19, %v4598_v20 }
  0x8f   : > { %v4380_v28 = vpack.c.bf16 %v4609_v26, %v4608_v27  ;;  %v4612_v29 = vpop.permute.xlu0 %4611 }
  0x90   : > { %4370 = vmatprep.subr.msk.bf16.mxu0 %vm4999_vm1, %v4368_v21  ;;  %v4614_v30 = vunpack.i.h.bf16 %v4612_v29  ;;  %v4613_v31 = vunpack.i.l.bf16 %v4612_v29  ;;  %v4617_v33 = vpop.permute.xlu1 %4616 }
  0x91   : > { %v4619_v34 = vunpack.i.h.bf16 %v4617_v33  ;;  %v4618_v35 = vunpack.i.l.bf16 %v4617_v33 }
  0x92   : > { %v4410_v32 = vpack.c.bf16 %v4614_v30, %v4613_v31 }
  0x93   : > { %v4416_v36 = vpack.c.bf16 %v4619_v34, %v4618_v35  ;;  %v4622_v37 = vpop.permute.xlu0 %4621 }
  0x94   : > { %v4624_v38 = vunpack.i.h.bf16 %v4622_v37  ;;  %v4623_v39 = vunpack.i.l.bf16 %v4622_v37  ;;  %v4627_v41 = vpop.permute.xlu1 %4626 }
  0x95   : > { %4373 = vmatpush3.bf16.xpose.msk.msra.mxu0 %vm4999_vm1, %v4368_v21  ;;  %v4629_v42 = vunpack.i.h.bf16 %v4627_v41  ;;  %v4628_v43 = vunpack.i.l.bf16 %v4627_v41 }
  0x96   : > { %4376 = vmatprep.subr.msk.bf16.mxu0 %vm4999_vm1, %v4374_v24  ;;  %v4422_v40 = vpack.c.bf16 %v4624_v38, %v4623_v39 }
  0x97   : > { %v4428_v44 = vpack.c.bf16 %v4629_v42, %v4628_v43  ;;  %v1978_v45 = vpop.permute.xlu0 %1977 }
  0x98   : > { %v1980_v46 = vpop.permute.xlu1 %1979 }
  0x9b   : > { %v1982_v47 = vpop.permute.xlu0 %1981 }
  0x9c   : > { %v1984_v48 = vpop.permute.xlu1 %1983 }
  0x9d   : > { %4379 = vmatpush3.bf16.xpose.msk.msra.mxu0 %vm4999_vm1, %v4374_v24 }
  0x9e   : > { %4382 = vmatprep.subr.msk.bf16.mxu0 %vm4999_vm1, %v4380_v28 }
  0x9f   : > { %v1986_v49 = vpop.permute.xlu0 %1985 }
  0xa0   : > { %v1988_v50 = vpop.permute.xlu1 %1987 }
  0xa3   : > { %v1990_v51 = vpop.permute.xlu0 %1989 }
  0xa4   : > { %v1992_v52 = vpop.permute.xlu1 %1991 }
  0xa5   : > { %4385 = vmatpush3.bf16.xpose.msk.msra.mxu0 %vm4999_vm1, %v4380_v28 }
  0xa6   : > { %4412 = vmatprep.subr.msk.bf16.mxu0 %vm4999_vm1, %v4410_v32 }
  0xac   : > { %4079 = vmatmul.mubr.msk.f32.vlgmr.msra.gmra.mrb[0].mxu0 %vm6958_vm0, %v4941_v1 }
  0xad   : > { %4081 = vmatprep.mubr.msk.f32.mxu0 %vm6958_vm0, %v4944_v2  ;;  %4415 = vmatpush3.bf16.xpose.msk.msra.mxu0 %vm4999_vm1, %v4410_v32  ;;  %v5090_v32 = vpop.permute.xlu1 %242 }
  0xae   : > { %4418 = vmatprep.subr.msk.bf16.mxu0 %vm4999_vm1, %v4416_v36  ;;  %7074 = vst [vmem:[#allocation3_spill] sm:$0xff] %v5090_v32 }
  0xb0   : > { %4082 = vmatmul.mubr.msk.f32.gmra.mrb[2].mxu0 %vm6958_vm0, %v4951_v4 }
  0xb1   : > { %4084 = vmatprep.mubr.msk.f32.mxu0 %vm6958_vm0, %v4954_v5 }
  0xb4   : > { %4085 = vmatmul.mubr.msk.f32.gmra.mrb[4].mxu0 %vm6958_vm0, %v4957_v6 }
  0xb5   : > { %4087 = vmatprep.mubr.msk.f32.mxu0 %vm6958_vm0, %v4966_v8  ;;  %4421 = vmatpush3.bf16.xpose.msk.msra.mxu0 %vm4999_vm1, %v4416_v36 }
  0xb6   : > { %4424 = vmatprep.subr.msk.bf16.mxu0 %vm4999_vm1, %v4422_v40 }
  0xb8   : > { %4088 = vmatmul.mubr.msk.f32.gmra.mrb[6].mxu0 %vm6958_vm0, %v4969_v9 }
  0xb9   : > { %4168 = vmatprep.mubr.msk.f32.mxu0 %vm6958_vm0, %v1978_v45 }
  0xbd   : > { %4427 = vmatpush3.bf16.xpose.msk.msra.mxu0 %vm4999_vm1, %v4422_v40 }
  0xbe   : > { %4430 = vmatprep.subr.msk.bf16.mxu0 %vm4999_vm1, %v4428_v44 }
  0xc5   : > { %4433 = vmatpush3.bf16.xpose.msk.msra.mxu0 %vm4999_vm1, %v4428_v44 }
  0xcc   : > { %4169 = vmatmul.mubr.msk.f32.vlgmr.msra.gmra.mrb[8].mxu0 %vm6958_vm0, %v1980_v46 }
  0xcd   : > { %4171 = vmatprep.mubr.msk.f32.mxu0 %vm6958_vm0, %v1982_v47 }
  0xd0   : > { %4172 = vmatmul.mubr.msk.f32.gmra.mrb[10].mxu0 %vm6958_vm0, %v1984_v48 }
  0xd1   : > { %4174 = vmatprep.mubr.msk.f32.mxu0 %vm6958_vm0, %v1986_v49 }
  0xd4   : > { %4175 = vmatmul.mubr.msk.f32.gmra.mrb[12].mxu0 %vm6958_vm0, %v1988_v50 }
  0xd5   : > { %4177 = vmatprep.mubr.msk.f32.mxu0 %vm6958_vm0, %v1990_v51 }
  0xd8   : > { %4178 = vmatmul.mubr.msk.f32.gmra.mrb[14].mxu0 %vm6958_vm0, %v1992_v52 }
 0x17f   : > { %v4080_v53 = vpop.f32.mrb[0].mxu0 }
 0x180   : > { %v1493_v54 = vmul.f32 0.35355338, %v4080_v53  ;;  %v1453_v55 = vpop.f32.mrb[1].mxu0 }
 0x181   : > { %v1492_v56 = vmul.f32 0.35355338, %v1453_v55 }
 0x182   : > { %v1504_v57 = vsel %vm7059_vm2, %v1493_v54, -inf }
 0x183   : > { %1505 = vmax.xlane.f32.xlu1 %v1504_v57  ;;  %v4083_v58 = vpop.f32.mrb[2].mxu0  ;;  %v1501_v59 = vsel %vm7059_vm2, %v1492_v56, -inf }
 0x184   : > { %v1495_v60 = vmul.f32 0.35355338, %v4083_v58  ;;  %1502 = vmax.xlane.f32.xlu0 %v1501_v59  ;;  %v1463_v61 = vpop.f32.mrb[3].mxu0 }
 0x185   : > { %v1494_v63 = vmul.f32 0.35355338, %v1463_v61 }
 0x186   : > { %v1510_v62 = vsel %vm7059_vm2, %v1495_v60, -inf }
 0x187   : > { %v4086_v12 = vpop.f32.mrb[4].mxu0  ;;  %v1507_v17 = vsel %vm7059_vm2, %v1494_v63, -inf }
 0x188   : > { %1511 = vmax.xlane.f32.xlu0 %v1510_v62  ;;  %v1473_v13 = vpop.f32.mrb[5].mxu0  ;;  %v1497_v16 = vmul.f32 0.35355338, %v4086_v12 }
 0x189   : > { %v1496_v14 = vmul.f32 0.35355338, %v1473_v13 }
 0x18a   : > { %v1516_v22 = vsel %vm7059_vm2, %v1497_v16, -inf }
 0x18b   : > { %v1513_v18 = vsel %vm7059_vm2, %v1496_v14, -inf  ;;  %v4089_v19 = vpop.f32.mrb[6].mxu0 }
 0x18c   : > { %1508 = vmax.xlane.f32.xlu0 %v1507_v17  ;;  %1514 = vmax.xlane.f32.xlu1 %v1513_v18  ;;  %v1483_v20 = vpop.f32.mrb[7].mxu0  ;;  %v1499_v21 = vmul.f32 0.35355338, %v4089_v19 }
 0x18d   : > { %v5072_v24 = vmul.f32 0.35355338, %v1483_v20 }
 0x18e   : > { %v1522_v23 = vsel %vm7059_vm2, %v1499_v21, -inf }
 0x18f   : > { %v1519_v25 = vsel %vm7059_vm2, %v5072_v24, -inf }
 0x190   : > { %1517 = vmax.xlane.f32.xlu0 %v1516_v22 }
 0x194   : > { %1523 = vmax.xlane.f32.xlu0 %v1522_v23 }
 0x19d   : > { %246 = vrot.lane.b32.xlu1 %v4944_v2, %s4887_s24 }
 0x19f   : > { %v5078_v26 = vpop.f32.mrb[8].mxu0 }
 0x1a0   : > { %v5080_v27 = vpop.f32.mrb[9].mxu0 }
 0x1a1   : > { %250 = vrot.lane.b32.xlu1 %v4954_v5, %s4887_s24 }
 0x1a3   : > { %v5082_v28 = vpop.f32.mrb[10].mxu0 }
 0x1a4   : > { %v5084_v29 = vpop.f32.mrb[11].mxu0 }
 0x1a7   : > { %v5086_v30 = vpop.f32.mrb[12].mxu0 }
 0x1a8   : > { %v5088_v31 = vpop.f32.mrb[13].mxu0 }
 0x1aa   : > { %244 = vrot.lane.b32.xlu0 %v4941_v1, %s4887_s24 }
 0x1ab   : > { %v5092_v33 = vpop.f32.mrb[14].mxu0 }
 0x1ac   : > { %v5094_v35 = vpop.f32.mrb[15].mxu0 }
 0x1ae   : > { %248 = vrot.lane.b32.xlu0 %v4951_v4, %s4887_s24 }
 0x1c5   : > { %1520 = vmax.xlane.f32.xlu1 %v1519_v25 }
 0x1d6   : > { %252 = vrot.lane.b32.xlu1 %v4957_v6, %s4887_s24 }
 0x210   : > { %v1506_v34 = vpop.xlane.xlu1 %1505 }
 0x211   : > { %v1526_v36 = vsub.f32 %v1493_v54, %v1506_v34  ;;  %v1503_v37 = vpop.xlane.xlu0 %1502 }
 0x212   : > { %v1525_v38 = vsub.f32 %v1492_v56, %v1503_v37 }
 0x213   : > { %v1535_v39 = vmul.f32 1.442695, %v1526_v36 }
 0x214   : > { %v1533_v40 = vmul.f32 1.442695, %v1525_v38 }
 0x215   : > { %4730 = vpow2.f32 %v1535_v39  ;;  %v1512_v41 = vpop.xlane.xlu0 %1511  ;;  %v266_v39 = vlaneseq }
 0x216   : > { %4732 = vpow2.f32 %v1533_v40  ;;  %v1528_v42 = vsub.f32 %v1495_v60, %v1512_v41 }
 0x218   : > { %v1539_v43 = vmul.f32 1.442695, %v1528_v42 }
 0x219   : > { %v1509_v44 = vpop.xlane.xlu0 %1508  ;;  %v1515_v45 = vpop.xlane.xlu1 %1514 }
 0x21a   : > { %4734 = vpow2.f32 %v1539_v43  ;;  %v1527_v46 = vsub.f32 %v1494_v63, %v1509_v44  ;;  %v1529_v47 = vsub.f32 %v1496_v14, %v1515_v45  ;;  %v6928_v45 = vrot.slane %v5090_v32, 7 }
 0x21c   : > { %v1537_v48 = vmul.f32 1.442695, %v1527_v46  ;;  %v1541_v49 = vmul.f32 1.442695, %v1529_v47 }
 0x21d   : > { %v1518_v50 = vpop.xlane.xlu0 %1517 }
 0x21e   : > { %4736 = vpow2.f32 %v1537_v48  ;;  %v1530_v51 = vsub.f32 %v1497_v16, %v1518_v50  ;;  %v5118_v16 = vpop.permute.xlu1 %246 }
 0x21f   : > { %v5096_v52 = vpop.eup %4730  ;;  %4738 = vpow2.f32 %v1541_v49  ;;  %7080 = vst [vmem:[#allocation9_spill] sm:$0xff] %v5118_v16  ;;  %v5191_v49 = vld [vmem:[%s6923_s3] sm:$0xff] }
 0x220   : > { %7075 = vst [vmem:[#allocation4_spill] sm:$0xff] %v5096_v52  ;;  %v5098_v53 = vpop.eup %4732  ;;  %v1543_v54 = vmul.f32 1.442695, %v1530_v51  ;;  %v1552_v55 = vsel %vm7059_vm2, %v5096_v52, 0.0 }
 0x221   : > { %1553 = vadd.xlane.f32.xlu0 %v1552_v55  ;;  %v1524_v56 = vpop.xlane.xlu0 %1523  ;;  %v1549_v57 = vsel %vm7059_vm2, %v5098_v53, 0.0 }
 0x222   : > { %4740 = vpow2.f32 %v1543_v54  ;;  %1550 = vadd.xlane.f32.xlu1 %v1549_v57  ;;  %v1532_v58 = vsub.f32 %v1499_v21, %v1524_v56  ;;  %v5138_v25 = vpop.permute.xlu1 %250 }
 0x223   : > { %7084 = vst [vmem:[#allocation13_spill] sm:$0xff] %v5138_v25  ;;  %v6979_v52 = vrot.slane %v5138_v25, 2 }
 0x224   : > { %v5104_v59 = vpop.eup %4734  ;;  %v1547_v60 = vmul.f32 1.442695, %v1532_v58 }
 0x225   : > { %7076 = vst [vmem:[#allocation5_spill] sm:$0xff] %v5104_v59  ;;  %v5106_v61 = vpop.permute.xlu0 %244  ;;  %v1558_v62 = vsel %vm7059_vm2, %v5104_v59, 0.0 }
 0x226   : > { %7077 = vst [vmem:[#allocation6_spill] sm:$0xff] %v5106_v61  ;;  %1559 = vadd.xlane.f32.xlu0 %v1558_v62  ;;  %4742 = vpow2.f32 %v1547_v60  ;;  %v4386_v63 = vpack.c.bf16 %v5106_v61, %v5090_v32  ;;  %v523_v42 = vrot.slane %v5106_v61, 7  ;;  %v6925_v58 = vrot.slane %v5106_v61, 1 }
 0x228   : > { %v5112_v12 = vpop.eup %4736  ;;  %4387 = vmatprep.subr.bf16.mxu1 %v4386_v63  ;;  %v5184_v48 = vsel %vm518_vm4, %v6928_v45, %v523_v42 }
 0x229   : > { %7078 = vst [vmem:[#allocation7_spill] sm:$0xff] %v5112_v12  ;;  %v5114_v13 = vpop.permute.xlu0 %248  ;;  %v1555_v14 = vsel %vm7059_vm2, %v5112_v12, 0.0  ;;  %4389 = vmatpush3.bf16.msra.mxu1 %v4386_v63  ;;  %v5120_v17 = vpop.eup %4738  ;;  %7088 = vst [vmem:[#allocation17_spill] sm:$0xff] %v5184_v48 }
 0x22a   : > { %7079 = vst [vmem:[#allocation8_spill] sm:$0xff] %v5114_v13  ;;  %1556 = vadd.xlane.f32.xlu1 %v1555_v14  ;;  %7081 = vst [vmem:[#allocation10_spill] sm:$0xff] %v5120_v17  ;;  %v4390_v18 = vpack.c.bf16 %v5114_v13, %v5118_v16  ;;  %v1561_v21 = vsel %vm7059_vm2, %v5120_v17, 0.0  ;;  %v6931_v14 = vrot.slane %v5118_v16, 1 }
 0x22c   : > { %v5124_v19 = vpop.eup %4740  ;;  %4391 = vmatprep.subr.bf16.mxu1 %v4390_v18 }
 0x22d   : > { %7082 = vst [vmem:[#allocation11_spill] sm:$0xff] %v5124_v19  ;;  %v1564_v20 = vsel %vm7059_vm2, %v5124_v19, 0.0  ;;  %4393 = vmatpush3.bf16.msra.mxu1 %v4390_v18  ;;  %v7122_v19 = vrot.slane %v5114_v13, 1 }
 0x22e   : > { %1565 = vadd.xlane.f32.xlu0 %v1564_v20  ;;  %1562 = vadd.xlane.f32.xlu1 %v1561_v21 }
 0x230   : > { %v5130_v22 = vpop.eup %4742 }
 0x231   : > { %7083 = vst [vmem:[#allocation12_spill] sm:$0xff] %v5130_v22  ;;  %v1570_v23 = vsel %vm7059_vm2, %v5130_v22, 0.0 }
 0x232   : > { %1571 = vadd.xlane.f32.xlu0 %v1570_v23  ;;  %v5233_v23 = vsel %vm7003_vm7, %v6925_v58, %v6931_v14 }
 0x233   : > { %7092 = vst [vmem:[#allocation21_spill] sm:$0xff] %v5233_v23 }
 0x248   : > { %254 = vrot.lane.b32.xlu0 %v4966_v8, %s4887_s24 }
 0x24c   : > { %4631 = vrot.lane.b32.xlu0 %v4948_v3, %s4888_s25 }
 0x250   : > { %4641 = vrot.lane.b32.xlu0 %v4963_v7, %s4888_s25  ;;  %v5151_v7 = vshrl.u32 %v266_v39, 7 }
 0x252   : > { %v1521_v34 = vpop.xlane.xlu1 %1520  ;;  %7085 = vst [vmem:[#allocation14_spill] sm:$0xff] %v5151_v7  ;;  %v5171_v46 = vsub.s32 1, %v5151_v7  ;;  %v5200_v54 = vsub.s32 2, %v5151_v7  ;;  %v5221_v18 = vsub.s32 3, %v5151_v7  ;;  %v5240_v39 = vsub.s32 4, %v5151_v7 }
 0x253   : > { %v1531_v36 = vsub.f32 %v5072_v24, %v1521_v34  ;;  %v270_v24 = vadd.s32 24, %v5151_v7  ;;  %v6927_v34 = vrot.slane %v5106_v61, 2 }
 0x254   : > { %2532 = vrot.lane.b32.xlu0 %v4938_v0, %s4889_s26  ;;  %v5208_v56 = vrot.slane %v5191_v49, %v5171_v46  ;;  %v5217_v63 = vrot.slane %v5191_v49, %v5200_v54 }
 0x255   : > { %v1545_v37 = vmul.f32 1.442695, %v1531_v36  ;;  %v300_v40 = vand.u32 7, %v270_v24  ;;  %v271_v24 = vadd.s32 32, %v5151_v7 }
 0x256   : > { %v5145_v38 = vpop.permute.xlu1 %252  ;;  %7090 = vst [vmem:[#allocation19_spill] sm:$0xff] %v5208_v56  ;;  %7091 = vst [vmem:[#allocation20_spill] sm:$0xff] %v5217_v63  ;;  %v574_v21 = vmul.f32 %v5217_v63, %v5106_v61 }
 0x257   : > { %4744 = vpow2.f32 %v1545_v37  ;;  %v4394_v3 = vpack.c.bf16 %v5145_v38, %v5138_v25  ;;  %v5164_v43 = vadd.s32 4294967294, %v300_v40  ;;  %v5166_v44 = vadd.s32 4294967295, %v300_v40 }
 0x258   : > { %2536 = vrot.lane.b32.xlu0 %v4944_v2, %s4889_s26  ;;  %v425_v2 = vrot.slane %v5106_v61, 6  ;;  %v5210_v57 = vadd.s32 1, %v300_v40  ;;  %v5224_v20 = vadd.s32 2, %v300_v40  ;;  %v6930_v37 = vrot.slane %v5118_v16, 2 }
 0x259   : > { %4395 = vmatprep.subr.bf16.mxu1 %v4394_v3  ;;  %vm382_vm5 = vcmp.ge.s32.totalorder %v5164_v43, 0  ;;  %vm481_vm6 = vcmp.ge.s32.totalorder %v5166_v44, 0  ;;  %v5248_v40 = vrot.slane %v5191_v49, %v5221_v18 }
 0x25a   : > { %4397 = vmatpush3.bf16.msra.mxu1 %v4394_v3  ;;  %v543_v51 = vsel %vm481_vm6, %v5184_v48, 0.0  ;;  %vm6982_vm8 = vcmp.lt.s32.totalorder %v5210_v57, 8  ;;  %vm707_vm10 = vcmp.lt.s32.totalorder %v5224_v20, 8  ;;  %v7179_v20 = vrot.slane %v5145_v38, 7 }
 0x25b   : > { %v555_v62 = vmul.f32 %v5208_v56, %v543_v51  ;;  %v663_v3 = vsel %vm6982_vm8, %v5233_v23, 0.0  ;;  %v5261_v51 = vmul.f32 0.35355338, %v5080_v27  ;;  %v5278_v27 = vsub.s32 5, %v5151_v7 }
 0x25c   : > { %2540 = vrot.lane.b32.xlu0 %v4954_v5, %s4889_s26  ;;  %v6926_v5 = vrot.slane %v5090_v32, 6  ;;  %v6950_v23 = vrot.slane %v5114_v13, 2 }
 0x25d   : > { %7094 = vst [vmem:[#allocation23_spill] sm:$0xff] %v5261_v51 }
 0x25e   : > { %v5179_v47 = vsel %vm420_vm3, %v6926_v5, %v425_v2  ;;  %v307_v5 = vand.u32 7, %v271_v24  ;;  %v5285_v24 = vmul.f32 0.35355338, %v5084_v29  ;;  %v5303_v29 = vrot.slane %v5191_v49, %v5278_v27 }
 0x25f   : > { %7087 = vst [vmem:[#allocation16_spill] sm:$0xff] %v5179_v47  ;;  %v445_v50 = vsel %vm382_vm5, %v5179_v47, 0.0 }
 0x260   : > { %2544 = vrot.lane.b32.xlu0 %v4966_v8, %s4889_s26  ;;  %v5174_v8 = vsub.s32 0, %v5151_v7  ;;  %7097 = vst [vmem:[#allocation26_spill] sm:$0xff] %v5285_v24  ;;  %7099 = vst [vmem:[#allocation28_spill] sm:$0xff] %v5303_v29  ;;  %v2160_v14 = vsel %vm7059_vm2, %v5285_v24, -inf  ;;  %v5392_v32 = vadd.s32 2, %v307_v5 }
 0x261   : > { %v5156_v0 = vpop.eup %4744 }
 0x262   : > { %7086 = vst [vmem:[#allocation15_spill] sm:$0xff] %v5156_v0  ;;  %v1567_v41 = vsel %vm7059_vm2, %v5156_v0, 0.0  ;;  %v5204_v55 = vrot.slane %v5191_v49, %v5174_v8  ;;  %7112 = vst [vmem:[#allocation38_spill] sm:$0xff] %v5392_v32  ;;  %vm708_vm14 = vcmp.lt.s32.totalorder %v5392_v32, 8 }
 0x263   : > { %1568 = vadd.xlane.f32.xlu1 %v1567_v41  ;;  %v5255_v41 = vsel %vm6980_vm9, %v6927_v34, %v6930_v37  ;;  %v5309_v37 = vmul.f32 0.35355338, %v5082_v28  ;;  %v5322_v28 = vsub.s32 7, %v5151_v7 }
 0x264   : > { %7089 = vst [vmem:[#allocation18_spill] sm:$0xff] %v5204_v55  ;;  %v457_v60 = vmul.f32 %v5204_v55, %v445_v50  ;;  %7093 = vst [vmem:[#allocation22_spill] sm:$0xff] %v5255_v41  ;;  %v764_v58 = vsel %vm707_vm10, %v5255_v41, 0.0 }
 0x265   : > { %7101 = vst [vmem:[#allocation30_spill] sm:$0xff] %v5309_v37  ;;  %7102 = vst [vmem:[#allocation31_spill] sm:$0xff] %v5322_v28 }
 0x266   : > { %v563_v36 = vadd.f32 %v555_v62, %v457_v60  ;;  %v6929_v60 = vrot.slane %v5118_v16, 6  ;;  %v675_v62 = vmul.f32 %v5248_v40, %v663_v3  ;;  %v2154_v3 = vsel %vm7059_vm2, %v5261_v51, -inf }
 0x268   : > { %v582_v50 = vadd.f32 %v574_v21, %v563_v36  ;;  %v5271_v21 = vsel %vm420_vm3, %v425_v2, %v6929_v60  ;;  %v6932_v2 = vrot.slane %v5118_v16, 7  ;;  %v5292_v60 = vadd.s32 4294967294, %v307_v5 }
 0x269   : > { %7095 = vst [vmem:[#allocation24_spill] sm:$0xff] %v5271_v21  ;;  %v794_v45 = vsel %vm382_vm5, %v5271_v21, 0.0 }
 0x26a   : > { %v683_v36 = vadd.f32 %v675_v62, %v582_v50  ;;  %v5294_v50 = vadd.s32 4294967295, %v307_v5  ;;  %v5306_v62 = vsub.s32 6, %v5151_v7  ;;  %vm383_vm11 = vcmp.ge.s32.totalorder %v5292_v60, 0 }
 0x26c   : > { %7100 = vst [vmem:[#allocation29_spill] sm:$0xff] %v5306_v62  ;;  %vm6981_vm12 = vcmp.ge.s32.totalorder %v5294_v50, 0 }
 0x274   : > { %256 = vrot.lane.b32.xlu1 %v4969_v9, %s4887_s24 }
 0x278   : > { %4636 = vrot.lane.b32.xlu1 %v4974_v10, %s4888_s25  ;;  %v5275_v10 = vrot.slane %v5191_v49, %v5240_v39 }
 0x27a   : > { %7096 = vst [vmem:[#allocation25_spill] sm:$0xff] %v5275_v10  ;;  %v776_v34 = vmul.f32 %v5275_v10, %v764_v58 }
 0x27c   : > { %4646 = vrot.lane.b32.xlu1 %v4979_v11, %s4888_s25  ;;  %v5299_v11 = vsel %vm518_vm4, %v523_v42, %v6932_v2  ;;  %v784_v58 = vadd.f32 %v776_v34, %v683_v36  ;;  %v806_v42 = vmul.f32 %v5303_v29, %v794_v45  ;;  %v2163_v45 = vsel %vm7059_vm2, %v5309_v37, -inf  ;;  %v5444_v37 = vld [vmem:[%s6923_s3 + $0x10] sm:$0xff]  ;;  %s4894_s25 = smov 48  }
 0x27d   : > { %7098 = vst [vmem:[#allocation27_spill] sm:$0xff] %v5299_v11  ;;  %v824_v2 = vsel %vm481_vm6, %v5299_v11, 0.0  ;;  %v446_v34 = vsel %vm383_vm11, %v5271_v21, 0.0  ;;  %v5504_v17 = vrot.slane %v5444_v37, %v5174_v8 }
 0x27e   : > { %v814_v36 = vadd.f32 %v806_v42, %v784_v58  ;;  %v544_v58 = vsel %vm6981_vm12, %v5299_v11, 0.0  ;;  %v7106_v42 = vrot.slane %v5114_v13, 1  ;;  %v5360_v11 = vld [vmem:[%s6923_s3 + $0x8] sm:$0xff] }
 0x27f   : > { %2155 = vmax.xlane.f32.xlu0 %v2154_v3  ;;  %v5334_v3 = vmul.f32 0.35355338, %v5086_v30  ;;  %v7107_v30 = vrot.slane %v5118_v16, 1  ;;  %v556_v48 = vmul.f32 %v5208_v56, %v544_v58  ;;  %v5388_v58 = vrot.slane %v5360_v11, %v5174_v8 }
 0x280   : > { %2534 = vrot.lane.b32.xlu1 %v4941_v1, %s4889_s26  ;;  %v5327_v1 = vrot.slane %v5191_v49, %v5306_v62 }
 0x281   : > { %7104 = vst [vmem:[#allocation33_spill] sm:$0xff] %v5334_v3 }
 0x282   : > { %7103 = vst [vmem:[#allocation32_spill] sm:$0xff] %v5327_v1  ;;  %v836_v41 = vmul.f32 %v5327_v1, %v824_v2  ;;  %v5354_v2 = vsel %vm7003_vm7, %v7107_v30, %v7106_v42  ;;  %v2169_v42 = vsel %vm7059_vm2, %v5334_v3, -inf  ;;  %v5369_v30 = vmul.f32 0.35355338, %v5092_v33 }
 0x283   : > { %2161 = vmax.xlane.f32.xlu0 %v2160_v14  ;;  %v5343_v14 = vadd.s32 1, %v307_v5  ;;  %7108 = vst [vmem:[#allocation35_spill] sm:$0xff] %v5354_v2  ;;  %v5422_v5 = vrot.slane %v5360_v11, %v5200_v54 }
 0x284   : > { %2538 = vrot.lane.b32.xlu1 %v4951_v4, %s4889_s26  ;;  %v5347_v4 = vrot.slane %v5191_v49, %v5322_v28  ;;  %v844_v21 = vadd.f32 %v836_v41, %v814_v36  ;;  %v458_v49 = vmul.f32 %v5204_v55, %v446_v34  ;;  %7109 = vst [vmem:[#allocation36_spill] sm:$0xff] %v5369_v30  ;;  %v875_v36 = vsel %vm6982_vm8, %v5354_v2, 0.0 }
 0x285   : > { %vm607_vm13 = vcmp.lt.s32.totalorder %v5343_v14, 8  ;;  %v2175_v34 = vsel %vm7059_vm2, %v5369_v30, -inf  ;;  %v887_v3 = vmul.f32 %v5388_v58, %v875_v36  ;;  %v5415_v36 = vrot.slane %v5360_v11, %v5171_v46 }
 0x286   : > { %7105 = vst [vmem:[#allocation34_spill] sm:$0xff] %v5347_v4  ;;  %v856_v41 = vmul.f32 %v5347_v4, %v5118_v16  ;;  %v564_v61 = vadd.f32 %v556_v48, %v458_v49  ;;  %v7113_v48 = vrot.slane %v5114_v13, 6  ;;  %v7114_v49 = vrot.slane %v5118_v16, 6 }
 0x287   : > { %2164 = vmax.xlane.f32.xlu0 %v2163_v45  ;;  %v7110_v45 = vrot.slane %v5118_v16, 2  ;;  %7116 = vst [vmem:[#allocation40_spill] sm:$0xff] %v5415_v36 }
 0x288   : > { %2542 = vrot.lane.b32.xlu1 %v4957_v6, %s4889_s26  ;;  %v272_v6 = vadd.s32 40, %v5151_v7  ;;  %v864_v47 = vadd.f32 %v856_v41, %v844_v21  ;;  %v5411_v41 = vsel %vm420_vm3, %v7114_v49, %v7113_v48 }
 0x289   : > { %v5384_v33 = vsel %vm6980_vm9, %v7110_v45, %v6950_v23  ;;  %v664_v45 = vsel %vm607_vm13, %v5354_v2, 0.0  ;;  %7115 = vst [vmem:[#allocation39_spill] sm:$0xff] %v5411_v41  ;;  %v937_v48 = vsel %vm382_vm5, %v5411_v41, 0.0 }
 0x28a   : > { %7111 = vst [vmem:[#allocation37_spill] sm:$0xff] %v5384_v33  ;;  %v906_v21 = vsel %vm707_vm10, %v5384_v33, 0.0  ;;  %v895_v23 = vadd.f32 %v887_v3, %v864_v47  ;;  %v676_v30 = vmul.f32 %v5248_v40, %v664_v45  ;;  %v7117_v47 = vrot.slane %v5114_v13, 7 }
 0x28b   : > { %2170 = vmax.xlane.f32.xlu0 %v2169_v42  ;;  %v575_v42 = vmul.f32 %v5217_v63, %v5118_v16  ;;  %v765_v45 = vsel %vm708_vm14, %v5384_v33, 0.0  ;;  %v949_v24 = vmul.f32 %v5422_v5, %v937_v48  ;;  %v5463_v48 = vrot.slane %v5360_v11, %v5240_v39 }
 0x28c   : > { %2546 = vrot.lane.b32.xlu1 %v4969_v9, %s4889_s26  ;;  %v314_v9 = vand.u32 7, %v272_v6  ;;  %v918_v6 = vmul.f32 %v5415_v36, %v906_v21  ;;  %v6971_v33 = vrot.slane %v5138_v25, 1 }
 0x28d   : > { %v583_v2 = vadd.f32 %v575_v42, %v564_v61  ;;  %v7118_v61 = vrot.slane %v5118_v16, 7  ;;  %v5449_v16 = vrot.slane %v5360_v11, %v5221_v18 }
 0x28e   : > { %v5427_v49 = vadd.s32 4294967294, %v314_v9  ;;  %v5439_v21 = vadd.s32 4294967295, %v314_v9  ;;  %v5506_v12 = vadd.s32 1, %v314_v9 }
 0x28f   : > { %2176 = vmax.xlane.f32.xlu0 %v2175_v34  ;;  %v5434_v3 = vsel %vm518_vm4, %v7118_v61, %v7117_v47  ;;  %v926_v34 = vadd.f32 %v918_v6, %v895_v23  ;;  %v684_v42 = vadd.f32 %v676_v30, %v583_v2  ;;  %v777_v6 = vmul.f32 %v5275_v10, %v765_v45 }
 0x290   : > { %7119 = vst [vmem:[#allocation41_spill] sm:$0xff] %v5434_v3  ;;  %v968_v23 = vsel %vm481_vm6, %v5434_v3, 0.0  ;;  %v273_v47 = vadd.s32 48, %v5151_v7  ;;  %v795_v30 = vsel %vm383_vm11, %v5411_v41, 0.0  ;;  %vm7005_vm15 = vcmp.ge.s32.totalorder %v5427_v49, 0 }
 0x291   : > { %v957_v2 = vadd.f32 %v949_v24, %v926_v34  ;;  %vm6977_vm0 = vcmp.ge.s32.totalorder %v5439_v21, 0  ;;  %v5467_v61 = vrot.slane %v5444_v37, %v5171_v46  ;;  %v785_v45 = vadd.f32 %v777_v6, %v684_v42 }
 0x292   : > { %v5472_v24 = vrot.slane %v5360_v11, %v5278_v27  ;;  %v5476_v34 = vrot.slane %v5360_v11, %v5306_v62  ;;  %v980_v51 = vmul.f32 %v5449_v16, %v968_v23  ;;  %v807_v0 = vmul.f32 %v5303_v29, %v795_v30 }
 0x293   : > { %7120 = vst [vmem:[#allocation42_spill] sm:$0xff] %v5467_v61  ;;  %v321_v22 = vand.u32 7, %v273_v47  ;;  %v447_v46 = vsel %vm7005_vm15, %v5411_v41, 0.0  ;;  %v545_v42 = vsel %vm6977_vm0, %v5434_v3, 0.0  ;;  %v1000_v6 = vmul.f32 %v5463_v48, %v5114_v13 }
 0x294   : > { %7121 = vst [vmem:[#allocation43_spill] sm:$0xff] %v5476_v34  ;;  %v5493_v23 = vsel %vm7003_vm7, %v7122_v19, %v6971_v33  ;;  %v988_v30 = vadd.f32 %v980_v51, %v957_v2  ;;  %v825_v47 = vsel %vm6981_vm12, %v5434_v3, 0.0  ;;  %v5500_v41 = vrot.slane %v5360_v11, %v5322_v28 }
 0x295   : > { %7123 = vst [vmem:[#allocation44_spill] sm:$0xff] %v5493_v23  ;;  %v815_v59 = vadd.f32 %v807_v0, %v785_v45  ;;  %v5511_v19 = vrot.slane %v5444_v37, %v5200_v54  ;;  %v459_v51 = vmul.f32 %v5204_v55, %v447_v46  ;;  %v557_v2 = vmul.f32 %v5208_v56, %v545_v42 }
 0x296   : > { %7124 = vst [vmem:[#allocation45_spill] sm:$0xff] %v5500_v41  ;;  %v1018_v11 = vsel %vm6982_vm8, %v5493_v23, 0.0  ;;  %v837_v8 = vmul.f32 %v5327_v1, %v825_v47  ;;  %v5519_v33 = vadd.s32 4294967294, %v321_v22  ;;  %v5521_v0 = vadd.s32 4294967295, %v321_v22 }
 0x297   : > { %v7126_v45 = vrot.slane %v5114_v13, 2  ;;  %v5532_v46 = vrot.slane %v5444_v37, %v5221_v18  ;;  %v1008_v42 = vadd.f32 %v1000_v6, %v988_v30  ;;  %v5534_v3 = vadd.s32 2, %v314_v9 }
 0x298   : > { %7125 = vst [vmem:[#allocation46_spill] sm:$0xff] %v5521_v0  ;;  %v857_v47 = vmul.f32 %v5347_v4, %v5114_v13  ;;  %v845_v15 = vadd.f32 %v837_v8, %v815_v59  ;;  %v274_v28 = vadd.s32 56, %v5151_v7  ;;  %vm608_vm0 = vcmp.lt.s32.totalorder %v5506_v12, 8 }
 0x299   : > { %v5528_v54 = vsel %vm6980_vm9, %v7126_v45, %v6979_v52  ;;  %v576_v62 = vmul.f32 %v5217_v63, %v5114_v13  ;;  %v6986_v45 = vrot.slane %v5138_v25, 6  ;;  %v1030_v52 = vmul.f32 %v5472_v24, %v1018_v11 }
 0x29a   : > { %7127 = vst [vmem:[#allocation47_spill] sm:$0xff] %v5528_v54  ;;  %v565_v18 = vadd.f32 %v557_v2, %v459_v51  ;;  %v5546_v9 = vrot.slane %v5444_v37, %v5240_v39  ;;  %v1048_v59 = vsel %vm707_vm10, %v5528_v54, 0.0  ;;  %vm7032_vm9 = vcmp.ge.s32.totalorder %v5519_v33, 0 }
 0x29b   : > { %vm7004_vm12 = vcmp.ge.s32.totalorder %v5521_v0, 0  ;;  %v7129_v6 = vrot.slane %v5114_v13, 6  ;;  %v1038_v51 = vadd.f32 %v1030_v52, %v1008_v42  ;;  %v876_v39 = vsel %vm607_vm13, %v5493_v23, 0.0 }
 0x29c   : > { %7128 = vst [vmem:[#allocation48_spill] sm:$0xff] %v5546_v9  ;;  %vm6992_vm8 = vcmp.lt.s32.totalorder %v5534_v3, 8  ;;  %v6989_v2 = vrot.slane %v5138_v25, 7  ;;  %v865_v11 = vadd.f32 %v857_v47, %v845_v15  ;;  %v5565_v8 = vand.u32 7, %v274_v28 }
 0x29d   : > { %v5558_v30 = vsel %vm420_vm3, %v7129_v6, %v6986_v45  ;;  %v665_v7 = vsel %vm608_vm0, %v5493_v23, 0.0  ;;  %v5571_v9 = vmul.f32 0.35355338, %v5078_v26  ;;  %v5574_v52 = vmul.f32 0.35355338, %v5088_v31 }
 0x29e   : > { %7130 = vst [vmem:[#allocation49_spill] sm:$0xff] %v5558_v30  ;;  %v1060_v42 = vmul.f32 %v5476_v34, %v1048_v59  ;;  %v584_v6 = vadd.f32 %v576_v62, %v565_v18  ;;  %v7133_v45 = vrot.slane %v5114_v13, 7  ;;  %v1078_v28 = vsel %vm382_vm5, %v5558_v30, 0.0 }
 0x29f   : > { %7131 = vst [vmem:[#allocation50_spill] sm:$0xff] %v5571_v9  ;;  %7132 = vst [vmem:[#allocation51_spill] sm:$0xff] %v5574_v52  ;;  %v888_v26 = vmul.f32 %v5388_v58, %v876_v39  ;;  %v5588_v47 = vadd.s32 1, %v321_v22  ;;  %v7006_v31 = vrot.slane %v5145_v38, 1  ;;  %v907_v62 = vsel %vm708_vm14, %v5528_v54, 0.0 }
 0x2a0   : > { %v5582_v15 = vsel %vm518_vm4, %v7133_v45, %v6989_v2  ;;  %v1068_v23 = vadd.f32 %v1060_v42, %v1038_v51  ;;  %v677_v18 = vmul.f32 %v5248_v40, %v665_v7  ;;  %v5596_v45 = vadd.s32 4294967294, %v5565_v8 }
 0x2a1   : > { %7134 = vst [vmem:[#allocation52_spill] sm:$0xff] %v5582_v15  ;;  %7135 = vst [vmem:[#allocation53_spill] sm:$0xff] %v5588_v47  ;;  %v896_v59 = vadd.f32 %v888_v26, %v865_v11  ;;  %v5598_v2 = vadd.s32 2, %v321_v22  ;;  %v766_v39 = vsel %vm6992_vm8, %v5528_v54, 0.0  ;;  %v1090_v13 = vmul.f32 %v5500_v41, %v1078_v28 }
 0x2a2   : > { %7136 = vst [vmem:[#allocation54_spill] sm:$0xff] %v5596_v45  ;;  %v448_v51 = vsel %vm7032_vm9, %v5558_v30, 0.0  ;;  %v546_v7 = vsel %vm7004_vm12, %v5582_v15, 0.0  ;;  %v685_v11 = vadd.f32 %v677_v18, %v584_v6  ;;  %v5611_v42 = vmul.f32 0.35355338, %v5094_v35 }
 0x2a3   : > { %7137 = vst [vmem:[#allocation55_spill] sm:$0xff] %v5598_v2  ;;  %v1108_v22 = vsel %vm481_vm6, %v5582_v15, 0.0  ;;  %v919_v26 = vmul.f32 %v5415_v36, %v907_v62  ;;  %vm7061_vm8 = vcmp.lt.s32.totalorder %v5588_v47, 8  ;;  %v7139_v28 = vrot.slane %v5138_v25, 1 }
 0x2a4   : > { %7138 = vst [vmem:[#allocation56_spill] sm:$0xff] %v5611_v42  ;;  %v1098_v41 = vadd.f32 %v1090_v13, %v1068_v23  ;;  %v938_v35 = vsel %vm383_vm11, %v5558_v30, 0.0  ;;  %v778_v6 = vmul.f32 %v5275_v10, %v766_v39  ;;  %v460_v0 = vmul.f32 %v5204_v55, %v448_v51 }
 0x2a5   : > { %v5623_v54 = vsel %vm7003_vm7, %v7139_v28, %v7006_v31  ;;  %v927_v18 = vadd.f32 %v919_v26, %v896_v59  ;;  %v558_v62 = vmul.f32 %v5208_v56, %v546_v7  ;;  %v796_v36 = vsel %vm7005_vm15, %v5558_v30, 0.0 }
 0x2a6   : > { %7140 = vst [vmem:[#allocation57_spill] sm:$0xff] %v5623_v54  ;;  %v1120_v28 = vmul.f32 %v5504_v17, %v1108_v22  ;;  %vm7033_vm7 = vcmp.lt.s32.totalorder %v5598_v2, 8  ;;  %v786_v13 = vadd.f32 %v778_v6, %v685_v11  ;;  %v2157_v23 = vsel %vm7059_vm2, %v5571_v9, -inf }
 0x2a7   : > { %v1140_v59 = vmul.f32 %v5467_v61, %v5138_v25  ;;  %vm7141_vm12 = vcmp.lt.s32.totalorder %v5210_v57, 8  ;;  %v950_v51 = vmul.f32 %v5422_v5, %v938_v35  ;;  %vm7142_vm15 = vcmp.ge.s32.totalorder %v5294_v50, 0 }
 0x2a8   : > { %v1156_v39 = vsel %vm7141_vm12, %v5623_v54, 0.0  ;;  %v1128_v26 = vadd.f32 %v1120_v28, %v1098_v41  ;;  %v969_v22 = vsel %vm7142_vm15, %v5582_v15, 0.0  ;;  %v666_v11 = vsel %vm7061_vm8, %v5623_v54, 0.0 }
 0x2a9   : > { %v808_v6 = vmul.f32 %v5303_v29, %v796_v36  ;;  %v958_v31 = vadd.f32 %v950_v51, %v927_v18  ;;  %v566_v34 = vadd.f32 %v558_v62, %v460_v0  ;;  %vm7143_vm12 = vcmp.ge.s32.totalorder %v5439_v21, 0 }
 0x2aa   : > { %v826_v35 = vsel %vm7143_vm12, %v5582_v15, 0.0  ;;  %v7145_v41 = vrot.slane %v5145_v38, 2  ;;  %v7146_v28 = vrot.slane %v5138_v25, 2  ;;  %vm7147_vm15 = vcmask 1045504  }
 0x2ab   : > { %v7013_v47 = vrot.slane %v5145_v38, 6  ;;  %v1168_v36 = vmul.f32 %v5511_v19, %v1156_v39  ;;  %v577_v0 = vmul.f32 %v5217_v63, %v5138_v25  ;;  %v2166_v18 = vsel %vm7059_vm2, %v5574_v52, -inf }
 0x2ac   : > { %v5662_v9 = vsel %vm7147_vm15, %v7146_v28, %v7145_v41  ;;  %v981_v62 = vmul.f32 %v5449_v16, %v969_v22  ;;  %v678_v51 = vmul.f32 %v5248_v40, %v666_v11  ;;  %v1148_v15 = vadd.f32 %v1140_v59, %v1128_v26 }
 0x2ad   : > { %7148 = vst [vmem:[#allocation59_spill] sm:$0xff] %v5662_v9  ;;  %v1019_v41 = vsel %vm607_vm13, %v5623_v54, 0.0  ;;  %v838_v39 = vmul.f32 %v5327_v1, %v826_v35  ;;  %v585_v28 = vadd.f32 %v577_v0, %v566_v34  ;;  %v877_v22 = vsel %vm608_vm0, %v5623_v54, 0.0 }
 0x2ae   : > { %v5655_v30 = vpop.xlane.xlu0 %1553  ;;  %v7149_v59 = vrot.slane %v5138_v25, 6  ;;  %v1176_v11 = vadd.f32 %v1168_v36, %v1148_v15  ;;  %v767_v35 = vsel %vm7033_vm7, %v5662_v9, 0.0  ;;  %v1031_v34 = vmul.f32 %v5472_v24, %v1019_v41 }
 0x2af   : > { %v1551_v7 = vpop.xlane.xlu1 %1550  ;;  %7144 = vst [vmem:[#allocation58_spill] sm:$0xff] %v5655_v30  ;;  %v5695_v0 = vadd.s32 4294967295, %v5565_v8  ;;  %v2172_v15 = vsel %vm7059_vm2, %v5611_v42, -inf  ;;  %v7153_v41 = vrot.slane %v5138_v25, 7  ;;  %vm7066_vm12 = vcmp.ge.s32.totalorder %v5596_v45, 0  ;;  %v7167_v30 = vld [vmem:[#allocation31_spill] sm:$0xff] }
 0x2b0   : > { %4746 = vrcp.f32 %v1551_v7  ;;  %2158 = vmax.xlane.f32.xlu1 %v2157_v23  ;;  %v816_v23 = vadd.f32 %v808_v6, %v786_v13  ;;  %v1184_v13 = vsel %vm707_vm10, %v5662_v9, 0.0  ;;  %v989_v6 = vadd.f32 %v981_v62, %v958_v31 }
 0x2b1   : > { %v434_v26 = vsel %vm420_vm3, %v7149_v59, %v7013_v47  ;;  %v1001_v31 = vmul.f32 %v5463_v48, %v5138_v25  ;;  %7150 = vst [vmem:[#allocation60_spill] sm:$0xff] %v5695_v0  ;;  %v686_v62 = vadd.f32 %v678_v51, %v585_v28  ;;  %v858_v7 = vmul.f32 %v5347_v4, %v5138_v25 }
 0x2b2   : > { %v1196_v36 = vmul.f32 %v5532_v46, %v1184_v13  ;;  %v1212_v51 = vsel %vm382_vm5, %v434_v26, 0.0  ;;  %v779_v47 = vmul.f32 %v5275_v10, %v767_v35  ;;  %v1049_v13 = vsel %vm708_vm14, %v5662_v9, 0.0 }
 0x2b3   : > { %v5699_v54 = vpop.xlane.xlu0 %1559  ;;  %v1009_v28 = vadd.f32 %v1001_v31, %v989_v6  ;;  %v5720_v25 = vrot.slane %v5444_v37, %v5278_v27  ;;  %vm7154_vm5 = vcmp.lt.s32.totalorder %v5534_v3, 8  ;;  %v7156_v31 = vld [vmem:[#allocation48_spill] sm:$0xff]  ;;  %v7157_v27 = vld [vmem:[#allocation43_spill] sm:$0xff]  ;;  %vm7065_vm15 = vcmp.ge.s32.totalorder %v5695_v0, 0 }
 0x2b4   : > { %2167 = vmax.xlane.f32.xlu1 %v2166_v18  ;;  %v846_v18 = vadd.f32 %v838_v39, %v816_v23  ;;  %7151 = vst [vmem:[#allocation61_spill] sm:$0xff] %v5699_v54  ;;  %v889_v23 = vmul.f32 %v5388_v58, %v877_v22  ;;  %v7152_v39 = vrot.slane %v5145_v38, 7  ;;  %v1204_v52 = vadd.f32 %v1196_v36, %v1176_v11 }
 0x2b5   : > { %v797_v22 = vsel %vm7032_vm9, %v434_v26, 0.0  ;;  %v787_v43 = vadd.f32 %v779_v47, %v686_v62  ;;  %v908_v6 = vsel %vm7154_vm5, %v5662_v9, 0.0  ;;  %v1224_v36 = vmul.f32 %v7156_v31, %v1212_v51  ;;  %v7160_v51 = vld [vmem:[#allocation40_spill] sm:$0xff] }
 0x2b6   : > { %v532_v59 = vsel %vm518_vm4, %v7153_v41, %v7152_v39  ;;  %v1039_v39 = vadd.f32 %v1031_v34, %v1009_v28  ;;  %v1061_v41 = vmul.f32 %v7157_v27, %v1049_v13  ;;  %v809_v47 = vmul.f32 %v5303_v29, %v797_v22 }
 0x2b7   : > { %v1232_v34 = vadd.f32 %v1224_v36, %v1204_v52  ;;  %v7164_v36 = vld [vmem:[#allocation45_spill] sm:$0xff] }
 0x2b8   : > { %2173 = vmax.xlane.f32.xlu1 %v2172_v15  ;;  %v866_v15 = vadd.f32 %v858_v7, %v846_v18  ;;  %v1240_v18 = vsel %vm481_vm6, %v532_v59, 0.0  ;;  %v1069_v28 = vadd.f32 %v1061_v41, %v1039_v39  ;;  %v817_v44 = vadd.f32 %v809_v47, %v787_v43 }
 0x2b9   : > { %vm7161_vm6 = vcmp.ge.s32.totalorder %v5427_v49, 0  ;;  %v1252_v22 = vmul.f32 %v5720_v25, %v1240_v18  ;;  %v449_v39 = vsel %vm7066_vm12, %v434_v26, 0.0  ;;  %v547_v43 = vsel %vm7065_vm15, %v532_v59, 0.0 }
 0x2ba   : > { %v4747_v42 = vpop.eup %4746  ;;  %v897_v7 = vadd.f32 %v889_v23, %v866_v15  ;;  %v920_v23 = vmul.f32 %v7160_v51, %v908_v6  ;;  %v939_v13 = vsel %vm7161_vm6, %v434_v26, 0.0  ;;  %v7162_v15 = vld [vmem:[#allocation29_spill] sm:$0xff]  ;;  %v859_v47 = vmul.f32 %v5347_v4, %v5145_v38 }
 0x2bb   : > { %v5725_v11 = vpop.xlane.xlu0 %1565  ;;  %v1581_v35 = vmul.f32 %v4747_v42, %v5098_v53  ;;  %v1079_v53 = vsel %vm383_vm11, %v434_v26, 0.0  ;;  %v7158_v42 = vld [vmem:[#allocation46_spill] sm:$0xff]  ;;  %v5745_v9 = vrot.slane %v5444_v37, %v7162_v15  ;;  %v1260_v6 = vadd.f32 %v1252_v22, %v1232_v34 }
 0x2bc   : > { %7155 = vst [vmem:[#allocation62_spill] sm:$0xff] %v5725_v11  ;;  %vm7159_vm5 = vcmp.ge.s32.totalorder %v7158_v42, 0  ;;  %v928_v52 = vadd.f32 %v920_v23, %v897_v7  ;;  %v1091_v11 = vmul.f32 %v7164_v36, %v1079_v53  ;;  %v951_v18 = vmul.f32 %v5422_v5, %v939_v13 }
 0x2bd   : > { %4106 = vmatprep.mubr.msk.f32.mxu1 %vm7059_vm2, %v1581_v35  ;;  %v827_v62 = vsel %vm7159_vm5, %v532_v59, 0.0  ;;  %v1272_v41 = vmul.f32 %v5745_v9, %v5145_v38  ;;  %vm7165_vm5 = vcmp.ge.s32.totalorder %v5294_v50, 0  ;;  %vm7166_vm6 = vcmp.ge.s32.totalorder %v5439_v21, 0 }
 0x2be   : > { %v839_v54 = vmul.f32 %v5327_v1, %v827_v62  ;;  %v1109_v7 = vsel %vm7165_vm5, %v532_v59, 0.0  ;;  %v1099_v53 = vadd.f32 %v1091_v11, %v1069_v28  ;;  %v970_v26 = vsel %vm7166_vm6, %v532_v59, 0.0  ;;  %v5780_v28 = vld [vmem:[%s4935_s20] sm:$0xff] }
 0x2bf   : > { %v5748_v35 = vpop.xlane.xlu0 %1571  ;;  %v959_v23 = vadd.f32 %v951_v18, %v928_v52  ;;  %v461_v34 = vmul.f32 %v5204_v55, %v449_v39  ;;  %v559_v15 = vmul.f32 %v5208_v56, %v547_v43  ;;  %v1002_v22 = vmul.f32 %v5463_v48, %v5145_v38  ;;  %7169 = vst [vmem:[#allocation46_spill] sm:$0xff] %v5780_v28 }
 0x2c0   : > { %7163 = vst [vmem:[#allocation48_spill] sm:$0xff] %v5748_v35  ;;  %v847_v62 = vadd.f32 %v839_v54, %v817_v44  ;;  %v5773_v13 = vrot.slane %v5444_v37, %v7167_v30  ;;  %v1121_v11 = vmul.f32 %v5504_v17, %v1109_v7  ;;  %v1141_v54 = vmul.f32 %v5467_v61, %v5145_v38  ;;  %v5783_v44 = vld [vmem:[%s4935_s20 + $0x8] sm:$0xff] }
 0x2c1   : > { %7170 = vst [vmem:[#allocation29_spill] sm:$0xff] %v5783_v44  ;;  %v5787_v52 = vpack.i.bf16 %v5783_v44, %v5780_v28  ;;  %v1279_v39 = vadd.f32 %v1272_v41, %v1260_v6  ;;  %v982_v43 = vmul.f32 %v5449_v16, %v970_v26  ;;  %v5793_v55 = vadd.f32 %v559_v15, %v461_v34 }
 0x2c2   : > { %7168 = vst [vmem:[#allocation43_spill] sm:$0xff] %v5773_v13  ;;  %v1129_v7 = vadd.f32 %v1121_v11, %v1099_v53  ;;  %v867_v18 = vadd.f32 %v859_v47, %v847_v62  ;;  %v5797_v1 = vmul.f32 %v5217_v63, %v5145_v38  ;;  %v7172_v6 = vrot.slane %v5145_v38, 1 }
 0x2c3   : > { %v5769_v35 = vpop.permute.xlu0 %254  ;;  %7171 = vst [vmem:[#allocation45_spill] sm:$0xff] %v5787_v52  ;;  %v990_v59 = vadd.f32 %v982_v43, %v959_v23  ;;  %vm7173_vm5 = vcmask 1046528   ;;  %v7174_v47 = vrot.slane %v5145_v38, 2  ;;  %vm7175_vm6 = vcmask 1045504  }
 0x2c4   : > { %v7026_v37 = vrot.slane %v5769_v35, 1  ;;  %v7025_v30 = vrot.slane %v5769_v35, 2  ;;  %v7034_v56 = vrot.slane %v5769_v35, 7  ;;  %v7176_v62 = vrot.slane %v5769_v35, 6 }
 0x2c5   : > { %v7177_v26 = vrot.slane %v5145_v38, 6  ;;  %v5819_v34 = vadd.s32 1, %v5565_v8 }
 0x2c6   : > { %v651_v41 = vsel %vm7173_vm5, %v7172_v6, %v7026_v37  ;;  %v5809_v53 = vsel %vm7175_vm6, %v7174_v47, %v7025_v30  ;;  %vm7178_vm5 = vcmp.lt.s32.totalorder %v5210_v57, 8  ;;  %v5837_v57 = vld [vmem:[%s6923_s3 + $0x18] ss:$0 sm:$0xff]  ;;  %vm7184_vm6 = vcmp.lt.s32.totalorder %v5534_v3, 8 }
 0x2c7   : > { %v4632_v28 = vpop.permute.xlu0 %4631  ;;  %v5816_v23 = vsel %vm420_vm3, %v7177_v26, %v7176_v62  ;;  %v1287_v43 = vsel %vm7178_vm5, %v651_v41, 0.0  ;;  %v1314_v6 = vsel %vm707_vm10, %v5809_v53, 0.0  ;;  %v1149_v62 = vadd.f32 %v1141_v54, %v1129_v7 }
 0x2c8   : > { %v4634_v15 = vunpack.i.h.bf16 %v4632_v28  ;;  %v4633_v11 = vunpack.i.l.bf16 %v4632_v28  ;;  %v1298_v47 = vmul.f32 %v5773_v13, %v1287_v43  ;;  %v1157_v26 = vsel %vm607_vm13, %v651_v41, 0.0 }
 0x2c9   : > { %4651 = vrot.lane.b32.xlu1 %v5787_v52, %s4890_s7  ;;  %v1185_v28 = vsel %vm708_vm14, %v5809_v53, 0.0  ;;  %v820_v43 = vsel %vm518_vm4, %v7179_v20, %v7034_v56  ;;  %v1169_v54 = vmul.f32 %v5511_v19, %v1157_v26  ;;  %v1010_v7 = vadd.f32 %v1002_v22, %v990_v59 }
 0x2ca   : > { %v4450_v30 = vpack.c.bf16 %v4634_v15, %v4633_v11  ;;  %v1306_v63 = vadd.f32 %v1298_v47, %v1279_v39  ;;  %v1325_v44 = vmul.f32 %v5837_v57, %v1314_v6  ;;  %v1213_v15 = vsel %vm383_vm11, %v5816_v23, 0.0 }
 0x2cb   : > { %v5845_v37 = vpop.permute.xlu0 %4641  ;;  %v878_v52 = vsel %vm7061_vm8, %v651_v41, 0.0  ;;  %v1177_v38 = vadd.f32 %v1169_v54, %v1149_v62  ;;  %v1197_v20 = vmul.f32 %v5532_v46, %v1185_v28  ;;  %vm610_vm10 = vcmp.lt.s32.totalorder %v5819_v34, 8 }
 0x2cc   : > { %4452 = vmatprep.subr.msk.bf16.mxu0 %vm4999_vm1, %v4450_v30  ;;  %v5858_v22 = vadd.s32 2, %v5565_v8  ;;  %v5862_v59 = vadd.f32 %v1325_v44, %v1306_v63  ;;  %vm7183_vm11 = vcmp.ge.s32.totalorder %v5294_v50, 0  ;;  %v890_v39 = vmul.f32 %v5388_v58, %v878_v52 }
 0x2cd   : > { %4455 = vmatpush3.bf16.xpose.msk.msra.mxu0 %vm4999_vm1, %v4450_v30  ;;  %v1241_v60 = vsel %vm7183_vm11, %v820_v43, 0.0  ;;  %v909_v6 = vsel %vm7033_vm7, %v5809_v53, 0.0  ;;  %v1205_v47 = vadd.f32 %v1197_v20, %v1177_v38  ;;  %v1225_v62 = vmul.f32 %v7156_v31, %v1213_v15 }
 0x2ce   : > { %7182 = vst [vmem:[#allocation31_spill] sm:$0xff] %v5862_v59  ;;  %v1273_v8 = vmul.f32 %v5745_v9, %v5769_v35  ;;  %v940_v63 = vsel %vm7032_vm9, %v5816_v23, 0.0  ;;  %v898_v30 = vadd.f32 %v890_v39, %v867_v18  ;;  %v921_v50 = vmul.f32 %v7160_v51, %v909_v6 }
 0x2cf   : > { %v2533_v44 = vpop.permute.xlu0 %2532  ;;  %v1020_v52 = vsel %vm608_vm0, %v651_v41, 0.0  ;;  %v1050_v26 = vsel %vm7184_vm6, %v5809_v53, 0.0  ;;  %vm7185_vm5 = vcmask 64512   ;;  %v1233_v28 = vadd.f32 %v1225_v62, %v1205_v47 }
 0x2d0   : > { %4238 = vmatprep.mubr.msk.f32.mxu0 %vm7185_vm5, %v2533_v44  ;;  %v1253_v54 = vmul.f32 %v5720_v25, %v1241_v60  ;;  %vm7186_vm11 = vcmp.ge.s32.totalorder %v7158_v42, 0  ;;  %v1032_v38 = vmul.f32 %v5472_v24, %v1020_v52  ;;  %v929_v18 = vadd.f32 %v921_v50, %v898_v30 }
 0x2d1   : > { %v971_v15 = vsel %vm7186_vm11, %v820_v43, 0.0  ;;  %v952_v20 = vmul.f32 %v5422_v5, %v940_v63  ;;  %vm7187_vm9 = vcmp.ge.s32.totalorder %v5427_v49, 0  ;;  %vm711_vm7 = vcmp.lt.s32.totalorder %v5858_v22, 8 }
 0x2d2   : > { %v1080_v39 = vsel %vm7187_vm9, %v5816_v23, 0.0  ;;  %v1003_v6 = vmul.f32 %v5463_v48, %v5769_v35  ;;  %v1261_v47 = vadd.f32 %v1253_v54, %v1233_v28  ;;  %v1040_v62 = vadd.f32 %v1032_v38, %v1010_v7 }
 0x2d3   : > { %v1062_v60 = vmul.f32 %v7157_v27, %v1050_v26  ;;  %v960_v44 = vadd.f32 %v952_v20, %v929_v18  ;;  %v983_v56 = vmul.f32 %v5449_v16, %v971_v15  ;;  %vm7188_vm6 = vcmp.ge.s32.totalorder %v5439_v21, 0 }
 0x2d4   : > { %v1110_v30 = vsel %vm7188_vm6, %v820_v43, 0.0  ;;  %v667_v63 = vsel %vm610_vm10, %v651_v41, 0.0  ;;  %v1280_v50 = vadd.f32 %v1273_v8, %v1261_v47  ;;  %v1092_v59 = vmul.f32 %v7164_v36, %v1080_v39 }
 0x2d5   : > { %v1070_v52 = vadd.f32 %v1062_v60, %v1040_v62  ;;  %v991_v51 = vadd.f32 %v983_v56, %v960_v44  ;;  %v586_v28 = vadd.f32 %v5797_v1, %v5793_v55  ;;  %v679_v7 = vmul.f32 %v5248_v40, %v667_v63  ;;  %v7189_v62 = vld [vmem:[#allocation32_spill] sm:$0xff]  ;;  %v1557_v60 = vpop.xlane.xlu1 %1556  ;;  %v7190_v44 = vld [vmem:[#allocation58_spill] sm:$0xff] }
 0x2d6   : > { %v768_v26 = vsel %vm711_vm7, %v5809_v53, 0.0  ;;  %v1122_v15 = vmul.f32 %v5504_v17, %v1110_v30  ;;  %v1142_v41 = vmul.f32 %v5467_v61, %v5769_v35  ;;  %v798_v8 = vsel %vm7066_vm12, %v5816_v23, 0.0  ;;  %v7192_v63 = vld [vmem:[#allocation62_spill] sm:$0xff] }
 0x2d7   : > { %v1100_v54 = vadd.f32 %v1092_v59, %v1070_v52  ;;  %v5913_v56 = vadd.f32 %v1003_v6, %v991_v51  ;;  %v687_v38 = vadd.f32 %v679_v7, %v586_v28  ;;  %v780_v55 = vmul.f32 %v5275_v10, %v768_v26  ;;  %v7193_v28 = vld [vmem:[#allocation48_spill] sm:$0xff] }
 0x2d8   : > { %v828_v18 = vsel %vm7065_vm15, %v820_v43, 0.0  ;;  %v810_v59 = vmul.f32 %v5303_v29, %v798_v8  ;;  %v860_v39 = vmul.f32 %v5347_v4, %v5769_v35  ;;  %4748 = vrcp.f32 %v7190_v44  ;;  %v7191_v43 = vld [vmem:[#allocation61_spill] sm:$0xff] }
 0x2d9   : > { %v1130_v1 = vadd.f32 %v1122_v15, %v1100_v54  ;;  %v788_v53 = vadd.f32 %v780_v55, %v687_v38  ;;  %v840_v23 = vmul.f32 %v7189_v62, %v828_v18  ;;  %v1563_v30 = vpop.xlane.xlu1 %1562  ;;  %4750 = vrcp.f32 %v1557_v60 }
 0x2da   : > { %4752 = vrcp.f32 %v7191_v43  ;;  %vm7195_vm9 = vcmask 1046528   ;;  %v7198_v44 = vrot.slane %v5769_v35, 2  ;;  %vm7199_vm5 = vcmask 1045504  }
 0x2db   : > { %v5919_v20 = vadd.f32 %v1142_v41, %v1130_v1  ;;  %v818_v47 = vadd.f32 %v810_v59, %v788_v53  ;;  %4754 = vrcp.f32 %v7192_v63  ;;  %v7194_v1 = vrot.slane %v5769_v35, 1 }
 0x2dc   : > { %4756 = vrcp.f32 %v1563_v30  ;;  %v7196_v53 = vrot.slane %v5769_v35, 6  ;;  %vm7212_vm11 = vcmp.lt.s32.totalorder %v5534_v3, 8  ;;  %vm7213_vm6 = vcmp.ge.s32.totalorder %v5427_v49, 0 }
 0x2dd   : > { %v848_v51 = vadd.f32 %v840_v23, %v818_v47  ;;  %4758 = vrcp.f32 %v7193_v28  ;;  %v4644_v23 = vunpack.i.h.bf16 %v5845_v37 }
 0x2df   : > { %v5924_v6 = vadd.f32 %v860_v39, %v848_v51  ;;  %v7197_v39 = vrot.slane %v5769_v35, 7  ;;  %v4643_v51 = vunpack.i.l.bf16 %v5845_v37 }
 0x2e2   : > { %v4749_v41 = vpop.eup %4748 }
 0x2e3   : > { %v4751_v55 = vpop.eup %4750 }
 0x2e4   : > { %v4753_v63 = vpop.eup %4752 }
 0x2f0   : > { %v1569_v52 = vpop.xlane.xlu1 %1568 }
 0x2f1   : > { %4760 = vrcp.f32 %v1569_v52 }
 0x2f4   : > { %v5930_v7 = vpop.permute.xlu1 %256 }
 0x2f5   : > { %v7039_v26 = vrot.slane %v5930_v7, 1  ;;  %v7037_v54 = vrot.slane %v5930_v7, 6  ;;  %v7036_v15 = vrot.slane %v5930_v7, 7  ;;  %v4398_v8 = vpack.c.bf16 %v5930_v7, %v5769_v35 }
 0x2f6   : > { %v7038_v38 = vrot.slane %v5930_v7, 2 }
 0x2f7   : > { %v5943_v18 = vsel %vm7195_vm9, %v7194_v1, %v7039_v26  ;;  %v932_v59 = vsel %vm420_vm3, %v7196_v53, %v7037_v54  ;;  %v5955_v47 = vsel %vm518_vm4, %v7197_v39, %v7036_v15  ;;  %4399 = vmatprep.subr.bf16.mxu1 %v4398_v8  ;;  %v4755_v39 = vpop.eup %4754  ;;  %v7201_v15 = vld [vmem:[#allocation4_spill] sm:$0xff]  ;;  %v7202_v54 = vld [vmem:[#allocation7_spill] sm:$0xff] }
 0x2f8   : > { %v4637_v60 = vpop.permute.xlu1 %4636  ;;  %v5964_v30 = vsel %vm7199_vm5, %v7198_v44, %v7038_v38  ;;  %v1288_v43 = vsel %vm607_vm13, %v5943_v18, 0.0  ;;  %4401 = vmatpush3.bf16.msra.mxu1 %v4398_v8  ;;  %v1582_v35 = vmul.f32 %v4749_v41, %v7201_v15  ;;  %v1583_v44 = vmul.f32 %v4751_v55, %v7202_v54  ;;  %v4757_v38 = vpop.eup %4756 }
 0x2f9   : > { %v4639_v52 = vunpack.i.h.bf16 %v4637_v60  ;;  %v4638_v28 = vunpack.i.l.bf16 %v4637_v60  ;;  %v1299_v1 = vmul.f32 %v5773_v13, %v1288_v43  ;;  %v1315_v53 = vsel %vm708_vm14, %v5964_v30, 0.0  ;;  %v4759_v60 = vpop.eup %4758  ;;  %v5986_v41 = vpop.permute.xlu0 %2536 }
 0x2fa   : > { %v1326_v14 = vmul.f32 %v5837_v57, %v1315_v53  ;;  %v1021_v8 = vsel %vm7061_vm8, %v5943_v18, 0.0  ;;  %v4891_v43 = vmov 0.0   ;;  %v4462_v54 = vpack.c.bf16 %v4644_v23, %v4643_v51  ;;  %v7207_v53 = vld [vmem:[#allocation10_spill] sm:$0xff]  ;;  %v7208_v23 = vld [vmem:[#allocation11_spill] sm:$0xff] }
 0x2fb   : > { %v4456_v26 = vpack.c.bf16 %v4639_v52, %v4638_v28  ;;  %v1307_v4 = vadd.f32 %v1299_v1, %v1280_v50  ;;  %4107 = vmatmul.mubr.msk.f32.vlgmr.msra.gmra.mrb[0].mxu1 %vm7059_vm2, %v1582_v35  ;;  %v5980_v37 = vrot.slane %v4891_v43, 6  ;;  %v5982_v62 = vrot.slane %v4891_v43, 7  ;;  %v7205_v50 = vld [vmem:[#allocation5_spill] sm:$0xff] }
 0x2fc   : > { %v5984_v15 = vrot.slane %v4891_v43, 1  ;;  %4109 = vmatprep.mubr.msk.f32.mxu1 %vm7059_vm2, %v1583_v44  ;;  %v1584_v55 = vmul.f32 %v4753_v63, %v7205_v50  ;;  %v5992_v52 = vrot.slane %v4891_v43, 2  ;;  %v4647_v1 = vpop.permute.xlu1 %4646  ;;  %v1585_v35 = vmul.f32 %v4757_v38, %v7207_v53 }
 0x2fd   : > { %7203 = vst [vmem:[#allocation58_spill] sm:$0xff] %v5980_v37  ;;  %7204 = vst [vmem:[#allocation61_spill] sm:$0xff] %v5982_v62  ;;  %4458 = vmatprep.subr.msk.bf16.mxu0 %vm4999_vm1, %v4456_v26  ;;  %v5994_v28 = vadd.f32 %v1326_v14, %v1307_v4  ;;  %v1586_v51 = vmul.f32 %v4755_v39, %v7208_v23  ;;  %v1033_v29 = vmul.f32 %v5472_v24, %v1021_v8  ;;  %v7209_v4 = vld [vmem:[#allocation12_spill] sm:$0xff]  ;;  %v4761_v39 = vpop.eup %4760 }
 0x2fe   : > { %4461 = vmatpush3.bf16.xpose.msk.msra.mxu0 %vm4999_vm1, %v4456_v26  ;;  %v1158_v44 = vsel %vm608_vm0, %v5943_v18, 0.0  ;;  %v1143_v63 = vmul.f32 %v5467_v61, %v5930_v7  ;;  %v1588_v14 = vmul.f32 %v4759_v60, %v7209_v4  ;;  %vm7210_vm13 = vcmp.lt.s32.totalorder %v5598_v2, 8 }
 0x2ff   : > { %7206 = vst [vmem:[#allocation62_spill] sm:$0xff] %v5994_v28  ;;  %4464 = vmatprep.subr.msk.bf16.mxu0 %vm4999_vm1, %v4462_v54  ;;  %v1051_v26 = vsel %vm7210_vm13, %v5964_v30, 0.0  ;;  %v1170_v38 = vmul.f32 %v5511_v19, %v1158_v44  ;;  %4110 = vmatmul.mubr.msk.f32.gmra.mrb[2].mxu1 %vm7059_vm2, %v1584_v55  ;;  %v941_v8 = vsel %vm7066_vm12, %v932_v59, 0.0  ;;  %vm7211_vm14 = vcmp.ge.s32.totalorder %v5519_v33, 0 }
 0x300   : > { %v1081_v43 = vsel %vm7211_vm14, %v932_v59, 0.0  ;;  %v1186_v50 = vsel %vm7212_vm11, %v5964_v30, 0.0  ;;  %v1214_v60 = vsel %vm7213_vm6, %v932_v59, 0.0  ;;  %v4649_v53 = vunpack.i.h.bf16 %v4647_v1  ;;  %4112 = vmatprep.mubr.msk.f32.mxu1 %vm7059_vm2, %v1585_v35  ;;  %v7216_v35 = vld [vmem:[#allocation15_spill] sm:$0xff] }
 0x301   : > { %v4648_v23 = vunpack.i.l.bf16 %v4647_v1  ;;  %v1178_v44 = vadd.f32 %v1170_v38, %v5919_v20  ;;  %v1198_v55 = vmul.f32 %v5532_v46, %v1186_v50  ;;  %v7214_v4 = vrot.slane %v5930_v7, 1  ;;  %v6035_v1 = vpop.permute.xlu0 %2540 }
 0x302   : > { %v1063_v61 = vmul.f32 %v7157_v27, %v1051_v26  ;;  %vm7215_vm5 = vcmp.ge.s32.totalorder %v5439_v21, 0  ;;  %v1041_v59 = vadd.f32 %v1033_v29, %v5913_v56  ;;  %v1587_v10 = vmul.f32 %v4761_v39, %v7216_v35 }
 0x303   : > { %v1013_v28 = vsel %vm7195_vm9, %v7214_v4, %v5984_v15  ;;  %v1242_v49 = vsel %vm7215_vm5, %v5955_v47, 0.0  ;;  %vm7217_vm13 = vcmp.ge.s32.totalorder %v7158_v42, 0  ;;  %v1206_v38 = vadd.f32 %v1198_v55, %v1178_v44  ;;  %4113 = vmatmul.mubr.msk.f32.gmra.mrb[4].mxu1 %vm7059_vm2, %v1586_v51 }
 0x304   : > { %v1111_v20 = vsel %vm7217_vm13, %v5955_v47, 0.0  ;;  %v1226_v50 = vmul.f32 %v7156_v31, %v1214_v60  ;;  %v953_v26 = vmul.f32 %v5422_v5, %v941_v8  ;;  %v1093_v21 = vmul.f32 %v7164_v36, %v1081_v43  ;;  %4115 = vmatprep.mubr.msk.f32.mxu1 %vm7059_vm2, %v1587_v10  ;;  %vm7226_vm9 = vmmov %vm7217_vm13 }
 0x305   : > { %v1274_v29 = vmul.f32 %v5745_v9, %v5930_v7  ;;  %v1071_v56 = vadd.f32 %v1063_v61, %v1041_v59  ;;  %v4468_v4 = vpack.c.bf16 %v4649_v53, %v4648_v23  ;;  %v7218_v39 = vrot.slane %v5930_v7, 2 }
 0x306   : > { %vm7219_vm14 = vcmask 1045504   ;;  %v1234_v55 = vadd.f32 %v1226_v50, %v1206_v38  ;;  %v1254_v60 = vmul.f32 %v5720_v25, %v1242_v49  ;;  %4467 = vmatpush3.bf16.xpose.msk.msra.mxu0 %vm4999_vm1, %v4462_v54  ;;  %v1123_v51 = vmul.f32 %v5504_v17, %v1111_v20  ;;  %v2545_v20 = vpop.permute.xlu0 %2544 }
 0x307   : > { %v1043_v44 = vsel %vm7219_vm14, %v7218_v39, %v5992_v52  ;;  %v1289_v8 = vsel %vm608_vm0, %v1013_v28, 0.0  ;;  %v1101_v61 = vadd.f32 %v1093_v21, %v1071_v56  ;;  %v879_v10 = vsel %vm610_vm10, %v5943_v18, 0.0  ;;  %4470 = vmatprep.subr.msk.bf16.mxu0 %vm4999_vm1, %v4468_v4  ;;  %4116 = vmatmul.mubr.msk.f32.gmra.mrb[6].mxu1 %vm7059_vm2, %v1588_v14  ;;  %v7222_v21 = vld [vmem:[#allocation40_spill] sm:$0xff] }
 0x308   : > { %v1159_v43 = vsel %vm7061_vm8, %v1013_v28, 0.0  ;;  %v1262_v53 = vadd.f32 %v1254_v60, %v1234_v55  ;;  %v891_v23 = vmul.f32 %v5388_v58, %v879_v10  ;;  %v910_v54 = vsel %vm711_vm7, %v5964_v30, 0.0 }
 0x309   : > { %vm7220_vm0 = vcmp.lt.s32.totalorder %v5598_v2, 8  ;;  %v1316_v18 = vsel %vm7212_vm11, %v1043_v44, 0.0  ;;  %v7221_v49 = vrot.slane %v5930_v7, 6  ;;  %v1131_v35 = vadd.f32 %v1123_v51, %v1101_v61  ;;  %v7263_v2 = vld [vmem:[#allocation6_spill] sm:$0xff] }
 0x30a   : > { %v1187_v12 = vsel %vm7220_vm0, %v1043_v44, 0.0  ;;  %v1281_v38 = vadd.f32 %v1274_v29, %v1262_v53  ;;  %v1300_v50 = vmul.f32 %v5773_v13, %v1289_v8  ;;  %v899_v30 = vadd.f32 %v891_v23, %v5924_v6 }
 0x30b   : > { %v1073_v59 = vsel %vm420_vm3, %v7221_v49, %v5980_v37  ;;  %v922_v14 = vmul.f32 %v7222_v21, %v910_v54  ;;  %v972_v56 = vsel %vm7065_vm15, %v5955_v47, 0.0  ;;  %v1171_v3 = vmul.f32 %v5511_v19, %v1159_v43  ;;  %v7227_v49 = vld [vmem:[#allocation23_spill] sm:$0xff] }
 0x30c   : > { %v7223_v39 = vrot.slane %v5930_v7, 7  ;;  %v1151_v60 = vadd.f32 %v1143_v63, %v1131_v35  ;;  %v1308_v51 = vadd.f32 %v1300_v50, %v1281_v38  ;;  %v1327_v29 = vmul.f32 %v5837_v57, %v1316_v18  ;;  %v2156_v53 = vpop.xlane.xlu0 %2155  ;;  %v2535_v63 = vpop.permute.xlu1 %2534 }
 0x30d   : > { %vm7224_vm6 = vcmp.ge.s32.totalorder %v5519_v33, 0  ;;  %v930_v8 = vadd.f32 %v922_v14, %v899_v30  ;;  %v1199_v61 = vmul.f32 %v5532_v46, %v1187_v12  ;;  %v984_v47 = vmul.f32 %v5449_v16, %v972_v56 }
 0x30e   : > { %v1103_v55 = vsel %vm518_vm4, %v7223_v39, %v5982_v62  ;;  %v1215_v6 = vsel %vm7224_vm6, %v1073_v59, 0.0  ;;  %v1179_v10 = vadd.f32 %v1171_v3, %v1151_v60  ;;  %v6094_v43 = vadd.f32 %v1327_v29, %v1308_v51  ;;  %4473 = vmatpush3.bf16.xpose.msk.msra.mxu0 %vm4999_vm1, %v4468_v4  ;;  %v7228_v3 = vld [vmem:[#allocation26_spill] sm:$0xff] }
 0x30f   : > { %v1243_v23 = vsel %vm7226_vm9, %v1103_v55, 0.0  ;;  %v961_v54 = vadd.f32 %v953_v26, %v930_v8  ;;  %v2178_v35 = vsub.f32 %v7227_v49, %v2156_v53  ;;  %v1227_v57 = vmul.f32 %v7156_v31, %v1215_v6 }
 0x310   : > { %7225 = vst [vmem:[#allocation48_spill] sm:$0xff] %v6094_v43  ;;  %v1207_v33 = vadd.f32 %v1199_v61, %v1179_v10  ;;  %v1022_v12 = vsel %vm610_vm10, %v1013_v28, 0.0  ;;  %v1004_v18 = vmul.f32 %v5463_v48, %v5930_v7  ;;  %v1255_v26 = vmul.f32 %v5720_v25, %v1243_v23  ;;  %v2162_v14 = vpop.xlane.xlu0 %2161  ;;  %v2539_v29 = vpop.permute.xlu1 %2538 }
 0x311   : > { %v992_v38 = vadd.f32 %v984_v47, %v961_v54  ;;  %v2186_v50 = vmul.f32 1.442695, %v2178_v35  ;;  %v1052_v30 = vsel %vm711_vm7, %v1043_v44, 0.0  ;;  %v1034_v4 = vmul.f32 %v5472_v24, %v1022_v12  ;;  %v7239_v35 = vld [vmem:[#allocation30_spill] sm:$0xff] }
 0x312   : > { %v1235_v42 = vadd.f32 %v1227_v57, %v1207_v33  ;;  %v2180_v39 = vsub.f32 %v7228_v3, %v2162_v14  ;;  %v1082_v28 = vsel %vm7066_vm12, %v1073_v59, 0.0  ;;  %v1064_v51 = vmul.f32 %v7157_v27, %v1052_v30  ;;  %v7240_v12 = vld [vmem:[#allocation50_spill] sm:$0xff]  ;;  %v7242_v14 = vld [vmem:[#allocation51_spill] sm:$0xff]  ;;  %v7243_v3 = vld [vmem:[#allocation36_spill] sm:$0xff] }
 0x313   : > { %v1012_v56 = vadd.f32 %v1004_v18, %v992_v38  ;;  %4762 = vpow2.f32 %v2186_v50  ;;  %v1112_v44 = vsel %vm7065_vm15, %v1103_v55, 0.0  ;;  %vm7230_vm5 = vcmask 64512   ;;  %v7241_v50 = vld [vmem:[#allocation33_spill] sm:$0xff] }
 0x314   : > { %v6113_v60 = vadd.f32 %v1255_v26, %v1235_v42  ;;  %v2190_v6 = vmul.f32 1.442695, %v2180_v39  ;;  %v1094_v8 = vmul.f32 %v7164_v36, %v1082_v28  ;;  %vm7231_vm13 = vmmov %vm7230_vm5  ;;  %v1124_v59 = vmul.f32 %v5504_v17, %v1112_v44  ;;  %v2543_v47 = vpop.permute.xlu1 %2542 }
 0x315   : > { %v1042_v7 = vadd.f32 %v1034_v4, %v1012_v56  ;;  %4239 = vmatmul.mubr.msk.f32.vlgmr.msra.gmra.mrb[16].mxu0 %vm7230_vm5, %v2535_v63  ;;  %vm7232_vm14 = vmmov %vm7230_vm5  ;;  %vm7266_vm12 = vcmask 1045504   ;;  %v7268_v45 = vrot.slane %v7263_v2, 2 }
 0x316   : > { %7229 = vst [vmem:[#allocation38_spill] sm:$0xff] %v6113_v60  ;;  %4764 = vpow2.f32 %v2190_v6  ;;  %4241 = vmatprep.mubr.msk.f32.mxu0 %vm7231_vm13, %v5986_v41  ;;  %vm7233_vm0 = vmmov %vm7230_vm5  ;;  %v7264_v60 = vrot.slane %v7263_v2, 1 }
 0x317   : > { %v1072_v61 = vadd.f32 %v1064_v51, %v1042_v7  ;;  %vm7235_vm11 = vmmov %vm7233_vm0 }
 0x318   : > { %vm7236_vm6 = vmmov %vm7233_vm0  ;;  %v2547_v54 = vpop.permute.xlu1 %2546 }
 0x319   : > { %v1102_v10 = vadd.f32 %v1094_v8, %v1072_v61  ;;  %4242 = vmatmul.mubr.msk.f32.gmra.mrb[18].mxu0 %vm7232_vm14, %v2539_v29  ;;  %vm7238_vm9 = vmmov %vm7233_vm0  ;;  %v7244_v29 = vld [vmem:[#allocation56_spill] sm:$0xff] }
 0x31a   : > { %4244 = vmatprep.mubr.msk.f32.mxu0 %vm7233_vm0, %v6035_v1  ;;  %v2165_v1 = vpop.xlane.xlu0 %2164 }
 0x31b   : > { %v6124_v53 = vadd.f32 %v1124_v59, %v1102_v10  ;;  %v2181_v33 = vsub.f32 %v7239_v35, %v2165_v1  ;;  %v226_v10 = vld [vmem:[%s6922_s2] sm:$0xff] }
 0x31c   : > { %4118 = vmatprep.subr.mxu1 %v226_v10 }
 0x31d   : > { %v6128_v55 = vpop.eup %4762  ;;  %4245 = vmatmul.mubr.msk.f32.gmra.mrb[20].mxu0 %vm7235_vm11, %v2543_v47  ;;  %v2192_v38 = vmul.f32 1.442695, %v2181_v33  ;;  %v6157_v47 = vld [vmem:[%s6922_s2 + $0x8] sm:$0xff]  ;;  %4119 = vmatpush3.msra.mxu1 %v226_v10 }
 0x31e   : > { %7234 = vst [vmem:[#allocation4_spill] sm:$0xff] %v6128_v55  ;;  %v2202_v23 = vsel %vm7059_vm2, %v6128_v55, 0.0  ;;  %4247 = vmatprep.mubr.msk.f32.mxu0 %vm7236_vm6, %v2545_v20  ;;  %v2171_v49 = vpop.xlane.xlu0 %2170  ;;  %7247 = vst [vmem:[#allocation11_spill] sm:$0xff] %v6157_v47 }
 0x31f   : > { %2203 = vadd.xlane.f32.xlu1 %v2202_v23  ;;  %v2183_v42 = vsub.f32 %v7241_v50, %v2171_v49  ;;  %v4861_v50 = vld [vmem:[%s4935_s20 + $0x28] sm:$0xff] }
 0x320   : > { %v6134_v41 = vpop.eup %4764 }
 0x321   : > { %7237 = vst [vmem:[#allocation7_spill] sm:$0xff] %v6134_v41  ;;  %v2208_v63 = vsel %vm7059_vm2, %v6134_v41, 0.0  ;;  %4248 = vmatmul.mubr.msk.f32.gmra.mrb[22].mxu0 %vm7238_vm9, %v2547_v54  ;;  %v2196_v4 = vmul.f32 1.442695, %v2183_v42  ;;  %v6162_v54 = vpack.c.bf16 %v6157_v47, %v226_v10 }
 0x322   : > { %v2177_v26 = vpop.xlane.xlu0 %2176 }
 0x323   : > { %2209 = vadd.xlane.f32.xlu1 %v2208_v63  ;;  %v2185_v39 = vsub.f32 %v7243_v3, %v2177_v26  ;;  %4403 = vmatprep.subr.bf16.mxu1 %v6162_v54  ;;  %v4863_v26 = vld [vmem:[%s4935_s20 + $0x38] sm:$0xff] }
 0x325   : > { %v2200_v51 = vmul.f32 1.442695, %v2185_v39  ;;  %v7253_v39 = vld [vmem:[#allocation14_spill] sm:$0xff] }
 0x33d   : > { %v2159_v57 = vpop.xlane.xlu1 %2158 }
 0x33e   : > { %v2179_v18 = vsub.f32 %v7240_v12, %v2159_v57 }
 0x340   : > { %v2188_v20 = vmul.f32 1.442695, %v2179_v18 }
 0x341   : > { %v2168_v30 = vpop.xlane.xlu1 %2167 }
 0x342   : > { %4766 = vpow2.f32 %v2188_v20  ;;  %v2182_v56 = vsub.f32 %v7242_v14, %v2168_v30  ;;  %v6188_v20 = vld [vmem:[%s4935_s20 + $0x30] sm:$0xff]  ;;  %v7252_v14 = vld [vmem:[#allocation45_spill] sm:$0xff] }
 0x343   : > { %4768 = vpow2.f32 %v2192_v38  ;;  %v6182_v38 = vld [vmem:[%s4935_s20 + $0x20] sm:$0xff]  ;;  %v4665_v30 = vpack.i.bf16 %v4863_v26, %v6188_v20 }
 0x344   : > { %v2194_v28 = vmul.f32 1.442695, %v2182_v56  ;;  %v4660_v42 = vpack.i.bf16 %v4861_v50, %v6182_v38  ;;  %v4864_v56 = vld [vmem:[%s4935_s20 + $0x10] sm:$0xff] }
 0x345   : > { %v2174_v7 = vpop.xlane.xlu1 %2173 }
 0x346   : > { %4770 = vpow2.f32 %v2194_v28  ;;  %v2184_v6 = vsub.f32 %v7244_v29, %v2174_v7  ;;  %v268_v28 = vadd.s32 8, %v7253_v39  ;;  %v279_v7 = vand.u32 7, %v7253_v39 }
 0x347   : > { %4772 = vpow2.f32 %v2196_v4  ;;  %v4865_v4 = vld [vmem:[%s4935_s20 + $0x18] sm:$0xff]  ;;  %v269_v29 = vadd.s32 16, %v7253_v39  ;;  %v7256_v39 = vld [vmem:[#allocation3_spill] sm:$0xff] }
 0x348   : > { %4774 = vpow2.f32 %v2200_v51  ;;  %v2198_v8 = vmul.f32 1.442695, %v2184_v6  ;;  %v4675_v3 = vpack.i.bf16 %v4865_v4, %v4864_v56  ;;  %v286_v51 = vand.u32 7, %v268_v28 }
 0x349   : > { %v6200_v6 = vadd.s32 4294967294, %v279_v7  ;;  %v638_v28 = vrot.slane %v7256_v39, 1  ;;  %v739_v47 = vrot.slane %v7256_v39, 2 }
 0x34a   : > { %4776 = vpow2.f32 %v2198_v8  ;;  %v6202_v8 = vadd.s32 4294967295, %v279_v7  ;;  %v6206_v10 = vadd.s32 4294967295, %v286_v51 }
 0x34b   : > { %vm379_vm5 = vcmp.ge.s32.totalorder %v6200_v6, 0 }
 0x34c   : > { %v6145_v44 = vpop.eup %4766  ;;  %vm478_vm13 = vcmp.ge.s32.totalorder %v6202_v8, 0  ;;  %vm479_vm0 = vcmp.ge.s32.totalorder %v6206_v10, 0  ;;  %v6509_v8 = vsel %vm610_vm10, %v5984_v15, 0.0  ;;  %vm7289_vm10 = vcmask 64512  }
 0x34d   : > { %7245 = vst [vmem:[#allocation5_spill] sm:$0xff] %v6145_v44  ;;  %v2205_v61 = vsel %vm7059_vm2, %v6145_v44, 0.0  ;;  %v6149_v59 = vpop.eup %4768 }
 0x34e   : > { %7246 = vst [vmem:[#allocation10_spill] sm:$0xff] %v6149_v59  ;;  %2206 = vadd.xlane.f32.xlu0 %v2205_v61  ;;  %v2211_v63 = vsel %vm7059_vm2, %v6149_v59, 0.0  ;;  %v6204_v61 = vadd.s32 4294967294, %v286_v51 }
 0x350   : > { %v6159_v23 = vpop.eup %4770  ;;  %vm380_vm14 = vcmp.ge.s32.totalorder %v6204_v61, 0  ;;  %v229_v61 = vld [vmem:[%s6922_s2 + $0x18] sm:$0xff] }
 0x351   : > { %7248 = vst [vmem:[#allocation12_spill] sm:$0xff] %v6159_v23  ;;  %v2214_v1 = vsel %vm7059_vm2, %v6159_v23, 0.0  ;;  %v6168_v49 = vpop.eup %4772  ;;  %v6251_v23 = vadd.s32 1, %v286_v51 }
 0x352   : > { %7249 = vst [vmem:[#allocation15_spill] sm:$0xff] %v6168_v49  ;;  %2212 = vadd.xlane.f32.xlu0 %v2211_v63  ;;  %2215 = vadd.xlane.f32.xlu1 %v2214_v1  ;;  %v2217_v35 = vsel %vm7059_vm2, %v6168_v49, 0.0  ;;  %v6173_v33 = vpop.eup %4774  ;;  %v7254_v63 = vld [vmem:[#allocation29_spill] sm:$0xff]  ;;  %v293_v1 = vand.u32 7, %v269_v29  ;;  %v7257_v29 = vld [vmem:[#allocation18_spill] sm:$0xff] }
 0x353   : > { %7250 = vst [vmem:[#allocation40_spill] sm:$0xff] %v6173_v33  ;;  %v2223_v57 = vsel %vm7059_vm2, %v6173_v33, 0.0  ;;  %v7258_v33 = vld [vmem:[#allocation19_spill] sm:$0xff] }
 0x354   : > { %v6177_v12 = vpop.eup %4776  ;;  %v6268_v32 = vadd.s32 1, %v293_v1 }
 0x355   : > { %7251 = vst [vmem:[#allocation23_spill] sm:$0xff] %v6177_v12  ;;  %v2220_v18 = vsel %vm7059_vm2, %v6177_v12, 0.0 }
 0x356   : > { %2218 = vadd.xlane.f32.xlu0 %v2217_v35  ;;  %v6218_v35 = vsel %vm379_vm5, %v5980_v37, 0.0 }
 0x35a   : > { %2224 = vadd.xlane.f32.xlu0 %v2223_v57  ;;  %v6223_v57 = vsel %vm478_vm13, %v5982_v62, 0.0 }
 0x35b   : > { %v552_v12 = vmul.f32 %v7258_v33, %v6223_v57 }
 0x35e   : > { %2221 = vadd.xlane.f32.xlu0 %v2220_v18  ;;  %v6225_v18 = vadd.s32 4294967294, %v293_v1 }
 0x360   : > { %vm381_vm11 = vcmp.ge.s32.totalorder %v6225_v18, 0 }
 0x363   : > { %4661 = vrot.lane.b32.xlu1 %v4660_v42, %s4890_s7 }
 0x367   : > { %4666 = vrot.lane.b32.xlu1 %v4665_v30, %s4890_s7 }
 0x36b   : > { %4671 = vrot.lane.b32.xlu1 %v7252_v14, %s4892_s14  ;;  %v6231_v14 = vadd.s32 1, %v279_v7 }
 0x36d   : > { %vm603_vm9 = vcmp.lt.s32.totalorder %v6231_v14, 8 }
 0x36f   : > { %4676 = vrot.lane.b32.xlu1 %v4675_v3, %s4892_s14 }
 0x373   : > { %4686 = vrot.lane.b32.xlu1 %v4665_v30, %s4892_s14  ;;  %v7255_v30 = vld [vmem:[#allocation46_spill] sm:$0xff] }
 0x374   : > { %4656 = vrot.lane.b32.xlu0 %v4675_v3, %s4890_s7  ;;  %v541_v3 = vsel %vm479_vm0, %v5982_v62, 0.0  ;;  %s217_s7 = scalar_lea.vmem %s6924_s4, %s4929_s17 }
 0x375   : > { %v553_v41 = vmul.f32 %v7258_v33, %v541_v3 }
 0x377   : > { %3089 = vrot.lane.b32.xlu1 %v7254_v63, %s4893_s16  ;;  %v454_v63 = vmul.f32 %v7257_v29, %v6218_v35 }
 0x378   : > { %4681 = vrot.lane.b32.xlu0 %v4660_v42, %s4892_s14  ;;  %v6227_v42 = vadd.s32 4294967295, %v293_v1 }
 0x379   : > { %v560_v55 = vadd.f32 %v552_v12, %v454_v63  ;;  %v660_v12 = vsel %vm603_vm9, %v5984_v15, 0.0  ;;  %v6284_v63 = vadd.s32 2, %v286_v51 }
 0x37a   : > { %vm480_vm6 = vcmp.ge.s32.totalorder %v6227_v42, 0 }
 0x37b   : > { %3093 = vrot.lane.b32.xlu1 %v4865_v4, %s4893_s16  ;;  %v443_v4 = vsel %vm380_vm14, %v5980_v37, 0.0  ;;  %vm705_vm15 = vcmp.lt.s32.totalorder %v6284_v63, 8 }
 0x37c   : > { %3087 = vrot.lane.b32.xlu0 %v7255_v30, %s4893_s16  ;;  %v7259_v30 = vrot.slane %v7256_v39, 7  ;;  %v455_v59 = vmul.f32 %v7257_v29, %v443_v4 }
 0x37e   : > { %v6249_v49 = vsel %vm518_vm4, %v5982_v62, %v7259_v30  ;;  %v7260_v30 = vrot.slane %v7256_v39, 6  ;;  %vm604_vm4 = vcmp.lt.s32.totalorder %v6251_v23, 8 }
 0x37f   : > { %3097 = vrot.lane.b32.xlu1 %v4861_v50, %s4893_s16  ;;  %v6259_v50 = vadd.s32 2, %v279_v7  ;;  %v542_v7 = vsel %vm480_vm6, %v6249_v49, 0.0 }
 0x380   : > { %3091 = vrot.lane.b32.xlu0 %v4864_v56, %s4893_s16  ;;  %v6266_v44 = vsel %vm420_vm3, %v5980_v37, %v7260_v30  ;;  %v7261_v56 = vld [vmem:[#allocation20_spill] sm:$0xff]  ;;  %vm7262_vm3 = vcmask 1046528   ;;  %v561_v30 = vadd.f32 %v553_v41, %v455_v59  ;;  %v554_v0 = vmul.f32 %v7258_v33, %v542_v7 }
 0x381   : > { %v572_v43 = vmul.f32 0.0, %v7261_v56  ;;  %v444_v4 = vsel %vm381_vm11, %v6266_v44, 0.0  ;;  %v639_v3 = vsel %vm7262_vm3, %v5984_v15, %v638_v28  ;;  %vm704_vm2 = vcmp.lt.s32.totalorder %v6259_v50, 8  ;;  %vm7265_vm8 = vmmov %vm7262_vm3 }
 0x382   : > { %v456_v11 = vmul.f32 %v7257_v29, %v444_v4  ;;  %vm605_vm3 = vcmp.lt.s32.totalorder %v6268_v32, 8  ;;  %v661_v51 = vsel %vm604_vm4, %v639_v3, 0.0  ;;  %v740_v41 = vsel %vm7266_vm12, %v5992_v52, %v739_v47 }
 0x383   : > { %3101 = vrot.lane.b32.xlu1 %v4863_v26, %s4893_s16  ;;  %v6292_v26 = vsel %vm7265_vm8, %v638_v28, %v7264_v60  ;;  %v579_v62 = vadd.f32 %v572_v43, %v560_v55  ;;  %v761_v60 = vsel %vm704_vm2, %v5992_v52, 0.0  ;;  %v6306_v59 = vadd.s32 2, %v293_v1  ;;  %v7267_v1 = vld [vmem:[#allocation25_spill] sm:$0xff]  ;;  %vm7269_vm8 = vmmov %vm7266_vm12 }
 0x384   : > { %3095 = vrot.lane.b32.xlu0 %v6182_v38, %s4893_s16  ;;  %v672_v38 = vmul.f32 %v5248_v40, %v660_v12  ;;  %v662_v55 = vsel %vm605_vm3, %v6292_v26, 0.0  ;;  %v573_v33 = vmul.f32 %v7261_v56, %v7256_v39  ;;  %v580_v28 = vadd.f32 %v572_v43, %v561_v30 }
 0x385   : > { %v673_v29 = vmul.f32 %v5248_v40, %v661_v51  ;;  %v562_v4 = vadd.f32 %v554_v0, %v456_v11  ;;  %v762_v12 = vsel %vm705_vm15, %v740_v41, 0.0  ;;  %v773_v13 = vmul.f32 %v7267_v1, %v761_v60 }
 0x386   : > { %v680_v7 = vadd.f32 %v672_v38, %v579_v62  ;;  %v674_v37 = vmul.f32 %v5248_v40, %v662_v55  ;;  %vm706_vm12 = vcmp.lt.s32.totalorder %v6306_v59, 8  ;;  %v774_v43 = vmul.f32 %v7267_v1, %v762_v12  ;;  %v7270_v62 = vld [vmem:[#allocation28_spill] sm:$0xff] }
 0x387   : > { %v681_v56 = vadd.f32 %v673_v29, %v580_v28  ;;  %v581_v30 = vadd.f32 %v573_v33, %v562_v4  ;;  %v792_v11 = vsel %vm380_vm14, %v6266_v44, 0.0  ;;  %v803_v51 = vmul.f32 %v7270_v62, %v6218_v35  ;;  %v7271_v33 = vld [vmem:[#allocation32_spill] sm:$0xff] }
 0x388   : > { %3099 = vrot.lane.b32.xlu0 %v6188_v20, %s4893_s16  ;;  %v6322_v20 = vsel %vm7269_vm8, %v739_v47, %v7268_v45  ;;  %v781_v0 = vadd.f32 %v773_v13, %v680_v7  ;;  %v804_v38 = vmul.f32 %v7270_v62, %v792_v11  ;;  %v822_v13 = vsel %vm479_vm0, %v6249_v49, 0.0  ;;  %v7272_v29 = vld [vmem:[#allocation16_spill] sm:$0xff] }
 0x389   : > { %v763_v45 = vsel %vm706_vm12, %v6322_v20, 0.0  ;;  %v682_v47 = vadd.f32 %v674_v37, %v581_v30  ;;  %v782_v40 = vadd.f32 %v774_v43, %v681_v56  ;;  %v833_v28 = vmul.f32 %v7271_v33, %v6223_v57  ;;  %v7274_v30 = vld [vmem:[#allocation17_spill] sm:$0xff] }
 0x38a   : > { %v775_v60 = vmul.f32 %v7267_v1, %v763_v45  ;;  %v811_v55 = vadd.f32 %v803_v51, %v781_v0  ;;  %v793_v35 = vsel %vm381_vm11, %v7272_v29, 0.0  ;;  %v834_v37 = vmul.f32 %v7271_v33, %v822_v13  ;;  %v7273_v1 = vld [vmem:[#allocation34_spill] sm:$0xff] }
 0x38b   : > { %v812_v7 = vadd.f32 %v804_v38, %v782_v40  ;;  %v805_v12 = vmul.f32 %v7270_v62, %v793_v35  ;;  %v853_v43 = vmul.f32 0.0, %v7273_v1  ;;  %v823_v0 = vsel %vm480_vm6, %v7274_v30, 0.0 }
 0x38c   : > { %v783_v4 = vadd.f32 %v775_v60, %v682_v47  ;;  %v841_v56 = vadd.f32 %v833_v28, %v811_v55  ;;  %v872_v57 = vsel %vm603_vm9, %v639_v3, 0.0  ;;  %v873_v51 = vsel %vm604_vm4, %v6292_v26, 0.0 }
 0x38d   : > { %v854_v45 = vmul.f32 %v7273_v1, %v7256_v39  ;;  %v842_v47 = vadd.f32 %v834_v37, %v812_v7  ;;  %v835_v62 = vmul.f32 %v7271_v33, %v823_v0  ;;  %v855_v38 = vmul.f32 %v7273_v1, %v7263_v2 }
 0x38e   : > { %v813_v11 = vadd.f32 %v805_v12, %v783_v4  ;;  %v861_v40 = vadd.f32 %v853_v43, %v841_v56  ;;  %v884_v60 = vmul.f32 %v5388_v58, %v872_v57  ;;  %v885_v55 = vmul.f32 %v5388_v58, %v873_v51  ;;  %v7275_v4 = vld [vmem:[#allocation21_spill] sm:$0xff] }
 0x38f   : > { %v903_v3 = vsel %vm704_vm2, %v740_v41, 0.0  ;;  %v862_v28 = vadd.f32 %v854_v45, %v842_v47  ;;  %v904_v35 = vsel %vm705_vm15, %v6322_v20, 0.0  ;;  %v874_v33 = vsel %vm605_vm3, %v7275_v4, 0.0 }
 0x390   : > { %v843_v13 = vadd.f32 %v835_v62, %v813_v11  ;;  %v892_v7 = vadd.f32 %v884_v60, %v861_v40  ;;  %v915_v12 = vmul.f32 %v7222_v21, %v903_v3  ;;  %v934_v1 = vsel %vm379_vm5, %v6266_v44, 0.0  ;;  %v7276_v11 = vld [vmem:[#allocation22_spill] sm:$0xff]  ;;  %v7277_v60 = vld [vmem:[#allocation24_spill] sm:$0xff] }
 0x391   : > { %v893_v37 = vadd.f32 %v885_v55, %v862_v28  ;;  %v916_v41 = vmul.f32 %v7222_v21, %v904_v35  ;;  %v886_v43 = vmul.f32 %v5388_v58, %v874_v33  ;;  %v935_v0 = vsel %vm380_vm14, %v7272_v29, 0.0 }
 0x392   : > { %v863_v56 = vadd.f32 %v855_v38, %v843_v13  ;;  %v905_v57 = vsel %vm706_vm12, %v7276_v11, 0.0  ;;  %v923_v51 = vadd.f32 %v915_v12, %v892_v7  ;;  %v946_v47 = vmul.f32 %v5422_v5, %v934_v1 }
 0x393   : > { %v924_v45 = vadd.f32 %v916_v41, %v893_v37  ;;  %v965_v44 = vsel %vm478_vm13, %v6249_v49, 0.0  ;;  %v947_v40 = vmul.f32 %v5422_v5, %v935_v0  ;;  %v917_v58 = vmul.f32 %v7222_v21, %v905_v57  ;;  %v7278_v37 = vld [vmem:[#allocation27_spill] sm:$0xff] }
 0x394   : > { %v894_v62 = vadd.f32 %v886_v43, %v863_v56  ;;  %v966_v38 = vsel %vm479_vm0, %v7274_v30, 0.0  ;;  %v936_v55 = vsel %vm381_vm11, %v7277_v60, 0.0  ;;  %v954_v13 = vadd.f32 %v946_v47, %v923_v51 }
 0x395   : > { %v955_v3 = vadd.f32 %v947_v40, %v924_v45  ;;  %v977_v28 = vmul.f32 %v5449_v16, %v965_v44  ;;  %v978_v33 = vmul.f32 %v5449_v16, %v966_v38  ;;  %v948_v49 = vmul.f32 %v5422_v5, %v936_v55  ;;  %v7279_v44 = vld [vmem:[#allocation9_spill] sm:$0xff] }
 0x396   : > { %v925_v35 = vadd.f32 %v917_v58, %v894_v62  ;;  %v997_v21 = vmul.f32 %v5463_v48, %v7256_v39  ;;  %v1015_v7 = vsel %vm603_vm9, %v6292_v26, 0.0  ;;  %v967_v12 = vsel %vm480_vm6, %v7278_v37, 0.0  ;;  %v7280_v58 = vld [vmem:[#allocation35_spill] sm:$0xff] }
 0x397   : > { %v998_v56 = vmul.f32 %v5463_v48, %v7263_v2  ;;  %v985_v1 = vadd.f32 %v977_v28, %v954_v13  ;;  %v986_v41 = vadd.f32 %v978_v33, %v955_v3  ;;  %v1027_v0 = vmul.f32 %v5472_v24, %v1015_v7 }
 0x398   : > { %v956_v43 = vadd.f32 %v948_v49, %v925_v35  ;;  %v979_v5 = vmul.f32 %v5449_v16, %v967_v12  ;;  %v1016_v39 = vsel %vm604_vm4, %v7275_v4, 0.0  ;;  %v1045_v45 = vsel %vm704_vm2, %v6322_v20, 0.0  ;;  %v7281_v49 = vld [vmem:[#allocation37_spill] sm:$0xff] }
 0x399   : > { %v1005_v57 = vadd.f32 %v997_v21, %v985_v1  ;;  %v1006_v26 = vadd.f32 %v998_v56, %v986_v41  ;;  %v1028_v47 = vmul.f32 %v5472_v24, %v1016_v39  ;;  %v999_v40 = vmul.f32 %v5463_v48, %v7279_v44 }
 0x39a   : > { %v987_v51 = vadd.f32 %v979_v5, %v956_v43  ;;  %v1046_v16 = vsel %vm705_vm15, %v7276_v11, 0.0  ;;  %v1017_v38 = vsel %vm605_vm3, %v7280_v58, 0.0  ;;  %v1057_v13 = vmul.f32 %v7157_v27, %v1045_v45  ;;  %v7283_v45 = vld [vmem:[#allocation42_spill] sm:$0xff] }
 0x39b   : > { %v1035_v62 = vadd.f32 %v1027_v0, %v1005_v57  ;;  %v1036_v55 = vadd.f32 %v1028_v47, %v1006_v26  ;;  %v1075_v20 = vsel %vm379_vm5, %v7272_v29, 0.0  ;;  %v1058_v28 = vmul.f32 %v7157_v27, %v1046_v16  ;;  %v7282_v0 = vld [vmem:[#allocation39_spill] sm:$0xff] }
 0x39c   : > { %v1007_v3 = vadd.f32 %v999_v40, %v987_v51  ;;  %v1029_v48 = vmul.f32 %v5472_v24, %v1017_v38  ;;  %v1076_v33 = vsel %vm380_vm14, %v7277_v60, 0.0  ;;  %v1047_v21 = vsel %vm706_vm12, %v7281_v49, 0.0 }
 0x39d   : > { %v1065_v35 = vadd.f32 %v1057_v13, %v1035_v62  ;;  %v1066_v7 = vadd.f32 %v1058_v28, %v1036_v55  ;;  %v1087_v12 = vmul.f32 %v7164_v36, %v1075_v20  ;;  %v1105_v29 = vsel %vm478_vm13, %v7274_v30, 0.0  ;;  %v7284_v62 = vld [vmem:[#allocation41_spill] sm:$0xff] }
 0x39e   : > { %v1037_v56 = vadd.f32 %v1029_v48, %v1007_v3  ;;  %v1088_v1 = vmul.f32 %v7164_v36, %v1076_v33  ;;  %v1059_v24 = vmul.f32 %v7157_v27, %v1047_v21  ;;  %v1106_v43 = vsel %vm479_vm0, %v7278_v37, 0.0  ;;  %v7285_v48 = vld [vmem:[#allocation8_spill] sm:$0xff] }
 0x39f   : > { %v1095_v41 = vadd.f32 %v1087_v12, %v1065_v35  ;;  %v1077_v5 = vsel %vm381_vm11, %v7282_v0, 0.0  ;;  %v1117_v57 = vmul.f32 %v5504_v17, %v1105_v29  ;;  %v1118_v51 = vmul.f32 %v5504_v17, %v1106_v43  ;;  %v7286_v12 = vld [vmem:[#allocation44_spill] sm:$0xff] }
 0x3a0   : > { %v1096_v39 = vadd.f32 %v1088_v1, %v1066_v7  ;;  %v1067_v26 = vadd.f32 %v1059_v24, %v1037_v56  ;;  %v1137_v47 = vmul.f32 %v7283_v45, %v7263_v2  ;;  %v1089_v27 = vmul.f32 %v7164_v36, %v1077_v5 }
 0x3a1   : > { %v1125_v30 = vadd.f32 %v1117_v57, %v1095_v41  ;;  %v1107_v40 = vsel %vm480_vm6, %v7284_v62, 0.0  ;;  %v1153_v55 = vsel %vm603_vm9, %v7275_v4, 0.0  ;;  %v1138_v13 = vmul.f32 %v7283_v45, %v7279_v44  ;;  %v7287_v57 = vld [vmem:[#allocation47_spill] sm:$0xff] }
 0x3a2   : > { %v1126_v16 = vadd.f32 %v1118_v51, %v1096_v39  ;;  %v1097_v38 = vadd.f32 %v1089_v27, %v1067_v26  ;;  %v1119_v20 = vmul.f32 %v5504_v17, %v1107_v40  ;;  %v1154_v2 = vsel %vm604_vm4, %v7280_v58, 0.0  ;;  %v6499_v27 = vld [vmem:[%s6922_s2 + $0x10] sm:$0xff] }
 0x3a3   : > { %v1145_v3 = vadd.f32 %v1137_v47, %v1125_v30  ;;  %v1165_v28 = vmul.f32 %v5511_v19, %v1153_v55  ;;  %v1139_v33 = vmul.f32 %v7283_v45, %v7285_v48  ;;  %v1181_v4 = vsel %vm704_vm2, %v7276_v11, 0.0  ;;  %v4652_v55 = vpop.permute.xlu1 %4651 }
 0x3a4   : > { %v1146_v36 = vadd.f32 %v1138_v13, %v1126_v16  ;;  %v1127_v35 = vadd.f32 %v1119_v20, %v1097_v38  ;;  %v1166_v21 = vmul.f32 %v5511_v19, %v1154_v2  ;;  %v1182_v17 = vsel %vm705_vm15, %v7281_v49, 0.0 }
 0x3a5   : > { %v1173_v7 = vadd.f32 %v1165_v28, %v1145_v3  ;;  %v1155_v56 = vsel %vm605_vm3, %v7286_v12, 0.0  ;;  %v1193_v1 = vmul.f32 %v5532_v46, %v1181_v4  ;;  %v1209_v24 = vsel %vm379_vm5, %v7277_v60, 0.0  ;;  %vm7290_vm5 = vmmov %vm7289_vm10 }
 0x3a6   : > { %v1174_v29 = vadd.f32 %v1166_v21, %v1146_v36  ;;  %v1147_v41 = vadd.f32 %v1139_v33, %v1127_v35  ;;  %v1194_v11 = vmul.f32 %v5532_v46, %v1182_v17  ;;  %v1167_v5 = vmul.f32 %v5511_v19, %v1155_v56 }
 0x3a7   : > { %v1201_v43 = vadd.f32 %v1193_v1, %v1173_v7  ;;  %v1210_v39 = vsel %vm380_vm14, %v7282_v0, 0.0  ;;  %v1183_v26 = vsel %vm706_vm12, %v7287_v57, 0.0  ;;  %v1221_v30 = vmul.f32 %v7156_v31, %v1209_v24  ;;  %vm7296_vm14 = vmmov %vm7290_vm5 }
 0x3a8   : > { %v1202_v51 = vadd.f32 %v1194_v11, %v1174_v29  ;;  %v1175_v47 = vadd.f32 %v1167_v5, %v1147_v41  ;;  %v1237_v6 = vsel %vm478_vm13, %v7278_v37, 0.0  ;;  %v1144_v60 = vmul.f32 0.0, %v7283_v45  ;;  %v7288_v45 = vld [vmem:[#allocation49_spill] sm:$0xff]  ;;  %v7294_v5 = vld [vmem:[#allocation54_spill] sm:$0xff] }
 0x3a9   : > { %v1229_v0 = vadd.f32 %v1221_v30, %v1201_v43  ;;  %v1222_v40 = vmul.f32 %v7156_v31, %v1210_v39  ;;  %v1195_v16 = vmul.f32 %v5532_v46, %v1183_v26  ;;  %v1238_v37 = vsel %vm479_vm0, %v7284_v62, 0.0  ;;  %v7293_v43 = vld [vmem:[#allocation58_spill] sm:$0xff]  ;;  %vm7300_vm0 = vmmov %vm7290_vm5 }
 0x3aa   : > { %v1211_v38 = vsel %vm381_vm11, %v7288_v45, 0.0  ;;  %v1249_v3 = vmul.f32 %v5720_v25, %v1237_v6  ;;  %v4406_v28 = vpack.c.bf16 %v229_v61, %v6499_v27  ;;  %v1152_v34 = vadd.f32 %v1144_v60, %v6124_v53  ;;  %v7291_v53 = vld [vmem:[#allocation52_spill] sm:$0xff]  ;;  %v7301_v45 = vld [vmem:[#allocation61_spill] sm:$0xff] }
 0x3ab   : > { %v1230_v20 = vadd.f32 %v1222_v40, %v1202_v51  ;;  %v1203_v2 = vadd.f32 %v1195_v16, %v1175_v47  ;;  %v1172_v35 = vmul.f32 %v5511_v19, %v6509_v8  ;;  %v1250_v18 = vmul.f32 %v5720_v25, %v1238_v37  ;;  %v7298_v51 = vld [vmem:[#allocation43_spill] sm:$0xff] }
 0x3ac   : > { %v1257_v10 = vadd.f32 %v1249_v3, %v1229_v0  ;;  %v1223_v62 = vmul.f32 %v7156_v31, %v1211_v38  ;;  %v6528_v33 = vsel %vm711_vm7, %v5992_v52, 0.0  ;;  %v4654_v4 = vunpack.i.h.bf16 %v4652_v55  ;;  %v2204_v1 = vpop.xlane.xlu1 %2203  ;;  %vm7292_vm7 = vmmov %vm7290_vm5  ;;  %v7299_v0 = vld [vmem:[#allocation13_spill] sm:$0xff]  ;;  %v7302_v38 = vld [vmem:[#allocation60_spill] sm:$0xff] }
 0x3ad   : > { %v4653_v21 = vunpack.i.l.bf16 %v4652_v55  ;;  %v1239_v19 = vsel %vm480_vm6, %v7291_v53, 0.0  ;;  %v1269_v17 = vmul.f32 %v5745_v9, %v7279_v44  ;;  %v1258_v56 = vadd.f32 %v1250_v18, %v1230_v20 }
 0x3ae   : > { %v1270_v22 = vmul.f32 %v5745_v9, %v7285_v48  ;;  %v1231_v29 = vadd.f32 %v1223_v62, %v1203_v2  ;;  %v1284_v24 = vsel %vm603_vm9, %v7280_v58, 0.0  ;;  %v1180_v42 = vadd.f32 %v1172_v35, %v1152_v34  ;;  %v7297_v58 = vld [vmem:[#allocation57_spill] sm:$0xff]  ;;  %v7305_v34 = vld [vmem:[#allocation59_spill] sm:$0xff]  ;;  %vm7306_vm9 = vmmov %vm7300_vm0 }
 0x3af   : > { %v1276_v11 = vadd.f32 %v1269_v17, %v1257_v10  ;;  %v1251_v44 = vmul.f32 %v5720_v25, %v1239_v19  ;;  %vm7295_vm13 = vcmp.ge.s32.totalorder %v7294_v5, 0  ;;  %v4434_v39 = vpack.c.bf16 %v4654_v4, %v4653_v21  ;;  %v7314_v5 = vld [vmem:[#allocation62_spill] sm:$0xff] }
 0x3b0   : > { %v1216_v48 = vsel %vm7295_vm13, %v7293_v43, 0.0  ;;  %v1285_v14 = vsel %vm604_vm4, %v7286_v12, 0.0  ;;  %v1295_v30 = vmul.f32 %v7298_v51, %v1284_v24  ;;  %v1277_v47 = vadd.f32 %v1270_v22, %v1258_v56  ;;  %vm7307_vm4 = vmmov %vm7300_vm0  ;;  %v7310_v22 = vld [vmem:[#allocation38_spill] sm:$0xff]  ;;  %v7313_v43 = vld [vmem:[#allocation31_spill] sm:$0xff] }
 0x3b1   : > { %v1259_v6 = vadd.f32 %v1251_v44, %v1231_v29  ;;  %v1311_v61 = vsel %vm704_vm2, %v7281_v49, 0.0  ;;  %v1271_v23 = vmul.f32 %v5745_v9, %v7299_v0  ;;  %v1228_v40 = vmul.f32 %v7156_v31, %v1216_v48  ;;  %vm7304_vm2 = vmmov %vm7300_vm0  ;;  %v4866_v31 = vld [vmem:[%s6923_s3 + $0x18] ss:$0 sm:$0xff] }
 0x3b2   : > { %v1303_v32 = vadd.f32 %v1295_v30, %v1276_v11  ;;  %v1296_v16 = vmul.f32 %v7298_v51, %v1285_v14  ;;  %vm7303_vm11 = vcmp.ge.s32.totalorder %v7302_v38, 0  ;;  %v1322_v3 = vmul.f32 %v4866_v31, %v1311_v61  ;;  %v7315_v30 = vld [vmem:[#allocation48_spill] sm:$0xff] }
 0x3b3   : > { %v1244_v55 = vsel %vm7303_vm11, %v7301_v45, 0.0  ;;  %v1312_v2 = vsel %vm705_vm15, %v7287_v57, 0.0  ;;  %vm1847_vm6 = vcmask 261120   ;;  %v1313_v35 = vsel %vm706_vm12, %v7305_v34, 0.0  ;;  %v7308_v57 = vld [vmem:[#allocation53_spill] sm:$0xff] }
 0x3b4   : > { %v1304_v20 = vadd.f32 %v1296_v16, %v1277_v47  ;;  %v1256_v18 = vmul.f32 %v5720_v25, %v1244_v55  ;;  %v1330_v62 = vadd.f32 %v1322_v3, %v1303_v32  ;;  %v1275_v21 = vmul.f32 0.0, %v5745_v9  ;;  %v7318_v16 = vld [vmem:[#allocation4_spill] sm:$0xff] }
 0x3b5   : > { %v1323_v63 = vmul.f32 %v4866_v31, %v1312_v2  ;;  %vm7309_vm15 = vcmp.lt.s32.totalorder %v7308_v57, 8  ;;  %v1324_v25 = vmul.f32 %v4866_v31, %v1313_v35  ;;  %4778 = vrcp.f32 %v2204_v1 }
 0x3b6   : > { %v1290_v53 = vsel %vm7309_vm15, %v5984_v15, 0.0  ;;  %v1282_v9 = vadd.f32 %v1275_v21, %v7310_v22  ;;  %vm7316_vm8 = vcmask 523264  }
 0x3b7   : > { %v1301_v29 = vmul.f32 %v7298_v51, %v1290_v53  ;;  %vm7317_vm12 = vmmov %vm7316_vm8 }
 0x3b9   : > { %v1309_v11 = vadd.f32 %v1301_v29, %v1282_v9 }
 0x3ce   : > { %v4108_v13 = vpop.f32.mrb[0].mxu1 }
 0x3cf   : > { %v1679_v36 = vpop.f32.mrb[1].mxu1 }
 0x3d0   : > { %4120 = vmatprep.mubr.msk.f32.mxu1 %vm7289_vm10, %v1679_v36  ;;  %v1278_v36 = vadd.f32 %v1271_v23, %v1259_v6  ;;  %vm7319_vm10 = vmmov %vm7316_vm8 }
 0x3d1   : > { %4121 = vmatmul.mubr.msk.f32.vlgmr.msra.gmra.mrb[8].mxu1 %vm7290_vm5, %v4108_v13  ;;  %v6569_v13 = vpop.xlane.xlu1 %2209  ;;  %vm7321_vm5 = vmmov %vm7316_vm8 }
 0x3d2   : > { %4405 = vmatpush3.bf16.msra.mxu1 %v6162_v54  ;;  %v4111_v7 = vpop.f32.mrb[2].mxu1  ;;  %v1200_v54 = vmul.f32 %v5532_v46, %v6528_v33  ;;  %v1286_v46 = vsel %vm605_vm3, %v7297_v58, 0.0  ;;  %v1329_v58 = vmul.f32 %v4866_v31, %v6528_v33  ;;  %vm7323_vm13 = vmmov %vm7321_vm5 }
 0x3d3   : > { %v1689_v41 = vpop.f32.mrb[3].mxu1  ;;  %4407 = vmatprep.subr.bf16.mxu1 %v4406_v28  ;;  %v1297_v37 = vmul.f32 %v7298_v51, %v1286_v46  ;;  %vm7325_vm11 = vmmov %vm7321_vm5 }
 0x3d4   : > { %4123 = vmatprep.mubr.msk.f32.mxu1 %vm7292_vm7, %v1689_v41  ;;  %v1208_v12 = vadd.f32 %v1200_v54, %v1180_v42  ;;  %v7311_v41 = vld [vmem:[#allocation55_spill] sm:$0xff]  ;;  %v1302_v54 = vmul.f32 %v7298_v51, %v6509_v8  ;;  %v4779_v51 = vpop.eup %4778  ;;  %vm7322_vm7 = vmmov %vm7321_vm5 }
 0x3d5   : > { %4124 = vmatmul.mubr.msk.f32.gmra.mrb[10].mxu1 %vm7296_vm14, %v4111_v7  ;;  %v1305_v4 = vadd.f32 %v1297_v37, %v1278_v36  ;;  %v1331_v7 = vadd.f32 %v1323_v63, %v1304_v20  ;;  %vm7312_vm3 = vcmp.lt.s32.totalorder %v7311_v41, 8  ;;  %v2234_v37 = vmul.f32 %v4779_v51, %v7318_v16  ;;  %vm7324_vm14 = vmmov %vm7321_vm5  ;;  %v7329_v51 = vld [vmem:[#allocation7_spill] sm:$0xff] }
 0x3d6   : > { %4409 = vmatpush3.bf16.msra.mxu1 %v4406_v28  ;;  %v4114_v26 = vpop.f32.mrb[4].mxu1  ;;  %v1236_v10 = vadd.f32 %v1228_v40, %v1208_v12  ;;  %v1317_v15 = vsel %vm7312_vm3, %v5992_v52, 0.0  ;;  %v7337_v16 = vld [vmem:[#allocation23_spill] sm:$0xff] }
 0x3d7   : > { %4435 = vmatprep.subr.bf16.mxu1 %v4434_v39  ;;  %v1699_v60 = vpop.f32.mrb[5].mxu1  ;;  %v1332_v56 = vadd.f32 %v1324_v25, %v1305_v4  ;;  %v1328_v44 = vmul.f32 %v4866_v31, %v1317_v15 }
 0x3d8   : > { %4126 = vmatprep.mubr.msk.f32.mxu1 %vm7300_vm0, %v1699_v60  ;;  %v1264_v17 = vadd.f32 %v1256_v18, %v1236_v10 }
 0x3d9   : > { %4127 = vmatmul.mubr.msk.f32.gmra.mrb[12].mxu1 %vm7304_vm2, %v4114_v26  ;;  %v1336_v8 = vadd.f32 %v1328_v44, %v1309_v11  ;;  %vm7326_vm2 = vmmov %vm7321_vm5 }
 0x3da   : > { %v4117_v50 = vpop.f32.mrb[6].mxu1  ;;  %v1283_v1 = vadd.f32 %v1275_v21, %v1264_v17  ;;  %vm7334_vm15 = vmmov %vm7326_vm2 }
 0x3db   : > { %v6572_v49 = vpop.xlane.xlu0 %2206  ;;  %v1709_v28 = vpop.f32.mrb[7].mxu1  ;;  %vm7335_vm3 = vmmov %vm7326_vm2 }
 0x3dc   : > { %4129 = vmatprep.mubr.msk.f32.mxu1 %vm7306_vm9, %v1709_v28  ;;  %v1310_v14 = vadd.f32 %v1302_v54, %v1283_v1  ;;  %4780 = vrcp.f32 %v6572_v49  ;;  %vm7330_vm9 = vmmov %vm7326_vm2 }
 0x3dd   : > { %4130 = vmatmul.mubr.msk.f32.gmra.mrb[14].mxu1 %vm7307_vm4, %v4117_v50  ;;  %4782 = vrcp.f32 %v6569_v13  ;;  %vm7331_vm4 = vmmov %vm7326_vm2 }
 0x3de   : > { %4140 = vmatprep.mubr.msk.f32.mxu1 %vm1847_vm6, %v1330_v62  ;;  %v1337_v12 = vadd.f32 %v1329_v58, %v1310_v14 }
 0x3df   : > { %v6591_v59 = vpop.xlane.xlu0 %2212  ;;  %v6593_v19 = vpop.xlane.xlu1 %2215 }
 0x3e0   : > { %4784 = vrcp.f32 %v6591_v59 }
 0x3e1   : > { %4141 = vmatmul.mubr.msk.f32.vlgmr.msra.gmra.mrb[8].mxu1 %vm1847_vm6, %v1331_v7  ;;  %4786 = vrcp.f32 %v6593_v19 }
 0x3e2   : > { %4437 = vmatpush3.bf16.msra.mxu1 %v4434_v39  ;;  %4143 = vmatprep.mubr.msk.f32.mxu1 %vm1847_vm6, %v1332_v56 }
 0x3e3   : > { %v6602_v24 = vpop.xlane.xlu0 %2218  ;;  %v4662_v42 = vpop.permute.xlu1 %4661 }
 0x3e4   : > { %v4664_v55 = vunpack.i.h.bf16 %v4662_v42  ;;  %v4663_v50 = vunpack.i.l.bf16 %v4662_v42  ;;  %4788 = vrcp.f32 %v6602_v24 }
 0x3e5   : > { %4144 = vmatmul.mubr.msk.f32.gmra.mrb[10].mxu1 %vm1847_vm6, %v7313_v43 }
 0x3e6   : > { %4146 = vmatprep.mubr.msk.f32.mxu1 %vm1847_vm6, %v7314_v5  ;;  %v4442_v63 = vpack.c.bf16 %v4664_v55, %v4663_v50  ;;  %v4781_v5 = vpop.eup %4780  ;;  %v4867_v55 = vld [vmem:[%s4935_s20] sm:$0xff]  ;;  %v4868_v50 = vld [vmem:[%s4935_s20 + $0x8] sm:$0xff] }
 0x3e7   : > { %v6610_v48 = vpop.xlane.xlu0 %2224  ;;  %v6612_v52 = vpop.permute.xlu1 %4666 }
 0x3e8   : > { %v4240_v39 = vpop.f32.mrb[16].mxu0  ;;  %v4669_v13 = vunpack.i.h.bf16 %v6612_v52  ;;  %v4668_v22 = vunpack.i.l.bf16 %v6612_v52  ;;  %v4783_v24 = vpop.eup %4782 }
 0x3e9   : > { %v6615_v46 = vmul.f32 0.35355338, %v4240_v39  ;;  %v2662_v26 = vpop.f32.mrb[17].mxu0  ;;  %4147 = vmatmul.mubr.msk.f32.gmra.mrb[12].mxu1 %vm1847_vm6, %v7315_v30  ;;  %v7327_v39 = vld [vmem:[#allocation5_spill] sm:$0xff]  ;;  %v2236_v30 = vmul.f32 %v4783_v24, %v7329_v51 }
 0x3ea   : > { %v6619_v47 = vmul.f32 0.35355338, %v2662_v26  ;;  %4149 = vmatprep.mubr.msk.f32.mxu1 %vm1847_vm6, %v1336_v8  ;;  %v4446_v54 = vpack.c.bf16 %v4669_v13, %v4668_v22  ;;  %v2235_v14 = vmul.f32 %v4781_v5, %v7327_v39  ;;  %v7328_v26 = vld [vmem:[#allocation11_spill] sm:$0xff]  ;;  %v4785_v8 = vpop.eup %4784 }
 0x3eb   : > { %v6622_v6 = vpop.xlane.xlu0 %2221  ;;  %v4672_v60 = vpop.permute.xlu1 %4671  ;;  %v2712_v61 = vsel %vm7316_vm8, %v6615_v46, -inf  ;;  %vm7338_vm8 = vmmov %vm7326_vm2 }
 0x3ec   : > { %v4674_v0 = vunpack.i.h.bf16 %v4672_v60  ;;  %v4673_v33 = vunpack.i.l.bf16 %v4672_v60  ;;  %2713 = vmax.xlane.f32.xlu1 %v2712_v61  ;;  %v4243_v23 = vpop.f32.mrb[18].mxu0  ;;  %v2709_v40 = vsel %vm7317_vm12, %v6619_v47, -inf  ;;  %4790 = vrcp.f32 %v6622_v6  ;;  %v4787_v6 = vpop.eup %4786  ;;  %vm7339_vm12 = vmmov %vm7326_vm2 }
 0x3ed   : > { %2710 = vmax.xlane.f32.xlu0 %v2709_v40  ;;  %v2672_v32 = vpop.f32.mrb[19].mxu0  ;;  %4150 = vmatmul.mubr.msk.f32.gmra.mrb[14].mxu1 %vm1847_vm6, %v1337_v12  ;;  %v6632_v31 = vmul.f32 0.35355338, %v4243_v23  ;;  %4792 = vrcp.f32 %v6610_v48  ;;  %v7332_v48 = vld [vmem:[#allocation10_spill] sm:$0xff]  ;;  %v7336_v12 = vld [vmem:[#allocation15_spill] sm:$0xff] }
 0x3ee   : > { %v4490_v45 = vpack.c.bf16 %v4674_v0, %v4673_v33  ;;  %v6630_v38 = vmul.f32 0.35355338, %v2672_v32  ;;  %4196 = vmatprep.mubr.msk.f32.mxu1 %vm7319_vm10, %v2234_v37  ;;  %v2237_v60 = vmul.f32 %v4785_v8, %v7332_v48  ;;  %v4789_v61 = vpop.eup %4788  ;;  %v7333_v0 = vld [vmem:[#allocation12_spill] sm:$0xff]  ;;  %vm7341_vm10 = vmmov %vm7326_vm2 }
 0x3ef   : > { %v4657_v3 = vpop.permute.xlu0 %4656  ;;  %v4677_v20 = vpop.permute.xlu1 %4676  ;;  %v2718_v7 = vsel %vm7322_vm7, %v6632_v31, -inf  ;;  %v2238_v33 = vmul.f32 %v4787_v6, %v7333_v0  ;;  %v2239_v40 = vmul.f32 %v4789_v61, %v7336_v12  ;;  %vm7343_vm7 = vmmov %vm7300_vm0 }
 0x3f0   : > { %v4659_v2 = vunpack.i.h.bf16 %v4657_v3  ;;  %v4658_v36 = vunpack.i.l.bf16 %v4657_v3  ;;  %v4246_v28 = vpop.f32.mrb[20].mxu0  ;;  %4492 = vmatprep.subr.msk.bf16.mxu0 %vm4999_vm1, %v4490_v45  ;;  %v2715_v35 = vsel %vm7321_vm5, %v6630_v38, -inf  ;;  %v4679_v10 = vunpack.i.h.bf16 %v4677_v20  ;;  %vm7342_vm5 = vmmov %vm7300_vm0 }
 0x3f1   : > { %4495 = vmatpush3.bf16.xpose.msk.msra.mxu0 %vm4999_vm1, %v4490_v45  ;;  %2716 = vmax.xlane.f32.xlu0 %v2715_v35  ;;  %v2682_v18 = vpop.f32.mrb[21].mxu0  ;;  %v4678_v62 = vunpack.i.l.bf16 %v4677_v20  ;;  %v6652_v9 = vmul.f32 0.35355338, %v4246_v28  ;;  %v6693_v3 = vpack.i.bf16 %v4868_v50, %v4867_v55  ;;  %v7340_v20 = vld [vmem:[#allocation40_spill] sm:$0xff] }
 0x3f2   : > { %v4438_v4 = vpack.c.bf16 %v4659_v2, %v4658_v36  ;;  %v6643_v21 = vmul.f32 0.35355338, %v2682_v18 }
 0x3f3   : > { %v4496_v57 = vpack.c.bf16 %v4679_v10, %v4678_v62  ;;  %v4682_v53 = vpop.permute.xlu0 %4681  ;;  %v4687_v59 = vpop.permute.xlu1 %4686  ;;  %v2724_v19 = vsel %vm7325_vm11, %v6652_v9, -inf  ;;  %vm7347_vm11 = vmmov %vm7300_vm0 }
 0x3f4   : > { %4439 = vmatprep.subr.bf16.mxu1 %v4438_v4  ;;  %v4249_v25 = vpop.f32.mrb[22].mxu0  ;;  %v2721_v49 = vsel %vm7323_vm13, %v6643_v21, -inf  ;;  %v4684_v17 = vunpack.i.h.bf16 %v4682_v53  ;;  %v4683_v56 = vunpack.i.l.bf16 %v4682_v53  ;;  %v4689_v44 = vunpack.i.h.bf16 %v4687_v59  ;;  %vm7344_vm13 = vmmov %vm7300_vm0 }
 0x3f5   : > { %4441 = vmatpush3.bf16.msra.mxu1 %v4438_v4  ;;  %2719 = vmax.xlane.f32.xlu0 %v2718_v7  ;;  %v2692_v29 = vpop.f32.mrb[23].mxu0  ;;  %v6663_v11 = vmul.f32 0.35355338, %v4249_v25  ;;  %v4688_v43 = vunpack.i.l.bf16 %v4687_v59 }
 0x3f6   : > { %2722 = vmax.xlane.f32.xlu1 %v2721_v49  ;;  %v6655_v41 = vmul.f32 0.35355338, %v2692_v29  ;;  %4443 = vmatprep.subr.bf16.mxu1 %v4442_v63  ;;  %v4502_v15 = vpack.c.bf16 %v4684_v17, %v4683_v56  ;;  %v4791_v23 = vpop.eup %4790 }
 0x3f7   : > { %4498 = vmatprep.subr.msk.bf16.mxu0 %vm4999_vm1, %v4496_v57  ;;  %v3088_v42 = vpop.permute.xlu0 %3087  ;;  %v2730_v52 = vsel %vm7326_vm2, %v6663_v11, -inf  ;;  %v4508_v58 = vpack.c.bf16 %v4689_v44, %v4688_v43  ;;  %v4793_v32 = vpop.eup %4792  ;;  %v2240_v37 = vmul.f32 %v4791_v23, %v7337_v16  ;;  %v4870_v23 = vld [vmem:[%s4935_s20 + $0x28] sm:$0xff] }
 0x3f8   : > { %v2727_v1 = vsel %vm7324_vm14, %v6655_v41, -inf  ;;  %4308 = vmatprep.mubr.msk.f32.mxu0 %vm7300_vm0, %v3088_v42  ;;  %v3090_v45 = vpop.permute.xlu1 %3089  ;;  %v2241_v2 = vmul.f32 %v4793_v32, %v7340_v20  ;;  %vm7345_vm14 = vmmov %vm7300_vm0  ;;  %v4872_v32 = vld [vmem:[%s4935_s20 + $0x38] sm:$0xff] }
 0x3f9   : > { %4445 = vmatpush3.bf16.msra.mxu1 %v4442_v63  ;;  %4501 = vmatpush3.bf16.xpose.msk.msra.mxu0 %vm4999_vm1, %v4496_v57 }
 0x3fa   : > { %2725 = vmax.xlane.f32.xlu0 %v2724_v19  ;;  %2728 = vmax.xlane.f32.xlu1 %v2727_v1 }
 0x3fb   : > { %4447 = vmatprep.subr.bf16.mxu1 %v4446_v54  ;;  %4504 = vmatprep.subr.msk.bf16.mxu0 %vm4999_vm1, %v4502_v15  ;;  %v3092_v36 = vpop.permute.xlu0 %3091 }
 0x3fc   : > { %v3094_v28 = vpop.permute.xlu1 %3093 }
 0x3fd   : > { %4449 = vmatpush3.bf16.msra.mxu1 %v4446_v54 }
 0x3fe   : > { %2731 = vmax.xlane.f32.xlu0 %v2730_v52  ;;  %4208 = vmatprep.subr.mxu1 %v7328_v26 }
 0x3ff   : > { %v3096_v35 = vpop.permute.xlu0 %3095 }
 0x400   : > { %4197 = vmatmul.mubr.msk.f32.vlgmr.msra.gmra.mrb[16].mxu1 %vm7330_vm9, %v2235_v14  ;;  %v3098_v10 = vpop.permute.xlu1 %3097  ;;  %vm7348_vm9 = vmmov %vm7326_vm2 }
 0x401   : > { %4199 = vmatprep.mubr.msk.f32.mxu1 %vm7331_vm4, %v2236_v30  ;;  %4507 = vmatpush3.bf16.xpose.msk.msra.mxu0 %vm4999_vm1, %v4502_v15  ;;  %vm7349_vm4 = vmmov %vm7326_vm2 }
 0x402   : > { %4510 = vmatprep.subr.msk.bf16.mxu0 %vm4999_vm1, %v4508_v58  ;;  %4209 = vmatpush3.msra.mxu1 %v7328_v26 }
 0x403   : > { %v3100_v34 = vpop.permute.xlu0 %3099 }
 0x404   : > { %4200 = vmatmul.mubr.msk.f32.gmra.mrb[18].mxu1 %vm7334_vm15, %v2237_v60  ;;  %v3102_v18 = vpop.permute.xlu1 %3101  ;;  %vm7350_vm15 = vmmov %vm7326_vm2 }
 0x405   : > { %4202 = vmatprep.mubr.msk.f32.mxu1 %vm7335_vm3, %v2238_v33  ;;  %vm7351_vm3 = vmmov %vm7326_vm2  ;;  %v4869_v33 = vld [vmem:[%s4935_s20 + $0x20] sm:$0xff] }
 0x406   : > { %v6752_v12 = vpack.i.bf16 %v4870_v23, %v4869_v33 }
 0x408   : > { %4203 = vmatmul.mubr.msk.f32.gmra.mrb[20].mxu1 %vm7338_vm8, %v2239_v40  ;;  %vm7352_vm8 = vmmov %vm7326_vm2  ;;  %v4871_v40 = vld [vmem:[%s4935_s20 + $0x30] sm:$0xff] }
 0x409   : > { %4205 = vmatprep.mubr.msk.f32.mxu1 %vm7339_vm12, %v2240_v37  ;;  %4513 = vmatpush3.bf16.xpose.msk.msra.mxu0 %vm4999_vm1, %v4508_v58  ;;  %vm7346_vm1 = vmmov %vm7300_vm0  ;;  %v6758_v16 = vpack.i.bf16 %v4872_v32, %v4871_v40  ;;  %v4873_v37 = vld [vmem:[%s4935_s20 + $0x10] sm:$0xff] }
 0x40a   : > { %vm7353_vm12 = vmmov %vm7326_vm2 }
 0x40b   : > { %4691 = vrot.lane.b32.xlu1 %v6693_v3, %s4894_s25 }
 0x40c   : > { %4206 = vmatmul.mubr.msk.f32.gmra.mrb[22].mxu1 %vm7341_vm10, %v2241_v2  ;;  %vm7354_vm10 = vmmov %vm7326_vm2 }
 0x410   : > { %4309 = vmatmul.mubr.msk.f32.vlgmr.msra.gmra.mrb[24].mxu0 %vm7342_vm5, %v3090_v45  ;;  %v4874_v45 = vld [vmem:[%s4935_s20 + $0x18] sm:$0xff]  ;;  %vm7355_vm5 = vmmov %vm7300_vm0  ;;  %s4895_s20 = smov 40  }
 0x411   : > { %4311 = vmatprep.mubr.msk.f32.mxu0 %vm7343_vm7, %v3092_v36  ;;  %v6764_v55 = vpack.i.bf16 %v4874_v45, %v4873_v37  ;;  %vm7356_vm7 = vmmov %vm7300_vm0 }
 0x414   : > { %4312 = vmatmul.mubr.msk.f32.gmra.mrb[26].mxu0 %vm7344_vm13, %v3094_v28  ;;  %vm7357_vm13 = vmmov %vm7300_vm0 }
 0x415   : > { %4314 = vmatprep.mubr.msk.f32.mxu0 %vm7345_vm14, %v3096_v35  ;;  %vm7358_vm14 = vmmov %vm7300_vm0 }
 0x418   : > { %4315 = vmatmul.mubr.msk.f32.gmra.mrb[28].mxu0 %vm7346_vm1, %v3098_v10  ;;  %vm7359_vm1 = vmmov %vm7300_vm0 }
 0x419   : > { %4317 = vmatprep.mubr.msk.f32.mxu0 %vm7300_vm0, %v3100_v34 }
 0x41c   : > { %4318 = vmatmul.mubr.msk.f32.gmra.mrb[30].mxu0 %vm7347_vm11, %v3102_v18  ;;  %vm7360_vm11 = vmmov %vm7300_vm0 }
 0x479   : > { %v2714_v62 = vpop.xlane.xlu1 %2713 }
 0x47a   : > { %v2734_v4 = vsub.f32 %v6615_v46, %v2714_v62  ;;  %v2711_v63 = vpop.xlane.xlu0 %2710 }
 0x47b   : > { %v2733_v57 = vsub.f32 %v6619_v47, %v2711_v63 }
 0x47c   : > { %v2743_v53 = vmul.f32 1.442695, %v2734_v4 }
 0x47d   : > { %v2741_v25 = vmul.f32 1.442695, %v2733_v57 }
 0x47e   : > { %4794 = vpow2.f32 %v2743_v53  ;;  %v2717_v7 = vpop.xlane.xlu0 %2716 }
 0x47f   : > { %4796 = vpow2.f32 %v2741_v25  ;;  %v2735_v49 = vsub.f32 %v6630_v38, %v2717_v7 }
 0x481   : > { %v2745_v17 = vmul.f32 1.442695, %v2735_v49 }
 0x482   : > { %v2720_v56 = vpop.xlane.xlu0 %2719 }
 0x483   : > { %4798 = vpow2.f32 %v2745_v17  ;;  %v2736_v13 = vsub.f32 %v6632_v31, %v2720_v56  ;;  %v2723_v22 = vpop.xlane.xlu1 %2722 }
 0x484   : > { %v2737_v29 = vsub.f32 %v6643_v21, %v2723_v22 }
 0x485   : > { %v2747_v15 = vmul.f32 1.442695, %v2736_v13 }
 0x486   : > { %v2749_v46 = vmul.f32 1.442695, %v2737_v29 }
 0x487   : > { %4800 = vpow2.f32 %v2747_v15  ;;  %v2726_v59 = vpop.xlane.xlu0 %2725  ;;  %v2729_v47 = vpop.xlane.xlu1 %2728 }
 0x488   : > { %v6715_v42 = vpop.eup %4794  ;;  %4802 = vpow2.f32 %v2749_v46  ;;  %v2738_v1 = vsub.f32 %v6652_v9, %v2726_v59  ;;  %v2739_v31 = vsub.f32 %v6655_v41, %v2729_v47 }
 0x489   : > { %v6718_v54 = vpop.eup %4796  ;;  %v2760_v38 = vsel %vm7326_vm2, %v6715_v42, 0.0  ;;  %vm7361_vm2 = vmmov %vm7300_vm0 }
 0x48a   : > { %v2751_v19 = vmul.f32 1.442695, %v2738_v1  ;;  %2761 = vadd.xlane.f32.xlu0 %v2760_v38  ;;  %v2757_v21 = vsel %vm7348_vm9, %v6718_v54, 0.0  ;;  %v2753_v39 = vmul.f32 1.442695, %v2739_v31  ;;  %vm7362_vm9 = vmmov %vm7351_vm3 }
 0x48b   : > { %v2732_v44 = vpop.xlane.xlu0 %2731  ;;  %2758 = vadd.xlane.f32.xlu1 %v2757_v21  ;;  %v4692_v43 = vpop.permute.xlu1 %4691 }
 0x48c   : > { %4804 = vpow2.f32 %v2751_v19  ;;  %v2740_v5 = vsub.f32 %v6663_v11, %v2732_v44  ;;  %v4694_v24 = vunpack.i.h.bf16 %v4692_v43  ;;  %v4693_v9 = vunpack.i.l.bf16 %v4692_v43 }
 0x48d   : > { %v6726_v52 = vpop.eup %4798 }
 0x48e   : > { %v2755_v14 = vmul.f32 1.442695, %v2740_v5  ;;  %v2763_v58 = vsel %vm7349_vm4, %v6726_v52, 0.0  ;;  %v4474_v41 = vpack.c.bf16 %v4694_v24, %v4693_v9  ;;  %vm7363_vm4 = vmmov %vm7351_vm3 }
 0x48f   : > { %2764 = vadd.xlane.f32.xlu1 %v2763_v58 }
 0x490   : > { %4806 = vpow2.f32 %v2755_v14  ;;  %4475 = vmatprep.subr.bf16.mxu1 %v4474_v41 }
 0x491   : > { %v6730_v26 = vpop.eup %4800  ;;  %4808 = vpow2.f32 %v2753_v39 }
 0x492   : > { %v6732_v8 = vpop.eup %4802  ;;  %v2766_v11 = vsel %vm7350_vm15, %v6730_v26, 0.0  ;;  %vm7364_vm15 = vmmov %vm7351_vm3 }
 0x493   : > { %2767 = vadd.xlane.f32.xlu0 %v2766_v11  ;;  %v2769_v51 = vsel %vm7351_vm3, %v6732_v8, 0.0 }
 0x494   : > { %2770 = vadd.xlane.f32.xlu1 %v2769_v51 }
 0x496   : > { %v6738_v30 = vpop.eup %4804 }
 0x497   : > { %v2772_v6 = vsel %vm7352_vm8, %v6738_v30, 0.0  ;;  %vm7365_vm8 = vmmov %vm7351_vm3 }
 0x498   : > { %2773 = vadd.xlane.f32.xlu0 %v2772_v6 }
 0x49a   : > { %v6742_v48 = vpop.eup %4806 }
 0x49b   : > { %v2778_v60 = vsel %vm7353_vm12, %v6742_v48, 0.0  ;;  %v6746_v61 = vpop.eup %4808  ;;  %vm7366_vm12 = vmmov %vm7351_vm3 }
 0x49c   : > { %2779 = vadd.xlane.f32.xlu0 %v2778_v60  ;;  %v2775_v0 = vsel %vm7354_vm10, %v6746_v61, 0.0  ;;  %vm7367_vm10 = vmmov %vm7351_vm3 }
 0x4a0   : > { %2776 = vadd.xlane.f32.xlu0 %v2775_v0 }
 0x4a5   : > { %4701 = vrot.lane.b32.xlu1 %v6752_v12, %s4894_s25 }
 0x4a9   : > { %4706 = vrot.lane.b32.xlu1 %v6758_v16, %s4894_s25 }
 0x4b6   : > { %4696 = vrot.lane.b32.xlu0 %v6764_v55, %s4894_s25 }
 0x4d3   : > { %v4198_v50 = vpop.f32.mrb[16].mxu1 }
 0x4d4   : > { %v2356_v20 = vpop.f32.mrb[17].mxu1 }
 0x4d5   : > { %4210 = vmatprep.mubr.msk.f32.mxu1 %vm7355_vm5, %v2356_v20  ;;  %vm7368_vm5 = vmmov %vm7351_vm3 }
 0x4d6   : > { %4211 = vmatmul.mubr.msk.f32.vlgmr.msra.gmra.mrb[8].mxu1 %vm7356_vm7, %v4198_v50  ;;  %vm7369_vm7 = vmmov %vm7351_vm3 }
 0x4d7   : > { %v4201_v2 = vpop.f32.mrb[18].mxu1  ;;  %4477 = vmatpush3.bf16.msra.mxu1 %v4474_v41 }
 0x4d8   : > { %v2366_v36 = vpop.f32.mrb[19].mxu1 }
 0x4d9   : > { %4213 = vmatprep.mubr.msk.f32.mxu1 %vm7357_vm13, %v2366_v36  ;;  %vm7370_vm13 = vmmov %vm7351_vm3 }
 0x4da   : > { %4214 = vmatmul.mubr.msk.f32.gmra.mrb[10].mxu1 %vm7358_vm14, %v4201_v2  ;;  %vm7371_vm14 = vmmov %vm7351_vm3 }
 0x4db   : > { %v4204_v28 = vpop.f32.mrb[20].mxu1 }
 0x4dc   : > { %v2376_v35 = vpop.f32.mrb[21].mxu1 }
 0x4dd   : > { %4216 = vmatprep.mubr.msk.f32.mxu1 %vm7359_vm1, %v2376_v35  ;;  %vm7372_vm1 = vmmov %vm7351_vm3 }
 0x4de   : > { %4217 = vmatmul.mubr.msk.f32.gmra.mrb[12].mxu1 %vm7300_vm0, %v4204_v28  ;;  %vm7373_vm0 = vmmov %vm7372_vm1 }
 0x4df   : > { %v4207_v10 = vpop.f32.mrb[22].mxu1 }
 0x4e0   : > { %v2386_v34 = vpop.f32.mrb[23].mxu1 }
 0x4e1   : > { %4219 = vmatprep.mubr.msk.f32.mxu1 %vm7360_vm11, %v2386_v34  ;;  %vm7374_vm11 = vmmov %vm7373_vm0 }
 0x4e2   : > { %4220 = vmatmul.mubr.msk.f32.gmra.mrb[14].mxu1 %vm7361_vm2, %v4207_v10  ;;  %vm7375_vm2 = vmmov %vm7373_vm0 }
 0x4e3   : > { %v4310_v18 = vpop.f32.mrb[24].mxu0 }
 0x4e4   : > { %v6776_v62 = vmul.f32 0.35355338, %v4310_v18  ;;  %v3217_v4 = vpop.f32.mrb[25].mxu0 }
 0x4e5   : > { %v6778_v63 = vmul.f32 0.35355338, %v3217_v4 }
 0x4e6   : > { %v3267_v57 = vsel %vm7362_vm9, %v6776_v62, -inf  ;;  %vm7376_vm9 = vmmov %vm7373_vm0 }
 0x4e7   : > { %v4313_v53 = vpop.f32.mrb[26].mxu0  ;;  %3268 = vmax.xlane.f32.xlu0 %v3267_v57  ;;  %v3264_v25 = vsel %vm7363_vm4, %v6778_v63, -inf  ;;  %vm7377_vm4 = vmmov %vm7373_vm0 }
 0x4e8   : > { %v6784_v7 = vmul.f32 0.35355338, %v4313_v53  ;;  %v3227_v49 = vpop.f32.mrb[27].mxu0  ;;  %3265 = vmax.xlane.f32.xlu1 %v3264_v25 }
 0x4e9   : > { %v6786_v17 = vmul.f32 0.35355338, %v3227_v49 }
 0x4ea   : > { %v3273_v56 = vsel %vm7364_vm15, %v6784_v7, -inf  ;;  %vm7378_vm15 = vmmov %vm7373_vm0 }
 0x4eb   : > { %v4316_v13 = vpop.f32.mrb[28].mxu0  ;;  %3274 = vmax.xlane.f32.xlu0 %v3273_v56  ;;  %v3270_v22 = vsel %vm7351_vm3, %v6786_v17, -inf  ;;  %vm7379_vm3 = vmmov %vm7373_vm0 }
 0x4ec   : > { %v6792_v29 = vmul.f32 0.35355338, %v4316_v13  ;;  %v3237_v15 = vpop.f32.mrb[29].mxu0  ;;  %3271 = vmax.xlane.f32.xlu1 %v3270_v22 }
 0x4ed   : > { %v6794_v46 = vmul.f32 0.35355338, %v3237_v15 }
 0x4ee   : > { %v3279_v59 = vsel %vm7365_vm8, %v6792_v29, -inf  ;;  %vm7380_vm8 = vmmov %vm7373_vm0 }
 0x4ef   : > { %v4319_v47 = vpop.f32.mrb[30].mxu0  ;;  %3280 = vmax.xlane.f32.xlu0 %v3279_v59  ;;  %v3276_v1 = vsel %vm7366_vm12, %v6794_v46, -inf  ;;  %vm7381_vm12 = vmmov %vm7373_vm0 }
 0x4f0   : > { %v6800_v38 = vmul.f32 0.35355338, %v4319_v47  ;;  %v3247_v19 = vpop.f32.mrb[31].mxu0  ;;  %3277 = vmax.xlane.f32.xlu1 %v3276_v1 }
 0x4f1   : > { %v6802_v31 = vmul.f32 0.35355338, %v3247_v19 }
 0x4f2   : > { %v3285_v21 = vsel %vm7367_vm10, %v6800_v38, -inf  ;;  %vm7382_vm10 = vmmov %vm7373_vm0 }
 0x4f3   : > { %3286 = vmax.xlane.f32.xlu0 %v3285_v21  ;;  %v3282_v44 = vsel %vm7368_vm5, %v6802_v31, -inf  ;;  %vm7383_vm5 = vmmov %vm7373_vm0 }
 0x4f4   : > { %3283 = vmax.xlane.f32.xlu1 %v3282_v44 }
 0x505   : > { %4711 = vrot.lane.b32.xlu1 %v6693_v3, %s4895_s20 }
 0x517   : > { %v2762_v5 = vpop.xlane.xlu0 %2761 }
 0x518   : > { %v2759_v43 = vpop.xlane.xlu1 %2758 }
 0x519   : > { %4810 = vrcp.f32 %v2759_v43 }
 0x51a   : > { %4812 = vrcp.f32 %v2762_v5 }
 0x51c   : > { %v2765_v9 = vpop.xlane.xlu1 %2764 }
 0x51d   : > { %4814 = vrcp.f32 %v2765_v9 }
 0x520   : > { %v2768_v24 = vpop.xlane.xlu0 %2767 }
 0x521   : > { %v2771_v41 = vpop.xlane.xlu1 %2770  ;;  %4816 = vrcp.f32 %v2768_v24 }
 0x522   : > { %4818 = vrcp.f32 %v2771_v41 }
 0x523   : > { %v4811_v39 = vpop.eup %4810 }
 0x524   : > { %v2789_v14 = vmul.f32 %v4811_v39, %v6718_v54  ;;  %v4813_v20 = vpop.eup %4812 }
 0x525   : > { %v2774_v58 = vpop.xlane.xlu0 %2773  ;;  %v4702_v51 = vpop.permute.xlu1 %4701  ;;  %v2790_v36 = vmul.f32 %v4813_v20, %v6715_v42 }
 0x526   : > { %4266 = vmatprep.mubr.msk.f32.mxu1 %vm7369_vm7, %v2789_v14  ;;  %v4704_v60 = vunpack.i.h.bf16 %v4702_v51  ;;  %v4703_v0 = vunpack.i.l.bf16 %v4702_v51  ;;  %4820 = vrcp.f32 %v2774_v58  ;;  %vm7384_vm7 = vmmov %vm7373_vm0 }
 0x527   : > { %v4815_v2 = vpop.eup %4814 }
 0x528   : > { %v4482_v37 = vpack.c.bf16 %v4704_v60, %v4703_v0  ;;  %v2791_v35 = vmul.f32 %v4815_v2, %v6726_v52 }
 0x529   : > { %v2780_v11 = vpop.xlane.xlu0 %2779  ;;  %v4707_v23 = vpop.permute.xlu1 %4706 }
 0x52a   : > { %v4709_v45 = vunpack.i.h.bf16 %v4707_v23  ;;  %v4708_v50 = vunpack.i.l.bf16 %v4707_v23 }
 0x52b   : > { %v4817_v28 = vpop.eup %4816 }
 0x52c   : > { %v4486_v54 = vpack.c.bf16 %v4709_v45, %v4708_v50  ;;  %v4819_v10 = vpop.eup %4818  ;;  %v2792_v34 = vmul.f32 %v4817_v28, %v6730_v26 }
 0x52d   : > { %v2777_v6 = vpop.xlane.xlu0 %2776  ;;  %v2793_v4 = vmul.f32 %v4819_v10, %v6732_v8 }
 0x52e   : > { %4822 = vrcp.f32 %v2777_v6 }
 0x52f   : > { %4824 = vrcp.f32 %v2780_v11 }
 0x530   : > { %v4821_v18 = vpop.eup %4820 }
 0x531   : > { %v4697_v33 = vpop.permute.xlu0 %4696  ;;  %v2794_v42 = vmul.f32 %v4821_v18, %v6738_v30 }
 0x532   : > { %v4699_v3 = vunpack.i.h.bf16 %v4697_v33  ;;  %v4698_v40 = vunpack.i.l.bf16 %v4697_v33 }
 0x534   : > { %v4478_v32 = vpack.c.bf16 %v4699_v3, %v4698_v40 }
 0x536   : > { %4479 = vmatprep.subr.bf16.mxu1 %v4478_v32 }
 0x537   : > { %4481 = vmatpush3.bf16.msra.mxu1 %v4478_v32 }
 0x538   : > { %4483 = vmatprep.subr.bf16.mxu1 %v4482_v37  ;;  %v4823_v57 = vpop.eup %4822 }
 0x539   : > { %v4825_v52 = vpop.eup %4824  ;;  %v2795_v53 = vmul.f32 %v4823_v57, %v6746_v61 }
 0x53b   : > { %4485 = vmatpush3.bf16.msra.mxu1 %v4482_v37 }
 0x53c   : > { %4487 = vmatprep.subr.bf16.mxu1 %v4486_v54 }
 0x53f   : > { %4489 = vmatpush3.bf16.msra.mxu1 %v4486_v54 }
 0x540   : > { %4278 = vmatprep.subr.mxu1 %v6499_v27 }
 0x542   : > { %4267 = vmatmul.mubr.msk.f32.vlgmr.msra.gmra.mrb[24].mxu1 %vm7370_vm13, %v2790_v36  ;;  %vm7385_vm13 = vcmask 64512  }
 0x543   : > { %4269 = vmatprep.mubr.msk.f32.mxu1 %vm7371_vm14, %v2791_v35  ;;  %4279 = vmatpush3.msra.mxu1 %v6499_v27  ;;  %v2796_v27 = vmul.f32 %v4825_v52, %v6742_v48  ;;  %vm7386_vm14 = vmmov %vm7385_vm13 }
 0x546   : > { %4270 = vmatmul.mubr.msk.f32.gmra.mrb[26].mxu1 %vm7372_vm1, %v2792_v34  ;;  %vm7387_vm1 = vmmov %vm7385_vm13 }
 0x547   : > { %4272 = vmatprep.mubr.msk.f32.mxu1 %vm7373_vm0, %v2793_v4  ;;  %vm7388_vm0 = vmmov %vm7387_vm1 }
 0x54a   : > { %4273 = vmatmul.mubr.msk.f32.gmra.mrb[28].mxu1 %vm7374_vm11, %v2794_v42  ;;  %vm7389_vm11 = vmmov %vm7388_vm0 }
 0x54b   : > { %4275 = vmatprep.mubr.msk.f32.mxu1 %vm7375_vm2, %v2795_v53  ;;  %vm7390_vm2 = vmmov %vm7388_vm0 }
 0x54e   : > { %4276 = vmatmul.mubr.msk.f32.gmra.mrb[30].mxu1 %vm7376_vm9, %v2796_v27  ;;  %vm7391_vm9 = vmmov %vm7379_vm3 }
 0x574   : > { %v3269_v26 = vpop.xlane.xlu0 %3268 }
 0x575   : > { %v3289_v8 = vsub.f32 %v6776_v62, %v3269_v26  ;;  %v3266_v25 = vpop.xlane.xlu1 %3265 }
 0x576   : > { %v3288_v49 = vsub.f32 %v6778_v63, %v3266_v25 }
 0x577   : > { %v3298_v56 = vmul.f32 1.442695, %v3289_v8 }
 0x578   : > { %v3296_v13 = vmul.f32 1.442695, %v3288_v49  ;;  %v3275_v30 = vpop.xlane.xlu0 %3274 }
 0x579   : > { %4826 = vpow2.f32 %v3298_v56  ;;  %v3291_v61 = vsub.f32 %v6784_v7, %v3275_v30  ;;  %v3272_v22 = vpop.xlane.xlu1 %3271 }
 0x57a   : > { %4828 = vpow2.f32 %v3296_v13  ;;  %v3290_v15 = vsub.f32 %v6786_v17, %v3272_v22 }
 0x57b   : > { %v3302_v59 = vmul.f32 1.442695, %v3291_v61 }
 0x57c   : > { %v3300_v48 = vmul.f32 1.442695, %v3290_v15  ;;  %v3281_v47 = vpop.xlane.xlu0 %3280 }
 0x57d   : > { %4830 = vpow2.f32 %v3302_v59  ;;  %v3293_v1 = vsub.f32 %v6792_v29, %v3281_v47  ;;  %v3278_v62 = vpop.xlane.xlu1 %3277 }
 0x57e   : > { %4832 = vpow2.f32 %v3300_v48  ;;  %v3292_v63 = vsub.f32 %v6794_v46, %v3278_v62 }
 0x57f   : > { %v3306_v19 = vmul.f32 1.442695, %v3293_v1 }
 0x580   : > { %v3304_v21 = vmul.f32 1.442695, %v3292_v63  ;;  %v3287_v44 = vpop.xlane.xlu0 %3286 }
 0x581   : > { %4834 = vpow2.f32 %v3306_v19  ;;  %v3295_v7 = vsub.f32 %v6800_v38, %v3287_v44  ;;  %v3284_v43 = vpop.xlane.xlu1 %3283 }
 0x582   : > { %4836 = vpow2.f32 %v3304_v21  ;;  %v3294_v17 = vsub.f32 %v6802_v31, %v3284_v43 }
 0x583   : > { %v6836_v5 = vpop.eup %4826  ;;  %v3310_v24 = vmul.f32 1.442695, %v3295_v7  ;;  %v4875_v7 = vld [vmem:[%s6922_s2 + $0x18] sm:$0xff] }
 0x584   : > { %v4829_v9 = vpop.eup %4828  ;;  %v3308_v39 = vmul.f32 1.442695, %v3294_v17  ;;  %v3315_v29 = vsel %vm7377_vm4, %v6836_v5, 0.0  ;;  %vm7392_vm4 = vmmov %vm7388_vm0 }
 0x585   : > { %4838 = vpow2.f32 %v3310_v24  ;;  %3316 = vadd.xlane.f32.xlu0 %v3315_v29  ;;  %v3312_v46 = vsel %vm7378_vm15, %v4829_v9, 0.0  ;;  %v4712_v14 = vpop.permute.xlu1 %4711  ;;  %vm7393_vm15 = vmmov %vm7388_vm0 }
 0x586   : > { %3313 = vadd.xlane.f32.xlu1 %v3312_v46  ;;  %v4714_v58 = vunpack.i.h.bf16 %v4712_v14  ;;  %v4713_v38 = vunpack.i.l.bf16 %v4712_v14  ;;  %4840 = vpow2.f32 %v3308_v39 }
 0x587   : > { %v6841_v41 = vpop.eup %4830 }
 0x588   : > { %v6843_v31 = vpop.eup %4832  ;;  %v3321_v11 = vsel %vm7379_vm3, %v6841_v41, 0.0  ;;  %v4514_v51 = vpack.c.bf16 %v4714_v58, %v4713_v38 }
 0x589   : > { %3322 = vadd.xlane.f32.xlu0 %v3321_v11  ;;  %v3318_v6 = vsel %vm7380_vm8, %v6843_v31, 0.0  ;;  %vm7394_vm8 = vmmov %vm7379_vm3  ;;  %v3643_v11 = vld [vmem:[%s212_s30 + $0x8] sm:$0xff] }
 0x58a   : > { %3319 = vadd.xlane.f32.xlu1 %v3318_v6  ;;  %4515 = vmatprep.subr.bf16.mxu0 %v4514_v51 }
 0x58b   : > { %v6849_v60 = vpop.eup %4834  ;;  %4530 = vmatprep.subr.bf16.mxu1 %v4514_v51  ;;  %4517 = vmatpush3.bf16.msra.mxu0 %v4514_v51 }
 0x58c   : > { %v4837_v0 = vpop.eup %4836  ;;  %v3327_v33 = vsel %vm7381_vm12, %v6849_v60, 0.0  ;;  %vm7395_vm12 = vmmov %vm7379_vm3 }
 0x58d   : > { %3328 = vadd.xlane.f32.xlu0 %v3327_v33  ;;  %v3324_v23 = vsel %vm7382_vm10, %v4837_v0, 0.0  ;;  %vm7396_vm10 = vmmov %vm7379_vm3 }
 0x58e   : > { %3325 = vadd.xlane.f32.xlu1 %v3324_v23  ;;  %v3645_v23 = vld [vmem:[%s212_s30 + $0x18] sm:$0xff] }
 0x58f   : > { %v6854_v3 = vpop.eup %4838 }
 0x590   : > { %v3333_v40 = vsel %vm7383_vm5, %v6854_v3, 0.0  ;;  %v6858_v32 = vpop.eup %4840  ;;  %vm7397_vm5 = vmmov %vm7379_vm3 }
 0x591   : > { %3334 = vadd.xlane.f32.xlu0 %v3333_v40  ;;  %v3330_v37 = vsel %vm7384_vm7, %v6858_v32, 0.0  ;;  %vm7398_vm7 = vmmov %vm7379_vm3 }
 0x595   : > { %3331 = vadd.xlane.f32.xlu0 %v3330_v37 }
 0x59f   : > { %4721 = vrot.lane.b32.xlu1 %v6752_v12, %s4895_s20 }
 0x5a3   : > { %4726 = vrot.lane.b32.xlu1 %v6758_v16, %s4895_s20 }
 0x5ab   : > { %4716 = vrot.lane.b32.xlu0 %v6764_v55, %s4895_s20 }
 0x612   : > { %v3317_v45 = vpop.xlane.xlu0 %3316 }
 0x613   : > { %v3314_v50 = vpop.xlane.xlu1 %3313 }
 0x614   : > { %4842 = vrcp.f32 %v3314_v50  ;;  %v3647_v50 = vld [vmem:[%s212_s30 + $0x28] sm:$0xff] }
 0x615   : > { %v4268_v54 = vpop.f32.mrb[24].mxu1 }
 0x616   : > { %v2911_v20 = vpop.f32.mrb[25].mxu1  ;;  %v3323_v2 = vpop.xlane.xlu0 %3322 }
 0x617   : > { %4280 = vmatprep.mubr.msk.f32.mxu1 %vm7385_vm13, %v2911_v20  ;;  %v3320_v36 = vpop.xlane.xlu1 %3319  ;;  %vm7399_vm13 = vmmov %vm7379_vm3 }
 0x618   : > { %4281 = vmatmul.mubr.msk.f32.vlgmr.msra.gmra.mrb[8].mxu1 %vm7386_vm14, %v4268_v54  ;;  %vm7400_vm14 = vmmov %vm7388_vm0  ;;  %v3646_v54 = vld [vmem:[%s212_s30 + $0x20] sm:$0xff] }
 0x619   : > { %4534 = vmatpush3.bf16.msra.mxu1 %v4514_v51  ;;  %v4271_v28 = vpop.f32.mrb[26].mxu1  ;;  %v3642_v51 = vld [vmem:[%s212_s30] sm:$0xff] }
 0x61a   : > { %v2921_v12 = vpop.f32.mrb[27].mxu1  ;;  %v3329_v35 = vpop.xlane.xlu0 %3328 }
 0x61b   : > { %4283 = vmatprep.mubr.msk.f32.mxu1 %vm7387_vm1, %v2921_v12  ;;  %v3326_v16 = vpop.xlane.xlu1 %3325  ;;  %vm7401_vm1 = vmmov %vm7388_vm0  ;;  %v3649_v12 = vld [vmem:[%s212_s30 + $0x38] sm:$0xff] }
 0x61c   : > { %4844 = vrcp.f32 %v3326_v16  ;;  %4284 = vmatmul.mubr.msk.f32.gmra.mrb[10].mxu1 %vm7388_vm0, %v4271_v28 }
 0x61d   : > { %v4274_v55 = vpop.f32.mrb[28].mxu1  ;;  %4846 = vrcp.f32 %v3317_v45 }
 0x61e   : > { %v4843_v10 = vpop.eup %4842  ;;  %v2931_v34 = vpop.f32.mrb[29].mxu1  ;;  %4848 = vrcp.f32 %v3320_v36 }
 0x61f   : > { %v3335_v18 = vpop.xlane.xlu0 %3334  ;;  %4286 = vmatprep.mubr.msk.f32.mxu1 %vm7389_vm11, %v2931_v34  ;;  %v3344_v4 = vmul.f32 %v4843_v10, %v4829_v9  ;;  %v4722_v57 = vpop.permute.xlu1 %4721  ;;  %4850 = vrcp.f32 %v3329_v35  ;;  %vm7402_vm11 = vmmov %vm7388_vm0  ;;  %v3648_v35 = vld [vmem:[%s212_s30 + $0x30] sm:$0xff] }
 0x620   : > { %4287 = vmatmul.mubr.msk.f32.gmra.mrb[12].mxu1 %vm7390_vm2, %v4274_v55  ;;  %v4724_v27 = vunpack.i.h.bf16 %v4722_v57  ;;  %v4723_v26 = vunpack.i.l.bf16 %v4722_v57  ;;  %vm7403_vm2 = vmmov %vm7388_vm0 }
 0x621   : > { %v4277_v42 = vpop.f32.mrb[30].mxu1  ;;  %4336 = vmatprep.mubr.msk.f32.mxu0 %vm7391_vm9, %v3344_v4  ;;  %vm7404_vm9 = vmmov %vm7388_vm0 }
 0x622   : > { %v2941_v52 = vpop.f32.mrb[31].mxu1  ;;  %v4522_v61 = vpack.c.bf16 %v4724_v27, %v4723_v26 }
 0x623   : > { %v3332_v53 = vpop.xlane.xlu0 %3331  ;;  %4289 = vmatprep.mubr.msk.f32.mxu1 %vm7392_vm4, %v2941_v52  ;;  %v4727_v49 = vpop.permute.xlu1 %4726  ;;  %vm7405_vm4 = vmmov %vm7388_vm0 }
 0x624   : > { %4290 = vmatmul.mubr.msk.f32.gmra.mrb[14].mxu1 %vm7393_vm15, %v4277_v42  ;;  %4852 = vrcp.f32 %v3332_v53  ;;  %v4729_v15 = vunpack.i.h.bf16 %v4727_v49  ;;  %v4728_v59 = vunpack.i.l.bf16 %v4727_v49  ;;  %vm7406_vm15 = vmmov %vm7388_vm0 }
 0x625   : > { %4854 = vrcp.f32 %v3323_v2 }
 0x626   : > { %v4845_v8 = vpop.eup %4844  ;;  %4856 = vrcp.f32 %v3335_v18  ;;  %v4526_v48 = vpack.c.bf16 %v4729_v15, %v4728_v59 }
 0x627   : > { %v4717_v25 = vpop.permute.xlu0 %4716  ;;  %v3348_v30 = vmul.f32 %v4845_v8, %v4837_v0  ;;  %v4847_v47 = vpop.eup %4846 }
 0x628   : > { %v4719_v56 = vunpack.i.h.bf16 %v4717_v25  ;;  %v4718_v13 = vunpack.i.l.bf16 %v4717_v25  ;;  %v4849_v1 = vpop.eup %4848  ;;  %v3345_v21 = vmul.f32 %v4847_v47, %v6836_v5 }
 0x629   : > { %4342 = vmatprep.mubr.msk.f32.mxu1 %vm7379_vm3, %v3348_v30  ;;  %v4851_v62 = vpop.eup %4850  ;;  %v3346_v17 = vmul.f32 %v4849_v1, %v6843_v31 }
 0x62a   : > { %v4518_v22 = vpack.c.bf16 %v4719_v56, %v4718_v13  ;;  %v3349_v44 = vmul.f32 %v4851_v62, %v6849_v60 }
 0x62c   : > { %4519 = vmatprep.subr.bf16.mxu0 %v4518_v22  ;;  %4531 = vmatprep.subr.bf16.mxu1 %v4518_v22 }
 0x62d   : > { %4521 = vmatpush3.bf16.msra.mxu0 %v4518_v22  ;;  %4535 = vmatpush3.bf16.msra.mxu1 %v4518_v22 }
 0x62e   : > { %4523 = vmatprep.subr.bf16.mxu0 %v4522_v61  ;;  %4532 = vmatprep.subr.bf16.mxu1 %v4522_v61  ;;  %v4853_v63 = vpop.eup %4852 }
 0x62f   : > { %v4855_v19 = vpop.eup %4854  ;;  %v3350_v24 = vmul.f32 %v4853_v63, %v6858_v32 }
 0x630   : > { %v4857_v43 = vpop.eup %4856  ;;  %v3347_v5 = vmul.f32 %v4855_v19, %v6841_v41 }
 0x631   : > { %4525 = vmatpush3.bf16.msra.mxu0 %v4522_v61  ;;  %4536 = vmatpush3.bf16.msra.mxu1 %v4522_v61  ;;  %v3351_v9 = vmul.f32 %v4857_v43, %v6854_v3  ;;  %v3644_v3 = vld [vmem:[%s212_s30 + $0x10] sm:$0xff] }
 0x632   : > { %4527 = vmatprep.subr.bf16.mxu0 %v4526_v48  ;;  %4533 = vmatprep.subr.bf16.mxu1 %v4526_v48 }
 0x635   : > { %4529 = vmatpush3.bf16.msra.mxu0 %v4526_v48  ;;  %4537 = vmatpush3.bf16.msra.mxu1 %v4526_v48 }
 0x636   : > { %4348 = vmatprep.subr.mxu1 %v4875_v7 }
 0x638   : > { %4337 = vmatmul.mubr.msk.f32.vlgmr.msra.gmra.mrb[32].mxu0 %vm7394_vm8, %v3345_v21  ;;  %4343 = vmatmul.mubr.msk.f32.vlgmr.msra.gmra.mrb[32].mxu1 %vm7395_vm12, %v3349_v44 }
 0x639   : > { %4339 = vmatprep.mubr.msk.f32.mxu0 %vm7396_vm10, %v3346_v17  ;;  %4345 = vmatprep.mubr.msk.f32.mxu1 %vm7397_vm5, %v3350_v24 }
 0x63a   : > { %4349 = vmatpush3.msra.mxu1 %v4875_v7 }
 0x63c   : > { %4340 = vmatmul.mubr.msk.f32.gmra.mrb[34].mxu0 %vm7398_vm7, %v3347_v5  ;;  %4346 = vmatmul.mubr.msk.f32.gmra.mrb[34].mxu1 %vm7399_vm13, %v3351_v9 }
 0x70b   : > { %v4338_v39 = vpop.f32.mrb[32].mxu0  ;;  %v4344_v29 = vpop.f32.mrb[32].mxu1 }
 0x70c   : > { %v3466_v46 = vpop.f32.mrb[33].mxu0  ;;  %v3486_v14 = vpop.f32.mrb[33].mxu1 }
 0x70d   : > { %4350 = vmatprep.mubr.msk.f32.mxu1 %vm7400_vm14, %v3466_v46 }
 0x70e   : > { %4351 = vmatmul.mubr.msk.f32.vlgmr.msra.gmra.mrb[8].mxu1 %vm7401_vm1, %v4338_v39 }
 0x70f   : > { %v4341_v58 = vpop.f32.mrb[34].mxu0  ;;  %v4347_v38 = vpop.f32.mrb[34].mxu1 }
 0x710   : > { %v3476_v41 = vpop.f32.mrb[35].mxu0  ;;  %v3496_v31 = vpop.f32.mrb[35].mxu1 }
 0x711   : > { %4353 = vmatprep.mubr.msk.f32.mxu1 %vm7388_vm0, %v3476_v41 }
 0x712   : > { %4354 = vmatmul.mubr.msk.f32.gmra.mrb[10].mxu1 %vm7402_vm11, %v4341_v58 }
 0x713   : > { %4356 = vmatprep.mubr.msk.f32.mxu1 %vm7403_vm2, %v3486_v14 }
 0x716   : > { %4357 = vmatmul.mubr.msk.f32.gmra.mrb[12].mxu1 %vm7404_vm9, %v4344_v29 }
 0x717   : > { %4359 = vmatprep.mubr.msk.f32.mxu1 %vm7405_vm4, %v3496_v31 }
 0x71a   : > { %4360 = vmatmul.mubr.msk.f32.gmra.mrb[14].mxu1 %vm7406_vm15, %v4347_v38 }
 0x7e1   : > { %v4352_v6 = vpop.f32.mrb[8].mxu1 }
 0x7e2   : > { %v3651_v60 = vadd.f32 %v4352_v6, %v3643_v11  ;;  %v3595_v0 = vpop.f32.mrb[9].mxu1 }
 0x7e3   : > { %v3650_v33 = vadd.f32 %v3642_v51, %v3595_v0 }
 0x7e4   : > { %3659 = vst.msk [vmem:[%s217_s7 + $0x8] sm:$0xff] %vm1847_vm6, %v3651_v60 }
 0x7e5   : > { %3658 = vst.msk [vmem:[%s217_s7] sm:$0xff] %vm1847_vm6, %v3650_v33  ;;  %v4355_v40 = vpop.f32.mrb[10].mxu1 }
 0x7e6   : > { %v3653_v32 = vadd.f32 %v4355_v40, %v3645_v23  ;;  %v3605_v37 = vpop.f32.mrb[11].mxu1 }
 0x7e7   : > { %v3652_v45 = vadd.f32 %v3644_v3, %v3605_v37 }
 0x7e8   : > { %3661 = vst.msk [vmem:[%s217_s7 + $0x18] sm:$0xff] %vm1847_vm6, %v3653_v32 }
 0x7e9   : > { %3660 = vst.msk [vmem:[%s217_s7 + $0x10] sm:$0xff] %vm1847_vm6, %v3652_v45  ;;  %v4358_v20 = vpop.f32.mrb[12].mxu1 }
 0x7ea   : > { %v3655_v2 = vadd.f32 %v4358_v20, %v3647_v50  ;;  %v3615_v36 = vpop.f32.mrb[13].mxu1 }
 0x7eb   : > { %v3654_v28 = vadd.f32 %v3646_v54, %v3615_v36 }
 0x7ec   : > { %3663 = vst.msk [vmem:[%s217_s7 + $0x28] sm:$0xff] %vm1847_vm6, %v3655_v2 }
 0x7ed   : > { %3662 = vst.msk [vmem:[%s217_s7 + $0x20] sm:$0xff] %vm1847_vm6, %v3654_v28  ;;  %v4361_v16 = vpop.f32.mrb[14].mxu1 }
 0x7ee   : > { %v3657_v55 = vadd.f32 %v4361_v16, %v3649_v12  ;;  %v3625_v10 = vpop.f32.mrb[15].mxu1 }
 0x7ef   : > { %v3656_v34 = vadd.f32 %v3648_v35, %v3625_v10 }
 0x7f0   : > { %3665 = vst.msk [vmem:[%s217_s7 + $0x38] sm:$0xff] %vm1847_vm6, %v3657_v55 }
 0x7f1   : > { %3664 = vst.msk [vmem:[%s217_s7 + $0x30] sm:$0xff] %vm1847_vm6, %v3656_v34 }
 0x7f2 PF: > { %s14_s15 = sadd.s32 1, %s4882_s15  }
 0x7f3   : > { %p11_p4 = scmp.ge.s32.totalorder %s14_s15, 4  }
 0x7f5   :  { %13 = sbr.rel (!%p11_p4) target bundleno = 1 (0x1), region = 69 }

// kernel: run.11
= control target key start
LH: loop header
LB: loop body
LE: loop exit
PB: predicated region body
PF: predicated region fallthrough
CT: control target
= control target key end

     0   :  { %s3619_s12 = smov 0   ;;  %s4282_s0 = inlined_call_operand.vmem [shape: f32[2,64,96], index: 0, kind: input, shape index: {}]   ;;  %s4283_s1 = inlined_call_operand.vmem [shape: f32[2,64,32], index: 1, kind: input, shape index: {}]   ;;  %s4284_s2 = inlined_call_operand.vmem [shape: f32[32,32], index: 2, kind: input, shape index: {}]   ;;  %s4285_s3 = inlined_call_operand.vmem [shape: f32[2,64,32], index: 3, kind: output, shape index: {}]  }
   0x1 LB: > { %s2493_s13 = sadd.s32 4294967295, %s3586_s12   ;;  %p2497_p0 = scmp.ge.s32.totalorder %s3586_s12, 1  ;;  %s3586_s12 = sphi %s3619_s12, %s13_s12  }
   0x2   : > { %p147_p1 = scmp.lt.s32.totalorder %s3586_s12, 3 }
   0x4   : > { %p148_p2 = pnand %p2497_p0, %p147_p1 }
   0x5   : > { %p176_p3 = scmp.lt.s32.totalorder (!%p148_p2), %s2493_s13, 1  ;;  %vm227_vm0 = vcmask (!%p148_p2), 64512   ;;  %s3588_s18 = smov (!%p148_p2), 96   ;;  %vm373_vm2 = vcmask (!%p148_p2), 523264   ;;  %vm2417_vm3 = vcmask (!%p148_p2), 261120  }
   0x6   : > { %151 = sbr.rel (%p148_p2) target bundleno = 2704 (0xa90), region = 32  ;;  %vm3683_vm1 = vmpackc.low (!%p148_p2), %vm227_vm0, %vm227_vm0  ;;  %s3589_s19 = smov (!%p148_p2), 64  }
   0x7   : > { %s3590_s20 = smov (!%p148_p2), 88   ;;  %s3591_s21 = smov (!%p148_p2), 120  }
   0x8   : > { %s3592_s22 = smov (!%p148_p2), 56   ;;  %s3593_s23 = smov (!%p148_p2), 80  }
   0x9   : > { %s3594_s24 = smov (!%p148_p2), 112   ;;  %s3595_s25 = smov (!%p148_p2), 72  }
   0xa   : > { %s3596_s28 = smov (!%p148_p2), 104   ;;  %s3597_s4 = smov (!%p148_p2), 48  }
   0xb   : > { %s3598_s5 = smov (!%p148_p2), 40  }
   0xd   : > { %s4289_s13 = smov (!%p176_p3, %s2493_s13), 1 }
   0xe   : > { %s3627_s14 = sshll.u32 %s4289_s13, 6 }
   0xf   : > { %s3633_s17 = scalar_lea.vmem %s4282_s0, %s3627_s14  ;;  %s185_s13 = scalar_lea.vmem %s4283_s1, %s3627_s14 }
  0x10   : > { %v3636_v0 = vld [vmem:[%s3633_s17] sm:$0xff]  ;;  %v3639_v1 = vld [vmem:[%s3633_s17 + $0x8] sm:$0xff]  ;;  %v3642_v2 = vld [vmem:[%s3633_s17 + $0x10] sm:$0xff] }
  0x11   : > { %v3646_v3 = vpack.i.bf16 %v3639_v1, %v3636_v0  ;;  %v3649_v4 = vld [vmem:[%s3633_s17 + $0x18] sm:$0xff]  ;;  %v3652_v5 = vld [vmem:[%s3633_s17 + $0x20] sm:$0xff]  ;;  %v3655_v6 = vld [vmem:[%s3633_s17 + $0x28] sm:$0xff]  ;;  %2817 = vmatprep.mubr.msk.f32.mxu0 %vm227_vm0, %v3636_v0 }
  0x12   : > { %v3661_v7 = vpack.i.bf16 %v3655_v6, %v3652_v5  ;;  %v3664_v8 = vld [vmem:[%s3633_s17 + $0x30] sm:$0xff]  ;;  %v3667_v9 = vld [vmem:[%s3633_s17 + $0x38] sm:$0xff]  ;;  %v3672_v10 = vpack.i.bf16 %v3649_v4, %v3642_v2 }
  0x13   : > { %3285 = vrot.lane.b32.xlu0 %v3646_v3, %s3588_s18  ;;  %v3677_v11 = vpack.i.bf16 %v3667_v9, %v3664_v8 }
  0x14   : > { %3295 = vrot.lane.b32.xlu1 %v3661_v7, %s3588_s18 }
  0x17   : > { %3290 = vrot.lane.b32.xlu0 %v3672_v10, %s3588_s18 }
  0x18   : > { %3300 = vrot.lane.b32.xlu1 %v3677_v11, %s3588_s18 }
  0x85   : > { %v3286_v12 = vpop.permute.xlu0 %3285 }
  0x86   : > { %v3288_v13 = vunpack.i.h.bf16 %v3286_v12  ;;  %v3287_v14 = vunpack.i.l.bf16 %v3286_v12  ;;  %v3296_v18 = vpop.permute.xlu1 %3295 }
  0x87   : > { %v3298_v22 = vunpack.i.h.bf16 %v3296_v18  ;;  %v3297_v23 = vunpack.i.l.bf16 %v3296_v18 }
  0x88   : > { %v3081_v16 = vpack.c.bf16 %v3288_v13, %v3287_v14 }
  0x89   : > { %v3291_v17 = vpop.permute.xlu0 %3290  ;;  %v3093_v24 = vpack.c.bf16 %v3298_v22, %v3297_v23 }
  0x8a   : > { %3083 = vmatprep.subr.msk.bf16.mxu0 %vm3683_vm1, %v3081_v16  ;;  %v3293_v19 = vunpack.i.h.bf16 %v3291_v17  ;;  %v3292_v20 = vunpack.i.l.bf16 %v3291_v17  ;;  %v3301_v25 = vpop.permute.xlu1 %3300 }
  0x8b   : > { %3086 = vmatpush3.bf16.xpose.msk.msra.mxu0 %vm3683_vm1, %v3081_v16  ;;  %v3303_v26 = vunpack.i.h.bf16 %v3301_v25  ;;  %v3302_v27 = vunpack.i.l.bf16 %v3301_v25 }
  0x8c   : > { %v3087_v21 = vpack.c.bf16 %v3293_v19, %v3292_v20 }
  0x8d   : > { %v3099_v28 = vpack.c.bf16 %v3303_v26, %v3302_v27 }
  0x8e   : > { %3089 = vmatprep.subr.msk.bf16.mxu0 %vm3683_vm1, %v3087_v21 }
  0x93   : > { %3092 = vmatpush3.bf16.xpose.msk.msra.mxu0 %vm3683_vm1, %v3087_v21 }
  0x94   : > { %3095 = vmatprep.subr.msk.bf16.mxu0 %vm3683_vm1, %v3093_v24 }
  0x9b   : > { %3098 = vmatpush3.bf16.xpose.msk.msra.mxu0 %vm3683_vm1, %v3093_v24 }
  0x9c   : > { %3101 = vmatprep.subr.msk.bf16.mxu0 %vm3683_vm1, %v3099_v28 }
  0xa3   : > { %3104 = vmatpush3.bf16.xpose.msk.msra.mxu0 %vm3683_vm1, %v3099_v28 }
  0xaa   : > { %2818 = vmatmul.mubr.msk.f32.vlgmr.msra.gmra.mrb[0].mxu0 %vm227_vm0, %v3639_v1 }
  0xab   : > { %2820 = vmatprep.mubr.msk.f32.mxu0 %vm227_vm0, %v3642_v2 }
  0xae   : > { %2821 = vmatmul.mubr.msk.f32.gmra.mrb[2].mxu0 %vm227_vm0, %v3649_v4 }
  0xaf   : > { %2823 = vmatprep.mubr.msk.f32.mxu0 %vm227_vm0, %v3652_v5 }
  0xb2   : > { %2824 = vmatmul.mubr.msk.f32.gmra.mrb[4].mxu0 %vm227_vm0, %v3655_v6 }
  0xb3   : > { %2826 = vmatprep.mubr.msk.f32.mxu0 %vm227_vm0, %v3664_v8 }
  0xb6   : > { %2827 = vmatmul.mubr.msk.f32.gmra.mrb[6].mxu0 %vm227_vm0, %v3667_v9 }
 0x17d   : > { %v2819_v29 = vpop.f32.mrb[0].mxu0 }
 0x17e   : > { %v366_v30 = vmul.f32 0.35355338, %v2819_v29  ;;  %v326_v31 = vpop.f32.mrb[1].mxu0 }
 0x17f   : > { %v365_v32 = vmul.f32 0.35355338, %v326_v31 }
 0x180   : > { %v377_v33 = vsel %vm373_vm2, %v366_v30, -inf }
 0x181   : > { %378 = vmax.xlane.f32.xlu1 %v377_v33  ;;  %v374_v34 = vsel %vm373_vm2, %v365_v32, -inf  ;;  %v2822_v35 = vpop.f32.mrb[2].mxu0 }
 0x182   : > { %375 = vmax.xlane.f32.xlu0 %v374_v34  ;;  %v3719_v36 = vmul.f32 0.35355338, %v2822_v35  ;;  %v336_v37 = vpop.f32.mrb[3].mxu0 }
 0x183   : > { %v367_v38 = vmul.f32 0.35355338, %v336_v37 }
 0x184   : > { %v383_v39 = vsel %vm373_vm2, %v3719_v36, -inf }
 0x185   : > { %v2825_v40 = vpop.f32.mrb[4].mxu0  ;;  %v380_v42 = vsel %vm373_vm2, %v367_v38, -inf }
 0x186   : > { %384 = vmax.xlane.f32.xlu0 %v383_v39  ;;  %v346_v41 = vpop.f32.mrb[5].mxu0  ;;  %v370_v43 = vmul.f32 0.35355338, %v2825_v40 }
 0x187   : > { %v369_v49 = vmul.f32 0.35355338, %v346_v41 }
 0x188   : > { %v389_v46 = vsel %vm373_vm2, %v370_v43, -inf }
 0x189   : > { %v2828_v44 = vpop.f32.mrb[6].mxu0  ;;  %v386_v50 = vsel %vm373_vm2, %v369_v49, -inf }
 0x18a   : > { %381 = vmax.xlane.f32.xlu0 %v380_v42  ;;  %v356_v45 = vpop.f32.mrb[7].mxu0  ;;  %v3725_v47 = vmul.f32 0.35355338, %v2828_v44 }
 0x18b   : > { %v3733_v51 = vmul.f32 0.35355338, %v356_v45 }
 0x18c   : > { %v395_v48 = vsel %vm373_vm2, %v3725_v47, -inf }
 0x18d   : > { %v392_v52 = vsel %vm373_vm2, %v3733_v51, -inf }
 0x18e   : > { %390 = vmax.xlane.f32.xlu0 %v389_v46 }
 0x192   : > { %3305 = vrot.lane.b32.xlu1 %v3646_v3, %s3589_s19  ;;  %396 = vmax.xlane.f32.xlu0 %v395_v48 }
 0x1a8   : > { %3310 = vrot.lane.b32.xlu0 %v3672_v10, %s3589_s19 }
 0x1b6   : > { %387 = vmax.xlane.f32.xlu1 %v386_v50 }
 0x1c7   : > { %3315 = vrot.lane.b32.xlu1 %v3661_v7, %s3589_s19 }
 0x1eb   : > { %393 = vmax.xlane.f32.xlu1 %v392_v52 }
 0x1fc   : > { %3320 = vrot.lane.b32.xlu1 %v3677_v11, %s3589_s19 }
 0x20e   : > { %v379_v53 = vpop.xlane.xlu1 %378 }
 0x20f   : > { %v399_v54 = vsub.f32 %v366_v30, %v379_v53  ;;  %v376_v55 = vpop.xlane.xlu0 %375 }
 0x210   : > { %v398_v56 = vsub.f32 %v365_v32, %v376_v55 }
 0x211   : > { %v408_v57 = vmul.f32 1.442695, %v399_v54 }
 0x212   : > { %v406_v58 = vmul.f32 1.442695, %v398_v56  ;;  %v3306_v59 = vpop.permute.xlu1 %3305 }
 0x213   : > { %3444 = vpow2.f32 %v408_v57  ;;  %v385_v60 = vpop.xlane.xlu0 %384  ;;  %v3308_v61 = vunpack.i.h.bf16 %v3306_v59  ;;  %v3307_v62 = vunpack.i.l.bf16 %v3306_v59 }
 0x214   : > { %3446 = vpow2.f32 %v406_v58  ;;  %v401_v32 = vsub.f32 %v3719_v36, %v385_v60 }
 0x215   : > { %v3105_v63 = vpack.c.bf16 %v3308_v61, %v3307_v62 }
 0x216   : > { %v412_v34 = vmul.f32 1.442695, %v401_v32 }
 0x217   : > { %3106 = vmatprep.subr.bf16.mxu1 %v3105_v63  ;;  %v382_v12 = vpop.xlane.xlu0 %381 }
 0x218   : > { %v400_v13 = vsub.f32 %v367_v38, %v382_v12  ;;  %3108 = vmatpush3.bf16.msra.mxu1 %v3105_v63 }
 0x21a   : > { %v410_v14 = vmul.f32 1.442695, %v400_v13 }
 0x21b   : > { %v391_v16 = vpop.xlane.xlu0 %390 }
 0x21c   : > { %3448 = vpow2.f32 %v410_v14  ;;  %v403_v17 = vsub.f32 %v370_v43, %v391_v16 }
 0x21d   : > { %v3738_v18 = vpop.eup %3444 }
 0x21e   : > { %v3740_v19 = vpop.eup %3446  ;;  %v416_v20 = vmul.f32 1.442695, %v403_v17  ;;  %v425_v21 = vsel %vm373_vm2, %v3738_v18, 0.0 }
 0x21f   : > { %426 = vadd.xlane.f32.xlu0 %v425_v21  ;;  %v397_v22 = vpop.xlane.xlu0 %396  ;;  %v422_v23 = vsel %vm373_vm2, %v3740_v19, 0.0 }
 0x220   : > { %3450 = vpow2.f32 %v416_v20  ;;  %423 = vadd.xlane.f32.xlu1 %v422_v23  ;;  %v405_v33 = vsub.f32 %v3725_v47, %v397_v22 }
 0x221   : > { %3452 = vpow2.f32 %v412_v34 }
 0x222   : > { %v420_v38 = vmul.f32 1.442695, %v405_v33 }
 0x223   : > { %v3311_v24 = vpop.permute.xlu0 %3310 }
 0x224   : > { %v3313_v25 = vunpack.i.h.bf16 %v3311_v24  ;;  %v3312_v26 = vunpack.i.l.bf16 %v3311_v24 }
 0x226   : > { %v3746_v27 = vpop.eup %3448  ;;  %v3109_v28 = vpack.c.bf16 %v3313_v25, %v3312_v26 }
 0x227   : > { %v428_v29 = vsel %vm373_vm2, %v3746_v27, 0.0 }
 0x228   : > { %429 = vadd.xlane.f32.xlu0 %v428_v29  ;;  %3110 = vmatprep.subr.bf16.mxu1 %v3109_v28 }
 0x229   : > { %3112 = vmatpush3.bf16.msra.mxu1 %v3109_v28 }
 0x22a   : > { %v3750_v30 = vpop.eup %3450 }
 0x22b   : > { %v437_v31 = vsel %vm373_vm2, %v3750_v30, 0.0  ;;  %v3758_v44 = vpop.eup %3452 }
 0x22c   : > { %438 = vadd.xlane.f32.xlu0 %v437_v31  ;;  %v431_v47 = vsel %vm373_vm2, %v3758_v44, 0.0 }
 0x231   : > { %3325 = vrot.lane.b32.xlu1 %v3646_v3, %s3590_s20 }
 0x243   : > { %v388_v35 = vpop.xlane.xlu1 %387 }
 0x244   : > { %v402_v37 = vsub.f32 %v369_v49, %v388_v35 }
 0x246   : > { %v414_v39 = vmul.f32 1.442695, %v402_v37 }
 0x247   : > { %v3316_v40 = vpop.permute.xlu1 %3315 }
 0x248   : > { %3454 = vpow2.f32 %v414_v39  ;;  %v3318_v41 = vunpack.i.h.bf16 %v3316_v40  ;;  %v3317_v42 = vunpack.i.l.bf16 %v3316_v40 }
 0x249   : > { %3456 = vpow2.f32 %v420_v38 }
 0x24a   : > { %v3113_v43 = vpack.c.bf16 %v3318_v41, %v3317_v42 }
 0x24c   : > { %3114 = vmatprep.subr.bf16.mxu1 %v3113_v43 }
 0x24d   : > { %3116 = vmatpush3.bf16.msra.mxu1 %v3113_v43 }
 0x252   : > { %v3760_v45 = vpop.eup %3454 }
 0x253   : > { %v434_v36 = vsel %vm373_vm2, %v3760_v45, 0.0  ;;  %v3764_v46 = vpop.eup %3456 }
 0x254   : > { %435 = vadd.xlane.f32.xlu0 %v434_v36  ;;  %v443_v48 = vsel %vm373_vm2, %v3764_v46, 0.0 }
 0x255   : > { %432 = vadd.xlane.f32.xlu1 %v431_v47 }
 0x258   : > { %444 = vadd.xlane.f32.xlu0 %v443_v48 }
 0x266   : > { %3335 = vrot.lane.b32.xlu1 %v3661_v7, %s3590_s20 }
 0x26a   : > { %3340 = vrot.lane.b32.xlu1 %v3677_v11, %s3590_s20 }
 0x26e   : > { %615 = vrot.lane.b32.xlu1 %v3636_v0, %s3591_s21 }
 0x272   : > { %617 = vrot.lane.b32.xlu1 %v3639_v1, %s3591_s21 }
 0x276   : > { %621 = vrot.lane.b32.xlu1 %v3649_v4, %s3591_s21 }
 0x278   : > { %v394_v49 = vpop.xlane.xlu1 %393 }
 0x279   : > { %v404_v50 = vsub.f32 %v3733_v51, %v394_v49 }
 0x27a   : > { %625 = vrot.lane.b32.xlu1 %v3655_v6, %s3591_s21 }
 0x27b   : > { %v418_v52 = vmul.f32 1.442695, %v404_v50 }
 0x27c   : > { %v3321_v53 = vpop.permute.xlu1 %3320 }
 0x27d   : > { %3458 = vpow2.f32 %v418_v52  ;;  %v3323_v54 = vunpack.i.h.bf16 %v3321_v53  ;;  %v3322_v55 = vunpack.i.l.bf16 %v3321_v53 }
 0x27e   : > { %629 = vrot.lane.b32.xlu1 %v3667_v9, %s3591_s21 }
 0x27f   : > { %v3117_v56 = vpack.c.bf16 %v3323_v54, %v3322_v55 }
 0x281   : > { %3118 = vmatprep.subr.bf16.mxu1 %v3117_v56 }
 0x282   : > { %3120 = vmatpush3.bf16.msra.mxu1 %v3117_v56 }
 0x287   : > { %v3780_v57 = vpop.eup %3458 }
 0x288   : > { %v440_v58 = vsel %vm373_vm2, %v3780_v57, 0.0 }
 0x289   : > { %441 = vadd.xlane.f32.xlu0 %v440_v58 }
 0x29f   : > { %3330 = vrot.lane.b32.xlu0 %v3672_v10, %s3590_s20 }
 0x2a3   : > { %619 = vrot.lane.b32.xlu0 %v3642_v2, %s3591_s21 }
 0x2a7   : > { %623 = vrot.lane.b32.xlu0 %v3652_v5, %s3591_s21 }
 0x2ab   : > { %627 = vrot.lane.b32.xlu0 %v3664_v8, %s3591_s21 }
 0x2ac   : > { %v427_v51 = vpop.xlane.xlu0 %426 }
 0x2ad   : > { %3460 = vrcp.f32 %v427_v51  ;;  %v424_v59 = vpop.xlane.xlu1 %423 }
 0x2ae   : > { %3462 = vrcp.f32 %v424_v59 }
 0x2b1   : > { %v3326_v60 = vpop.permute.xlu1 %3325 }
 0x2b2   : > { %v3328_v61 = vunpack.i.h.bf16 %v3326_v60  ;;  %v3327_v62 = vunpack.i.l.bf16 %v3326_v60 }
 0x2b4   : > { %v3121_v63 = vpack.c.bf16 %v3328_v61, %v3327_v62 }
 0x2b5   : > { %v430_v12 = vpop.xlane.xlu0 %429 }
 0x2b6   : > { %3464 = vrcp.f32 %v430_v12  ;;  %3123 = vmatprep.subr.msk.bf16.mxu1 %vm3683_vm1, %v3121_v63 }
 0x2b7   : > { %v3461_v13 = vpop.eup %3460 }
 0x2b8   : > { %v3463_v14 = vpop.eup %3462  ;;  %v455_v17 = vmul.f32 %v3461_v13, %v3738_v18 }
 0x2b9   : > { %v454_v16 = vmul.f32 %v3463_v14, %v3740_v19  ;;  %v439_v22 = vpop.xlane.xlu0 %438 }
 0x2bb   : > { %2845 = vmatprep.mubr.msk.f32.mxu1 %vm373_vm2, %v454_v16 }
 0x2bc   : > { %2846 = vmatmul.mubr.msk.f32.vlgmr.msra.gmra.mrb[0].mxu1 %vm373_vm2, %v455_v17 }
 0x2bd   : > { %3126 = vmatpush3.bf16.xpose.msk.msra.mxu1 %vm3683_vm1, %v3121_v63 }
 0x2c0   : > { %v3465_v20 = vpop.eup %3464 }
 0x2c1   : > { %v456_v21 = vmul.f32 %v3465_v20, %v3746_v27 }
 0x2c3   : > { %2848 = vmatprep.mubr.msk.f32.mxu1 %vm373_vm2, %v456_v21 }
 0x2e1   : > { %v436_v23 = vpop.xlane.xlu0 %435 }
 0x2e2   : > { %3466 = vrcp.f32 %v436_v23  ;;  %v433_v24 = vpop.xlane.xlu1 %432 }
 0x2e3   : > { %3468 = vrcp.f32 %v433_v24 }
 0x2e4   : > { %3470 = vrcp.f32 %v439_v22 }
 0x2e5   : > { %v445_v29 = vpop.xlane.xlu0 %444 }
 0x2e6   : > { %3472 = vrcp.f32 %v445_v29  ;;  %v3336_v32 = vpop.permute.xlu1 %3335 }
 0x2e7   : > { %v3338_v33 = vunpack.i.h.bf16 %v3336_v32  ;;  %v3337_v34 = vunpack.i.l.bf16 %v3336_v32 }
 0x2e9   : > { %v3133_v40 = vpack.c.bf16 %v3338_v33, %v3337_v34 }
 0x2ea   : > { %v3341_v41 = vpop.permute.xlu1 %3340 }
 0x2eb   : > { %v3343_v43 = vunpack.i.h.bf16 %v3341_v41 }
 0x2ec   : > { %v3467_v19 = vpop.eup %3466 }
 0x2ed   : > { %v3469_v18 = vpop.eup %3468  ;;  %v458_v28 = vmul.f32 %v3467_v19, %v3760_v45 }
 0x2ee   : > { %v457_v25 = vmul.f32 %v3469_v18, %v3758_v44  ;;  %v3471_v26 = vpop.eup %3470  ;;  %v3342_v44 = vunpack.i.l.bf16 %v3341_v41  ;;  %v616_v47 = vpop.permute.xlu1 %615 }
 0x2ef   : > { %v459_v27 = vmul.f32 %v3471_v26, %v3750_v30 }
 0x2f0   : > { %2849 = vmatmul.mubr.msk.f32.gmra.mrb[2].mxu1 %vm373_vm2, %v457_v25  ;;  %v3473_v42 = vpop.eup %3472  ;;  %v3139_v48 = vpack.c.bf16 %v3343_v43, %v3342_v44 }
 0x2f1   : > { %2851 = vmatprep.mubr.msk.f32.mxu1 %vm373_vm2, %v458_v28  ;;  %v461_v36 = vmul.f32 %v3473_v42, %v3764_v46 }
 0x2f2   : > { %v618_v49 = vpop.permute.xlu1 %617 }
 0x2f4   : > { %2852 = vmatmul.mubr.msk.f32.gmra.mrb[4].mxu1 %vm373_vm2, %v459_v27 }
 0x2f6   : > { %v622_v46 = vpop.permute.xlu1 %621 }
 0x2fa   : > { %v626_v53 = vpop.permute.xlu1 %625 }
 0x2fe   : > { %v630_v55 = vpop.permute.xlu1 %629 }
 0x316   : > { %v442_v31 = vpop.xlane.xlu0 %441 }
 0x317   : > { %3474 = vrcp.f32 %v442_v31 }
 0x31a   : > { %v3331_v35 = vpop.permute.xlu0 %3330 }
 0x31b   : > { %v3333_v37 = vunpack.i.h.bf16 %v3331_v35  ;;  %v3332_v38 = vunpack.i.l.bf16 %v3331_v35 }
 0x31d   : > { %v3127_v39 = vpack.c.bf16 %v3333_v37, %v3332_v38 }
 0x31e   : > { %v620_v50 = vpop.permute.xlu0 %619 }
 0x31f   : > { %3129 = vmatprep.subr.msk.bf16.mxu1 %vm3683_vm1, %v3127_v39 }
 0x320   : > { %3132 = vmatpush3.bf16.xpose.msk.msra.mxu1 %vm3683_vm1, %v3127_v39 }
 0x321   : > { %v3475_v30 = vpop.eup %3474  ;;  %3135 = vmatprep.subr.msk.bf16.mxu1 %vm3683_vm1, %v3133_v40 }
 0x322   : > { %v460_v45 = vmul.f32 %v3475_v30, %v3780_v57  ;;  %v624_v52 = vpop.permute.xlu0 %623 }
 0x324   : > { %2854 = vmatprep.mubr.msk.f32.mxu1 %vm373_vm2, %v460_v45 }
 0x325   : > { %2855 = vmatmul.mubr.msk.f32.gmra.mrb[6].mxu1 %vm373_vm2, %v461_v36 }
 0x326   : > { %2873 = vmatprep.mubr.msk.f32.mxu1 %vm227_vm0, %v616_v47  ;;  %v628_v54 = vpop.permute.xlu0 %627 }
 0x328   : > { %3138 = vmatpush3.bf16.xpose.msk.msra.mxu1 %vm3683_vm1, %v3133_v40 }
 0x329   : > { %3141 = vmatprep.subr.msk.bf16.mxu1 %vm3683_vm1, %v3139_v48 }
 0x330   : > { %3144 = vmatpush3.bf16.xpose.msk.msra.mxu1 %vm3683_vm1, %v3139_v48 }
 0x337   : > { %2874 = vmatmul.mubr.msk.f32.vlgmr.msra.gmra.mrb[8].mxu1 %vm227_vm0, %v618_v49 }
 0x338   : > { %2876 = vmatprep.mubr.msk.f32.mxu1 %vm227_vm0, %v620_v50 }
 0x33b   : > { %2877 = vmatmul.mubr.msk.f32.gmra.mrb[10].mxu1 %vm227_vm0, %v622_v46 }
 0x33c   : > { %2879 = vmatprep.mubr.msk.f32.mxu1 %vm227_vm0, %v624_v52 }
 0x33f   : > { %2880 = vmatmul.mubr.msk.f32.gmra.mrb[12].mxu1 %vm227_vm0, %v626_v53 }
 0x340   : > { %2882 = vmatprep.mubr.msk.f32.mxu1 %vm227_vm0, %v628_v54 }
 0x343   : > { %2883 = vmatmul.mubr.msk.f32.gmra.mrb[14].mxu1 %vm227_vm0, %v630_v55 }
 0x38f   : > { %v3829_v56 = vpop.f32.mrb[0].mxu1 }
 0x390   : > { %v3831_v57 = vpop.f32.mrb[1].mxu1 }
 0x3c3   : > { %v3833_v58 = vpop.f32.mrb[2].mxu1 }
 0x3c4   : > { %v3835_v51 = vpop.f32.mrb[3].mxu1 }
 0x3c7   : > { %v3837_v59 = vpop.f32.mrb[4].mxu1 }
 0x3c8   : > { %v3839_v60 = vpop.f32.mrb[5].mxu1 }
 0x3f8   : > { %v3841_v61 = vpop.f32.mrb[6].mxu1 }
 0x3f9   : > { %v3843_v62 = vpop.f32.mrb[7].mxu1 }
 0x40a   : > { %v2875_v63 = vpop.f32.mrb[8].mxu1 }
 0x40b   : > { %v785_v12 = vmul.f32 0.35355338, %v2875_v63  ;;  %v745_v13 = vpop.f32.mrb[9].mxu1 }
 0x40c   : > { %v784_v14 = vmul.f32 0.35355338, %v745_v13 }
 0x40d   : > { %v795_v16 = vsel %vm373_vm2, %v785_v12, -inf }
 0x40e   : > { %796 = vmax.xlane.f32.xlu1 %v795_v16  ;;  %v792_v17 = vsel %vm373_vm2, %v784_v14, -inf  ;;  %v2878_v20 = vpop.f32.mrb[10].mxu1 }
 0x40f   : > { %793 = vmax.xlane.f32.xlu0 %v792_v17  ;;  %v3847_v21 = vmul.f32 0.35355338, %v2878_v20  ;;  %v755_v22 = vpop.f32.mrb[11].mxu1 }
 0x410   : > { %v786_v23 = vmul.f32 0.35355338, %v755_v22 }
 0x411   : > { %v801_v24 = vsel %vm373_vm2, %v3847_v21, -inf }
 0x412   : > { %v2881_v19 = vpop.f32.mrb[12].mxu1  ;;  %v798_v25 = vsel %vm373_vm2, %v786_v23, -inf }
 0x413   : > { %802 = vmax.xlane.f32.xlu0 %v801_v24  ;;  %v765_v18 = vpop.f32.mrb[13].mxu1  ;;  %v789_v26 = vmul.f32 0.35355338, %v2881_v19 }
 0x414   : > { %v788_v33 = vmul.f32 0.35355338, %v765_v18 }
 0x415   : > { %v807_v29 = vsel %vm373_vm2, %v789_v26, -inf }
 0x416   : > { %v2884_v28 = vpop.f32.mrb[14].mxu1  ;;  %v804_v34 = vsel %vm373_vm2, %v788_v33, -inf }
 0x417   : > { %799 = vmax.xlane.f32.xlu0 %v798_v25  ;;  %v775_v27 = vpop.f32.mrb[15].mxu1  ;;  %v3853_v31 = vmul.f32 0.35355338, %v2884_v28 }
 0x418   : > { %v3861_v35 = vmul.f32 0.35355338, %v775_v27 }
 0x419   : > { %v813_v32 = vsel %vm373_vm2, %v3853_v31, -inf }
 0x41a   : > { %v810_v37 = vsel %vm373_vm2, %v3861_v35, -inf }
 0x41b   : > { %808 = vmax.xlane.f32.xlu0 %v807_v29 }
 0x41f   : > { %3345 = vrot.lane.b32.xlu1 %v3646_v3, %s3592_s22  ;;  %814 = vmax.xlane.f32.xlu0 %v813_v32 }
 0x435   : > { %3350 = vrot.lane.b32.xlu0 %v3672_v10, %s3592_s22 }
 0x443   : > { %805 = vmax.xlane.f32.xlu1 %v804_v34 }
 0x454   : > { %3355 = vrot.lane.b32.xlu1 %v3661_v7, %s3592_s22 }
 0x478   : > { %811 = vmax.xlane.f32.xlu1 %v810_v37 }
 0x489   : > { %3360 = vrot.lane.b32.xlu1 %v3677_v11, %s3592_s22 }
 0x49b   : > { %v797_v38 = vpop.xlane.xlu1 %796 }
 0x49c   : > { %v817_v39 = vsub.f32 %v785_v12, %v797_v38  ;;  %v794_v40 = vpop.xlane.xlu0 %793 }
 0x49d   : > { %v816_v41 = vsub.f32 %v784_v14, %v794_v40 }
 0x49e   : > { %v826_v42 = vmul.f32 1.442695, %v817_v39 }
 0x49f   : > { %v824_v30 = vmul.f32 1.442695, %v816_v41  ;;  %v3346_v43 = vpop.permute.xlu1 %3345 }
 0x4a0   : > { %3476 = vpow2.f32 %v826_v42  ;;  %v3348_v44 = vunpack.i.h.bf16 %v3346_v43  ;;  %v3347_v45 = vunpack.i.l.bf16 %v3346_v43  ;;  %v803_v36 = vpop.xlane.xlu0 %802 }
 0x4a1   : > { %3478 = vpow2.f32 %v824_v30  ;;  %v819_v18 = vsub.f32 %v3847_v21, %v803_v36 }
 0x4a2   : > { %v3145_v47 = vpack.c.bf16 %v3348_v44, %v3347_v45 }
 0x4a4   : > { %3146 = vmatprep.subr.bf16.mxu1 %v3145_v47  ;;  %v800_v48 = vpop.xlane.xlu0 %799 }
 0x4a5   : > { %v818_v49 = vsub.f32 %v786_v23, %v800_v48  ;;  %3148 = vmatpush3.bf16.msra.mxu1 %v3145_v47 }
 0x4a7   : > { %v828_v50 = vmul.f32 1.442695, %v818_v49 }
 0x4a8   : > { %v809_v46 = vpop.xlane.xlu0 %808 }
 0x4a9   : > { %3480 = vpow2.f32 %v828_v50  ;;  %v821_v52 = vsub.f32 %v789_v26, %v809_v46  ;;  %v830_v26 = vmul.f32 1.442695, %v819_v18 }
 0x4aa   : > { %v3866_v53 = vpop.eup %3476 }
 0x4ab   : > { %v3868_v54 = vpop.eup %3478  ;;  %v834_v55 = vmul.f32 1.442695, %v821_v52  ;;  %v843_v63 = vsel %vm373_vm2, %v3866_v53, 0.0 }
 0x4ac   : > { %844 = vadd.xlane.f32.xlu0 %v843_v63  ;;  %v815_v12 = vpop.xlane.xlu0 %814  ;;  %v840_v13 = vsel %vm373_vm2, %v3868_v54, 0.0 }
 0x4ad   : > { %3482 = vpow2.f32 %v834_v55  ;;  %841 = vadd.xlane.f32.xlu1 %v840_v13  ;;  %v823_v25 = vsub.f32 %v3853_v31, %v815_v12 }
 0x4ae   : > { %3484 = vpow2.f32 %v830_v26 }
 0x4af   : > { %v838_v29 = vmul.f32 1.442695, %v823_v25 }
 0x4b0   : > { %v3351_v14 = vpop.permute.xlu0 %3350 }
 0x4b1   : > { %v3353_v16 = vunpack.i.h.bf16 %v3351_v14  ;;  %v3352_v17 = vunpack.i.l.bf16 %v3351_v14 }
 0x4b3   : > { %v3874_v20 = vpop.eup %3480  ;;  %v3149_v22 = vpack.c.bf16 %v3353_v16, %v3352_v17 }
 0x4b4   : > { %v846_v23 = vsel %vm373_vm2, %v3874_v20, 0.0 }
 0x4b5   : > { %847 = vadd.xlane.f32.xlu0 %v846_v23  ;;  %3150 = vmatprep.subr.bf16.mxu1 %v3149_v22 }
 0x4b6   : > { %3152 = vmatpush3.bf16.msra.mxu1 %v3149_v22 }
 0x4b7   : > { %v3878_v24 = vpop.eup %3482 }
 0x4b8   : > { %v855_v19 = vsel %vm373_vm2, %v3878_v24, 0.0  ;;  %v3886_v40 = vpop.eup %3484 }
 0x4b9   : > { %856 = vadd.xlane.f32.xlu0 %v855_v19 }
 0x4be   : > { %3365 = vrot.lane.b32.xlu1 %v3646_v3, %s3593_s23 }
 0x4d0   : > { %v806_v28 = vpop.xlane.xlu1 %805 }
 0x4d1   : > { %v820_v27 = vsub.f32 %v788_v33, %v806_v28  ;;  %v849_v33 = vsel %vm373_vm2, %v3886_v40, 0.0 }
 0x4d3   : > { %v832_v32 = vmul.f32 1.442695, %v820_v27 }
 0x4d4   : > { %v3356_v34 = vpop.permute.xlu1 %3355 }
 0x4d5   : > { %3486 = vpow2.f32 %v832_v32  ;;  %v3358_v37 = vunpack.i.h.bf16 %v3356_v34  ;;  %v3357_v38 = vunpack.i.l.bf16 %v3356_v34 }
 0x4d6   : > { %3488 = vpow2.f32 %v838_v29 }
 0x4d7   : > { %v3153_v39 = vpack.c.bf16 %v3358_v37, %v3357_v38 }
 0x4d9   : > { %3154 = vmatprep.subr.bf16.mxu1 %v3153_v39 }
 0x4da   : > { %3156 = vmatpush3.bf16.msra.mxu1 %v3153_v39 }
 0x4df   : > { %v3888_v41 = vpop.eup %3486 }
 0x4e0   : > { %v852_v21 = vsel %vm373_vm2, %v3888_v41, 0.0  ;;  %v3892_v31 = vpop.eup %3488 }
 0x4e1   : > { %853 = vadd.xlane.f32.xlu0 %v852_v21  ;;  %v861_v42 = vsel %vm373_vm2, %v3892_v31, 0.0 }
 0x4e2   : > { %850 = vadd.xlane.f32.xlu1 %v849_v33 }
 0x4e5   : > { %862 = vadd.xlane.f32.xlu0 %v861_v42 }
 0x4f3   : > { %3375 = vrot.lane.b32.xlu1 %v3661_v7, %s3593_s23 }
 0x4f7   : > { %3380 = vrot.lane.b32.xlu1 %v3677_v11, %s3593_s23 }
 0x4fb   : > { %1291 = vrot.lane.b32.xlu1 %v3636_v0, %s3594_s24 }
 0x4ff   : > { %1293 = vrot.lane.b32.xlu1 %v3639_v1, %s3594_s24 }
 0x503   : > { %1297 = vrot.lane.b32.xlu1 %v3649_v4, %s3594_s24 }
 0x505   : > { %v812_v30 = vpop.xlane.xlu1 %811 }
 0x506   : > { %v822_v43 = vsub.f32 %v3861_v35, %v812_v30 }
 0x507   : > { %1301 = vrot.lane.b32.xlu1 %v3655_v6, %s3594_s24 }
 0x508   : > { %v836_v44 = vmul.f32 1.442695, %v822_v43 }
 0x509   : > { %v3361_v45 = vpop.permute.xlu1 %3360 }
 0x50a   : > { %3490 = vpow2.f32 %v836_v44  ;;  %v3363_v36 = vunpack.i.h.bf16 %v3361_v45  ;;  %v3362_v47 = vunpack.i.l.bf16 %v3361_v45 }
 0x50b   : > { %1305 = vrot.lane.b32.xlu1 %v3667_v9, %s3594_s24 }
 0x50c   : > { %v3157_v48 = vpack.c.bf16 %v3363_v36, %v3362_v47 }
 0x50e   : > { %3158 = vmatprep.subr.bf16.mxu1 %v3157_v48 }
 0x50f   : > { %3160 = vmatpush3.bf16.msra.mxu1 %v3157_v48  ;;  %3390 = vrot.lane.b32.xlu1 %v3672_v10, %s3595_s25 }
 0x513   : > { %3400 = vrot.lane.b32.xlu1 %v3677_v11, %s3595_s25 }
 0x514   : > { %v3908_v49 = vpop.eup %3490 }
 0x515   : > { %v858_v50 = vsel %vm373_vm2, %v3908_v49, 0.0 }
 0x516   : > { %859 = vadd.xlane.f32.xlu0 %v858_v50 }
 0x517   : > { %1848 = vrot.lane.b32.xlu1 %v3639_v1, %s3596_s28 }
 0x51b   : > { %1852 = vrot.lane.b32.xlu1 %v3649_v4, %s3596_s28 }
 0x51f   : > { %1856 = vrot.lane.b32.xlu1 %v3655_v6, %s3596_s28 }
 0x523   : > { %1860 = vrot.lane.b32.xlu1 %v3667_v9, %s3596_s28 }
 0x52c   : > { %3370 = vrot.lane.b32.xlu0 %v3672_v10, %s3593_s23 }
 0x530   : > { %1295 = vrot.lane.b32.xlu0 %v3642_v2, %s3594_s24 }
 0x534   : > { %1299 = vrot.lane.b32.xlu0 %v3652_v5, %s3594_s24 }
 0x538   : > { %1303 = vrot.lane.b32.xlu0 %v3664_v8, %s3594_s24 }
 0x539   : > { %v845_v35 = vpop.xlane.xlu0 %844 }
 0x53a   : > { %3492 = vrcp.f32 %v845_v35  ;;  %v842_v46 = vpop.xlane.xlu1 %841 }
 0x53b   : > { %3494 = vrcp.f32 %v842_v46 }
 0x53c   : > { %3385 = vrot.lane.b32.xlu0 %v3646_v3, %s3595_s25 }
 0x53e   : > { %v3366_v52 = vpop.permute.xlu1 %3365 }
 0x53f   : > { %v3368_v55 = vunpack.i.h.bf16 %v3366_v52  ;;  %v3367_v63 = vunpack.i.l.bf16 %v3366_v52  ;;  %v199_v52 = vld [vmem:[%s4284_s2] sm:$0xff] }
 0x540   : > { %3395 = vrot.lane.b32.xlu0 %v3661_v7, %s3595_s25  ;;  %v200_v7 = vld [vmem:[%s4284_s2 + $0x8] sm:$0xff] }
 0x541   : > { %v3161_v12 = vpack.c.bf16 %v3368_v55, %v3367_v63  ;;  %2913 = vmatprep.subr.mxu0 %v200_v7 }
 0x542   : > { %v848_v13 = vpop.xlane.xlu0 %847  ;;  %2914 = vmatpush3.msra.mxu0 %v200_v7 }
 0x543   : > { %3496 = vrcp.f32 %v848_v13  ;;  %3163 = vmatprep.subr.msk.bf16.mxu1 %vm3683_vm1, %v3161_v12  ;;  %2927 = vmatprep.subr.mxu0 %v199_v52 }
 0x544   : > { %v3493_v14 = vpop.eup %3492  ;;  %1846 = vrot.lane.b32.xlu0 %v3636_v0, %s3596_s28 }
 0x545   : > { %v3495_v16 = vpop.eup %3494  ;;  %v873_v22 = vmul.f32 %v3493_v14, %v3866_v53 }
 0x546   : > { %v872_v17 = vmul.f32 %v3495_v16, %v3868_v54  ;;  %v857_v53 = vpop.xlane.xlu0 %856 }
 0x548   : > { %2901 = vmatprep.mubr.msk.f32.mxu1 %vm373_vm2, %v872_v17  ;;  %1850 = vrot.lane.b32.xlu0 %v3642_v2, %s3596_s28 }
 0x549   : > { %2902 = vmatmul.mubr.msk.f32.vlgmr.msra.gmra.mrb[16].mxu1 %vm373_vm2, %v873_v22 }
 0x54a   : > { %3166 = vmatpush3.bf16.xpose.msk.msra.mxu1 %vm3683_vm1, %v3161_v12 }
 0x54c   : > { %1854 = vrot.lane.b32.xlu0 %v3652_v5, %s3596_s28 }
 0x54d   : > { %v3497_v23 = vpop.eup %3496 }
 0x54e   : > { %v874_v19 = vmul.f32 %v3497_v23, %v3874_v20 }
 0x550   : > { %2904 = vmatprep.mubr.msk.f32.mxu1 %vm373_vm2, %v874_v19  ;;  %1858 = vrot.lane.b32.xlu0 %v3664_v8, %s3596_s28 }
 0x56e   : > { %v854_v54 = vpop.xlane.xlu0 %853 }
 0x56f   : > { %3498 = vrcp.f32 %v854_v54  ;;  %v851_v18 = vpop.xlane.xlu1 %850 }
 0x570   : > { %3500 = vrcp.f32 %v851_v18 }
 0x571   : > { %3502 = vrcp.f32 %v857_v53 }
 0x572   : > { %v863_v10 = vpop.xlane.xlu0 %862 }
 0x573   : > { %3504 = vrcp.f32 %v863_v10  ;;  %v3376_v32 = vpop.permute.xlu1 %3375 }
 0x574   : > { %v3377_v34 = vunpack.i.l.bf16 %v3376_v32 }
 0x579   : > { %v3499_v25 = vpop.eup %3498 }
 0x57a   : > { %v3501_v26 = vpop.eup %3500  ;;  %v876_v27 = vmul.f32 %v3499_v25, %v3888_v41 }
 0x57b   : > { %v875_v28 = vmul.f32 %v3501_v26, %v3886_v40  ;;  %v3503_v20 = vpop.eup %3502  ;;  %v3381_v40 = vpop.permute.xlu1 %3380 }
 0x57c   : > { %v877_v3 = vmul.f32 %v3503_v20, %v3878_v24  ;;  %v3378_v24 = vunpack.i.h.bf16 %v3376_v32  ;;  %v3383_v4 = vunpack.i.h.bf16 %v3381_v40  ;;  %v3382_v5 = vunpack.i.l.bf16 %v3381_v40 }
 0x57d   : > { %2905 = vmatmul.mubr.msk.f32.gmra.mrb[18].mxu1 %vm373_vm2, %v875_v28  ;;  %v3505_v1 = vpop.eup %3504 }
 0x57e   : > { %2907 = vmatprep.mubr.msk.f32.mxu1 %vm373_vm2, %v876_v27  ;;  %v3173_v11 = vpack.c.bf16 %v3378_v24, %v3377_v34  ;;  %v879_v21 = vmul.f32 %v3505_v1, %v3892_v31  ;;  %v3179_v8 = vpack.c.bf16 %v3383_v4, %v3382_v5 }
 0x57f   : > { %v1292_v33 = vpop.permute.xlu1 %1291 }
 0x581   : > { %2908 = vmatmul.mubr.msk.f32.gmra.mrb[20].mxu1 %vm373_vm2, %v877_v3 }
 0x583   : > { %v1294_v6 = vpop.permute.xlu1 %1293 }
 0x587   : > { %v1298_v42 = vpop.permute.xlu1 %1297 }
 0x58b   : > { %v1302_v30 = vpop.permute.xlu1 %1301 }
 0x58f   : > { %v1306_v44 = vpop.permute.xlu1 %1305 }
 0x5a3   : > { %v860_v29 = vpop.xlane.xlu0 %859 }
 0x5a4   : > { %3506 = vrcp.f32 %v860_v29 }
 0x5a7   : > { %v3371_v37 = vpop.permute.xlu0 %3370 }
 0x5a8   : > { %v3373_v38 = vunpack.i.h.bf16 %v3371_v37  ;;  %v3372_v39 = vunpack.i.l.bf16 %v3371_v37 }
 0x5aa   : > { %v3167_v0 = vpack.c.bf16 %v3373_v38, %v3372_v39 }
 0x5ab   : > { %v1296_v31 = vpop.permute.xlu0 %1295 }
 0x5ac   : > { %3169 = vmatprep.subr.msk.bf16.mxu1 %vm3683_vm1, %v3167_v0 }
 0x5ad   : > { %3172 = vmatpush3.bf16.xpose.msk.msra.mxu1 %vm3683_vm1, %v3167_v0 }
 0x5ae   : > { %v3507_v2 = vpop.eup %3506  ;;  %3175 = vmatprep.subr.msk.bf16.mxu1 %vm3683_vm1, %v3173_v11 }
 0x5af   : > { %v878_v41 = vmul.f32 %v3507_v2, %v3908_v49  ;;  %v1300_v9 = vpop.permute.xlu0 %1299  ;;  %v3391_v49 = vpop.permute.xlu1 %3390 }
 0x5b0   : > { %v3393_v50 = vunpack.i.h.bf16 %v3391_v49  ;;  %v3392_v35 = vunpack.i.l.bf16 %v3391_v49 }
 0x5b1   : > { %2910 = vmatprep.mubr.msk.f32.mxu1 %vm373_vm2, %v878_v41 }
 0x5b2   : > { %2911 = vmatmul.mubr.msk.f32.gmra.mrb[22].mxu1 %vm373_vm2, %v879_v21  ;;  %v3207_v46 = vpack.c.bf16 %v3393_v50, %v3392_v35 }
 0x5b3   : > { %2957 = vmatprep.mubr.msk.f32.mxu1 %vm227_vm0, %v1292_v33  ;;  %v1304_v43 = vpop.permute.xlu0 %1303  ;;  %v3401_v14 = vpop.permute.xlu1 %3400 }
 0x5b4   : > { %v3403_v16 = vunpack.i.h.bf16 %v3401_v14  ;;  %v3402_v17 = vunpack.i.l.bf16 %v3401_v14 }
 0x5b5   : > { %3178 = vmatpush3.bf16.xpose.msk.msra.mxu1 %vm3683_vm1, %v3173_v11 }
 0x5b6   : > { %3181 = vmatprep.subr.msk.bf16.mxu1 %vm3683_vm1, %v3179_v8  ;;  %v3219_v22 = vpack.c.bf16 %v3403_v16, %v3402_v17 }
 0x5b7   : > { %v3386_v45 = vpop.permute.xlu0 %3385  ;;  %v1849_v54 = vpop.permute.xlu1 %1848 }
 0x5b8   : > { %v3388_v36 = vunpack.i.h.bf16 %v3386_v45  ;;  %v3387_v47 = vunpack.i.l.bf16 %v3386_v45 }
 0x5ba   : > { %v3201_v48 = vpack.c.bf16 %v3388_v36, %v3387_v47 }
 0x5bb   : > { %v3396_v55 = vpop.permute.xlu0 %3395  ;;  %v1853_v25 = vpop.permute.xlu1 %1852 }
 0x5bc   : > { %v3398_v63 = vunpack.i.h.bf16 %v3396_v55  ;;  %v3397_v12 = vunpack.i.l.bf16 %v3396_v55 }
 0x5bd   : > { %3184 = vmatpush3.bf16.xpose.msk.msra.mxu1 %vm3683_vm1, %v3179_v8 }
 0x5be   : > { %3203 = vmatprep.subr.msk.bf16.mxu1 %vm3683_vm1, %v3201_v48  ;;  %v3213_v13 = vpack.c.bf16 %v3398_v63, %v3397_v12 }
 0x5bf   : > { %v1847_v53 = vpop.permute.xlu0 %1846  ;;  %v1857_v26 = vpop.permute.xlu1 %1856 }
 0x5c3   : > { %v1851_v18 = vpop.permute.xlu0 %1850  ;;  %v1861_v20 = vpop.permute.xlu1 %1860 }
 0x5c4   : > { %2958 = vmatmul.mubr.msk.f32.vlgmr.msra.gmra.mrb[24].mxu1 %vm227_vm0, %v1294_v6  ;;  %v3572_v6 = vld [vmem:[%s3633_s17] sm:$0xff] }
 0x5c5   : > { %2960 = vmatprep.mubr.msk.f32.mxu1 %vm227_vm0, %v1296_v31  ;;  %3206 = vmatpush3.bf16.xpose.msk.msra.mxu1 %vm3683_vm1, %v3201_v48  ;;  %v3573_v31 = vld [vmem:[%s3633_s17 + $0x8] sm:$0xff] }
 0x5c6   : > { %3209 = vmatprep.subr.msk.bf16.mxu1 %vm3683_vm1, %v3207_v46 }
 0x5c7   : > { %v1855_v15 = vpop.permute.xlu0 %1854 }
 0x5c8   : > { %2961 = vmatmul.mubr.msk.f32.gmra.mrb[26].mxu1 %vm227_vm0, %v1298_v42  ;;  %v4041_v42 = vpack.i.bf16 %v3573_v31, %v3572_v6 }
 0x5c9   : > { %2963 = vmatprep.mubr.msk.f32.mxu1 %vm227_vm0, %v1300_v9 }
 0x5cb   : > { %v1859_v28 = vpop.permute.xlu0 %1858 }
 0x5cc   : > { %2964 = vmatmul.mubr.msk.f32.gmra.mrb[28].mxu1 %vm227_vm0, %v1302_v30 }
 0x5cd   : > { %2966 = vmatprep.mubr.msk.f32.mxu1 %vm227_vm0, %v1304_v43  ;;  %3212 = vmatpush3.bf16.xpose.msk.msra.mxu1 %vm3683_vm1, %v3207_v46 }
 0x5ce   : > { %3215 = vmatprep.subr.msk.bf16.mxu1 %vm3683_vm1, %v3213_v13 }
 0x5d0   : > { %2967 = vmatmul.mubr.msk.f32.gmra.mrb[30].mxu1 %vm227_vm0, %v1306_v44 }
 0x5d1   : > { %3027 = vmatprep.mubr.msk.f32.mxu1 %vm227_vm0, %v1847_v53 }
 0x5d5   : > { %3218 = vmatpush3.bf16.xpose.msk.msra.mxu1 %vm3683_vm1, %v3213_v13 }
 0x5d6   : > { %3221 = vmatprep.subr.msk.bf16.mxu1 %vm3683_vm1, %v3219_v22 }
 0x5dd   : > { %3224 = vmatpush3.bf16.xpose.msk.msra.mxu1 %vm3683_vm1, %v3219_v22 }
 0x5e4   : > { %3028 = vmatmul.mubr.msk.f32.vlgmr.msra.gmra.mrb[32].mxu1 %vm227_vm0, %v1849_v54 }
 0x5e5   : > { %3030 = vmatprep.mubr.msk.f32.mxu1 %vm227_vm0, %v1851_v18 }
 0x5e8   : > { %3031 = vmatmul.mubr.msk.f32.gmra.mrb[34].mxu1 %vm227_vm0, %v1853_v25 }
 0x5e9   : > { %3033 = vmatprep.mubr.msk.f32.mxu1 %vm227_vm0, %v1855_v15 }
 0x5ec   : > { %3034 = vmatmul.mubr.msk.f32.gmra.mrb[36].mxu1 %vm227_vm0, %v1857_v26 }
 0x5ed   : > { %3036 = vmatprep.mubr.msk.f32.mxu1 %vm227_vm0, %v1859_v28 }
 0x5f0   : > { %3037 = vmatmul.mubr.msk.f32.gmra.mrb[38].mxu1 %vm227_vm0, %v1861_v20 }
 0x61c   : > { %v2903_v23 = vpop.f32.mrb[16].mxu1 }
 0x61d   : > { %v994_v19 = vpop.f32.mrb[17].mxu1 }
 0x61e   : > { %2915 = vmatprep.mubr.msk.f32.mxu0 %vm227_vm0, %v994_v19 }
 0x61f   : > { %2916 = vmatmul.mubr.msk.f32.vlgmr.msra.gmra.mrb[8].mxu0 %vm227_vm0, %v2903_v23 }
 0x620   : > { %2928 = vmatpush3.msra.mxu0 %v199_v52 }
 0x650   : > { %v2906_v27 = vpop.f32.mrb[18].mxu1 }
 0x651   : > { %v1004_v3 = vpop.f32.mrb[19].mxu1 }
 0x652   : > { %2918 = vmatprep.mubr.msk.f32.mxu0 %vm227_vm0, %v1004_v3 }
 0x653   : > { %2919 = vmatmul.mubr.msk.f32.gmra.mrb[10].mxu0 %vm227_vm0, %v2906_v27 }
 0x654   : > { %v2909_v7 = vpop.f32.mrb[20].mxu1 }
 0x655   : > { %v1014_v10 = vpop.f32.mrb[21].mxu1 }
 0x656   : > { %2921 = vmatprep.mubr.msk.f32.mxu0 %vm227_vm0, %v1014_v10 }
 0x657   : > { %2922 = vmatmul.mubr.msk.f32.gmra.mrb[12].mxu0 %vm227_vm0, %v2909_v7 }
 0x685   : > { %v2912_v29 = vpop.f32.mrb[22].mxu1 }
 0x686   : > { %v1024_v32 = vpop.f32.mrb[23].mxu1 }
 0x687   : > { %2924 = vmatprep.mubr.msk.f32.mxu0 %vm227_vm0, %v1024_v32 }
 0x688   : > { %2925 = vmatmul.mubr.msk.f32.gmra.mrb[14].mxu0 %vm227_vm0, %v2912_v29 }
 0x689   : > { %2929 = vmatprep.mubr.msk.f32.mxu0 %vm227_vm0, %v3831_v57 }
 0x68c   : > { %2930 = vmatmul.mubr.msk.f32.vlgmr.msra.gmra.mrb[8].mxu0 %vm227_vm0, %v3829_v56 }
 0x68d   : > { %2932 = vmatprep.mubr.msk.f32.mxu0 %vm227_vm0, %v3835_v51 }
 0x690   : > { %2933 = vmatmul.mubr.msk.f32.gmra.mrb[10].mxu0 %vm227_vm0, %v3833_v58 }
 0x691   : > { %2935 = vmatprep.mubr.msk.f32.mxu0 %vm227_vm0, %v3839_v60 }
 0x694   : > { %2936 = vmatmul.mubr.msk.f32.gmra.mrb[12].mxu0 %vm227_vm0, %v3837_v59 }
 0x695   : > { %2938 = vmatprep.mubr.msk.f32.mxu0 %vm227_vm0, %v3843_v62 }
 0x697   : > { %v2959_v24 = vpop.f32.mrb[24].mxu1 }
 0x698   : > { %v1461_v57 = vmul.f32 0.35355338, %v2959_v24  ;;  %2939 = vmatmul.mubr.msk.f32.gmra.mrb[14].mxu0 %vm227_vm0, %v3841_v61  ;;  %v1421_v56 = vpop.f32.mrb[25].mxu1 }
 0x699   : > { %v1460_v34 = vmul.f32 0.35355338, %v1421_v56 }
 0x69a   : > { %v1471_v51 = vsel %vm373_vm2, %v1461_v57, -inf }
 0x69b   : > { %1472 = vmax.xlane.f32.xlu1 %v1471_v51  ;;  %v2962_v58 = vpop.f32.mrb[26].mxu1  ;;  %v1468_v37 = vsel %vm373_vm2, %v1460_v34, -inf }
 0x69c   : > { %1469 = vmax.xlane.f32.xlu0 %v1468_v37  ;;  %v1431_v60 = vpop.f32.mrb[27].mxu1  ;;  %v1463_v59 = vmul.f32 0.35355338, %v2962_v58 }
 0x69d   : > { %v1462_v38 = vmul.f32 0.35355338, %v1431_v60 }
 0x69e   : > { %v1477_v1 = vsel %vm373_vm2, %v1463_v59, -inf }
 0x69f   : > { %v2965_v39 = vpop.f32.mrb[28].mxu1  ;;  %v1474_v62 = vsel %vm373_vm2, %v1462_v38, -inf }
 0x6a0   : > { %1475 = vmax.xlane.f32.xlu0 %v1474_v62  ;;  %v1441_v0 = vpop.f32.mrb[29].mxu1  ;;  %v1465_v11 = vmul.f32 0.35355338, %v2965_v39 }
 0x6a1   : > { %v1464_v61 = vmul.f32 0.35355338, %v1441_v0 }
 0x6a2   : > { %v1483_v21 = vsel %vm373_vm2, %v1465_v11, -inf }
 0x6a3   : > { %v2968_v40 = vpop.f32.mrb[30].mxu1  ;;  %v1480_v2 = vsel %vm373_vm2, %v1464_v61, -inf }
 0x6a4   : > { %1478 = vmax.xlane.f32.xlu0 %v1477_v1  ;;  %1481 = vmax.xlane.f32.xlu1 %v1480_v2  ;;  %v1451_v4 = vpop.f32.mrb[31].mxu1  ;;  %v1467_v5 = vmul.f32 0.35355338, %v2968_v40  ;;  %v3574_v40 = vld [vmem:[%s3633_s17 + $0x20] sm:$0xff]  ;;  %v3575_v1 = vld [vmem:[%s3633_s17 + $0x28] sm:$0xff] }
 0x6a5   : > { %v1466_v41 = vmul.f32 0.35355338, %v1451_v4  ;;  %v4095_v2 = vpack.i.bf16 %v3575_v1, %v3574_v40  ;;  %v3576_v4 = vld [vmem:[%s3633_s17 + $0x30] sm:$0xff] }
 0x6a6   : > { %v1489_v8 = vsel %vm373_vm2, %v1467_v5, -inf }
 0x6a7   : > { %v1486_v33 = vsel %vm373_vm2, %v1466_v41, -inf }
 0x6a8   : > { %1484 = vmax.xlane.f32.xlu0 %v1483_v21  ;;  %1487 = vmax.xlane.f32.xlu1 %v1486_v33  ;;  %v3578_v21 = vld [vmem:[%s3633_s17 + $0x10] sm:$0xff]  ;;  %v3579_v33 = vld [vmem:[%s3633_s17 + $0x18] sm:$0xff] }
 0x6ac   : > { %1490 = vmax.xlane.f32.xlu0 %v1489_v8  ;;  %v4107_v8 = vpack.i.bf16 %v3579_v33, %v3578_v21 }
 0x6b7   : > { %v4045_v9 = vpop.f32.mrb[32].mxu1 }
 0x6b8   : > { %v4047_v30 = vpop.f32.mrb[33].mxu1 }
 0x6b9   : > { %3405 = vrot.lane.b32.xlu1 %v4041_v42, %s3597_s4  ;;  %v4112_v6 = vmul.f32 0.35355338, %v4047_v30 }
 0x6bb   : > { %v4049_v43 = vpop.f32.mrb[34].mxu1 }
 0x6bc   : > { %v4051_v44 = vpop.f32.mrb[35].mxu1 }
 0x6bd   : > { %v4115_v31 = vmul.f32 0.35355338, %v4051_v44 }
 0x6bf   : > { %v4053_v45 = vpop.f32.mrb[36].mxu1 }
 0x6c0   : > { %v4055_v36 = vpop.f32.mrb[37].mxu1 }
 0x6c3   : > { %v4057_v47 = vpop.f32.mrb[38].mxu1 }
 0x6c4   : > { %v4059_v48 = vpop.f32.mrb[39].mxu1 }
 0x6c5   : > { %v4133_v44 = vmul.f32 0.35355338, %v4059_v48 }
 0x728   : > { %v1473_v49 = vpop.xlane.xlu1 %1472 }
 0x729   : > { %v1493_v50 = vsub.f32 %v1461_v57, %v1473_v49  ;;  %v1470_v35 = vpop.xlane.xlu0 %1469  ;;  %v2023_v49 = vsel %vm373_vm2, %v4112_v6, -inf }
 0x72a   : > { %v1492_v46 = vsub.f32 %v1460_v34, %v1470_v35  ;;  %v4123_v35 = vmul.f32 0.35355338, %v4055_v36  ;;  %v4138_v36 = vmul.f32 0.35355338, %v4053_v45 }
 0x72b   : > { %v1502_v52 = vmul.f32 1.442695, %v1493_v50  ;;  %v4120_v50 = vmul.f32 0.35355338, %v4045_v9 }
 0x72c   : > { %v1500_v55 = vmul.f32 1.442695, %v1492_v46  ;;  %v2029_v46 = vsel %vm373_vm2, %v4115_v31, -inf  ;;  %v2035_v9 = vsel %vm373_vm2, %v4123_v35, -inf  ;;  %v2038_v48 = vsel %vm373_vm2, %v4138_v36, -inf }
 0x72d   : > { %3508 = vpow2.f32 %v1502_v52  ;;  %v1476_v63 = vpop.xlane.xlu0 %1475  ;;  %v4128_v52 = vmul.f32 0.35355338, %v4049_v43  ;;  %v2026_v30 = vsel %vm373_vm2, %v4120_v50, -inf  ;;  %v2041_v43 = vsel %vm373_vm2, %v4133_v44, -inf }
 0x72e   : > { %3510 = vpow2.f32 %v1500_v55  ;;  %v1494_v12 = vsub.f32 %v1462_v38, %v1476_v63  ;;  %v4145_v63 = vmul.f32 0.35355338, %v4057_v47 }
 0x72f   : > { %v2032_v55 = vsel %vm373_vm2, %v4128_v52, -inf }
 0x730   : > { %v1504_v13 = vmul.f32 1.442695, %v1494_v12  ;;  %v2044_v45 = vsel %vm373_vm2, %v4145_v63, -inf }
 0x731   : > { %v1479_v14 = vpop.xlane.xlu0 %1478  ;;  %v1482_v16 = vpop.xlane.xlu1 %1481 }
 0x732   : > { %3512 = vpow2.f32 %v1504_v13  ;;  %v1495_v17 = vsub.f32 %v1463_v59, %v1479_v14  ;;  %v1496_v22 = vsub.f32 %v1464_v61, %v1482_v16 }
 0x734   : > { %v1506_v23 = vmul.f32 1.442695, %v1495_v17  ;;  %v1508_v19 = vmul.f32 1.442695, %v1496_v22 }
 0x735   : > { %v1485_v53 = vpop.xlane.xlu0 %1484  ;;  %v1488_v54 = vpop.xlane.xlu1 %1487 }
 0x736   : > { %3514 = vpow2.f32 %v1506_v23  ;;  %v1497_v18 = vsub.f32 %v1465_v11, %v1485_v53  ;;  %v1498_v28 = vsub.f32 %v1466_v41, %v1488_v54 }
 0x737   : > { %v4061_v25 = vpop.eup %3508  ;;  %3516 = vpow2.f32 %v1508_v19 }
 0x738   : > { %v4063_v15 = vpop.eup %3510  ;;  %v1510_v26 = vmul.f32 1.442695, %v1497_v18  ;;  %v1519_v20 = vsel %vm373_vm2, %v4061_v25, 0.0  ;;  %v1512_v57 = vmul.f32 1.442695, %v1498_v28 }
 0x739   : > { %1520 = vadd.xlane.f32.xlu0 %v1519_v20  ;;  %v1491_v27 = vpop.xlane.xlu0 %1490  ;;  %v1516_v3 = vsel %vm373_vm2, %v4063_v15, 0.0  ;;  %v3406_v7 = vpop.permute.xlu1 %3405 }
 0x73a   : > { %3518 = vpow2.f32 %v1510_v26  ;;  %v1499_v10 = vsub.f32 %v1467_v5, %v1491_v27  ;;  %1517 = vadd.xlane.f32.xlu1 %v1516_v3  ;;  %v3408_v29 = vunpack.i.h.bf16 %v3406_v7  ;;  %v3407_v32 = vunpack.i.l.bf16 %v3406_v7  ;;  %v3577_v5 = vld [vmem:[%s3633_s17 + $0x38] sm:$0xff]  ;;  %s4261_s17 = scalar_lea.vmem %s4285_s3, %s3627_s14 }
 0x73b   : > { %v4101_v41 = vpack.i.bf16 %v3577_v5, %v3576_v4 }
 0x73c   : > { %v4069_v24 = vpop.eup %3512  ;;  %v1514_v56 = vmul.f32 1.442695, %v1499_v10  ;;  %v3185_v34 = vpack.c.bf16 %v3408_v29, %v3407_v32 }
 0x73d   : > { %v1522_v51 = vsel %vm373_vm2, %v4069_v24, 0.0 }
 0x73e   : > { %3520 = vpow2.f32 %v1514_v56  ;;  %1523 = vadd.xlane.f32.xlu1 %v1522_v51  ;;  %3186 = vmatprep.subr.bf16.mxu0 %v3185_v34 }
 0x73f   : > { %3188 = vmatpush3.bf16.msra.mxu0 %v3185_v34  ;;  %3522 = vpow2.f32 %v1512_v57  ;;  %v201_v57 = vld [vmem:[%s4284_s2 + $0x10] sm:$0xff] }
 0x740   : > { %v4073_v58 = vpop.eup %3514 }
 0x741   : > { %v4075_v37 = vpop.eup %3516  ;;  %v1525_v60 = vsel %vm373_vm2, %v4073_v58, 0.0 }
 0x742   : > { %1526 = vadd.xlane.f32.xlu0 %v1525_v60  ;;  %v1528_v38 = vsel %vm373_vm2, %v4075_v37, 0.0 }
 0x743   : > { %1529 = vadd.xlane.f32.xlu1 %v1528_v38 }
 0x744   : > { %v4081_v59 = vpop.eup %3518 }
 0x745   : > { %v1531_v39 = vsel %vm373_vm2, %v4081_v59, 0.0 }
 0x746   : > { %1532 = vadd.xlane.f32.xlu0 %v1531_v39 }
 0x748   : > { %v4085_v62 = vpop.eup %3520 }
 0x749   : > { %v1537_v0 = vsel %vm373_vm2, %v4085_v62, 0.0  ;;  %v4089_v11 = vpop.eup %3522 }
 0x74a   : > { %1538 = vadd.xlane.f32.xlu0 %v1537_v0  ;;  %v1534_v61 = vsel %vm373_vm2, %v4089_v11, 0.0 }
 0x74e   : > { %1535 = vadd.xlane.f32.xlu0 %v1534_v61 }
 0x754   : > { %3415 = vrot.lane.b32.xlu1 %v4095_v2, %s3597_s4 }
 0x758   : > { %3420 = vrot.lane.b32.xlu1 %v4101_v41, %s3597_s4 }
 0x764   : > { %3410 = vrot.lane.b32.xlu0 %v4107_v8, %s3597_s4 }
 0x77c   : > { %2024 = vmax.xlane.f32.xlu1 %v2023_v49 }
 0x780   : > { %2030 = vmax.xlane.f32.xlu1 %v2029_v46 }
 0x783   : > { %2027 = vmax.xlane.f32.xlu0 %v2026_v30 }
 0x784   : > { %2036 = vmax.xlane.f32.xlu1 %v2035_v9 }
 0x787   : > { %2033 = vmax.xlane.f32.xlu0 %v2032_v55 }
 0x788   : > { %2042 = vmax.xlane.f32.xlu1 %v2041_v43 }
 0x78b   : > { %2039 = vmax.xlane.f32.xlu0 %v2038_v48 }
 0x78f   : > { %2045 = vmax.xlane.f32.xlu0 %v2044_v45 }
 0x799   : > { %3425 = vrot.lane.b32.xlu1 %v4041_v42, %s3598_s5 }
 0x7c6   : > { %v1521_v13 = vpop.xlane.xlu0 %1520 }
 0x7c7   : > { %v1518_v12 = vpop.xlane.xlu1 %1517 }
 0x7c8   : > { %3524 = vrcp.f32 %v1518_v12 }
 0x7c9   : > { %3526 = vrcp.f32 %v1521_v13 }
 0x7cb   : > { %v1524_v14 = vpop.xlane.xlu1 %1523 }
 0x7cc   : > { %3528 = vrcp.f32 %v1524_v14 }
 0x7cf   : > { %v1527_v16 = vpop.xlane.xlu0 %1526 }
 0x7d0   : > { %v1530_v23 = vpop.xlane.xlu1 %1529  ;;  %3530 = vrcp.f32 %v1527_v16 }
 0x7d1   : > { %3532 = vrcp.f32 %v1530_v23 }
 0x7d2   : > { %v3525_v47 = vpop.eup %3524 }
 0x7d3   : > { %v1533_v17 = vpop.xlane.xlu0 %1532  ;;  %v1548_v22 = vmul.f32 %v3525_v47, %v4063_v15  ;;  %v3527_v32 = vpop.eup %3526 }
 0x7d4   : > { %v3416_v53 = vpop.permute.xlu1 %3415  ;;  %3534 = vrcp.f32 %v1533_v17  ;;  %v1549_v34 = vmul.f32 %v3527_v32, %v4061_v25 }
 0x7d5   : > { %2985 = vmatprep.mubr.msk.f32.mxu0 %vm373_vm2, %v1548_v22  ;;  %v3418_v26 = vunpack.i.h.bf16 %v3416_v53  ;;  %v3417_v28 = vunpack.i.l.bf16 %v3416_v53 }
 0x7d6   : > { %v3529_v56 = vpop.eup %3528 }
 0x7d7   : > { %v1539_v19 = vpop.xlane.xlu0 %1538  ;;  %v3193_v7 = vpack.c.bf16 %v3418_v26, %v3417_v28  ;;  %v1550_v60 = vmul.f32 %v3529_v56, %v4069_v24 }
 0x7d8   : > { %v3421_v27 = vpop.permute.xlu1 %3420 }
 0x7d9   : > { %v3423_v10 = vunpack.i.h.bf16 %v3421_v27  ;;  %v3422_v29 = vunpack.i.l.bf16 %v3421_v27 }
 0x7da   : > { %v3531_v51 = vpop.eup %3530 }
 0x7db   : > { %v1536_v54 = vpop.xlane.xlu0 %1535  ;;  %v3197_v15 = vpack.c.bf16 %v3423_v10, %v3422_v29  ;;  %v3533_v38 = vpop.eup %3532  ;;  %v1551_v39 = vmul.f32 %v3531_v51, %v4073_v58 }
 0x7dc   : > { %3536 = vrcp.f32 %v1536_v54  ;;  %v1552_v61 = vmul.f32 %v3533_v38, %v4075_v37 }
 0x7dd   : > { %3538 = vrcp.f32 %v1539_v19 }
 0x7de   : > { %v3535_v0 = vpop.eup %3534 }
 0x7df   : > { %v3411_v18 = vpop.permute.xlu0 %3410  ;;  %v1553_v25 = vmul.f32 %v3535_v0, %v4081_v59 }
 0x7e0   : > { %v3413_v20 = vunpack.i.h.bf16 %v3411_v18  ;;  %v3412_v42 = vunpack.i.l.bf16 %v3411_v18 }
 0x7e2   : > { %v3189_v3 = vpack.c.bf16 %v3413_v20, %v3412_v42 }
 0x7e4   : > { %3190 = vmatprep.subr.bf16.mxu0 %v3189_v3 }
 0x7e5   : > { %3192 = vmatpush3.bf16.msra.mxu0 %v3189_v3 }
 0x7e6   : > { %3194 = vmatprep.subr.bf16.mxu0 %v3193_v7  ;;  %v3537_v40 = vpop.eup %3536 }
 0x7e7   : > { %v3539_v1 = vpop.eup %3538  ;;  %v1554_v24 = vmul.f32 %v3537_v40, %v4089_v11 }
 0x7e8   : > { %v1555_v4 = vmul.f32 %v3539_v1, %v4085_v62 }
 0x7e9   : > { %3196 = vmatpush3.bf16.msra.mxu0 %v3193_v7 }
 0x7ea   : > { %3198 = vmatprep.subr.bf16.mxu0 %v3197_v15 }
 0x7ed   : > { %3200 = vmatpush3.bf16.msra.mxu0 %v3197_v15 }
 0x7ee   : > { %2997 = vmatprep.subr.mxu0 %v201_v57 }
 0x7f0   : > { %2986 = vmatmul.mubr.msk.f32.vlgmr.msra.gmra.mrb[16].mxu0 %vm373_vm2, %v1549_v34 }
 0x7f1   : > { %2988 = vmatprep.mubr.msk.f32.mxu0 %vm373_vm2, %v1550_v60  ;;  %2998 = vmatpush3.msra.mxu0 %v201_v57 }
 0x7f4   : > { %2989 = vmatmul.mubr.msk.f32.gmra.mrb[18].mxu0 %vm373_vm2, %v1551_v39 }
 0x7f5   : > { %2991 = vmatprep.mubr.msk.f32.mxu0 %vm373_vm2, %v1552_v61 }
 0x7f8   : > { %2992 = vmatmul.mubr.msk.f32.gmra.mrb[20].mxu0 %vm373_vm2, %v1553_v25 }
 0x7f9   : > { %2994 = vmatprep.mubr.msk.f32.mxu0 %vm373_vm2, %v1554_v24 }
 0x7fc   : > { %2995 = vmatmul.mubr.msk.f32.gmra.mrb[22].mxu0 %vm373_vm2, %v1555_v4 }
 0x809   : > { %v2025_v58 = vpop.xlane.xlu1 %2024 }
 0x80a   : > { %v2047_v37 = vsub.f32 %v4112_v6, %v2025_v58 }
 0x80c   : > { %v2055_v5 = vmul.f32 1.442695, %v2047_v37 }
 0x80d   : > { %v2031_v21 = vpop.xlane.xlu1 %2030 }
 0x80e   : > { %3540 = vpow2.f32 %v2055_v5  ;;  %v2049_v33 = vsub.f32 %v4115_v31, %v2031_v21 }
 0x810   : > { %v2059_v59 = vmul.f32 1.442695, %v2049_v33  ;;  %v2028_v49 = vpop.xlane.xlu0 %2027 }
 0x811   : > { %v2048_v11 = vsub.f32 %v4120_v50, %v2028_v49  ;;  %v2037_v46 = vpop.xlane.xlu1 %2036 }
 0x812   : > { %3542 = vpow2.f32 %v2059_v59  ;;  %v2051_v30 = vsub.f32 %v4123_v35, %v2037_v46 }
 0x813   : > { %v2057_v9 = vmul.f32 1.442695, %v2048_v11 }
 0x814   : > { %v2063_v62 = vmul.f32 1.442695, %v2051_v30  ;;  %v2034_v55 = vpop.xlane.xlu0 %2033 }
 0x815   : > { %3544 = vpow2.f32 %v2057_v9  ;;  %v2050_v43 = vsub.f32 %v4128_v52, %v2034_v55  ;;  %v2043_v6 = vpop.xlane.xlu1 %2042 }
 0x816   : > { %3546 = vpow2.f32 %v2063_v62  ;;  %v2053_v16 = vsub.f32 %v4133_v44, %v2043_v6  ;;  %v202_v62 = vld [vmem:[%s4284_s2 + $0x18] sm:$0xff] }
 0x817   : > { %v2061_v48 = vmul.f32 1.442695, %v2050_v43 }
 0x818   : > { %v4177_v45 = vpop.eup %3540  ;;  %v2040_v31 = vpop.xlane.xlu0 %2039  ;;  %v2067_v53 = vmul.f32 1.442695, %v2053_v16 }
 0x819   : > { %3548 = vpow2.f32 %v2061_v48  ;;  %v2052_v12 = vsub.f32 %v4138_v36, %v2040_v31  ;;  %v2071_v50 = vsel %vm373_vm2, %v4177_v45, 0.0  ;;  %v3426_v13 = vpop.permute.xlu1 %3425 }
 0x81a   : > { %2072 = vadd.xlane.f32.xlu1 %v2071_v50  ;;  %v3428_v35 = vunpack.i.h.bf16 %v3426_v13  ;;  %v3427_v14 = vunpack.i.l.bf16 %v3426_v13 }
 0x81b   : > { %v2065_v47 = vmul.f32 1.442695, %v2052_v12 }
 0x81c   : > { %v4183_v52 = vpop.eup %3542  ;;  %v2046_v17 = vpop.xlane.xlu0 %2045  ;;  %v3225_v22 = vpack.c.bf16 %v3428_v35, %v3427_v14 }
 0x81d   : > { %3550 = vpow2.f32 %v2065_v47  ;;  %v2054_v23 = vsub.f32 %v4145_v63, %v2046_v17  ;;  %v2077_v36 = vsel %vm373_vm2, %v4183_v52, 0.0 }
 0x81e   : > { %2078 = vadd.xlane.f32.xlu1 %v2077_v36  ;;  %3226 = vmatprep.subr.bf16.mxu0 %v3225_v22 }
 0x81f   : > { %v4188_v19 = vpop.eup %3544  ;;  %v2069_v54 = vmul.f32 1.442695, %v2054_v23 }
 0x820   : > { %v4190_v18 = vpop.eup %3546  ;;  %v2074_v44 = vsel %vm373_vm2, %v4188_v19, 0.0 }
 0x821   : > { %3552 = vpow2.f32 %v2069_v54  ;;  %2075 = vadd.xlane.f32.xlu0 %v2074_v44  ;;  %v2083_v26 = vsel %vm373_vm2, %v4190_v18, 0.0  ;;  %v2401_v44 = vld [vmem:[%s185_s13] sm:$0xff] }
 0x822   : > { %2084 = vadd.xlane.f32.xlu1 %v2083_v26  ;;  %3554 = vpow2.f32 %v2067_v53 }
 0x823   : > { %v4196_v63 = vpop.eup %3548 }
 0x824   : > { %v2080_v28 = vsel %vm373_vm2, %v4196_v63, 0.0 }
 0x825   : > { %2081 = vadd.xlane.f32.xlu0 %v2080_v28 }
 0x827   : > { %v4200_v20 = vpop.eup %3550 }
 0x828   : > { %v2086_v42 = vsel %vm373_vm2, %v4200_v20, 0.0 }
 0x829   : > { %2087 = vadd.xlane.f32.xlu0 %v2086_v42  ;;  %v2404_v42 = vld [vmem:[%s185_s13 + $0x18] sm:$0xff] }
 0x82b   : > { %v4204_v27 = vpop.eup %3552 }
 0x82c   : > { %v2092_v3 = vsel %vm373_vm2, %v4204_v27, 0.0  ;;  %v4208_v7 = vpop.eup %3554 }
 0x82d   : > { %2093 = vadd.xlane.f32.xlu0 %v2092_v3  ;;  %v2089_v10 = vsel %vm373_vm2, %v4208_v7, 0.0 }
 0x831   : > { %2090 = vadd.xlane.f32.xlu0 %v2089_v10 }
 0x833   : > { %3435 = vrot.lane.b32.xlu1 %v4095_v2, %s3598_s5 }
 0x837   : > { %3440 = vrot.lane.b32.xlu1 %v4101_v41, %s3598_s5 }
 0x847   : > { %3430 = vrot.lane.b32.xlu0 %v4107_v8, %s3598_s5 }
 0x8a7   : > { %v2073_v15 = vpop.xlane.xlu1 %2072 }
 0x8a8   : > { %3556 = vrcp.f32 %v2073_v15  ;;  %v2406_v15 = vld [vmem:[%s185_s13 + $0x28] sm:$0xff] }
 0x8ab   : > { %v2079_v57 = vpop.xlane.xlu1 %2078 }
 0x8ae   : > { %v2076_v29 = vpop.xlane.xlu0 %2075 }
 0x8af   : > { %v2085_v51 = vpop.xlane.xlu1 %2084  ;;  %3558 = vrcp.f32 %v2076_v29 }
 0x8b0   : > { %3560 = vrcp.f32 %v2079_v57 }
 0x8b2   : > { %v2082_v32 = vpop.xlane.xlu0 %2081  ;;  %v3557_v49 = vpop.eup %3556 }
 0x8b3   : > { %v3436_v38 = vpop.permute.xlu1 %3435  ;;  %3562 = vrcp.f32 %v2082_v32  ;;  %v2103_v9 = vmul.f32 %v3557_v49, %v4177_v45  ;;  %v2405_v32 = vld [vmem:[%s185_s13 + $0x20] sm:$0xff] }
 0x8b4   : > { %v3438_v25 = vunpack.i.h.bf16 %v3436_v38  ;;  %v3437_v41 = vunpack.i.l.bf16 %v3436_v38  ;;  %3564 = vrcp.f32 %v2085_v51  ;;  %v2407_v38 = vld [vmem:[%s185_s13 + $0x30] sm:$0xff] }
 0x8b6   : > { %v2088_v56 = vpop.xlane.xlu0 %2087  ;;  %v3233_v4 = vpack.c.bf16 %v3438_v25, %v3437_v41 }
 0x8b7   : > { %v3441_v8 = vpop.permute.xlu1 %3440  ;;  %3566 = vrcp.f32 %v2088_v56 }
 0x8b8   : > { %v3443_v37 = vunpack.i.h.bf16 %v3441_v8  ;;  %v3442_v5 = vunpack.i.l.bf16 %v3441_v8 }
 0x8b9   : > { %v3559_v30 = vpop.eup %3558 }
 0x8ba   : > { %v2094_v34 = vpop.xlane.xlu0 %2093  ;;  %v3237_v33 = vpack.c.bf16 %v3443_v37, %v3442_v5  ;;  %v3561_v55 = vpop.eup %3560  ;;  %v2104_v43 = vmul.f32 %v3559_v30, %v4188_v19 }
 0x8bb   : > { %v2105_v48 = vmul.f32 %v3561_v55, %v4183_v52 }
 0x8bd   : > { %v3563_v6 = vpop.eup %3562 }
 0x8be   : > { %v2091_v60 = vpop.xlane.xlu0 %2090  ;;  %v3565_v31 = vpop.eup %3564  ;;  %v2106_v45 = vmul.f32 %v3563_v6, %v4196_v63 }
 0x8bf   : > { %3568 = vrcp.f32 %v2091_v60  ;;  %v2107_v50 = vmul.f32 %v3565_v31, %v4190_v18  ;;  %v2402_v18 = vld [vmem:[%s185_s13 + $0x8] sm:$0xff]  ;;  %v2408_v60 = vld [vmem:[%s185_s13 + $0x38] sm:$0xff] }
 0x8c0   : > { %3570 = vrcp.f32 %v2094_v34 }
 0x8c1   : > { %v3567_v12 = vpop.eup %3566 }
 0x8c2   : > { %v3431_v39 = vpop.permute.xlu0 %3430  ;;  %v2108_v35 = vmul.f32 %v3567_v12, %v4200_v20 }
 0x8c3   : > { %v2987_v0 = vpop.f32.mrb[16].mxu0  ;;  %v3433_v61 = vunpack.i.h.bf16 %v3431_v39  ;;  %v3432_v40 = vunpack.i.l.bf16 %v3431_v39 }
 0x8c4   : > { %v1670_v2 = vpop.f32.mrb[17].mxu0 }
 0x8c5   : > { %v3229_v1 = vpack.c.bf16 %v3433_v61, %v3432_v40  ;;  %2999 = vmatprep.mubr.msk.f32.mxu0 %vm227_vm0, %v1670_v2 }
 0x8c6   : > { %3000 = vmatmul.mubr.msk.f32.vlgmr.msra.gmra.mrb[8].mxu0 %vm227_vm0, %v2987_v0 }
 0x8c7   : > { %3228 = vmatpush3.bf16.msra.mxu0 %v3225_v22  ;;  %v2990_v24 = vpop.f32.mrb[18].mxu0 }
 0x8c8   : > { %v1680_v58 = vpop.f32.mrb[19].mxu0  ;;  %3230 = vmatprep.subr.bf16.mxu0 %v3229_v1 }
 0x8c9   : > { %3002 = vmatprep.mubr.msk.f32.mxu0 %vm227_vm0, %v1680_v58  ;;  %v3569_v13 = vpop.eup %3568 }
 0x8ca   : > { %3003 = vmatmul.mubr.msk.f32.gmra.mrb[10].mxu0 %vm227_vm0, %v2990_v24  ;;  %v3571_v14 = vpop.eup %3570  ;;  %v2109_v16 = vmul.f32 %v3569_v13, %v4208_v7 }
 0x8cb   : > { %3232 = vmatpush3.bf16.msra.mxu0 %v3229_v1  ;;  %v2993_v21 = vpop.f32.mrb[20].mxu0  ;;  %v2110_v47 = vmul.f32 %v3571_v14, %v4204_v27  ;;  %v2403_v27 = vld [vmem:[%s185_s13 + $0x10] sm:$0xff] }
 0x8cc   : > { %v1690_v59 = vpop.f32.mrb[21].mxu0  ;;  %3234 = vmatprep.subr.bf16.mxu0 %v3233_v4 }
 0x8cd   : > { %3005 = vmatprep.mubr.msk.f32.mxu0 %vm227_vm0, %v1690_v59 }
 0x8ce   : > { %3006 = vmatmul.mubr.msk.f32.gmra.mrb[12].mxu0 %vm227_vm0, %v2993_v21 }
 0x8cf   : > { %3236 = vmatpush3.bf16.msra.mxu0 %v3233_v4  ;;  %v2996_v11 = vpop.f32.mrb[22].mxu0 }
 0x8d0   : > { %v1700_v46 = vpop.f32.mrb[23].mxu0  ;;  %3238 = vmatprep.subr.bf16.mxu0 %v3237_v33 }
 0x8d1   : > { %3008 = vmatprep.mubr.msk.f32.mxu0 %vm227_vm0, %v1700_v46 }
 0x8d2   : > { %3009 = vmatmul.mubr.msk.f32.gmra.mrb[14].mxu0 %vm227_vm0, %v2996_v11 }
 0x8d3   : > { %3240 = vmatpush3.bf16.msra.mxu0 %v3237_v33  ;;  %3055 = vmatprep.mubr.msk.f32.mxu0 %vm373_vm2, %v2103_v9 }
 0x8d4   : > { %3067 = vmatprep.subr.mxu0 %v202_v62 }
 0x8d6   : > { %3056 = vmatmul.mubr.msk.f32.vlgmr.msra.gmra.mrb[24].mxu0 %vm373_vm2, %v2104_v43 }
 0x8d7   : > { %3058 = vmatprep.mubr.msk.f32.mxu0 %vm373_vm2, %v2105_v48  ;;  %3068 = vmatpush3.msra.mxu0 %v202_v62 }
 0x8da   : > { %3059 = vmatmul.mubr.msk.f32.gmra.mrb[26].mxu0 %vm373_vm2, %v2106_v45 }
 0x8db   : > { %3061 = vmatprep.mubr.msk.f32.mxu0 %vm373_vm2, %v2107_v50 }
 0x8de   : > { %3062 = vmatmul.mubr.msk.f32.gmra.mrb[28].mxu0 %vm373_vm2, %v2108_v35 }
 0x8df   : > { %3064 = vmatprep.mubr.msk.f32.mxu0 %vm373_vm2, %v2109_v16 }
 0x8e2   : > { %3065 = vmatmul.mubr.msk.f32.gmra.mrb[30].mxu0 %vm373_vm2, %v2110_v47 }
 0x9a9   : > { %v3057_v52 = vpop.f32.mrb[24].mxu0 }
 0x9aa   : > { %v2225_v17 = vpop.f32.mrb[25].mxu0 }
 0x9ab   : > { %3069 = vmatprep.mubr.msk.f32.mxu0 %vm227_vm0, %v2225_v17 }
 0x9ac   : > { %3070 = vmatmul.mubr.msk.f32.vlgmr.msra.gmra.mrb[8].mxu0 %vm227_vm0, %v3057_v52 }
 0x9ad   : > { %v3060_v22 = vpop.f32.mrb[26].mxu0 }
 0x9ae   : > { %v2235_v23 = vpop.f32.mrb[27].mxu0 }
 0x9af   : > { %3072 = vmatprep.mubr.msk.f32.mxu0 %vm227_vm0, %v2235_v23 }
 0x9b0   : > { %3073 = vmatmul.mubr.msk.f32.gmra.mrb[10].mxu0 %vm227_vm0, %v3060_v22 }
 0x9b1   : > { %v3063_v36 = vpop.f32.mrb[28].mxu0 }
 0x9b2   : > { %v2245_v19 = vpop.f32.mrb[29].mxu0 }
 0x9b3   : > { %3075 = vmatprep.mubr.msk.f32.mxu0 %vm227_vm0, %v2245_v19 }
 0x9b4   : > { %3076 = vmatmul.mubr.msk.f32.gmra.mrb[12].mxu0 %vm227_vm0, %v3063_v36 }
 0x9b5   : > { %v3066_v53 = vpop.f32.mrb[30].mxu0 }
 0x9b6   : > { %v2255_v54 = vpop.f32.mrb[31].mxu0 }
 0x9b7   : > { %3078 = vmatprep.mubr.msk.f32.mxu0 %vm227_vm0, %v2255_v54 }
 0x9b8   : > { %3079 = vmatmul.mubr.msk.f32.gmra.mrb[14].mxu0 %vm227_vm0, %v3066_v53 }
 0xa7f   : > { %v3071_v26 = vpop.f32.mrb[8].mxu0 }
 0xa80   : > { %v2410_v63 = vadd.f32 %v3071_v26, %v2402_v18  ;;  %v2354_v28 = vpop.f32.mrb[9].mxu0 }
 0xa81   : > { %v2409_v20 = vadd.f32 %v2401_v44, %v2354_v28 }
 0xa82   : > { %2419 = vst.msk [vmem:[%s4261_s17 + $0x8] sm:$0xff] %vm2417_vm3, %v2410_v63 }
 0xa83   : > { %2418 = vst.msk [vmem:[%s4261_s17] sm:$0xff] %vm2417_vm3, %v2409_v20  ;;  %v3074_v3 = vpop.f32.mrb[10].mxu0 }
 0xa84   : > { %v2412_v7 = vadd.f32 %v3074_v3, %v2404_v42  ;;  %v2364_v10 = vpop.f32.mrb[11].mxu0 }
 0xa85   : > { %v2411_v29 = vadd.f32 %v2403_v27, %v2364_v10 }
 0xa86   : > { %2421 = vst.msk [vmem:[%s4261_s17 + $0x18] sm:$0xff] %vm2417_vm3, %v2412_v7 }
 0xa87   : > { %2420 = vst.msk [vmem:[%s4261_s17 + $0x10] sm:$0xff] %vm2417_vm3, %v2411_v29  ;;  %v3077_v57 = vpop.f32.mrb[12].mxu0 }
 0xa88   : > { %v2414_v56 = vadd.f32 %v3077_v57, %v2406_v15  ;;  %v2374_v34 = vpop.f32.mrb[13].mxu0 }
 0xa89   : > { %v2413_v51 = vadd.f32 %v2405_v32, %v2374_v34 }
 0xa8a   : > { %2423 = vst.msk [vmem:[%s4261_s17 + $0x28] sm:$0xff] %vm2417_vm3, %v2414_v56 }
 0xa8b   : > { %2422 = vst.msk [vmem:[%s4261_s17 + $0x20] sm:$0xff] %vm2417_vm3, %v2413_v51  ;;  %v3080_v39 = vpop.f32.mrb[14].mxu0 }
 0xa8c   : > { %v2416_v0 = vadd.f32 %v3080_v39, %v2408_v60  ;;  %v2384_v61 = vpop.f32.mrb[15].mxu0 }
 0xa8d   : > { %v2415_v40 = vadd.f32 %v2407_v38, %v2384_v61 }
 0xa8e   : > { %2425 = vst.msk [vmem:[%s4261_s17 + $0x38] sm:$0xff] %vm2417_vm3, %v2416_v0 }
 0xa8f   : > { %2424 = vst.msk [vmem:[%s4261_s17 + $0x30] sm:$0xff] %vm2417_vm3, %v2415_v40 }
 0xa90 PF: > { %s13_s12 = sadd.s32 1, %s3586_s12  }
 0xa91   : > { %p10_p4 = scmp.ge.s32.totalorder %s13_s12, 4  }
 0xa93   :  { %12 = sbr.rel (!%p10_p4) target bundleno = 1 (0x1), region = 65 }

// kernel: run.13
= control target key start
LH: loop header
LB: loop body
LE: loop exit
PB: predicated region body
PF: predicated region fallthrough
CT: control target
= control target key end

     0   :  { %9 = vsyncpa [#allocation3], 0  ;;  %s3214_s0 = inlined_call_operand.vmem [shape: f32[2,64,32], index: 0, kind: input, shape index: {}]   ;;  %s3215_s1 = inlined_call_operand.vmem [shape: f32[2,64,32], index: 1, kind: input, shape index: {}]   ;;  %s3216_s2 = inlined_call_operand.vmem [shape: f32[9,32,32], index: 2, kind: input, shape index: {}]   ;;  %s3217_s3 = inlined_call_operand.vmem [shape: f32[1,32], index: 3, kind: input, shape index: {}]   ;;  %s3218_s4 = inlined_call_operand.hbm [shape: f32[2,64,32], index: 4, kind: output, shape index: {}]  }
   0x1   :  { %11 = vsyncpa [#allocation3 + $0x1], 0  ;;  %s2520_s15 = smov 0   ;;  %s2522_s16 = smov 0  }
   0x2   :  { %s2524_s17 = smov 0   ;;  %s2526_s18 = smov 0  }
   0x3 LB: > { %s2541_s19 = sadd.s32 4294967295, %s2489_s18   ;;  %s1869_s20 = sadd.s32 4294967294, %s2489_s18   ;;  %s2489_s18 = sphi %s2526_s18, %s3232_s18   ;;  %s2485_s17 = sphi %s2524_s17, %s3231_s17   ;;  %s2481_s16 = sphi %s2522_s16, %s3230_s16   ;;  %s2477_s15 = sphi %s2520_s15, %s3229_s15  }
   0x4   : > { %s2545_s21 = sadd.s32 1, %s2489_s18   ;;  %s118_s22 = sadd.s32 1, %s2485_s17 }
   0x5   : > { %s115_s23 = ssub.s32 %s2489_s18, %s2545_s21  ;;  %p128_p0 = scmp.ne.s32.totalorder %s2485_s17, %s2481_s16 }
   0x6   : > { %p116_p1 = scmp.eq.s32.totalorder %s115_s23, 0  ;;  %p129_p2 = scmp.eq.s32.totalorder %s2541_s19, 1 }
   0x7   : > { %p134_p3 = scmp.ne.s32.totalorder %s2481_s16, %s2477_s15  ;;  %p135_p4 = scmp.eq.s32.totalorder %s1869_s20, 1 }
   0x8   : > { %s2556_s24 = scalar_select %p116_p1, %s2485_s17, %s118_s22  }
   0x9   : > { %p2558_p5 = por %p129_p2, %p128_p0  ;;  %p2562_p6 = por %p135_p4, %p134_p3 }
   0xa   : > { %p1872_p7 = scmp.ge.s32.totalorder %s2489_s18, 1  ;;  %p175_p8 = scmp.lt.s32.totalorder %s2489_s18, 3 }
   0xc   : > { %p176_p9 = pnand %p1872_p7, %p175_p8 }
   0xd   : > { %v228_v0 = vld [vmem:[%s3216_s2 + $0x20] sm:$0xff] (!%p176_p9)  ;;  %v229_v1 = vld [vmem:[%s3216_s2 + $0x28] sm:$0xff] (!%p176_p9)  ;;  %p206_p10 = scmp.lt.s32.totalorder (!%p176_p9), %s2541_s19, 1  ;;  %v260_v3 = vlaneseq (!%p176_p9)  ;;  %v230_v6 = vld [vmem:[%s3216_s2 + $0x30] sm:$0xff] (!%p176_p9)  ;;  %v2491_v8 = vmov (!%p176_p9), 0.0   ;;  %vm454_vm0 = vcmask (!%p176_p9), 261120  }
   0xe   : > { %179 = sbr.rel (%p176_p9) target bundleno = 329 (0x149), region = 36  ;;  %v240_v2 = vld [vmem:[%s3216_s2 + $0x80] sm:$0xff] (!%p176_p9)  ;;  %v2245_v4 = vpack.c.bf16 (!%p176_p9), %v229_v1, %v228_v0  ;;  %v241_v5 = vld [vmem:[%s3216_s2 + $0x88] sm:$0xff] (!%p176_p9)  ;;  %v231_v7 = vld [vmem:[%s3216_s2 + $0x38] sm:$0xff] (!%p176_p9)  ;;  %2073 = vmatprep.mubr.f32.mxu1 (!%p176_p9), %v2491_v8  ;;  %v2647_v28 = vrot.slane (!%p176_p9), %v2491_v8, 7  ;;  %vm754_vm1 = vcmask (!%p176_p9), 1046528  }
   0xf   : > { %v2588_v9 = vpack.c.bf16 (!%p176_p9), %v241_v5, %v240_v2  ;;  %v2249_v10 = vpack.c.bf16 (!%p176_p9), %v231_v7, %v230_v6  ;;  %v242_v11 = vld [vmem:[%s3216_s2 + $0x90] sm:$0xff] (!%p176_p9)  ;;  %v243_v12 = vld [vmem:[%s3216_s2 + $0x98] sm:$0xff] (!%p176_p9)  ;;  %v224_v13 = vld [vmem:[%s3216_s2] sm:$0xff] (!%p176_p9)  ;;  %v2602_v14 = vshrl.u32 (!%p176_p9), %v260_v3, 7  ;;  %v2680_v44 = vrot.slane (!%p176_p9), %v2491_v8, 1  ;;  %s203_s27 = sand.u32 (!%p176_p9), 1, %s2481_s16  }
  0x10   : > { %2246 = vmatprep.subr.bf16.mxu1 (!%p176_p9), %v2245_v4  ;;  %v2604_v15 = vpack.c.bf16 (!%p176_p9), %v243_v12, %v242_v11  ;;  %v225_v16 = vld [vmem:[%s3216_s2 + $0x8] sm:$0xff] (!%p176_p9)  ;;  %v244_v17 = vld [vmem:[%s3216_s2 + $0xa0] sm:$0xff] (!%p176_p9)  ;;  %v246_v19 = vld [vmem:[%s3216_s2 + $0xb0] sm:$0xff] (!%p176_p9)  ;;  %vm421_vm5 = vcmask (!%p176_p9), 1040384   ;;  %s1873_s6 = sshll.u32 (!%p176_p9), %s203_s27, 6  ;;  %s2492_s13 = smov (!%p176_p9), [#allocation2]  }
  0x11   : > { %v245_v18 = vld [vmem:[%s3216_s2 + $0xa8] sm:$0xff] (!%p176_p9)  ;;  %2278 = vmatprep.subr.bf16.mxu0 (!%p176_p9), %v2588_v9  ;;  %2248 = vmatpush3.bf16.msra.mxu1 (!%p176_p9), %v2245_v4  ;;  %v262_v20 = vadd.s32 (!%p176_p9), 8, %v2602_v14  ;;  %v273_v21 = vand.u32 (!%p176_p9), 7, %v2602_v14  ;;  %v2253_v22 = vpack.c.bf16 (!%p176_p9), %v225_v16, %v224_v13  ;;  %v247_v23 = vld [vmem:[%s3216_s2 + $0xb8] sm:$0xff] (!%p176_p9)  ;;  %v226_v24 = vld [vmem:[%s3216_s2 + $0x10] sm:$0xff] (!%p176_p9)  ;;  %v2640_v26 = vadd.s32 (!%p176_p9), 16, %v2602_v14 }
  0x12   : > { %2280 = vmatpush3.bf16.msra.mxu0 (!%p176_p9), %v2588_v9  ;;  %2250 = vmatprep.subr.bf16.mxu1 (!%p176_p9), %v2249_v10  ;;  %v227_v25 = vld [vmem:[%s3216_s2 + $0x18] sm:$0xff] (!%p176_p9)  ;;  %v2643_v27 = vadd.s32 (!%p176_p9), 24, %v2602_v14  ;;  %v2285_v31 = vpack.c.bf16 (!%p176_p9), %v245_v18, %v244_v17  ;;  %v2676_v43 = vadd.s32 (!%p176_p9), 32, %v2602_v14  ;;  %v2289_v45 = vpack.c.bf16 (!%p176_p9), %v247_v23, %v246_v19  ;;  %v248_v47 = vld [vmem:[%s3216_s2 + $0xc0] sm:$0xff] (!%p176_p9)  ;;  %v249_v50 = vld [vmem:[%s3216_s2 + $0xc8] sm:$0xff] (!%p176_p9)  ;;  %s2431_s20 = sshll.u32 (!%p176_p9), %s2492_s13, 4  ;;  %s2432_s20 = int_to_ptr.vmem [resolvable:$false] %s2431_s20 }
  0x13   : > { %2282 = vmatprep.subr.bf16.mxu0 (!%p176_p9), %v2604_v15  ;;  %v280_v33 = vand.u32 (!%p176_p9), 7, %v262_v20  ;;  %v2658_v34 = vadd.s32 (!%p176_p9), 1, %v273_v21  ;;  %v287_v41 = vand.u32 (!%p176_p9), 7, %v2640_v26  ;;  %v2257_v46 = vpack.c.bf16 (!%p176_p9), %v227_v25, %v226_v24  ;;  %v232_v60 = vld [vmem:[%s3216_s2 + $0x40] sm:$0xff] (!%p176_p9)  ;;  %v233_v61 = vld [vmem:[%s3216_s2 + $0x48] sm:$0xff] (!%p176_p9)  ;;  %v251_v11 = vld [vmem:[%s3216_s2 + $0xd8] sm:$0xff] (!%p176_p9) }
  0x14   : > { %v294_v48 = vand.u32 (!%p176_p9), 7, %v2643_v27  ;;  %v2718_v58 = vadd.s32 (!%p176_p9), 4294967295, %v273_v21  ;;  %v301_v59 = vand.u32 (!%p176_p9), 7, %v2676_v43  ;;  %v2293_v62 = vpack.c.bf16 (!%p176_p9), %v249_v50, %v248_v47  ;;  %v234_v50 = vld [vmem:[%s3216_s2 + $0x50] sm:$0xff] (!%p176_p9)  ;;  %s2433_s22 = scalar_lea.vmem (!%p176_p9), %s2432_s20, 2048 }
  0x15   : > { %s2597_s23 = scalar_select %p206_p10, %s2541_s19, 1  ;;  %2252 = vmatpush3.bf16.msra.mxu1 %v2249_v10  ;;  %v2671_v40 = vadd.s32 1, %v280_v33  ;;  %vm721_vm2 = vcmp.lt.s32.totalorder %v2658_v34, 8  ;;  %v2694_v52 = vadd.s32 1, %v287_v41  ;;  %v2730_v0 = vadd.s32 4294967295, %v280_v33  ;;  %v250_v10 = vld [vmem:[%s3216_s2 + $0xd0] sm:$0xff] }
  0x16   : > { %2284 = vmatpush3.bf16.msra.mxu0 %v2604_v15  ;;  %2254 = vmatprep.subr.bf16.mxu1 %v2253_v22  ;;  %v2710_v56 = vadd.s32 1, %v294_v48  ;;  %v2748_v5 = vadd.s32 1, %v301_v59  ;;  %vm3221_vm7 = vcmp.ge.s32.totalorder %v2718_v58, 0  ;;  %v2757_v7 = vpack.c.bf16 %v233_v61, %v232_v60  ;;  %v235_v61 = vld [vmem:[%s3216_s2 + $0x58] sm:$0xff] }
  0x17   : > { %s1954_s9 = sshll.u32 %s2597_s23, 6  ;;  %2286 = vmatprep.subr.bf16.mxu0 %v2285_v31  ;;  %vm722_vm3 = vcmp.lt.s32.totalorder %v2671_v40, 8  ;;  %vm723_vm4 = vcmp.lt.s32.totalorder %v2694_v52, 8  ;;  %vm374_vm8 = vcmp.ge.s32.totalorder %v2730_v0, 0  ;;  %v266_v17 = vadd.s32 40, %v2602_v14  ;;  %s3139_s23 = scalar_lea.vmem [#allocation2], %s1873_s6 }
  0x18   : > { %s2628_s14 = scalar_lea.vmem %s3214_s0, %s1954_s9  ;;  %vm724_vm6 = vcmp.lt.s32.totalorder %v2710_v56, 8  ;;  %vm725_vm9 = vcmp.lt.s32.totalorder %v2748_v5, 8  ;;  %v2786_v19 = vadd.s32 4294967295, %v287_v41  ;;  %v267_v23 = vadd.s32 48, %v2602_v14  ;;  %s3129_s29 = scalar_lea.vmem %s3215_s1, %s1954_s9 }
  0x19   : > { %v2650_v29 = vld [vmem:[%s2628_s14] sm:$0xff]  ;;  %v2653_v30 = vld [vmem:[%s2628_s14 + $0x8] sm:$0xff]  ;;  %v2656_v32 = vld [vmem:[%s2628_s14 + $0x10] sm:$0xff]  ;;  %v308_v21 = vand.u32 7, %v266_v17  ;;  %v2802_v26 = vadd.s32 4294967295, %v294_v48  ;;  %v2847_v60 = vadd.s32 4294967295, %v301_v59 }
  0x1a   : > { %v756_v35 = vrot.slane %v2650_v29, 1  ;;  %2153 = vmatprep.mubr.msk.f32.mxu0 %vm454_vm0, %v2650_v29  ;;  %v760_v36 = vrot.slane %v2656_v32, 1  ;;  %v2665_v37 = vld [vmem:[%s2628_s14 + $0x18] sm:$0xff]  ;;  %v758_v38 = vrot.slane %v2653_v30, 1  ;;  %v2669_v39 = vld [vmem:[%s2628_s14 + $0x20] sm:$0xff]  ;;  %v424_v49 = vrot.slane %v2650_v29, 7  ;;  %2074 = vmatmul.mubr.msk.f32.vlgmr.msra.gmra.mrb[0].mxu1 %vm454_vm0, %v2650_v29 }
  0x1b   : > { %v762_v42 = vrot.slane %v2665_v37, 1  ;;  %v2692_v51 = vld [vmem:[%s2628_s14 + $0x28] sm:$0xff]  ;;  %v764_v53 = vrot.slane %v2669_v39, 1  ;;  %2154 = vmatmul.mubr.msk.f32.vlgmr.msra.gmra.mrb[0].mxu0 %vm454_vm0, %v2653_v30  ;;  %2256 = vmatpush3.bf16.msra.mxu1 %v2253_v22  ;;  %v2741_v3 = vld [vmem:[%s2628_s14 + $0x30] sm:$0xff]  ;;  %v2766_v12 = vld [vmem:[%s2628_s14 + $0x38] sm:$0xff]  ;;  %v426_v20 = vrot.slane %v2653_v30, 7  ;;  %v2297_v22 = vpack.c.bf16 %v251_v11, %v250_v10 }
  0x1c   : > { %v2703_v54 = vsel %vm754_vm1, %v756_v35, %v758_v38  ;;  %v2706_v55 = vsel %vm754_vm1, %v758_v38, %v760_v36  ;;  %2288 = vmatpush3.bf16.msra.mxu0 %v2285_v31  ;;  %2076 = vmatprep.mubr.msk.f32.mxu1 %vm454_vm0, %v2653_v30  ;;  %v766_v63 = vrot.slane %v2692_v51, 1  ;;  %v2780_v16 = vsel %vm421_vm5, %v2647_v28, %v424_v49  ;;  %s1956_s9 = sshll.u32 %s2541_s19, 10  ;;  %s1795_s7 = sshll.u32 %s3139_s23, 4  ;;  %s3165_s7 = int_to_ptr.vmem [resolvable:$true] %s1795_s7 }
  0x1d   : > { %v2716_v57 = vsel %vm754_vm1, %v760_v36, %v762_v42  ;;  %2156 = vmatprep.mubr.msk.f32.mxu0 %vm454_vm0, %v2656_v32  ;;  %2290 = vmatprep.subr.bf16.mxu0 %v2289_v45  ;;  %v1190_v1 = vsel %vm721_vm2, %v2703_v54, 0.0  ;;  %v1191_v2 = vsel %vm722_vm3, %v2706_v55, 0.0  ;;  %v2744_v4 = vsel %vm754_vm1, %v762_v42, %v764_v53  ;;  %s3163_s11 = scalar_lea.hbm %s3218_s4, %s1956_s9  ;;  %s3173_s19 = scalar_lea.sflag [#allocation3], %s203_s27 }
  0x1e   : > { %2077 = vmatmul.mubr.msk.f32.gmra.mrb[2].mxu1 %vm454_vm0, %v2656_v32  ;;  %2258 = vmatprep.subr.bf16.mxu1 %v2257_v46  ;;  %v1192_v6 = vsel %vm723_vm4, %v2716_v57, 0.0  ;;  %v2773_v13 = vsel %vm754_vm1, %v764_v53, %v766_v63  ;;  %v768_v18 = vrot.slane %v2741_v3, 1  ;;  %v770_v24 = vrot.slane %v2766_v12, 1  ;;  %s2427_s12 = scalar_lea.vmem %s3165_s7, 1024  ;;  %p2434_p0 = scmp.lt.s32.totalorder %s3165_s7, %s2432_s20 }
  0x1f   : > { %2157 = vmatmul.mubr.msk.f32.gmra.mrb[2].mxu0 %vm454_vm0, %v2665_v37  ;;  %2079 = vmatprep.mubr.msk.f32.mxu1 %vm454_vm0, %v2665_v37  ;;  %vm375_vm10 = vcmp.ge.s32.totalorder %v2786_v19, 0  ;;  %v2798_v25 = vsel %vm421_vm5, %v424_v49, %v426_v20  ;;  %v428_v31 = vrot.slane %v2656_v32, 7  ;;  %v1193_v33 = vsel %vm724_vm6, %v2744_v4, 0.0  ;;  %p2428_p11 = scmp.ne.s32.totalorder %s3165_s7, %s2427_s12  ;;  %p2435_p1 = scmp.lt.s32.totalorder %s2433_s22, %s2427_s12 }
  0x20   : > { %2292 = vmatpush3.bf16.msra.mxu0 %v2289_v45  ;;  %2173 = vmatprep.mubr.msk.f32.mxu0 %vm454_vm0, %v1190_v1  ;;  %v446_v36 = vsel %vm3221_vm7, %v2647_v28, 0.0  ;;  %v2814_v38 = vadd.s32 1, %v308_v21  ;;  %v315_v27 = vand.u32 7, %v267_v23  ;;  %v1194_v41 = vsel %vm725_vm9, %v2773_v13, 0.0  ;;  %v237_v23 = vld [vmem:[%s3216_s2 + $0x68] sm:$0xff] }
  0x21   : > { %2294 = vmatprep.subr.bf16.mxu0 %v2293_v62  ;;  %2260 = vmatpush3.bf16.msra.mxu1 %v2257_v46  ;;  %v447_v42 = vsel %vm374_vm8, %v2780_v16, 0.0  ;;  %v2824_v45 = vsel %vm754_vm1, %v766_v63, %v768_v18  ;;  %v268_v46 = vadd.s32 56, %v2602_v14  ;;  %v448_v47 = vsel %vm375_vm10, %v2798_v25, 0.0  ;;  %v253_v63 = vld [vmem:[%s3216_s2 + $0xe8] sm:$0xff]  ;;  %p2429_p12 = pnand %p2428_p11, %p2558_p5  ;;  %p2436_p2 = por %p2435_p1, %p2434_p0 }
  0x22   : > { %2080 = vmatmul.mubr.msk.f32.gmra.mrb[4].mxu1 %vm454_vm0, %v2669_v39  ;;  %2262 = vmatprep.subr.bf16.mxu1 %v2757_v7  ;;  %vm3220_vm11 = vcmp.lt.s32.totalorder %v2814_v38, 8  ;;  %v2831_v48 = vadd.s32 1, %v315_v27  ;;  %v2834_v49 = vsel %vm754_vm1, %v768_v18, %v770_v24  ;;  %vm376_vm12 = vcmp.ge.s32.totalorder %v2802_v26, 0 }
  0x23   : > { %2174 = vmatmul.mubr.msk.f32.vlgmr.msra.gmra.mrb[0].mxu0 %vm454_vm0, %v1191_v2  ;;  %2082 = vmatprep.mubr.msk.f32.mxu1 %vm454_vm0, %v2692_v51  ;;  %v2843_v14 = vsel %vm421_vm5, %v426_v20, %v428_v31  ;;  %v322_v53 = vand.u32 7, %v268_v46  ;;  %v1195_v43 = vsel %vm3220_vm11, %v2824_v45, 0.0  ;;  %v430_v59 = vrot.slane %v2665_v37, 7  ;;  %p2430_p13 = pneg %p2429_p12 }
  0x24   : > { %2296 = vmatpush3.bf16.msra.mxu0 %v2293_v62  ;;  %2176 = vmatprep.mubr.msk.f32.mxu0 %vm454_vm0, %v1192_v6  ;;  %v252_v62 = vld [vmem:[%s3216_s2 + $0xe0] sm:$0xff]  ;;  %vm3219_vm13 = vcmp.lt.s32.totalorder %v2831_v48, 8  ;;  %v2865_v1 = vadd.s32 4294967295, %v308_v21  ;;  %v2872_v6 = vsel %vm754_vm1, %v770_v24, %v2680_v44  ;;  %vm377_vm14 = vcmp.ge.s32.totalorder %v2847_v60, 0 }
  0x25   : > { %2298 = vmatprep.subr.bf16.mxu0 %v2297_v22  ;;  %v2868_v2 = vadd.s32 1, %v322_v53  ;;  %v432_v10 = vrot.slane %v2669_v39, 7  ;;  %v1196_v11 = vsel %vm3219_vm13, %v2834_v49, 0.0  ;;  %v2880_v17 = vsel %vm421_vm5, %v428_v31, %v430_v59  ;;  %p2437_p3 = pnand %p2436_p2, %p2430_p13 }
  0x26   : > { %2083 = vmatmul.mubr.msk.f32.gmra.mrb[6].mxu1 %vm454_vm0, %v2741_v3  ;;  %v2265_v18 = vpack.c.bf16 %v235_v61, %v234_v50  ;;  %v2301_v20 = vpack.c.bf16 %v253_v63, %v252_v62  ;;  %v2884_v21 = vadd.s32 4294967295, %v315_v27  ;;  %v449_v24 = vsel %vm376_vm12, %v2843_v14, 0.0  ;;  %v254_v50 = vld [vmem:[%s3216_s2 + $0xf0] sm:$0xff] }
  0x27   : > { %2177 = vmatmul.mubr.msk.f32.gmra.mrb[2].mxu0 %vm454_vm0, %v1193_v33  ;;  %2093 = vmatprep.mubr.msk.f32.mxu1 %vm454_vm0, %v446_v36  ;;  %vm728_vm15 = vcmp.lt.s32.totalorder %v2868_v2, 8  ;;  %v450_v31 = vsel %vm377_vm14, %v2880_v17, 0.0  ;;  %vm378_vm13 = vcmp.ge.s32.totalorder %v2865_v1, 0  ;;  %v434_v33 = vrot.slane %v2692_v51, 7 }
  0x28   : > { %2179 = vmatprep.mubr.msk.f32.mxu0 %vm454_vm0, %v1194_v41  ;;  %2300 = vmatpush3.bf16.msra.mxu0 %v2297_v22  ;;  %v236_v22 = vld [vmem:[%s3216_s2 + $0x60] sm:$0xff]  ;;  %v2908_v36 = vsel %vm421_vm5, %v430_v59, %v432_v10  ;;  %v2910_v27 = vadd.s32 4294967295, %v322_v53  ;;  %v436_v41 = vrot.slane %v2741_v3, 7  ;;  %vm379_vm11 = vcmp.ge.s32.totalorder %v2884_v21, 0  ;;  %v255_v53 = vld [vmem:[%s3216_s2 + $0xf8] sm:$0xff] }
  0x29   : > { %2302 = vmatprep.subr.bf16.mxu0 %v2301_v20  ;;  %v2918_v46 = vsel %vm421_vm5, %v432_v10, %v434_v33  ;;  %v451_v61 = vsel %vm378_vm13, %v2908_v36, 0.0  ;;  %v1338_v62 = vsel %vm374_vm8, %v2843_v14, 0.0  ;;  %v1339_v59 = vsel %vm375_vm10, %v2880_v17, 0.0 }
  0x2a   : > { %2094 = vmatmul.mubr.msk.f32.vlgmr.msra.gmra.mrb[0].mxu1 %vm454_vm0, %v447_v42  ;;  %v1337_v42 = vsel %vm3221_vm7, %v2798_v25, 0.0  ;;  %v452_v63 = vsel %vm379_vm11, %v2918_v46, 0.0  ;;  %vm380_vm7 = vcmp.ge.s32.totalorder %v2910_v27, 0  ;;  %v757_v10 = vsel %vm754_vm1, %v2680_v44, %v756_v35 }
  0x2b   : > { %2180 = vmatmul.mubr.msk.f32.gmra.mrb[4].mxu0 %vm454_vm0, %v1195_v43  ;;  %2264 = vmatpush3.bf16.msra.mxu1 %v2757_v7  ;;  %v1197_v7 = vsel %vm728_vm15, %v2872_v6, 0.0  ;;  %v2941_v43 = vsel %vm421_vm5, %v434_v33, %v436_v41  ;;  %v1340_v35 = vsel %vm376_vm12, %v2908_v36, 0.0  ;;  %vm3224_vm1 = vcmp.lt.s32.totalorder %v2814_v38, 8 }
  0x2c   : > { %2096 = vmatprep.mubr.msk.f32.mxu1 %vm454_vm0, %v448_v47  ;;  %2182 = vmatprep.mubr.msk.f32.mxu0 %vm454_vm0, %v1196_v11  ;;  %v2269_v47 = vpack.c.bf16 %v237_v23, %v236_v22  ;;  %v2305_v11 = vpack.c.bf16 %v255_v53, %v254_v50  ;;  %v256_v22 = vld [vmem:[%s3216_s2 + $0x100] sm:$0xff]  ;;  %v257_v23 = vld [vmem:[%s3216_s2 + $0x108] sm:$0xff]  ;;  %v453_v29 = vsel %vm380_vm7, %v2941_v43, 0.0  ;;  %v781_v50 = vsel %vm722_vm3, %v2703_v54, 0.0 }
  0x2d   : > { %2266 = vmatprep.subr.bf16.mxu1 %v2265_v18  ;;  %v2309_v33 = vpack.c.bf16 %v257_v23, %v256_v22  ;;  %v782_v53 = vsel %vm723_vm4, %v2706_v55, 0.0  ;;  %v787_v23 = vsel %vm728_vm15, %v2834_v49, 0.0  ;;  %v932_v0 = vsel %vm377_vm14, %v2908_v36, 0.0  ;;  %v1759_v36 = vld [vmem:[%s3129_s29 + $0x10] sm:$0xff] }
  0x2e   : > { %2097 = vmatmul.mubr.msk.f32.gmra.mrb[2].mxu1 %vm454_vm0, %v449_v24  ;;  %v780_v24 = vsel %vm721_vm2, %v757_v10, 0.0  ;;  %v259_v10 = vld [vmem:[%s3216_s2 + $0x118] sm:$0xff]  ;;  %v1598_v19 = vsel %vm722_vm3, %v2716_v57, 0.0  ;;  %v934_v34 = vsel %vm379_vm11, %v2941_v43, 0.0  ;;  %v1601_v52 = vsel %vm725_vm9, %v2824_v45, 0.0 }
  0x2f   : > { %2183 = vmatmul.mubr.msk.f32.gmra.mrb[6].mxu0 %vm454_vm0, %v1197_v7  ;;  %2099 = vmatprep.mubr.msk.f32.mxu1 %vm454_vm0, %v450_v31  ;;  %v1341_v31 = vsel %vm377_vm14, %v2918_v46, 0.0 }
  0x30   : > { %2193 = vmatprep.mubr.msk.f32.mxu0 %vm454_vm0, %v1337_v42  ;;  %2268 = vmatpush3.bf16.msra.mxu1 %v2265_v18  ;;  %v925_v18 = vrot.slane %v2766_v12, 7  ;;  %v239_v42 = vld [vmem:[%s3216_s2 + $0x78] sm:$0xff] }
  0x31   : > { %2270 = vmatprep.subr.bf16.mxu1 %v2269_v47 }
  0x32   : > { %2100 = vmatmul.mubr.msk.f32.gmra.mrb[4].mxu1 %vm454_vm0, %v451_v61  ;;  %v2974_v7 = vsel %vm421_vm5, %v436_v41, %v925_v18  ;;  %v1342_v41 = vsel %vm378_vm13, %v2941_v43, 0.0  ;;  %v1335_v54 = vsel %vm421_vm5, %v925_v18, %v2647_v28  ;;  %v784_v28 = vsel %vm725_vm9, %v2744_v4, 0.0 }
  0x33   : > { %2194 = vmatmul.mubr.msk.f32.vlgmr.msra.gmra.mrb[0].mxu0 %vm454_vm0, %v1338_v62  ;;  %2102 = vmatprep.mubr.msk.f32.mxu1 %vm454_vm0, %v452_v63  ;;  %v1343_v61 = vsel %vm379_vm11, %v2974_v7, 0.0  ;;  %v783_v63 = vsel %vm724_vm6, %v2716_v57, 0.0  ;;  %vm3225_vm5 = vcmp.lt.s32.totalorder %v2831_v48, 8  ;;  %v935_v40 = vsel %vm380_vm7, %v2974_v7, 0.0  ;;  %v1762_v7 = vld [vmem:[%s3129_s29 + $0x28] sm:$0xff] }
  0x34   : > { %2304 = vmatpush3.bf16.msra.mxu0 %v2301_v20  ;;  %2196 = vmatprep.mubr.msk.f32.mxu0 %vm454_vm0, %v1339_v59  ;;  %v238_v20 = vld [vmem:[%s3216_s2 + $0x70] sm:$0xff]  ;;  %v1344_v59 = vsel %vm380_vm7, %v1335_v54, 0.0  ;;  %v786_v18 = vsel %vm3225_vm5, %v2824_v45, 0.0  ;;  %vm3228_vm3 = vmmov %vm3225_vm5  ;;  %v1757_v45 = vld [vmem:[%s3129_s29] sm:$0xff] }
  0x35   : > { %2306 = vmatprep.subr.bf16.mxu0 %v2305_v11  ;;  %v2273_v62 = vpack.c.bf16 %v239_v42, %v238_v20  ;;  %v1603_v56 = vsel %vm3228_vm3, %v2872_v6, 0.0  ;;  %v1760_v6 = vld [vmem:[%s3129_s29 + $0x18] sm:$0xff] }
  0x36   : > { %2103 = vmatmul.mubr.msk.f32.gmra.mrb[6].mxu1 %vm454_vm0, %v453_v29 }
  0x37   : > { %2197 = vmatmul.mubr.msk.f32.gmra.mrb[2].mxu0 %vm454_vm0, %v1340_v35  ;;  %2113 = vmatprep.mubr.msk.f32.mxu1 %vm454_vm0, %v780_v24 }
  0x38   : > { %2199 = vmatprep.mubr.msk.f32.mxu0 %vm454_vm0, %v1341_v31  ;;  %2308 = vmatpush3.bf16.msra.mxu0 %v2305_v11  ;;  %v785_v11 = vsel %vm3224_vm1, %v2773_v13, 0.0  ;;  %vm3226_vm1 = vcmp.ge.s32.totalorder %v2718_v58, 0  ;;  %v931_v58 = vsel %vm376_vm12, %v2880_v17, 0.0 }
  0x39   : > { %2310 = vmatprep.subr.bf16.mxu0 %v2309_v33 }
  0x3a   : > { %2114 = vmatmul.mubr.msk.f32.vlgmr.msra.gmra.mrb[0].mxu1 %vm454_vm0, %v781_v50  ;;  %v1761_v50 = vld [vmem:[%s3129_s29 + $0x20] sm:$0xff] }
  0x3b   : > { %2200 = vmatmul.mubr.msk.f32.gmra.mrb[4].mxu0 %vm454_vm0, %v1342_v41  ;;  %2272 = vmatpush3.bf16.msra.mxu1 %v2269_v47  ;;  %v258_v47 = vld [vmem:[%s3216_s2 + $0x110] sm:$0xff] }
  0x3c   : > { %2116 = vmatprep.mubr.msk.f32.mxu1 %vm454_vm0, %v782_v53  ;;  %2202 = vmatprep.mubr.msk.f32.mxu0 %vm454_vm0, %v1343_v61  ;;  %v2313_v22 = vpack.c.bf16 %v259_v10, %v258_v47  ;;  %v1764_v47 = vld [vmem:[%s3129_s29 + $0x38] sm:$0xff] }
  0x3d   : > { %2274 = vmatprep.subr.bf16.mxu1 %v2273_v62 }
  0x3e   : > { %2117 = vmatmul.mubr.msk.f32.gmra.mrb[2].mxu1 %vm454_vm0, %v783_v63 }
  0x3f   : > { %2203 = vmatmul.mubr.msk.f32.gmra.mrb[6].mxu0 %vm454_vm0, %v1344_v59  ;;  %2119 = vmatprep.mubr.msk.f32.mxu1 %vm454_vm0, %v784_v28 }
  0x40   : > { %2213 = vmatprep.mubr.msk.f32.mxu0 %vm454_vm0, %v2653_v30  ;;  %2276 = vmatpush3.bf16.msra.mxu1 %v2273_v62  ;;  %v928_v30 = vsel %vm3226_vm1, %v2780_v16, 0.0  ;;  %v1597_v16 = vsel %vm721_vm2, %v2706_v55, 0.0  ;;  %vm3227_vm2 = vcmp.lt.s32.totalorder %v2814_v38, 8 }
  0x41   : > { %2317 = vmatprep.subr.bf16.mxu1 %v2588_v9  ;;  %v1602_v55 = vsel %vm3227_vm2, %v2834_v49, 0.0 }
  0x42   : > { %2120 = vmatmul.mubr.msk.f32.gmra.mrb[4].mxu1 %vm454_vm0, %v785_v11 }
  0x43   : > { %2214 = vmatmul.mubr.msk.f32.vlgmr.msra.gmra.mrb[0].mxu0 %vm454_vm0, %v2656_v32  ;;  %2122 = vmatprep.mubr.msk.f32.mxu1 %vm454_vm0, %v786_v18  ;;  %v929_v32 = vsel %vm374_vm8, %v2798_v25, 0.0  ;;  %v1758_v25 = vld [vmem:[%s3129_s29 + $0x8] sm:$0xff]  ;;  %v1763_v18 = vld [vmem:[%s3129_s29 + $0x30] sm:$0xff] }
  0x44   : > { %2312 = vmatpush3.bf16.msra.mxu0 %v2309_v33  ;;  %2216 = vmatprep.mubr.msk.f32.mxu0 %vm454_vm0, %v2665_v37  ;;  %v930_v37 = vsel %vm375_vm10, %v2843_v14, 0.0 }
  0x45   : > { %2314 = vmatprep.subr.bf16.mxu0 %v2313_v22 }
  0x46   : > { %2123 = vmatmul.mubr.msk.f32.gmra.mrb[6].mxu1 %vm454_vm0, %v787_v23 }
  0x47   : > { %2217 = vmatmul.mubr.msk.f32.gmra.mrb[2].mxu0 %vm454_vm0, %v2669_v39  ;;  %2133 = vmatprep.mubr.msk.f32.mxu1 %vm454_vm0, %v928_v30 }
  0x48   : > { %2219 = vmatprep.mubr.msk.f32.mxu0 %vm454_vm0, %v2692_v51  ;;  %2316 = vmatpush3.bf16.msra.mxu0 %v2313_v22 }
  0x4a   : > { %2134 = vmatmul.mubr.msk.f32.vlgmr.msra.gmra.mrb[0].mxu1 %vm454_vm0, %v929_v32 }
  0x4b   : > { %2220 = vmatmul.mubr.msk.f32.gmra.mrb[4].mxu0 %vm454_vm0, %v2741_v3  ;;  %2319 = vmatpush3.bf16.msra.mxu1 %v2588_v9  ;;  %v933_v9 = vsel %vm378_vm13, %v2918_v46, 0.0 }
  0x4c   : > { %2136 = vmatprep.mubr.msk.f32.mxu1 %vm454_vm0, %v930_v37  ;;  %2222 = vmatprep.mubr.msk.f32.mxu0 %vm454_vm0, %v2766_v12 }
  0x4d   : > { %2318 = vmatprep.subr.bf16.mxu1 %v2604_v15 }
  0x4e   : > { %2137 = vmatmul.mubr.msk.f32.gmra.mrb[2].mxu1 %vm454_vm0, %v931_v58 }
  0x4f   : > { %2223 = vmatmul.mubr.f32.gmra.mrb[6].mxu0 %v2491_v8  ;;  %2139 = vmatprep.mubr.msk.f32.mxu1 %vm454_vm0, %v932_v0  ;;  %v1599_v8 = vsel %vm723_vm4, %v2744_v4, 0.0 }
  0x50   : > { %2233 = vmatprep.mubr.msk.f32.mxu0 %vm454_vm0, %v1597_v16  ;;  %2320 = vmatpush3.bf16.msra.mxu1 %v2604_v15  ;;  %v1600_v15 = vsel %vm724_vm6, %v2773_v13, 0.0 }
  0x52   : > { %2140 = vmatmul.mubr.msk.f32.gmra.mrb[4].mxu1 %vm454_vm0, %v933_v9 }
  0x53   : > { %2234 = vmatmul.mubr.msk.f32.vlgmr.msra.gmra.mrb[0].mxu0 %vm454_vm0, %v1598_v19  ;;  %2142 = vmatprep.mubr.msk.f32.mxu1 %vm454_vm0, %v934_v34 }
  0x54   : > { %2236 = vmatprep.mubr.msk.f32.mxu0 %vm454_vm0, %v1599_v8 }
  0x56   : > { %2143 = vmatmul.mubr.msk.f32.gmra.mrb[6].mxu1 %vm454_vm0, %v935_v40 }
  0x57   : > { %2237 = vmatmul.mubr.msk.f32.gmra.mrb[2].mxu0 %vm454_vm0, %v1600_v15  ;;  %2159 = vmatprep.mubr.msk.f32.mxu1 %vm454_vm0, %v2669_v39  ;;  %v1604_v39 = vsel %vm728_vm15, %v2680_v44, 0.0 }
  0x58   : > { %2239 = vmatprep.mubr.msk.f32.mxu0 %vm454_vm0, %v1601_v52 }
  0x5a   : > { %2160 = vmatmul.mubr.msk.f32.vlgmr.msra.gmra.mrb[4].mxu1 %vm454_vm0, %v2692_v51 }
  0x5b   : > { %2240 = vmatmul.mubr.msk.f32.gmra.mrb[4].mxu0 %vm454_vm0, %v1602_v55  ;;  %2162 = vmatprep.mubr.msk.f32.mxu1 %vm454_vm0, %v2741_v3  ;;  %v1948_v3 = vld [vmem:[%s3217_s3] ss:$0 sm:$0xff] }
  0x5c   : > { %2242 = vmatprep.mubr.msk.f32.mxu0 %vm454_vm0, %v1603_v56 }
  0x5e   : > { %2163 = vmatmul.mubr.msk.f32.gmra.mrb[6].mxu1 %vm454_vm0, %v2766_v12 }
  0x5f   : > { %2243 = vmatmul.mubr.msk.f32.gmra.mrb[6].mxu0 %vm454_vm0, %v1604_v39 }
 0x11d   : > { %v2135_v57 = vpop.f32.mrb[0].mxu1 }
 0x11e   : > { %v1026_v4 = vpop.f32.mrb[1].mxu1 }
 0x121   : > { %v2138_v5 = vpop.f32.mrb[2].mxu1 }
 0x122   : > { %v1036_v51 = vpop.f32.mrb[3].mxu1 }
 0x126   : > { %v2235_v44 = vpop.f32.mrb[0].mxu0 }
 0x127   : > { %v2321_v12 = vadd.f32 %v2235_v44, %v2135_v57  ;;  %v1695_v13 = vpop.f32.mrb[1].mxu0 }
 0x128   : > { %v2322_v26 = vadd.f32 %v1695_v13, %v1026_v4 }
 0x129   : > { %v1750_v38 = vadd.f32 %v2321_v12, %v1948_v3 }
 0x12a   : > { %v1749_v48 = vadd.f32 %v2322_v26, %v1948_v3  ;;  %v2238_v49 = vpop.f32.mrb[2].mxu0 }
 0x12b   : > { %v1766_v14 = vadd.f32 %v1758_v25, %v1750_v38  ;;  %v2323_v60 = vadd.f32 %v2238_v49, %v2138_v5  ;;  %v1705_v1 = vpop.f32.mrb[3].mxu0 }
 0x12c   : > { %v1765_v2 = vadd.f32 %v1757_v45, %v1749_v48  ;;  %v2324_v17 = vadd.f32 %v1705_v1, %v1036_v51 }
 0x12d   : > { %1774 = vst.msk [vmem:[%s3139_s23 + $0x8] sm:$0xff] %vm454_vm0, %v1766_v14  ;;  %v1752_v21 = vadd.f32 %v2323_v60, %v1948_v3  ;;  %v2161_v27 = vpop.f32.mrb[4].mxu1 }
 0x12e   : > { %1773 = vst.msk [vmem:[%s3139_s23] sm:$0xff] %vm454_vm0, %v1765_v2  ;;  %v1751_v46 = vadd.f32 %v2324_v17, %v1948_v3  ;;  %v2241_v43 = vpop.f32.mrb[4].mxu0  ;;  %v1161_v29 = vpop.f32.mrb[5].mxu1 }
 0x12f   : > { %v1768_v35 = vadd.f32 %v1760_v6, %v1752_v21  ;;  %v2325_v24 = vadd.f32 %v2241_v43, %v2161_v27  ;;  %v1715_v31 = vpop.f32.mrb[5].mxu0 }
 0x130   : > { %v1767_v33 = vadd.f32 %v1759_v36, %v1751_v46  ;;  %v2326_v20 = vadd.f32 %v1715_v31, %v1161_v29 }
 0x131   : > { %1776 = vst.msk [vmem:[%s3139_s23 + $0x18] sm:$0xff] %vm454_vm0, %v1768_v35  ;;  %v1754_v42 = vadd.f32 %v2325_v24, %v1948_v3  ;;  %v2164_v41 = vpop.f32.mrb[6].mxu1 }
 0x132   : > { %1775 = vst.msk [vmem:[%s3139_s23 + $0x10] sm:$0xff] %vm454_vm0, %v1767_v33  ;;  %v1753_v53 = vadd.f32 %v2326_v20, %v1948_v3  ;;  %v2244_v61 = vpop.f32.mrb[6].mxu0  ;;  %v1171_v54 = vpop.f32.mrb[7].mxu1 }
 0x133   : > { %v1770_v62 = vadd.f32 %v1762_v7, %v1754_v42  ;;  %v2327_v63 = vadd.f32 %v2244_v61, %v2164_v41  ;;  %v1725_v59 = vpop.f32.mrb[7].mxu0 }
 0x134   : > { %v1769_v28 = vadd.f32 %v1761_v50, %v1753_v53  ;;  %v2328_v10 = vadd.f32 %v1725_v59, %v1171_v54 }
 0x135   : > { %1778 = vst.msk [vmem:[%s3139_s23 + $0x28] sm:$0xff] %vm454_vm0, %v1770_v62  ;;  %v1756_v11 = vadd.f32 %v2327_v63, %v1948_v3 }
 0x136   : > { %1777 = vst.msk [vmem:[%s3139_s23 + $0x20] sm:$0xff] %vm454_vm0, %v1769_v28  ;;  %v1755_v22 = vadd.f32 %v2328_v10, %v1948_v3 }
 0x137   : > { %v1772_v23 = vadd.f32 %v1764_v47, %v1756_v11 }
 0x138   : > { %v1771_v30 = vadd.f32 %v1763_v18, %v1755_v22 }
 0x139   : > { %1780 = vst.msk [vmem:[%s3139_s23 + $0x38] sm:$0xff] %vm454_vm0, %v1772_v23 }
 0x13a   : > { %1779 = vst.msk [vmem:[%s3139_s23 + $0x30] sm:$0xff] %vm454_vm0, %v1771_v30 }
 0x13b   : > { %2440 = shalt.err (!%p2437_p3)
}
 0x13c   : > { %s2441_s27 = scalar_lea.hbm %s3163_s11, 1024  ;;  %s2445_s29 = scalar_lea.hbm %s3218_s4, 2048 }
 0x13d   : > { %p2442_p4 = scmp.ne.s32.totalorder %s3163_s11, %s2441_s27  ;;  %p2446_p9 = scmp.lt.u32.totalorder %s3163_s11, %s3218_s4 }
 0x13e   : > { %p2447_p10 = scmp.lt.u32.totalorder %s2445_s29, %s2441_s27  ;;  %p2449_p12 = scmp.lt.u32.totalorder %s2441_s27, %s3163_s11 }
 0x13f   : > { %p2443_p7 = pnand %p2442_p4, %p2558_p5 }
 0x140   : > { %p2448_p11 = por %p2447_p10, %p2446_p9 }
 0x141   : > { %p2444_p8 = pneg %p2443_p7 }
 0x142   : > { %p2450_p13 = por %p2449_p12, %p2448_p11 }
 0x144   : > { %p2451_p0 = pnand %p2450_p13, %p2444_p8 }
 0x146   : > { %2454 = shalt.err (!%p2451_p0)
}
 0x147   : > { %s2493_s6 = smov 128   ;;  %s2494_s23 = smov 8  }
 0x148   : > { %2385 = dma.vmem_to_hbm [thread:$0]  (%p2558_p5), %s3165_s7, 1024, %s3163_s11, %s3173_s19, %s2493_s6, %s2493_s6, %s2494_s23  }
 0x149 PF: > { %p2391_p1 = scmp.ge.s32.totalorder %s2489_s18, 2  ;;  %s1810_s9 = sand.u32 1, %s2477_s15  }
 0x14a   : > { %s1811_s8 = scalar_lea.sflag [#allocation3], %s1810_s9 }
 0x14b   : > { %p2388_p2 = pnand %p2391_p1, %p2562_p6 }
 0x14d   : > { %2472 = dma.done.wait (!%p2388_p2), %s1811_s8, 1024  }
 0x14e   : > { %2474 = vsyncadd (!%p2388_p2), %s1811_s8, 4294966272  ;;  %p14_p3 = scmp.ge.s32.totalorder %s2545_s21, 4   ;;  %s3229_s15 = smov %s2481_s16 }
 0x14f   : > { %s3230_s16 = smov %s2485_s17  ;;  %s3231_s17 = smov %s2556_s24 }
 0x150   : > { %s3232_s18 = smov %s2545_s21  ;;  %16 = sbr.rel (!%p14_p3) target bundleno = 3 (0x3), region = 74 }
 0x157   :  { %1816 = vsyncpa [#allocation3], 1 }
 0x158   :  { %1818 = vsyncpa [#allocation3 + $0x1], 1 }

</bundles_post_ra>
